<compile_context>
chip_gen: v7x
topology: tpu7x:2x2x1
jax: 0.10.0
libtpu: 0.0.40
codegen_flags: <defaults>
</compile_context>

<pallas_src>
import functools

import jax
import jax.numpy as jnp
import numpy as np
from jax.experimental import pallas as pl
from jax.experimental.pallas import tpu as pltpu


# ----------------------------- Kernel A: conv1 + conv2 -----------------------------

def _conv_kernel(cols1_ref, w1_ref, b1_ref, g_ref, w2_ref, b2_ref, o_ref):
    # cols1: (B*64, 9) bf16   w1: (9, 32) bf16   b1: (1, 32) f32
    # g:     (4, B*49, B*64) bf16  0/1 gather matrices (one per conv2 tap)
    # w2:    (4, 32, 64) bf16      b2: (1, 64) f32
    # o:     (B*49, 64) bf16       rows ordered b*49 + h*7 + w  (NHWC flatten)
    c1 = jnp.dot(cols1_ref[...], w1_ref[...], preferred_element_type=jnp.float32)
    c1 = jnp.maximum(c1 + b1_ref[...], 0.0).astype(jnp.bfloat16)   # (B*64, 32), stays in VMEM

    m2, cout = o_ref.shape
    acc = jnp.zeros((m2, cout), jnp.float32)
    for t in range(4):                                             # conv2 taps, unrolled
        # 0/1 gather in bf16 is exact; accumulation is f32.
        patch = jnp.dot(g_ref[t], c1, preferred_element_type=jnp.float32)   # (B*49, 32)
        acc = acc + jnp.dot(patch.astype(jnp.bfloat16), w2_ref[t],
                            preferred_element_type=jnp.float32)
    o_ref[...] = jnp.maximum(acc + b2_ref[...], 0.0).astype(o_ref.dtype)


def conv_fused(cols1, w1, b1, g, w2, b2):
    m2 = g.shape[1]
    cout = w2.shape[-1]
    return pl.pallas_call(
        _conv_kernel,
        out_shape=jax.ShapeDtypeStruct((m2, cout), jnp.bfloat16),
        grid_spec=pltpu.PrefetchScalarGridSpec(
            num_scalar_prefetch=0,
            grid=(1,),
            in_specs=[
                pl.BlockSpec(cols1.shape, lambda i: (0, 0)),
                pl.BlockSpec(w1.shape, lambda i: (0, 0)),
                pl.BlockSpec(b1.shape, lambda i: (0, 0)),
                pl.BlockSpec(g.shape, lambda i: (0, 0, 0)),
                pl.BlockSpec(w2.shape, lambda i: (0, 0, 0)),
                pl.BlockSpec(b2.shape, lambda i: (0, 0)),
            ],
            out_specs=pl.BlockSpec((m2, cout), lambda i: (0, 0)),
        ),
        compiler_params=pltpu.CompilerParams(dimension_semantics=("arbitrary",)),
    )(cols1, w1, b1, g, w2, b2)


# ------------------------------ Kernel B: fc1 + fc2 --------------------------------

def _fc_kernel(act_ref, wf1_ref, bf1_ref, wf2_ref, o_ref):
    # act:  (B, 3136) bf16 (resident across tiles)
    # wf1:  (3136, TN) bf16  -- one contiguous HBM slab per grid step
    # bf1:  (1, TN) f32
    # wf2:  (TN, N2p) bf16   -- contiguous row block
    # o:    (B, N2p) f32     -- this tile's PARTIAL fc2 (bias + ReLU in wrapper after sum)
    h = jnp.dot(act_ref[...], wf1_ref[...], preferred_element_type=jnp.float32)
    h = jnp.maximum(h + bf1_ref[...], 0.0)                         # fc1 tile + ReLU
    o_ref[...] = jnp.dot(h.astype(wf2_ref.dtype), wf2_ref[...],
                         preferred_element_type=jnp.float32)


def fc_fused(act, wf1_t, bf1, wf2, *, vmem_limit_bytes=28 * 1024 * 1024):
    b, k1 = act.shape
    nb, k1_w, tn = wf1_t.shape
    assert k1 == k1_w, (k1, k1_w)
    n2 = wf2.shape[1]
    return pl.pallas_call(
        _fc_kernel,
        out_shape=jax.ShapeDtypeStruct((nb, b, n2), jnp.float32),
        grid_spec=pltpu.PrefetchScalarGridSpec(
            num_scalar_prefetch=0,
            grid=(nb,),
            in_specs=[
                pl.BlockSpec((b, k1), lambda j: (0, 0)),             # activation, resident
                pl.BlockSpec((None, k1, tn), lambda j: (j, 0, 0)),   # wf1 contiguous tile
                pl.BlockSpec((1, tn), lambda j: (0, j)),             # bf1 tile
                pl.BlockSpec((tn, n2), lambda j: (j, 0)),            # wf2 row block (contiguous)
            ],
            out_specs=pl.BlockSpec((None, b, n2), lambda j: (j, 0, 0)),
        ),
        compiler_params=pltpu.CompilerParams(
            dimension_semantics=("parallel",),        # splits weight stream across TCs on v7x
            vmem_limit_bytes=vmem_limit_bytes),
    )(act, wf1_t, bf1, wf2)


# ------------------------------ wrapper-side glue -----------------------------------

def conv1_patches(x_nchw, k=3):
    """im2col of the raw input only (B*1*n*n floats).  Rows: b*oh*oh + h*oh + w."""
    x = x_nchw[:, 0, :, :]                                     # (B, n, n)
    batch = x.shape[0]
    oh = x.shape[1] - k + 1
    taps = [x[:, di:di + oh, dj:dj + oh] for di in range(k) for dj in range(k)]
    cols = jnp.stack(taps, axis=-1)                            # (B, oh, oh, k*k)
    return cols.reshape(batch * oh * oh, k * k).astype(jnp.bfloat16)


def _conv2_gather_matrices(batch, oh1, oh2):
    """0/1 matrices mapping the flat conv1 activation rows to conv2 patch rows."""
    g = np.zeros((4, batch * oh2 * oh2, batch * oh1 * oh1), np.float32)
    for t in range(4):
        di, dj = divmod(t, 2)
        for b in range(batch):
            for h in range(oh2):
                for w in range(oh2):
                    dst = b * oh2 * oh2 + h * oh2 + w
                    src = b * oh1 * oh1 + (h + di) * oh1 + (w + dj)
                    g[t, dst, src] = 1.0
    return g


def prepare_params(params, *, batch, n=10, tn=1024):
    """One-time conversion of canonical (PyTorch-layout) params into kernel layouts."""
    oh1, oh2 = n - 2, n - 3
    flat, nh = params["wf1"].shape                             # (3136, 2048)

    w1 = params["w1"].reshape(9, 32).astype(jnp.bfloat16)      # HWIO -> (tap, cout)
    b1 = params["b1"].reshape(1, 32)
    w2 = params["w2"].reshape(4, 32, 64).astype(jnp.bfloat16)  # (tap, cin, cout)
    b2 = params["b2"].reshape(1, 64)
    g = jnp.asarray(_conv2_gather_matrices(batch, oh1, oh2), dtype=jnp.bfloat16)

    if nh % tn != 0:
        tn = nh                                                # fallback: single tile
    nb = nh // tn

    # fc1: permute rows from PyTorch NCHW flatten order (c*49+h*7+w) to our NHWC flatten
    # order (h*7*64 + w*64 + c), then repack column tiles tile-major (nb, flat, tn) so
    # each streamed tile is one contiguous slab in HBM; cast to bf16.
    wf1 = (params["wf1"].reshape(64, oh2, oh2, nh)
           .transpose(1, 2, 0, 3)
           .reshape(flat, nh)
           .reshape(flat, nb, tn)
           .transpose(1, 0, 2)
           .astype(jnp.bfloat16))                              # (nb, 3136, tn)
    bf1 = params["bf1"].reshape(1, nh)

    # fc2: zero-pad N 700 -> 768 (6*128) for lane-dense tiling; cast to bf16.
    n_out = params["wf2"].shape[1]
    n_pad = ((n_out + 127) // 128) * 128
    wf2 = jnp.pad(params["wf2"], ((0, 0), (0, n_pad - n_out))).astype(jnp.bfloat16)
    bf2 = jnp.pad(params["bf2"], (0, n_pad - n_out)).reshape(1, n_pad)

    return {"w1": w1, "b1": b1, "w2": w2, "b2": b2, "g": g,
            "wf1": wf1, "bf1": bf1, "wf2": wf2, "bf2": bf2}


@functools.partial(jax.jit, static_argnames=("n", "n_out"))
def net_full_forward(prep, x_nchw, *, n, n_out):
    batch = x_nchw.shape[0]
    oh2 = n - 3
    # g (and hence prep) is built for a fixed batch size -- fail loudly otherwise.
    assert prep["g"].shape[1] == batch * oh2 * oh2, (
        "prepare_params was built for a different batch size")

    cols1 = conv1_patches(x_nchw, 3)                                    # (B*64, 9) bf16
    act = conv_fused(cols1, prep["w1"], prep["b1"],
                     prep["g"], prep["w2"], prep["b2"])                 # (B*49, 64) bf16
    act = act.reshape(batch, -1)                                        # free reshape -> (B, 3136)
    partials = fc_fused(act, prep["wf1"], prep["bf1"], prep["wf2"])     # (nb, B, 768) f32
    # ReLU(h) makes fc2 exactly additive over hidden-dim tiles: sum partials, add bias.
    logits = jnp.sum(partials, axis=0) + prep["bf2"]
    return jnp.maximum(logits, 0.0)[:, :n_out]                          # drop fc2 padding


# --------------------------- canonical params & reference ---------------------------

def init_params(key, n=10, nb_piece=7):
    ks = jax.random.split(key, 8)

    def u(k, shape, fan_in):
        bound = 1.0 / np.sqrt(fan_in)
        return jax.random.uniform(k, shape, jnp.float32, -bound, bound)

    flat = 64 * (n - 3) * (n - 3)
    out = n * n * nb_piece
    return {
        "w1": u(ks[0], (3, 3, 1, 32), 9),
        "b1": u(ks[1], (32,), 9),
        "w2": u(ks[2], (2, 2, 32, 64), 2 * 2 * 32),
        "b2": u(ks[3], (64,), 2 * 2 * 32),
        "wf1": u(ks[4], (flat, 2048), flat),
        "bf1": u(ks[5], (2048,), flat),
        "wf2": u(ks[6], (2048, out), 2048),
        "bf2": u(ks[7], (out,), 2048),
    }


def reference_forward(params, x_nchw):
    x = jnp.transpose(x_nchw, (0, 2, 3, 1))                    # NCHW -> NHWC
    batch = x.shape[0]

    def conv(inp, w, b):
        y = jax.lax.conv_general_dilated(
            inp, w, window_strides=(1, 1), padding="VALID",
            dimension_numbers=("NHWC", "HWIO", "NHWC"),
            precision=jax.lax.Precision.HIGHEST)
        return jnp.maximum(y + b, 0.0)

    y = conv(x, params["w1"], params["b1"])
    y = conv(y, params["w2"], params["b2"])
    y = jnp.transpose(y, (0, 3, 1, 2)).reshape(batch, -1)      # PyTorch NCHW flatten
    y = jnp.maximum(
        jnp.dot(y, params["wf1"], precision=jax.lax.Precision.HIGHEST) + params["bf1"], 0.0)
    y = jnp.maximum(
        jnp.dot(y, params["wf2"], precision=jax.lax.Precision.HIGHEST) + params["bf2"], 0.0)
    return y


# --------------------------------------- main ---------------------------------------

if __name__ == "__main__":
    n, nb_piece, B = 10, 7, 2
    key = jax.random.PRNGKey(0)
    pkey, xkey = jax.random.split(key)

    params = init_params(pkey, n, nb_piece)
    x = jax.random.normal(xkey, (B, 1, n, n), jnp.float32)     # NCHW, like PyTorch

    prep = prepare_params(params, batch=B, n=n, tn=1024)
    out = net_full_forward(prep, x, n=n, n_out=n * n * nb_piece)
    out = jax.block_until_ready(out)

    assert out.shape == (B, n * n * nb_piece), out.shape

    ref = reference_forward(params, x)
    if not np.allclose(np.asarray(out), np.asarray(ref), rtol=2e-2, atol=2e-2):
        max_err = np.max(np.abs(np.asarray(out) - np.asarray(ref)))
        raise AssertionError(f"Pallas output mismatch vs JAX reference (max abs err {max_err})")

    print("KERNEL_OK")
</pallas_src>

<mosaic_0001>
module attributes {stable_mosaic.version = 11 : i64} {
  func.func @_fc_kernel(%arg0: i32, %arg1: memref<2x3136xbf16, #tpu.memory_space<vmem>>, %arg2: memref<1x3136x1024xbf16, #tpu.memory_space<vmem>>, %arg3: memref<1x1024xf32, #tpu.memory_space<vmem>>, %arg4: memref<1024x768xbf16, #tpu.memory_space<vmem>>, %arg5: memref<1x2x768xf32, #tpu.memory_space<vmem>>) attributes {dimension_semantics = [#tpu.dimension_semantics<parallel>], iteration_bounds = array<i64: 2>, scalar_prefetch = 0 : i64, scratch_operands = 0 : i64, tpu.core_type = #tpu.core_type<tc>, window_params = [{pipeline_mode = #tpu.pipeline_mode<synchronous>, transform_indices = @transform_0, window_bounds = array<i64: 2, 3136>}, {transform_indices = @transform_1, window_bounds = array<i64: 1, 3136, 1024>}, {transform_indices = @transform_2, window_bounds = array<i64: 1, 1024>}, {transform_indices = @transform_3, window_bounds = array<i64: 1024, 768>}, {transform_indices = @transform_4, window_bounds = array<i64: 1, 2, 768>}]} {
    %c0 = arith.constant 0 : index
    %c0_0 = arith.constant 0 : index
    %0 = vector.load %arg1[%c0, %c0_0] : memref<2x3136xbf16, #tpu.memory_space<vmem>>, vector<2x3136xbf16>
    %c0_1 = arith.constant 0 : index
    %c0_2 = arith.constant 0 : index
    %c0_3 = arith.constant 0 : index
    %1 = vector.load %arg2[%c0_1, %c0_2, %c0_3] : memref<1x3136x1024xbf16, #tpu.memory_space<vmem>>, vector<1x3136x1024xbf16>
    %2 = vector.shape_cast %1 : vector<1x3136x1024xbf16> to vector<3136x1024xbf16>
    %cst = arith.constant dense<0.000000e+00> : vector<2x1024xf32>
    %3 = tpu.matmul %0, %2, %cst {dimension_numbers = #tpu.dot_dimension_numbers<[1], [0], [0], [1], [0, 0, 1, 1], [], []>} : vector<2x3136xbf16>, vector<3136x1024xbf16>, vector<2x1024xf32> -> vector<2x1024xf32>
    %c0_4 = arith.constant 0 : index
    %c0_5 = arith.constant 0 : index
    %4 = vector.load %arg3[%c0_4, %c0_5] : memref<1x1024xf32, #tpu.memory_space<vmem>>, vector<1x1024xf32>
    %5 = vector.broadcast %4 : vector<1x1024xf32> to vector<2x1024xf32>
    %6 = arith.addf %3, %5 : vector<2x1024xf32>
    %cst_6 = arith.constant 0.000000e+00 : f32
    %7 = vector.broadcast %cst_6 : f32 to vector<2x1024xf32>
    %8 = arith.maximumf %6, %7 : vector<2x1024xf32>
    %9 = arith.truncf %8 : vector<2x1024xf32> to vector<2x1024xbf16>
    %c0_7 = arith.constant 0 : index
    %c0_8 = arith.constant 0 : index
    %10 = vector.load %arg4[%c0_7, %c0_8] : memref<1024x768xbf16, #tpu.memory_space<vmem>>, vector<1024x768xbf16>
    %cst_9 = arith.constant dense<0.000000e+00> : vector<2x768xf32>
    %11 = tpu.matmul %9, %10, %cst_9 {dimension_numbers = #tpu.dot_dimension_numbers<[1], [0], [0], [1], [0, 0, 1, 1], [], []>} : vector<2x1024xbf16>, vector<1024x768xbf16>, vector<2x768xf32> -> vector<2x768xf32>
    %c0_10 = arith.constant 0 : index
    %c0_11 = arith.constant 0 : index
    %c0_12 = arith.constant 0 : index
    %12 = vector.load %arg5[%c0_10, %c0_11, %c0_12] : memref<1x2x768xf32, #tpu.memory_space<vmem>>, vector<1x2x768xf32>
    %13 = vector.shape_cast %12 : vector<1x2x768xf32> to vector<2x768xf32>
    %14 = vector.shape_cast %11 : vector<2x768xf32> to vector<1x2x768xf32>
    tpu.vector_store %arg5[%c0_10, %c0_11, %c0_12], %14 {strides = array<i32>} : memref<1x2x768xf32, #tpu.memory_space<vmem>>, vector<1x2x768xf32>,
    return
  }
  func.func @transform_0(%arg0: i32) -> (i32, i32) {
    %c0_i32 = arith.constant 0 : i32
    %c0_i32_0 = arith.constant 0 : i32
    %c0_i32_1 = arith.constant 0 : i32
    return %c0_i32, %c0_i32_0 : i32, i32
  }
  func.func @transform_1(%arg0: i32) -> (i32, i32, i32) {
    %c0_i32 = arith.constant 0 : i32
    %c0_i32_0 = arith.constant 0 : i32
    %c0_i32_1 = arith.constant 0 : i32
    return %arg0, %c0_i32, %c0_i32_0 : i32, i32, i32
  }
  func.func @transform_2(%arg0: i32) -> (i32, i32) {
    %c0_i32 = arith.constant 0 : i32
    %c0_i32_0 = arith.constant 0 : i32
    return %c0_i32, %arg0 : i32, i32
  }
  func.func @transform_3(%arg0: i32) -> (i32, i32) {
    %c0_i32 = arith.constant 0 : i32
    %c0_i32_0 = arith.constant 0 : i32
    return %arg0, %c0_i32 : i32, i32
  }
  func.func @transform_4(%arg0: i32) -> (i32, i32, i32) {
    %c0_i32 = arith.constant 0 : i32
    %c0_i32_0 = arith.constant 0 : i32
    %c0_i32_1 = arith.constant 0 : i32
    return %arg0, %c0_i32, %c0_i32_0 : i32, i32, i32
  }
}

module attributes {stable_mosaic.version = 11 : i64} {
  func.func @_conv_kernel(%arg0: i32, %arg1: memref<128x9xbf16, #tpu.memory_space<vmem>>, %arg2: memref<9x32xbf16, #tpu.memory_space<vmem>>, %arg3: memref<1x32xf32, #tpu.memory_space<vmem>>, %arg4: memref<4x98x128xbf16, #tpu.memory_space<vmem>>, %arg5: memref<4x32x64xbf16, #tpu.memory_space<vmem>>, %arg6: memref<1x64xf32, #tpu.memory_space<vmem>>, %arg7: memref<98x64xbf16, #tpu.memory_space<vmem>>) attributes {dimension_semantics = [#tpu.dimension_semantics<arbitrary>], iteration_bounds = array<i64: 1>, scalar_prefetch = 0 : i64, scratch_operands = 0 : i64, tpu.core_type = #tpu.core_type<tc>, window_params = [{pipeline_mode = #tpu.pipeline_mode<synchronous>, transform_indices = @transform_0, window_bounds = array<i64: 128, 9>}, {pipeline_mode = #tpu.pipeline_mode<synchronous>, transform_indices = @transform_1, window_bounds = array<i64: 9, 32>}, {pipeline_mode = #tpu.pipeline_mode<synchronous>, transform_indices = @transform_2, window_bounds = array<i64: 1, 32>}, {pipeline_mode = #tpu.pipeline_mode<synchronous>, transform_indices = @transform_3, window_bounds = array<i64: 4, 98, 128>}, {pipeline_mode = #tpu.pipeline_mode<synchronous>, transform_indices = @transform_4, window_bounds = array<i64: 4, 32, 64>}, {pipeline_mode = #tpu.pipeline_mode<synchronous>, transform_indices = @transform_5, window_bounds = array<i64: 1, 64>}, {pipeline_mode = #tpu.pipeline_mode<synchronous>, transform_indices = @transform_6, window_bounds = array<i64: 98, 64>}]} {
    %c0 = arith.constant 0 : index
    %c0_0 = arith.constant 0 : index
    %0 = vector.load %arg1[%c0, %c0_0] : memref<128x9xbf16, #tpu.memory_space<vmem>>, vector<128x9xbf16>
    %c0_1 = arith.constant 0 : index
    %c0_2 = arith.constant 0 : index
    %1 = vector.load %arg2[%c0_1, %c0_2] : memref<9x32xbf16, #tpu.memory_space<vmem>>, vector<9x32xbf16>
    %cst = arith.constant dense<0.000000e+00> : vector<128x32xf32>
    %2 = tpu.matmul %0, %1, %cst {dimension_numbers = #tpu.dot_dimension_numbers<[1], [0], [0], [1], [0, 0, 1, 1], [], []>} : vector<128x9xbf16>, vector<9x32xbf16>, vector<128x32xf32> -> vector<128x32xf32>
    %c0_3 = arith.constant 0 : index
    %c0_4 = arith.constant 0 : index
    %3 = vector.load %arg3[%c0_3, %c0_4] : memref<1x32xf32, #tpu.memory_space<vmem>>, vector<1x32xf32>
    %4 = vector.broadcast %3 : vector<1x32xf32> to vector<128x32xf32>
    %5 = arith.addf %2, %4 : vector<128x32xf32>
    %cst_5 = arith.constant 0.000000e+00 : f32
    %6 = vector.broadcast %cst_5 : f32 to vector<128x32xf32>
    %7 = arith.maximumf %5, %6 : vector<128x32xf32>
    %8 = arith.truncf %7 : vector<128x32xf32> to vector<128x32xbf16>
    %cst_6 = arith.constant 0.000000e+00 : f32
    %9 = vector.broadcast %cst_6 : f32 to vector<98x64xf32>
    %c0_7 = arith.constant 0 : index
    %c0_8 = arith.constant 0 : index
    %c0_9 = arith.constant 0 : index
    %10 = vector.load %arg4[%c0_7, %c0_8, %c0_9] : memref<4x98x128xbf16, #tpu.memory_space<vmem>>, vector<1x98x128xbf16>
    %11 = vector.shape_cast %10 : vector<1x98x128xbf16> to vector<98x128xbf16>
    %cst_10 = arith.constant dense<0.000000e+00> : vector<98x32xf32>
    %12 = tpu.matmul %11, %8, %cst_10 {dimension_numbers = #tpu.dot_dimension_numbers<[1], [0], [0], [1], [0, 0, 1, 1], [], []>} : vector<98x128xbf16>, vector<128x32xbf16>, vector<98x32xf32> -> vector<98x32xf32>
    %13 = arith.truncf %12 : vector<98x32xf32> to vector<98x32xbf16>
    %c0_11 = arith.constant 0 : index
    %c0_12 = arith.constant 0 : index
    %c0_13 = arith.constant 0 : index
    %14 = vector.load %arg5[%c0_11, %c0_12, %c0_13] : memref<4x32x64xbf16, #tpu.memory_space<vmem>>, vector<1x32x64xbf16>
    %15 = vector.shape_cast %14 : vector<1x32x64xbf16> to vector<32x64xbf16>
    %cst_14 = arith.constant dense<0.000000e+00> : vector<98x64xf32>
    %16 = tpu.matmul %13, %15, %cst_14 {dimension_numbers = #tpu.dot_dimension_numbers<[1], [0], [0], [1], [0, 0, 1, 1], [], []>} : vector<98x32xbf16>, vector<32x64xbf16>, vector<98x64xf32> -> vector<98x64xf32>
    %17 = arith.addf %9, %16 : vector<98x64xf32>
    %c1 = arith.constant 1 : index
    %c0_15 = arith.constant 0 : index
    %c0_16 = arith.constant 0 : index
    %18 = vector.load %arg4[%c1, %c0_15, %c0_16] : memref<4x98x128xbf16, #tpu.memory_space<vmem>>, vector<1x98x128xbf16>
    %19 = vector.shape_cast %18 : vector<1x98x128xbf16> to vector<98x128xbf16>
    %cst_17 = arith.constant dense<0.000000e+00> : vector<98x32xf32>
    %20 = tpu.matmul %19, %8, %cst_17 {dimension_numbers = #tpu.dot_dimension_numbers<[1], [0], [0], [1], [0, 0, 1, 1], [], []>} : vector<98x128xbf16>, vector<128x32xbf16>, vector<98x32xf32> -> vector<98x32xf32>
    %21 = arith.truncf %20 : vector<98x32xf32> to vector<98x32xbf16>
    %c1_18 = arith.constant 1 : index
    %c0_19 = arith.constant 0 : index
    %c0_20 = arith.constant 0 : index
    %22 = vector.load %arg5[%c1_18, %c0_19, %c0_20] : memref<4x32x64xbf16, #tpu.memory_space<vmem>>, vector<1x32x64xbf16>
    %23 = vector.shape_cast %22 : vector<1x32x64xbf16> to vector<32x64xbf16>
    %cst_21 = arith.constant dense<0.000000e+00> : vector<98x64xf32>
    %24 = tpu.matmul %21, %23, %cst_21 {dimension_numbers = #tpu.dot_dimension_numbers<[1], [0], [0], [1], [0, 0, 1, 1], [], []>} : vector<98x32xbf16>, vector<32x64xbf16>, vector<98x64xf32> -> vector<98x64xf32>
    %25 = arith.addf %17, %24 : vector<98x64xf32>
    %c2 = arith.constant 2 : index
    %c0_22 = arith.constant 0 : index
    %c0_23 = arith.constant 0 : index
    %26 = vector.load %arg4[%c2, %c0_22, %c0_23] : memref<4x98x128xbf16, #tpu.memory_space<vmem>>, vector<1x98x128xbf16>
    %27 = vector.shape_cast %26 : vector<1x98x128xbf16> to vector<98x128xbf16>
    %cst_24 = arith.constant dense<0.000000e+00> : vector<98x32xf32>
    %28 = tpu.matmul %27, %8, %cst_24 {dimension_numbers = #tpu.dot_dimension_numbers<[1], [0], [0], [1], [0, 0, 1, 1], [], []>} : vector<98x128xbf16>, vector<128x32xbf16>, vector<98x32xf32> -> vector<98x32xf32>
    %29 = arith.truncf %28 : vector<98x32xf32> to vector<98x32xbf16>
    %c2_25 = arith.constant 2 : index
    %c0_26 = arith.constant 0 : index
    %c0_27 = arith.constant 0 : index
    %30 = vector.load %arg5[%c2_25, %c0_26, %c0_27] : memref<4x32x64xbf16, #tpu.memory_space<vmem>>, vector<1x32x64xbf16>
    %31 = vector.shape_cast %30 : vector<1x32x64xbf16> to vector<32x64xbf16>
    %cst_28 = arith.constant dense<0.000000e+00> : vector<98x64xf32>
    %32 = tpu.matmul %29, %31, %cst_28 {dimension_numbers = #tpu.dot_dimension_numbers<[1], [0], [0], [1], [0, 0, 1, 1], [], []>} : vector<98x32xbf16>, vector<32x64xbf16>, vector<98x64xf32> -> vector<98x64xf32>
    %33 = arith.addf %25, %32 : vector<98x64xf32>
    %c3 = arith.constant 3 : index
    %c0_29 = arith.constant 0 : index
    %c0_30 = arith.constant 0 : index
    %34 = vector.load %arg4[%c3, %c0_29, %c0_30] : memref<4x98x128xbf16, #tpu.memory_space<vmem>>, vector<1x98x128xbf16>
    %35 = vector.shape_cast %34 : vector<1x98x128xbf16> to vector<98x128xbf16>
    %cst_31 = arith.constant dense<0.000000e+00> : vector<98x32xf32>
    %36 = tpu.matmul %35, %8, %cst_31 {dimension_numbers = #tpu.dot_dimension_numbers<[1], [0], [0], [1], [0, 0, 1, 1], [], []>} : vector<98x128xbf16>, vector<128x32xbf16>, vector<98x32xf32> -> vector<98x32xf32>
    %37 = arith.truncf %36 : vector<98x32xf32> to vector<98x32xbf16>
    %c3_32 = arith.constant 3 : index
    %c0_33 = arith.constant 0 : index
    %c0_34 = arith.constant 0 : index
    %38 = vector.load %arg5[%c3_32, %c0_33, %c0_34] : memref<4x32x64xbf16, #tpu.memory_space<vmem>>, vector<1x32x64xbf16>
    %39 = vector.shape_cast %38 : vector<1x32x64xbf16> to vector<32x64xbf16>
    %cst_35 = arith.constant dense<0.000000e+00> : vector<98x64xf32>
    %40 = tpu.matmul %37, %39, %cst_35 {dimension_numbers = #tpu.dot_dimension_numbers<[1], [0], [0], [1], [0, 0, 1, 1], [], []>} : vector<98x32xbf16>, vector<32x64xbf16>, vector<98x64xf32> -> vector<98x64xf32>
    %41 = arith.addf %33, %40 : vector<98x64xf32>
    %c0_36 = arith.constant 0 : index
    %c0_37 = arith.constant 0 : index
    %42 = vector.load %arg6[%c0_36, %c0_37] : memref<1x64xf32, #tpu.memory_space<vmem>>, vector<1x64xf32>
    %43 = vector.broadcast %42 : vector<1x64xf32> to vector<98x64xf32>
    %44 = arith.addf %41, %43 : vector<98x64xf32>
    %cst_38 = arith.constant 0.000000e+00 : f32
    %45 = vector.broadcast %cst_38 : f32 to vector<98x64xf32>
    %46 = arith.maximumf %44, %45 : vector<98x64xf32>
    %47 = arith.truncf %46 : vector<98x64xf32> to vector<98x64xbf16>
    %c0_39 = arith.constant 0 : index
    %c0_40 = arith.constant 0 : index
    %48 = vector.load %arg7[%c0_39, %c0_40] : memref<98x64xbf16, #tpu.memory_space<vmem>>, vector<98x64xbf16>
    tpu.vector_store %arg7[%c0_39, %c0_40], %47 {strides = array<i32>} : memref<98x64xbf16, #tpu.memory_space<vmem>>, vector<98x64xbf16>,
    return
  }
  func.func @transform_0(%arg0: i32) -> (i32, i32) {
    %c0_i32 = arith.constant 0 : i32
    %c0_i32_0 = arith.constant 0 : i32
    %c0_i32_1 = arith.constant 0 : i32
    return %c0_i32, %c0_i32_0 : i32, i32
  }
  func.func @transform_1(%arg0: i32) -> (i32, i32) {
    %c0_i32 = arith.constant 0 : i32
    %c0_i32_0 = arith.constant 0 : i32
    %c0_i32_1 = arith.constant 0 : i32
    return %c0_i32, %c0_i32_0 : i32, i32
  }
  func.func @transform_2(%arg0: i32) -> (i32, i32) {
    %c0_i32 = arith.constant 0 : i32
    %c0_i32_0 = arith.constant 0 : i32
    %c0_i32_1 = arith.constant 0 : i32
    return %c0_i32, %c0_i32_0 : i32, i32
  }
  func.func @transform_3(%arg0: i32) -> (i32, i32, i32) {
    %c0_i32 = arith.constant 0 : i32
    %c0_i32_0 = arith.constant 0 : i32
    %c0_i32_1 = arith.constant 0 : i32
    %c0_i32_2 = arith.constant 0 : i32
    return %c0_i32, %c0_i32_0, %c0_i32_1 : i32, i32, i32
  }
  func.func @transform_4(%arg0: i32) -> (i32, i32, i32) {
    %c0_i32 = arith.constant 0 : i32
    %c0_i32_0 = arith.constant 0 : i32
    %c0_i32_1 = arith.constant 0 : i32
    %c0_i32_2 = arith.constant 0 : i32
    return %c0_i32, %c0_i32_0, %c0_i32_1 : i32, i32, i32
  }
  func.func @transform_5(%arg0: i32) -> (i32, i32) {
    %c0_i32 = arith.constant 0 : i32
    %c0_i32_0 = arith.constant 0 : i32
    %c0_i32_1 = arith.constant 0 : i32
    return %c0_i32, %c0_i32_0 : i32, i32
  }
  func.func @transform_6(%arg0: i32) -> (i32, i32) {
    %c0_i32 = arith.constant 0 : i32
    %c0_i32_0 = arith.constant 0 : i32
    %c0_i32_1 = arith.constant 0 : i32
    return %c0_i32, %c0_i32_0 : i32, i32
  }
}

</mosaic_0001>

<bundles_post_ra>
// kernel: net_full_forward.2
= control target key start
LH: loop header
LB: loop body
LE: loop exit
PB: predicated region body
PF: predicated region fallthrough
CT: control target
= control target key end

     0   :  { %11 = vsyncpa [#allocation3], 0  ;;  %s2841_s0 = inlined_call_operand.vmem [shape: bf16[128,9], index: 0, kind: input, shape index: {}]   ;;  %s2842_s1 = inlined_call_operand.hbm [shape: bf16[9,32], index: 1, kind: input, shape index: {}]   ;;  %s2843_s2 = inlined_call_operand.hbm [shape: f32[1,32], index: 2, kind: input, shape index: {}]   ;;  %s2844_s3 = inlined_call_operand.vmem [shape: bf16[4,98,128], index: 3, kind: input, shape index: {}]   ;;  %s2845_s4 = inlined_call_operand.hbm [shape: bf16[4,32,64], index: 4, kind: input, shape index: {}]   ;;  %s2846_s5 = inlined_call_operand.hbm [shape: f32[1,64], index: 5, kind: input, shape index: {}]   ;;  %s2847_s6 = inlined_call_operand.vmem [shape: bf16[98,64], index: 6, kind: output, shape index: {}]  }
   0x1   :  { %12 = vsyncpa [#allocation5], 0 }
   0x2   :  { %13 = vsyncpa [#allocation8], 0  ;;  %s2254_s21 = smov [#allocation4]   ;;  %s2255_s23 = smov [#allocation2]  }
   0x3   :  { %s34_s22 = sshll.u32 %s2254_s21, 4  ;;  %s21_s24 = sshll.u32 %s2255_s23, 4  ;;  %s35_s22 = int_to_ptr.vmem [resolvable:$true] %s34_s22  ;;  %s2298_s24 = int_to_ptr.vmem [resolvable:$true] %s21_s24 }
   0x4   :  { %s2160_s27 = scalar_lea.hbm %s2843_s2, 16 }
   0x5   :  { %p2161_p0 = scmp.ne.s32.totalorder %s2843_s2, %s2160_s27  ;;  %p2164_p1 = scmp.lt.u32.totalorder %s2160_s27, %s2843_s2 }
   0x7   :  { %p2166_p2 = pnand %p2164_p1, %p2161_p0 }
   0x9   :  { %2169 = shalt.err (!%p2166_p2)
}
   0xa   :  { %s2170_s8 = scalar_lea.vmem %s35_s22, 16  ;;  %s2174_s9 = scalar_lea.vmem %s35_s22, 32 }
   0xb   :  { %p2171_p3 = scmp.ne.s32.totalorder %s35_s22, %s2170_s8  ;;  %p2175_p4 = scmp.lt.s32.totalorder %s35_s22, %s35_s22 }
   0xc   :  { %p2176_p5 = scmp.lt.s32.totalorder %s2174_s9, %s2170_s8 }
   0xe   :  { %p2177_p6 = por %p2176_p5, %p2175_p4 }
  0x10   :  { %p2178_p7 = pnand %p2177_p6, %p2171_p3 }
  0x12   :  { %2181 = shalt.err (!%p2178_p7)
}
  0x13   :  { %37 = dma.hbm_to_vmem [thread:$0]  %s2843_s2, 16, %s35_s22, [#allocation5]  }
  0x14   :  { %s2182_s14 = scalar_lea.hbm %s2842_s1, 128 }
  0x15   :  { %p2183_p8 = scmp.ne.s32.totalorder %s2842_s1, %s2182_s14  ;;  %p2186_p9 = scmp.lt.u32.totalorder %s2182_s14, %s2842_s1 }
  0x17   :  { %p2188_p10 = pnand %p2186_p9, %p2183_p8 }
  0x19   :  { %2191 = shalt.err (!%p2188_p10)
}
  0x1a   :  { %s2192_s19 = scalar_lea.vmem %s2298_s24, 128  ;;  %p2197_p12 = scmp.lt.s32.totalorder %s2298_s24, %s2298_s24 }
  0x1b   :  { %p2193_p11 = scmp.ne.s32.totalorder %s2298_s24, %s2192_s19  ;;  %p2198_p13 = scmp.lt.s32.totalorder %s2192_s19, %s2192_s19 }
  0x1d   :  { %p2199_p0 = por %p2198_p13, %p2197_p12 }
  0x1f   :  { %p2200_p1 = pnand %p2199_p0, %p2193_p11 }
  0x21   :  { %2203 = shalt.err (!%p2200_p1)
}
  0x22   :  { %s2256_s2 = smov 64   ;;  %s2257_s20 = smov 4  }
  0x23   :  { %27 = dma.hbm_to_vmem [thread:$0]  %s2842_s1, 128, %s2298_s24, [#allocation3], %s2256_s2, %s2256_s2, %s2257_s20  }
  0x24   :  { %s2258_s23 = smov [#allocation6]   ;;  %s2259_s26 = smov [#allocation7]  }
  0x25   :  { %s45_s25 = sshll.u32 %s2258_s23, 4  ;;  %s58_s27 = sshll.u32 %s2259_s26, 4  ;;  %s46_s25 = int_to_ptr.vmem [resolvable:$true] %s45_s25  ;;  %s59_s27 = int_to_ptr.vmem [resolvable:$true] %s58_s27 }
  0x26   :  { %s2204_s30 = scalar_lea.hbm %s2845_s4, 1024 }
  0x27   :  { %p2205_p2 = scmp.ne.s32.totalorder %s2845_s4, %s2204_s30  ;;  %p2208_p3 = scmp.lt.u32.totalorder %s2204_s30, %s2845_s4 }
  0x29   :  { %p2210_p4 = pnand %p2208_p3, %p2205_p2 }
  0x2b   :  { %2213 = shalt.err (!%p2210_p4)
}
  0x2c   :  { %s2214_s1 = scalar_lea.vmem %s46_s25, 1024  ;;  %p2219_p6 = scmp.lt.s32.totalorder %s46_s25, %s46_s25 }
  0x2d   :  { %p2215_p5 = scmp.ne.s32.totalorder %s46_s25, %s2214_s1  ;;  %p2220_p7 = scmp.lt.s32.totalorder %s2214_s1, %s2214_s1 }
  0x2f   :  { %p2221_p8 = por %p2220_p7, %p2219_p6 }
  0x31   :  { %p2222_p9 = pnand %p2221_p8, %p2215_p5 }
  0x33   :  { %2225 = shalt.err (!%p2222_p9)
}
  0x34   :  { %51 = dma.hbm_to_vmem [thread:$0]  %s2845_s4, 1024, %s46_s25, [#allocation5], %s2256_s2, %s2256_s2, %s2257_s20  }
  0x35   :  { %s2226_s14 = scalar_lea.hbm %s2846_s5, 16 }
  0x36   :  { %p2227_p10 = scmp.ne.s32.totalorder %s2846_s5, %s2226_s14  ;;  %p2230_p11 = scmp.lt.u32.totalorder %s2226_s14, %s2846_s5 }
  0x38   :  { %p2232_p12 = pnand %p2230_p11, %p2227_p10 }
  0x3a   :  { %2235 = shalt.err (!%p2232_p12)
}
  0x3b   :  { %s2236_s19 = scalar_lea.vmem %s59_s27, 16  ;;  %s2240_s21 = scalar_lea.vmem %s59_s27, 32 }
  0x3c   :  { %p2237_p13 = scmp.ne.s32.totalorder %s59_s27, %s2236_s19  ;;  %p2241_p0 = scmp.lt.s32.totalorder %s59_s27, %s59_s27 }
  0x3d   :  { %p2242_p1 = scmp.lt.s32.totalorder %s2240_s21, %s2236_s19 }
  0x3f   :  { %p2243_p2 = por %p2242_p1, %p2241_p0 }
  0x41   :  { %p2244_p3 = pnand %p2243_p2, %p2237_p13 }
  0x43   :  { %2247 = shalt.err (!%p2244_p3)
}
  0x44   :  { %61 = dma.hbm_to_vmem [thread:$0]  %s2846_s5, 16, %s59_s27, [#allocation8]  }
  0x45   :  { %2248 = dma.done.wait [#allocation3], 128  }
  0x46   :  { %2249 = vsyncadd [#allocation3], 4294967168 }
  0x47   :  { %2250 = dma.done.wait [#allocation5], 1040  }
  0x48   :  { %2251 = vsyncadd [#allocation5], 4294966256 }
  0x49   :  { %2252 = dma.done.wait [#allocation8], 16  }
  0x4a   :  { %2253 = vsyncadd [#allocation8], 4294967280  ;;  %vm170_vm0 = vcmask 1043456   ;;  %vm171_vm1 = vcmask 1044480   ;;  %v2260_v0 = vmov 65535   ;;  %vm145_vm2 = vcmask 72704  }
  0x4b   :  { %v172_v1 = vsel %vm170_vm0, 4294967295, %v2260_v0  ;;  %v2115_v3 = vld [vmem:[#allocation2] sm:$0x1f]   ;;  %v2117_v6 = vld [vmem:[%s2841_s0 + $0x8] sm:$0xff]   ;;  %v2118_v7 = vld [vmem:[%s2841_s0 + $0x10] sm:$0xff]   ;;  %v2261_v13 = vmov 0.0  }
  0x4c   :  { %v173_v2 = vsel %vm171_vm1, %v172_v1, 0  ;;  %v2116_v4 = vld [vmem:[%s2841_s0] sm:$0xff]   ;;  %v2119_v8 = vld [vmem:[%s2841_s0 + $0x18] sm:$0xff]   ;;  %v2121_v10 = vld [vmem:[%s2841_s0 + $0x28] sm:$0xff]   ;;  %1802 = vmatprep.subr.bf16.mxu1 %v2261_v13  ;;  %vm2262_vm3 = vmmov 0   ;;  %vm616_vm4 = vcmask 261120  }
  0x4d   :  { %v175_v5 = vand.u32 %v2115_v3, %v173_v2  ;;  %1786 = vmatprep.mubr.msk.bf16.mxu0 %vm145_vm2, %v2116_v4  ;;  %v2120_v9 = vld [vmem:[%s2841_s0 + $0x20] sm:$0xff]   ;;  %v2122_v11 = vld [vmem:[%s2841_s0 + $0x30] sm:$0xff]   ;;  %v2123_v12 = vld [vmem:[%s2841_s0 + $0x38] sm:$0xff]   ;;  %1818 = vmatprep.mubr.msk.bf16.mxu1 %vm2262_vm3, %v2261_v13  ;;  %vm1509_vm5 = vcmask 519168   ;;  %vm1522_vm6 = vcmask 516096  }
  0x4e   :  { %v2391_v14 = vld [vmem:[#allocation4] ss:$0 sm:$0xff] }
  0x4f   :  { %1784 = vmatprep.subr.bf16.mxu0 %v175_v5 }
  0x50   :  { %1785 = vmatpush3.bf16.msra.mxu0 %v175_v5 }
  0x51   :  { %1846 = vmatprep.subr.bf16.mxu0 %v2261_v13 }
  0x53   :  { %1787 = vmatmul.mubr.msk.bf16.vlgmr.msra.gmra.mrb[0].mxu0 %vm145_vm2, %v2117_v6 }
  0x54   :  { %1790 = vmatprep.mubr.msk.bf16.mxu0 %vm145_vm2, %v2118_v7  ;;  %v2124_v7 = vld [vmem:[%s2844_s3] sm:$0xff]  }
  0x5b   :  { %1791 = vmatmul.mubr.msk.bf16.gmra.mrb[4].mxu0 %vm145_vm2, %v2119_v8  ;;  %v2125_v8 = vld [vmem:[%s2844_s3 + $0x34] sm:$0xff]  }
  0x5c   :  { %1794 = vmatprep.mubr.msk.bf16.mxu0 %vm145_vm2, %v2120_v9  ;;  %v2138_v9 = vld [vmem:[#allocation6 + $0x10] sm:$0xff]  }
  0x63   :  { %1795 = vmatmul.mubr.msk.bf16.gmra.mrb[8].mxu0 %vm145_vm2, %v2121_v10  ;;  %v2140_v10 = vld [vmem:[#allocation6] sm:$0xff]  }
  0x64   :  { %1798 = vmatprep.mubr.msk.bf16.mxu0 %vm145_vm2, %v2122_v11  ;;  %v2139_v11 = vld [vmem:[#allocation6 + $0x18] sm:$0xff]  }
  0x6b   :  { %1799 = vmatmul.mubr.msk.bf16.gmra.mrb[12].mxu0 %vm145_vm2, %v2123_v12  ;;  %v2126_v12 = vld [vmem:[%s2844_s3 + $0x8] sm:$0xff]  }
  0x6c   :  { %1862 = vmatprep.mubr.msk.bf16.mxu0 %vm2262_vm3, %v2261_v13 }
 0x126   :  { %v1788_v15 = vpop.f32.mrb[0].mxu0 }
 0x127   :  { %v220_v16 = vadd.f32 %v1788_v15, %v2391_v14  ;;  %v211_v17 = vpop.f32.mrb[1].mxu0  ;;  %v2128_v15 = vld [vmem:[%s2844_s3 + $0x10] sm:$0xff]  }
 0x128   :  { %v212_v18 = vadd.f32 %v2391_v14, %v211_v17  ;;  %v1789_v19 = vpop.f32.mrb[2].mxu0  ;;  %v2130_v17 = vld [vmem:[%s2844_s3 + $0x18] sm:$0xff]  }
 0x129   :  { %v223_v20 = vadd.f32 %v1789_v19, %v2391_v14  ;;  %v214_v21 = vpop.f32.mrb[3].mxu0  ;;  %v276_v23 = vmax.f32 %v220_v16, 0.0  ;;  %v2129_v16 = vld [vmem:[%s2844_s3 + $0x44] sm:$0xff]  }
 0x12a   :  { %v215_v22 = vadd.f32 %v2391_v14, %v214_v21  ;;  %v274_v25 = vmax.f32 %v212_v18, 0.0  ;;  %v2131_v18 = vld [vmem:[%s2844_s3 + $0x4c] sm:$0xff]   ;;  %v2132_v19 = vld [vmem:[%s2844_s3 + $0x20] sm:$0xff]  }
 0x12b   :  { %v277_v24 = vmax.f32 %v223_v20, 0.0  ;;  %v2133_v20 = vld [vmem:[%s2844_s3 + $0x54] sm:$0xff]   ;;  %v2134_v21 = vld [vmem:[%s2844_s3 + $0x28] sm:$0xff]  }
 0x12c   :  { %v275_v26 = vmax.f32 %v215_v22, 0.0  ;;  %v2135_v22 = vld [vmem:[%s2844_s3 + $0x5c] sm:$0xff]  }
 0x12d   :  { %v2397_v27 = vpack.c.bf16 %v277_v24, %v276_v23  ;;  %v2136_v23 = vld [vmem:[%s2844_s3 + $0x64] ss:$0 sps:$4 sm:$0x11]   ;;  %v2137_v24 = vld [vmem:[%s2844_s3 + $0x30] ss:$0 sps:$4 sm:$0x11]  }
 0x12e   :  { %v2399_v28 = vpack.c.bf16 %v275_v26, %v274_v25  ;;  %v1792_v29 = vpop.f32.mrb[4].mxu0  ;;  %v2141_v25 = vld [vmem:[#allocation6 + $0x8] sm:$0xff]  }
 0x12f   :  { %v236_v30 = vadd.f32 %v1792_v29, %v2391_v14  ;;  %v227_v31 = vpop.f32.mrb[5].mxu0 }
 0x130   :  { %v228_v32 = vadd.f32 %v2391_v14, %v227_v31  ;;  %v1793_v33 = vpop.f32.mrb[6].mxu0  ;;  %1803 = vmatpush3.bf16.msra.mxu1 %v2399_v28  ;;  %1847 = vmatpush3.bf16.msra.mxu0 %v2399_v28 }
 0x131   :  { %v239_v34 = vadd.f32 %v1793_v33, %v2391_v14  ;;  %v230_v35 = vpop.f32.mrb[7].mxu0  ;;  %1804 = vmatprep.subr.bf16.mxu1 %v2261_v13  ;;  %1848 = vmatprep.subr.bf16.mxu0 %v2261_v13  ;;  %v280_v37 = vmax.f32 %v236_v30, 0.0 }
 0x132   :  { %v231_v36 = vadd.f32 %v2391_v14, %v230_v35  ;;  %v278_v39 = vmax.f32 %v228_v32, 0.0 }
 0x133   :  { %v281_v38 = vmax.f32 %v239_v34, 0.0 }
 0x134   :  { %v279_v40 = vmax.f32 %v231_v36, 0.0  ;;  %1805 = vmatpush3.bf16.msra.mxu1 %v2397_v27  ;;  %1849 = vmatpush3.bf16.msra.mxu0 %v2397_v27 }
 0x135   :  { %v2411_v41 = vpack.c.bf16 %v281_v38, %v280_v37  ;;  %1806 = vmatprep.subr.bf16.mxu1 %v2261_v13  ;;  %1850 = vmatprep.subr.bf16.mxu0 %v2261_v13 }
 0x136   :  { %v2415_v42 = vpack.c.bf16 %v279_v40, %v278_v39  ;;  %v1796_v43 = vpop.f32.mrb[8].mxu0 }
 0x137   :  { %v252_v44 = vadd.f32 %v1796_v43, %v2391_v14  ;;  %v243_v45 = vpop.f32.mrb[9].mxu0 }
 0x138   :  { %v244_v46 = vadd.f32 %v2391_v14, %v243_v45  ;;  %v1797_v47 = vpop.f32.mrb[10].mxu0  ;;  %1807 = vmatpush3.bf16.msra.mxu1 %v2415_v42  ;;  %1851 = vmatpush3.bf16.msra.mxu0 %v2415_v42 }
 0x139   :  { %v255_v48 = vadd.f32 %v1797_v47, %v2391_v14  ;;  %v246_v49 = vpop.f32.mrb[11].mxu0  ;;  %1808 = vmatprep.subr.bf16.mxu1 %v2261_v13  ;;  %1852 = vmatprep.subr.bf16.mxu0 %v2261_v13  ;;  %v284_v51 = vmax.f32 %v252_v44, 0.0 }
 0x13a   :  { %v247_v50 = vadd.f32 %v2391_v14, %v246_v49  ;;  %v282_v53 = vmax.f32 %v244_v46, 0.0 }
 0x13b   :  { %v285_v52 = vmax.f32 %v255_v48, 0.0 }
 0x13c   :  { %v283_v54 = vmax.f32 %v247_v50, 0.0  ;;  %1809 = vmatpush3.bf16.msra.mxu1 %v2411_v41  ;;  %1853 = vmatpush3.bf16.msra.mxu0 %v2411_v41 }
 0x13d   :  { %v2427_v55 = vpack.c.bf16 %v285_v52, %v284_v51  ;;  %1810 = vmatprep.subr.bf16.mxu1 %v2261_v13  ;;  %1854 = vmatprep.subr.bf16.mxu0 %v2261_v13 }
 0x13e   :  { %v2431_v56 = vpack.c.bf16 %v283_v54, %v282_v53  ;;  %v1800_v57 = vpop.f32.mrb[12].mxu0 }
 0x13f   :  { %v268_v58 = vadd.f32 %v1800_v57, %v2391_v14  ;;  %v259_v59 = vpop.f32.mrb[13].mxu0 }
 0x140   :  { %v260_v60 = vadd.f32 %v2391_v14, %v259_v59  ;;  %v1801_v61 = vpop.f32.mrb[14].mxu0  ;;  %1811 = vmatpush3.bf16.msra.mxu1 %v2431_v56  ;;  %1855 = vmatpush3.bf16.msra.mxu0 %v2431_v56 }
 0x141   :  { %v271_v62 = vadd.f32 %v1801_v61, %v2391_v14  ;;  %v262_v63 = vpop.f32.mrb[15].mxu0  ;;  %1812 = vmatprep.subr.bf16.mxu1 %v2261_v13  ;;  %1856 = vmatprep.subr.bf16.mxu0 %v2261_v13  ;;  %v288_v1 = vmax.f32 %v268_v58, 0.0 }
 0x142   :  { %v263_v0 = vadd.f32 %v2391_v14, %v262_v63  ;;  %v286_v3 = vmax.f32 %v260_v60, 0.0  ;;  %v2127_v14 = vld [vmem:[%s2844_s3 + $0x3c] sm:$0xff]  }
 0x143   :  { %v289_v2 = vmax.f32 %v271_v62, 0.0 }
 0x144   :  { %v287_v4 = vmax.f32 %v263_v0, 0.0  ;;  %1813 = vmatpush3.bf16.msra.mxu1 %v2427_v55  ;;  %1857 = vmatpush3.bf16.msra.mxu0 %v2427_v55 }
 0x145   :  { %v2443_v5 = vpack.c.bf16 %v289_v2, %v288_v1  ;;  %1814 = vmatprep.subr.bf16.mxu1 %v2261_v13  ;;  %1858 = vmatprep.subr.bf16.mxu0 %v2261_v13 }
 0x146   :  { %v2447_v6 = vpack.c.bf16 %v287_v4, %v286_v3 }
 0x148   :  { %1815 = vmatpush3.bf16.msra.mxu1 %v2447_v6  ;;  %1859 = vmatpush3.bf16.msra.mxu0 %v2447_v6 }
 0x149   :  { %1816 = vmatprep.subr.bf16.mxu1 %v2261_v13  ;;  %1860 = vmatprep.subr.bf16.mxu0 %v2261_v13 }
 0x14c   :  { %1817 = vmatpush3.bf16.msra.mxu1 %v2443_v5  ;;  %1861 = vmatpush3.bf16.msra.mxu0 %v2443_v5 }
 0x14d   :  { %1890 = vmatprep.subr.bf16.mxu1 %v2261_v13  ;;  %1922 = vmatprep.subr.bf16.mxu0 %v2261_v13 }
 0x14f   :  { %1819 = vmatmul.mubr.bf16.vlgmr.msra.gmra.mrb[0].mxu1 %v2124_v7  ;;  %1863 = vmatmul.mubr.bf16.vlgmr.msra.gmra.mrb[16].mxu0 %v2125_v8 }
 0x150   :  { %1822 = vmatprep.mubr.msk.bf16.mxu1 %vm2262_vm3, %v2261_v13  ;;  %1866 = vmatprep.mubr.msk.bf16.mxu0 %vm2262_vm3, %v2261_v13 }
 0x151   :  { %1891 = vmatpush3.bf16.msra.mxu1 %v2138_v9  ;;  %1923 = vmatpush3.bf16.msra.mxu0 %v2140_v10 }
 0x152   :  { %1892 = vmatprep.subr.bf16.mxu1 %v2261_v13  ;;  %1924 = vmatprep.subr.bf16.mxu0 %v2261_v13 }
 0x155   :  { %1893 = vmatpush3.bf16.msra.mxu1 %v2139_v11  ;;  %1925 = vmatpush3.bf16.msra.mxu0 %v2141_v25 }
 0x156   :  { %1954 = vmatprep.subr.bf16.mxu1 %v2261_v13  ;;  %1998 = vmatprep.subr.bf16.mxu0 %v2261_v13 }
 0x157   :  { %1823 = vmatmul.mubr.bf16.gmra.mrb[4].mxu1 %v2126_v12  ;;  %1867 = vmatmul.mubr.bf16.gmra.mrb[20].mxu0 %v2127_v14 }
 0x158   :  { %1826 = vmatprep.mubr.msk.bf16.mxu1 %vm2262_vm3, %v2261_v13  ;;  %1870 = vmatprep.mubr.msk.bf16.mxu0 %vm2262_vm3, %v2261_v13 }
 0x15f   :  { %1827 = vmatmul.mubr.bf16.gmra.mrb[8].mxu1 %v2128_v15  ;;  %1871 = vmatmul.mubr.bf16.gmra.mrb[24].mxu0 %v2129_v16 }
 0x160   :  { %1830 = vmatprep.mubr.msk.bf16.mxu1 %vm2262_vm3, %v2261_v13  ;;  %1874 = vmatprep.mubr.msk.bf16.mxu0 %vm2262_vm3, %v2261_v13 }
 0x167   :  { %1831 = vmatmul.mubr.bf16.gmra.mrb[12].mxu1 %v2130_v17  ;;  %1875 = vmatmul.mubr.bf16.gmra.mrb[28].mxu0 %v2131_v18 }
 0x168   :  { %1834 = vmatprep.mubr.msk.bf16.mxu1 %vm2262_vm3, %v2261_v13  ;;  %1878 = vmatprep.mubr.msk.bf16.mxu0 %vm2262_vm3, %v2261_v13 }
 0x16f   :  { %1835 = vmatmul.mubr.bf16.gmra.mrb[16].mxu1 %v2132_v19  ;;  %1879 = vmatmul.mubr.bf16.gmra.mrb[32].mxu0 %v2133_v20 }
 0x170   :  { %1838 = vmatprep.mubr.msk.bf16.mxu1 %vm2262_vm3, %v2261_v13  ;;  %1882 = vmatprep.mubr.msk.bf16.mxu0 %vm2262_vm3, %v2261_v13 }
 0x177   :  { %1839 = vmatmul.mubr.bf16.gmra.mrb[20].mxu1 %v2134_v21  ;;  %1883 = vmatmul.mubr.bf16.gmra.mrb[36].mxu0 %v2135_v22 }
 0x178   :  { %1886 = vmatprep.mubr.msk.bf16.mxu0 %vm2262_vm3, %v2261_v13  ;;  %1842 = vmatprep.mubr.msk.bf16.mxu1 %vm2262_vm3, %v2261_v13 }
 0x17f   :  { %1887 = vmatmul.mubr.bf16.gmra.mrb[40].mxu0 %v2136_v23  ;;  %1843 = vmatmul.mubr.bf16.gmra.mrb[24].mxu1 %v2137_v24 }
 0x180   :  { %1894 = vmatprep.mubr.msk.bf16.mxu1 %vm2262_vm3, %v2261_v13  ;;  %1926 = vmatprep.mubr.msk.bf16.mxu0 %vm2262_vm3, %v2261_v13 }
 0x222   :  { %v385_v26 = vpop.f32.mrb[0].mxu1  ;;  %v538_v29 = vpop.f32.mrb[16].mxu0 }
 0x223   :  { %v1820_v30 = vpop.f32.mrb[1].mxu1  ;;  %v1864_v31 = vpop.f32.mrb[17].mxu0 }
 0x224   :  { %v388_v32 = vpop.f32.mrb[2].mxu1  ;;  %v541_v33 = vpop.f32.mrb[18].mxu0 }
 0x225   :  { %v439_v34 = vpack.c.bf16 %v388_v32, %v385_v26  ;;  %v592_v35 = vpack.c.bf16 %v541_v33, %v538_v29  ;;  %v1865_v36 = vpop.f32.mrb[19].mxu0  ;;  %v1821_v37 = vpop.f32.mrb[3].mxu1 }
 0x227   :  { %1895 = vmatmul.mubr.msk.bf16.vlgmr.msra.gmra.mrb[28].mxu1 %vm616_vm4, %v592_v35  ;;  %1927 = vmatmul.mubr.msk.bf16.vlgmr.msra.gmra.mrb[44].mxu0 %vm616_vm4, %v439_v34 }
 0x228   :  { %1955 = vmatpush3.bf16.msra.mxu1 %v2399_v28  ;;  %1898 = vmatprep.mubr.msk.bf16.mxu1 %vm2262_vm3, %v2261_v13 }
 0x229   :  { %1956 = vmatprep.subr.bf16.mxu1 %v2261_v13  ;;  %1930 = vmatprep.mubr.msk.bf16.mxu0 %vm2262_vm3, %v2261_v13 }
 0x22a   :  { %v393_v38 = vpop.f32.mrb[4].mxu1  ;;  %v546_v39 = vpop.f32.mrb[20].mxu0 }
 0x22b   :  { %v1824_v40 = vpop.f32.mrb[5].mxu1  ;;  %v1868_v43 = vpop.f32.mrb[21].mxu0 }
 0x22c   :  { %1957 = vmatpush3.bf16.msra.mxu1 %v2397_v27  ;;  %v396_v44 = vpop.f32.mrb[6].mxu1  ;;  %v549_v45 = vpop.f32.mrb[22].mxu0 }
 0x22d   :  { %v440_v46 = vpack.c.bf16 %v396_v44, %v393_v38  ;;  %v593_v47 = vpack.c.bf16 %v549_v45, %v546_v39  ;;  %v1869_v48 = vpop.f32.mrb[23].mxu0  ;;  %1958 = vmatprep.subr.bf16.mxu1 %v2261_v13  ;;  %v1825_v49 = vpop.f32.mrb[7].mxu1  ;;  %v2142_v45 = vld [vmem:[%s2844_s3 + $0x68] sm:$0xff]  }
 0x22e   :  { %v2151_v48 = vld [vmem:[%s2844_s3 + $0xac] sm:$0xff]   ;;  %v2152_v49 = vld [vmem:[%s2844_s3 + $0xb4] sm:$0xff]  }
 0x22f   :  { %1899 = vmatmul.mubr.msk.bf16.gmra.mrb[32].mxu1 %vm616_vm4, %v593_v47  ;;  %1931 = vmatmul.mubr.msk.bf16.gmra.mrb[48].mxu0 %vm616_vm4, %v440_v46  ;;  %v2143_v46 = vld [vmem:[%s2844_s3 + $0x70] sm:$0xff]  }
 0x230   :  { %1959 = vmatpush3.bf16.msra.mxu1 %v2415_v42  ;;  %1902 = vmatprep.mubr.msk.bf16.mxu1 %vm2262_vm3, %v2261_v13  ;;  %v2157_v47 = vld [vmem:[#allocation6 + $0x28] sm:$0xff]  }
 0x231   :  { %1960 = vmatprep.subr.bf16.mxu1 %v2261_v13  ;;  %1934 = vmatprep.mubr.msk.bf16.mxu0 %vm2262_vm3, %v2261_v13 }
 0x232   :  { %v401_v50 = vpop.f32.mrb[8].mxu1  ;;  %v554_v51 = vpop.f32.mrb[24].mxu0 }
 0x233   :  { %v1828_v52 = vpop.f32.mrb[9].mxu1  ;;  %v1872_v53 = vpop.f32.mrb[25].mxu0 }
 0x234   :  { %1961 = vmatpush3.bf16.msra.mxu1 %v2411_v41  ;;  %v404_v54 = vpop.f32.mrb[10].mxu1  ;;  %v557_v57 = vpop.f32.mrb[26].mxu0  ;;  %v2155_v52 = vld [vmem:[%s2844_s3 + $0xcc] ss:$0 sps:$4 sm:$0x11]  }
 0x235   :  { %v441_v58 = vpack.c.bf16 %v404_v54, %v401_v50  ;;  %v594_v59 = vpack.c.bf16 %v557_v57, %v554_v51  ;;  %v1873_v60 = vpop.f32.mrb[27].mxu0  ;;  %1962 = vmatprep.subr.bf16.mxu1 %v2261_v13  ;;  %v1829_v61 = vpop.f32.mrb[11].mxu1  ;;  %v2153_v50 = vld [vmem:[%s2844_s3 + $0xbc] sm:$0xff]   ;;  %v2154_v51 = vld [vmem:[%s2844_s3 + $0xc4] sm:$0xff]  }
 0x237   :  { %1903 = vmatmul.mubr.msk.bf16.gmra.mrb[36].mxu1 %vm616_vm4, %v594_v59  ;;  %1935 = vmatmul.mubr.msk.bf16.gmra.mrb[52].mxu0 %vm616_vm4, %v441_v58 }
 0x238   :  { %1963 = vmatpush3.bf16.msra.mxu1 %v2431_v56  ;;  %1906 = vmatprep.mubr.msk.bf16.mxu1 %vm2262_vm3, %v2261_v13 }
 0x239   :  { %1964 = vmatprep.subr.bf16.mxu1 %v2261_v13  ;;  %1938 = vmatprep.mubr.msk.bf16.mxu0 %vm2262_vm3, %v2261_v13 }
 0x23a   :  { %v409_v62 = vpop.f32.mrb[12].mxu1  ;;  %v562_v63 = vpop.f32.mrb[28].mxu0 }
 0x23b   :  { %v1832_v0 = vpop.f32.mrb[13].mxu1  ;;  %v1876_v1 = vpop.f32.mrb[29].mxu0 }
 0x23c   :  { %1965 = vmatpush3.bf16.msra.mxu1 %v2427_v55  ;;  %v412_v2 = vpop.f32.mrb[14].mxu1  ;;  %v565_v3 = vpop.f32.mrb[30].mxu0 }
 0x23d   :  { %v442_v4 = vpack.c.bf16 %v412_v2, %v409_v62  ;;  %v595_v7 = vpack.c.bf16 %v565_v3, %v562_v63  ;;  %v1877_v8 = vpop.f32.mrb[31].mxu0  ;;  %1966 = vmatprep.subr.bf16.mxu1 %v2261_v13  ;;  %v1833_v9 = vpop.f32.mrb[15].mxu1 }
 0x23f   :  { %1907 = vmatmul.mubr.msk.bf16.gmra.mrb[40].mxu1 %vm616_vm4, %v595_v7  ;;  %1939 = vmatmul.mubr.msk.bf16.gmra.mrb[56].mxu0 %vm616_vm4, %v442_v4 }
 0x240   :  { %1967 = vmatpush3.bf16.msra.mxu1 %v2447_v6  ;;  %1910 = vmatprep.mubr.msk.bf16.mxu1 %vm2262_vm3, %v2261_v13 }
 0x241   :  { %1968 = vmatprep.subr.bf16.mxu1 %v2261_v13  ;;  %1942 = vmatprep.mubr.msk.bf16.mxu0 %vm2262_vm3, %v2261_v13 }
 0x242   :  { %v417_v10 = vpop.f32.mrb[16].mxu1  ;;  %v570_v11 = vpop.f32.mrb[32].mxu0 }
 0x243   :  { %v1836_v12 = vpop.f32.mrb[17].mxu1  ;;  %v1880_v14 = vpop.f32.mrb[33].mxu0 }
 0x244   :  { %1969 = vmatpush3.bf16.msra.mxu1 %v2443_v5  ;;  %v420_v15 = vpop.f32.mrb[18].mxu1  ;;  %v573_v16 = vpop.f32.mrb[34].mxu0 }
 0x245   :  { %v443_v17 = vpack.c.bf16 %v420_v15, %v417_v10  ;;  %v596_v18 = vpack.c.bf16 %v573_v16, %v570_v11  ;;  %v1881_v19 = vpop.f32.mrb[35].mxu0  ;;  %v1837_v20 = vpop.f32.mrb[19].mxu1  ;;  %2030 = vmatprep.subr.bf16.mxu1 %v2261_v13 }
 0x247   :  { %1911 = vmatmul.mubr.msk.bf16.gmra.mrb[44].mxu1 %vm616_vm4, %v596_v18  ;;  %1943 = vmatmul.mubr.msk.bf16.gmra.mrb[60].mxu0 %vm616_vm4, %v443_v17 }
 0x248   :  { %1914 = vmatprep.mubr.msk.bf16.mxu1 %vm2262_vm3, %v2261_v13  ;;  %1946 = vmatprep.mubr.msk.bf16.mxu0 %vm2262_vm3, %v2261_v13 }
 0x24a   :  { %v425_v21 = vpop.f32.mrb[20].mxu1  ;;  %v578_v22 = vpop.f32.mrb[36].mxu0 }
 0x24b   :  { %v1840_v23 = vpop.f32.mrb[21].mxu1  ;;  %v1884_v24 = vpop.f32.mrb[37].mxu0 }
 0x24c   :  { %v428_v25 = vpop.f32.mrb[22].mxu1  ;;  %v581_v26 = vpop.f32.mrb[38].mxu0 }
 0x24d   :  { %v444_v29 = vpack.c.bf16 %v428_v25, %v425_v21  ;;  %v597_v30 = vpack.c.bf16 %v581_v26, %v578_v22  ;;  %v1885_v31 = vpop.f32.mrb[39].mxu0  ;;  %v1841_v32 = vpop.f32.mrb[23].mxu1 }
 0x24f   :  { %1915 = vmatmul.mubr.msk.bf16.gmra.mrb[48].mxu1 %vm616_vm4, %v597_v30  ;;  %1947 = vmatmul.mubr.msk.bf16.gmra.mrb[64].mxu0 %vm616_vm4, %v444_v29 }
 0x250   :  { %1918 = vmatprep.mubr.msk.bf16.mxu1 %vm2262_vm3, %v2261_v13  ;;  %1950 = vmatprep.mubr.msk.bf16.mxu0 %vm2262_vm3, %v2261_v13 }
 0x252   :  { %v586_v33 = vpop.f32.mrb[40].mxu0  ;;  %v433_v34 = vpop.f32.mrb[24].mxu1 }
 0x253   :  { %v598_v35 = vpack.c.bf16 %v586_v33, %v586_v33  ;;  %v1888_v36 = vpop.f32.mrb[41].mxu0  ;;  %v445_v37 = vpack.c.bf16 %v433_v34, %v433_v34  ;;  %v1844_v38 = vpop.f32.mrb[25].mxu1 }
 0x254   :  { %v589_v39 = vpop.f32.mrb[42].mxu0  ;;  %v436_v40 = vpop.f32.mrb[26].mxu1 }
 0x255   :  { %v1889_v43 = vpop.f32.mrb[43].mxu0  ;;  %v1845_v44 = vpop.f32.mrb[27].mxu1 }
 0x257   :  { %1919 = vmatmul.mubr.msk.bf16.gmra.mrb[52].mxu1 %vm616_vm4, %v598_v35  ;;  %1951 = vmatmul.mubr.msk.bf16.gmra.mrb[68].mxu0 %vm616_vm4, %v445_v37 }
 0x258   :  { %1970 = vmatprep.mubr.msk.bf16.mxu1 %vm2262_vm3, %v2261_v13  ;;  %2002 = vmatprep.mubr.msk.bf16.mxu0 %vm2262_vm3, %v2261_v13 }
 0x25f   :  { %1971 = vmatmul.mubr.bf16.vlgmr.msra.gmra.mrb[56].mxu1 %v2142_v45 }
 0x260   :  { %2031 = vmatpush3.bf16.msra.mxu1 %v2399_v28  ;;  %1974 = vmatprep.mubr.msk.bf16.mxu1 %vm2262_vm3, %v2261_v13  ;;  %v2144_v28 = vld [vmem:[%s2844_s3 + $0x78] sm:$0xff]  }
 0x261   :  { %2032 = vmatprep.subr.bf16.mxu1 %v2261_v13 }
 0x264   :  { %2033 = vmatpush3.bf16.msra.mxu1 %v2397_v27  ;;  %v2145_v27 = vld [vmem:[%s2844_s3 + $0x80] sm:$0xff]  }
 0x265   :  { %2034 = vmatprep.subr.bf16.mxu1 %v2261_v13 }
 0x267   :  { %1975 = vmatmul.mubr.bf16.gmra.mrb[60].mxu1 %v2143_v46 }
 0x268   :  { %2035 = vmatpush3.bf16.msra.mxu1 %v2415_v42  ;;  %1978 = vmatprep.mubr.msk.bf16.mxu1 %vm2262_vm3, %v2261_v13  ;;  %v2156_v42 = vld [vmem:[#allocation6 + $0x20] sm:$0xff]  }
 0x269   :  { %2036 = vmatprep.subr.bf16.mxu1 %v2261_v13  ;;  %1999 = vmatpush3.bf16.msra.mxu0 %v2156_v42 }
 0x26a   :  { %2000 = vmatprep.subr.bf16.mxu0 %v2261_v13 }
 0x26c   :  { %2037 = vmatpush3.bf16.msra.mxu1 %v2411_v41  ;;  %v2146_v41 = vld [vmem:[%s2844_s3 + $0x88] sm:$0xff]  }
 0x26d   :  { %2038 = vmatprep.subr.bf16.mxu1 %v2261_v13  ;;  %2001 = vmatpush3.bf16.msra.mxu0 %v2157_v47 }
 0x26e   :  { %2074 = vmatprep.subr.bf16.mxu0 %v2261_v13 }
 0x26f   :  { %1979 = vmatmul.mubr.bf16.gmra.mrb[64].mxu1 %v2144_v28 }
 0x270   :  { %2039 = vmatpush3.bf16.msra.mxu1 %v2431_v56  ;;  %1982 = vmatprep.mubr.msk.bf16.mxu1 %vm2262_vm3, %v2261_v13  ;;  %v2148_v56 = vld [vmem:[%s2844_s3 + $0x98] ss:$0 sps:$4 sm:$0x11]  }
 0x271   :  { %2040 = vmatprep.subr.bf16.mxu1 %v2261_v13 }
 0x274   :  { %2041 = vmatpush3.bf16.msra.mxu1 %v2427_v55  ;;  %v2147_v55 = vld [vmem:[%s2844_s3 + $0x90] sm:$0xff]  }
 0x275   :  { %2042 = vmatprep.subr.bf16.mxu1 %v2261_v13 }
 0x277   :  { %1983 = vmatmul.mubr.bf16.gmra.mrb[68].mxu1 %v2145_v27 }
 0x278   :  { %2043 = vmatpush3.bf16.msra.mxu1 %v2447_v6  ;;  %1986 = vmatprep.mubr.msk.bf16.mxu1 %vm2262_vm3, %v2261_v13  ;;  %v2150_v6 = vld [vmem:[%s2844_s3 + $0xa4] sm:$0xff]  }
 0x279   :  { %2044 = vmatprep.subr.bf16.mxu1 %v2261_v13 }
 0x27c   :  { %2045 = vmatpush3.bf16.msra.mxu1 %v2443_v5  ;;  %v2149_v5 = vld [vmem:[%s2844_s3 + $0x9c] sm:$0xff]  }
 0x27f   :  { %1987 = vmatmul.mubr.bf16.gmra.mrb[72].mxu1 %v2146_v41 }
 0x280   :  { %1990 = vmatprep.mubr.msk.bf16.mxu1 %vm2262_vm3, %v2261_v13 }
 0x287   :  { %1991 = vmatmul.mubr.bf16.gmra.mrb[76].mxu1 %v2147_v55 }
 0x288   :  { %1994 = vmatprep.mubr.msk.bf16.mxu1 %vm2262_vm3, %v2261_v13 }
 0x28f   :  { %1995 = vmatmul.mubr.bf16.gmra.mrb[80].mxu1 %v2148_v56 }
 0x290   :  { %2046 = vmatprep.mubr.msk.bf16.mxu1 %vm2262_vm3, %v2261_v13 }
 0x297   :  { %2047 = vmatmul.mubr.bf16.vlgmr.msra.gmra.mrb[84].mxu1 %v2149_v5 }
 0x298   :  { %2050 = vmatprep.mubr.msk.bf16.mxu1 %vm2262_vm3, %v2261_v13 }
 0x29f   :  { %2051 = vmatmul.mubr.bf16.gmra.mrb[88].mxu1 %v2150_v6 }
 0x2a0   :  { %2054 = vmatprep.mubr.msk.bf16.mxu1 %vm2262_vm3, %v2261_v13 }
 0x2a7   :  { %2055 = vmatmul.mubr.bf16.gmra.mrb[92].mxu1 %v2151_v48 }
 0x2a8   :  { %2058 = vmatprep.mubr.msk.bf16.mxu1 %vm2262_vm3, %v2261_v13 }
 0x2af   :  { %2059 = vmatmul.mubr.bf16.gmra.mrb[96].mxu1 %v2152_v49 }
 0x2b0   :  { %2062 = vmatprep.mubr.msk.bf16.mxu1 %vm2262_vm3, %v2261_v13 }
 0x2b7   :  { %2063 = vmatmul.mubr.bf16.gmra.mrb[100].mxu1 %v2153_v50 }
 0x2b8   :  { %2066 = vmatprep.mubr.msk.bf16.mxu1 %vm2262_vm3, %v2261_v13 }
 0x2bf   :  { %2067 = vmatmul.mubr.bf16.gmra.mrb[104].mxu1 %v2154_v51 }
 0x2c0   :  { %2070 = vmatprep.mubr.msk.bf16.mxu1 %vm2262_vm3, %v2261_v13 }
 0x2c7   :  { %2071 = vmatmul.mubr.bf16.gmra.mrb[108].mxu1 %v2155_v52 }
 0x2fa   :  { %v672_v53 = vpop.f32.mrb[28].mxu1  ;;  %v793_v54 = vpop.f32.mrb[44].mxu0 }
 0x2fb   :  { %v2674_v57 = vadd.f32 %v793_v54, %v672_v53  ;;  %v1896_v58 = vpop.f32.mrb[29].mxu1  ;;  %v1928_v59 = vpop.f32.mrb[45].mxu0 }
 0x2fc   :  { %v675_v60 = vpop.f32.mrb[30].mxu1  ;;  %v796_v61 = vpop.f32.mrb[46].mxu0 }
 0x2fd   :  { %v2676_v62 = vadd.f32 %v796_v61, %v675_v60  ;;  %v1897_v63 = vpop.f32.mrb[31].mxu1  ;;  %v1929_v0 = vpop.f32.mrb[47].mxu0 }
 0x302   :  { %v680_v1 = vpop.f32.mrb[32].mxu1  ;;  %v801_v2 = vpop.f32.mrb[48].mxu0 }
 0x303   :  { %v2678_v3 = vadd.f32 %v801_v2, %v680_v1  ;;  %v1900_v4 = vpop.f32.mrb[33].mxu1  ;;  %v1932_v7 = vpop.f32.mrb[49].mxu0  ;;  %v2158_v2 = vld [vmem:[#allocation6 + $0x30] sm:$0xff]  }
 0x304   :  { %v683_v8 = vpop.f32.mrb[34].mxu1  ;;  %v804_v9 = vpop.f32.mrb[50].mxu0 }
 0x305   :  { %v2680_v10 = vadd.f32 %v804_v9, %v683_v8  ;;  %v1901_v11 = vpop.f32.mrb[35].mxu1  ;;  %v1933_v12 = vpop.f32.mrb[51].mxu0  ;;  %v2159_v8 = vld [vmem:[#allocation6 + $0x38] sm:$0xff]  }
 0x30a   :  { %v688_v14 = vpop.f32.mrb[36].mxu1  ;;  %v809_v15 = vpop.f32.mrb[52].mxu0 }
 0x30b   :  { %v2682_v16 = vadd.f32 %v809_v15, %v688_v14  ;;  %v1904_v17 = vpop.f32.mrb[37].mxu1  ;;  %v1936_v18 = vpop.f32.mrb[53].mxu0 }
 0x30c   :  { %v691_v19 = vpop.f32.mrb[38].mxu1  ;;  %v812_v20 = vpop.f32.mrb[54].mxu0 }
 0x30d   :  { %v2684_v21 = vadd.f32 %v812_v20, %v691_v19  ;;  %v1905_v22 = vpop.f32.mrb[39].mxu1  ;;  %v1937_v23 = vpop.f32.mrb[55].mxu0 }
 0x312   :  { %v696_v24 = vpop.f32.mrb[40].mxu1  ;;  %v817_v25 = vpop.f32.mrb[56].mxu0 }
 0x313   :  { %v2686_v26 = vadd.f32 %v817_v25, %v696_v24  ;;  %v1908_v29 = vpop.f32.mrb[41].mxu1  ;;  %v1940_v30 = vpop.f32.mrb[57].mxu0 }
 0x314   :  { %v699_v31 = vpop.f32.mrb[42].mxu1  ;;  %v820_v32 = vpop.f32.mrb[58].mxu0 }
 0x315   :  { %v2688_v33 = vadd.f32 %v820_v32, %v699_v31  ;;  %v1909_v34 = vpop.f32.mrb[43].mxu1  ;;  %v1941_v35 = vpop.f32.mrb[59].mxu0 }
 0x31a   :  { %v704_v36 = vpop.f32.mrb[44].mxu1  ;;  %v825_v37 = vpop.f32.mrb[60].mxu0 }
 0x31b   :  { %v2690_v38 = vadd.f32 %v825_v37, %v704_v36  ;;  %v1912_v39 = vpop.f32.mrb[45].mxu1  ;;  %v1944_v40 = vpop.f32.mrb[61].mxu0 }
 0x31c   :  { %v707_v43 = vpop.f32.mrb[46].mxu1  ;;  %v828_v44 = vpop.f32.mrb[62].mxu0 }
 0x31d   :  { %v2692_v45 = vadd.f32 %v828_v44, %v707_v43  ;;  %v1913_v46 = vpop.f32.mrb[47].mxu1  ;;  %v1945_v28 = vpop.f32.mrb[63].mxu0 }
 0x322   :  { %v712_v27 = vpop.f32.mrb[48].mxu1  ;;  %v833_v41 = vpop.f32.mrb[64].mxu0 }
 0x323   :  { %v2694_v42 = vadd.f32 %v833_v41, %v712_v27  ;;  %v1916_v55 = vpop.f32.mrb[49].mxu1  ;;  %v1948_v56 = vpop.f32.mrb[65].mxu0 }
 0x324   :  { %v715_v5 = vpop.f32.mrb[50].mxu1  ;;  %v836_v6 = vpop.f32.mrb[66].mxu0 }
 0x325   :  { %v2696_v47 = vadd.f32 %v836_v6, %v715_v5  ;;  %v1917_v48 = vpop.f32.mrb[51].mxu1  ;;  %v1949_v49 = vpop.f32.mrb[67].mxu0 }
 0x32a   :  { %v720_v50 = vpop.f32.mrb[52].mxu1  ;;  %v841_v51 = vpop.f32.mrb[68].mxu0 }
 0x32b   :  { %v1920_v52 = vpop.f32.mrb[53].mxu1  ;;  %v2698_v53 = vadd.f32 %v841_v51, %v720_v50  ;;  %v1952_v54 = vpop.f32.mrb[69].mxu0 }
 0x32c   :  { %v723_v58 = vpop.f32.mrb[54].mxu1  ;;  %v844_v59 = vpop.f32.mrb[70].mxu0 }
 0x32d   :  { %v1921_v60 = vpop.f32.mrb[55].mxu1  ;;  %v1953_v61 = vpop.f32.mrb[71].mxu0 }
 0x332   :  { %v935_v63 = vpop.f32.mrb[56].mxu1 }
 0x333   :  { %v1972_v0 = vpop.f32.mrb[57].mxu1 }
 0x334   :  { %v938_v1 = vpop.f32.mrb[58].mxu1 }
 0x335   :  { %v989_v4 = vpack.c.bf16 %v938_v1, %v935_v63  ;;  %v1973_v7 = vpop.f32.mrb[59].mxu1 }
 0x337   :  { %2003 = vmatmul.mubr.msk.bf16.vlgmr.msra.gmra.mrb[72].mxu0 %vm616_vm4, %v989_v4 }
 0x338   :  { %2075 = vmatpush3.bf16.msra.mxu0 %v2158_v2  ;;  %2006 = vmatprep.mubr.msk.bf16.mxu0 %vm2262_vm3, %v2261_v13 }
 0x339   :  { %2076 = vmatprep.subr.bf16.mxu0 %v2261_v13 }
 0x33a   :  { %v943_v9 = vpop.f32.mrb[60].mxu1 }
 0x33b   :  { %v1976_v11 = vpop.f32.mrb[61].mxu1 }
 0x33c   :  { %v946_v12 = vpop.f32.mrb[62].mxu1  ;;  %2077 = vmatpush3.bf16.msra.mxu0 %v2159_v8 }
 0x33d   :  { %v990_v14 = vpack.c.bf16 %v946_v12, %v943_v9  ;;  %v1977_v15 = vpop.f32.mrb[63].mxu1 }
 0x33f   :  { %2007 = vmatmul.mubr.msk.bf16.gmra.mrb[76].mxu0 %vm616_vm4, %v990_v14 }
 0x340   :  { %2010 = vmatprep.mubr.msk.bf16.mxu0 %vm2262_vm3, %v2261_v13 }
 0x342   :  { %v951_v17 = vpop.f32.mrb[64].mxu1 }
 0x343   :  { %v1980_v18 = vpop.f32.mrb[65].mxu1 }
 0x344   :  { %v954_v19 = vpop.f32.mrb[66].mxu1 }
 0x345   :  { %v991_v20 = vpack.c.bf16 %v954_v19, %v951_v17  ;;  %v1981_v22 = vpop.f32.mrb[67].mxu1 }
 0x347   :  { %2011 = vmatmul.mubr.msk.bf16.gmra.mrb[80].mxu0 %vm616_vm4, %v991_v20 }
 0x348   :  { %2014 = vmatprep.mubr.msk.bf16.mxu0 %vm2262_vm3, %v2261_v13 }
 0x34a   :  { %v959_v23 = vpop.f32.mrb[68].mxu1 }
 0x34b   :  { %v1984_v24 = vpop.f32.mrb[69].mxu1 }
 0x34c   :  { %v962_v25 = vpop.f32.mrb[70].mxu1 }
 0x34d   :  { %v992_v29 = vpack.c.bf16 %v962_v25, %v959_v23  ;;  %v1985_v30 = vpop.f32.mrb[71].mxu1 }
 0x34f   :  { %2015 = vmatmul.mubr.msk.bf16.gmra.mrb[84].mxu0 %vm616_vm4, %v992_v29 }
 0x350   :  { %2018 = vmatprep.mubr.msk.bf16.mxu0 %vm2262_vm3, %v2261_v13 }
 0x352   :  { %v967_v31 = vpop.f32.mrb[72].mxu1 }
 0x353   :  { %v1988_v32 = vpop.f32.mrb[73].mxu1 }
 0x354   :  { %v970_v34 = vpop.f32.mrb[74].mxu1 }
 0x355   :  { %v993_v35 = vpack.c.bf16 %v970_v34, %v967_v31  ;;  %v1989_v36 = vpop.f32.mrb[75].mxu1 }
 0x357   :  { %2019 = vmatmul.mubr.msk.bf16.gmra.mrb[88].mxu0 %vm616_vm4, %v993_v35 }
 0x358   :  { %2022 = vmatprep.mubr.msk.bf16.mxu0 %vm2262_vm3, %v2261_v13 }
 0x35a   :  { %v975_v37 = vpop.f32.mrb[76].mxu1 }
 0x35b   :  { %v1992_v39 = vpop.f32.mrb[77].mxu1 }
 0x35c   :  { %v978_v40 = vpop.f32.mrb[78].mxu1 }
 0x35d   :  { %v994_v43 = vpack.c.bf16 %v978_v40, %v975_v37  ;;  %v1993_v44 = vpop.f32.mrb[79].mxu1 }
 0x35f   :  { %2023 = vmatmul.mubr.msk.bf16.gmra.mrb[92].mxu0 %vm616_vm4, %v994_v43 }
 0x360   :  { %2026 = vmatprep.mubr.msk.bf16.mxu0 %vm2262_vm3, %v2261_v13 }
 0x362   :  { %v983_v46 = vpop.f32.mrb[80].mxu1 }
 0x363   :  { %v1996_v28 = vpop.f32.mrb[81].mxu1  ;;  %v995_v41 = vpack.c.bf16 %v983_v46, %v983_v46 }
 0x364   :  { %v986_v27 = vpop.f32.mrb[82].mxu1 }
 0x365   :  { %v1997_v55 = vpop.f32.mrb[83].mxu1 }
 0x367   :  { %2027 = vmatmul.mubr.msk.bf16.gmra.mrb[96].mxu0 %vm616_vm4, %v995_v41 }
 0x368   :  { %2078 = vmatprep.mubr.msk.bf16.mxu0 %vm2262_vm3, %v2261_v13 }
 0x36a   :  { %v1223_v56 = vpop.f32.mrb[84].mxu1 }
 0x36b   :  { %v2048_v5 = vpop.f32.mrb[85].mxu1 }
 0x36c   :  { %v1226_v6 = vpop.f32.mrb[86].mxu1 }
 0x36d   :  { %v1277_v48 = vpack.c.bf16 %v1226_v6, %v1223_v56  ;;  %v2049_v49 = vpop.f32.mrb[87].mxu1 }
 0x36f   :  { %2079 = vmatmul.mubr.msk.bf16.vlgmr.msra.gmra.mrb[100].mxu0 %vm616_vm4, %v1277_v48 }
 0x370   :  { %2082 = vmatprep.mubr.msk.bf16.mxu0 %vm2262_vm3, %v2261_v13 }
 0x372   :  { %v1231_v50 = vpop.f32.mrb[88].mxu1 }
 0x373   :  { %v2052_v51 = vpop.f32.mrb[89].mxu1 }
 0x374   :  { %v1234_v52 = vpop.f32.mrb[90].mxu1 }
 0x375   :  { %v1278_v54 = vpack.c.bf16 %v1234_v52, %v1231_v50  ;;  %v2053_v58 = vpop.f32.mrb[91].mxu1 }
 0x377   :  { %2083 = vmatmul.mubr.msk.bf16.gmra.mrb[104].mxu0 %vm616_vm4, %v1278_v54 }
 0x378   :  { %2086 = vmatprep.mubr.msk.bf16.mxu0 %vm2262_vm3, %v2261_v13 }
 0x37a   :  { %v1239_v59 = vpop.f32.mrb[92].mxu1 }
 0x37b   :  { %v2056_v60 = vpop.f32.mrb[93].mxu1 }
 0x37c   :  { %v1242_v61 = vpop.f32.mrb[94].mxu1 }
 0x37d   :  { %v1279_v63 = vpack.c.bf16 %v1242_v61, %v1239_v59  ;;  %v2057_v0 = vpop.f32.mrb[95].mxu1 }
 0x37f   :  { %2087 = vmatmul.mubr.msk.bf16.gmra.mrb[108].mxu0 %vm616_vm4, %v1279_v63 }
 0x380   :  { %2090 = vmatprep.mubr.msk.bf16.mxu0 %vm2262_vm3, %v2261_v13 }
 0x382   :  { %v1247_v1 = vpop.f32.mrb[96].mxu1 }
 0x383   :  { %v2060_v2 = vpop.f32.mrb[97].mxu1 }
 0x384   :  { %v1250_v4 = vpop.f32.mrb[98].mxu1  ;;  %v2768_v2 = vld [vmem:[#allocation7] ss:$0 sm:$0xff] }
 0x385   :  { %v1280_v7 = vpack.c.bf16 %v1250_v4, %v1247_v1  ;;  %v2061_v8 = vpop.f32.mrb[99].mxu1 }
 0x387   :  { %2091 = vmatmul.mubr.msk.bf16.gmra.mrb[112].mxu0 %vm616_vm4, %v1280_v7 }
 0x388   :  { %2094 = vmatprep.mubr.msk.bf16.mxu0 %vm2262_vm3, %v2261_v13 }
 0x38a   :  { %v1255_v9 = vpop.f32.mrb[100].mxu1 }
 0x38b   :  { %v2064_v11 = vpop.f32.mrb[101].mxu1 }
 0x38c   :  { %v1258_v12 = vpop.f32.mrb[102].mxu1 }
 0x38d   :  { %v1281_v14 = vpack.c.bf16 %v1258_v12, %v1255_v9  ;;  %v2065_v15 = vpop.f32.mrb[103].mxu1 }
 0x38f   :  { %2095 = vmatmul.mubr.msk.bf16.gmra.mrb[116].mxu0 %vm616_vm4, %v1281_v14 }
 0x390   :  { %2098 = vmatprep.mubr.msk.bf16.mxu0 %vm2262_vm3, %v2261_v13 }
 0x392   :  { %v1263_v17 = vpop.f32.mrb[104].mxu1 }
 0x393   :  { %v2068_v18 = vpop.f32.mrb[105].mxu1 }
 0x394   :  { %v1266_v19 = vpop.f32.mrb[106].mxu1 }
 0x395   :  { %v1282_v20 = vpack.c.bf16 %v1266_v19, %v1263_v17  ;;  %v2069_v22 = vpop.f32.mrb[107].mxu1 }
 0x397   :  { %2099 = vmatmul.mubr.msk.bf16.gmra.mrb[120].mxu0 %vm616_vm4, %v1282_v20 }
 0x398   :  { %2102 = vmatprep.mubr.msk.bf16.mxu0 %vm2262_vm3, %v2261_v13 }
 0x39a   :  { %v1271_v23 = vpop.f32.mrb[108].mxu1 }
 0x39b   :  { %v1283_v24 = vpack.c.bf16 %v1271_v23, %v1271_v23  ;;  %v2072_v25 = vpop.f32.mrb[109].mxu1 }
 0x39c   :  { %v1274_v29 = vpop.f32.mrb[110].mxu1 }
 0x39d   :  { %v2073_v30 = vpop.f32.mrb[111].mxu1 }
 0x39f   :  { %2103 = vmatmul.mubr.msk.bf16.gmra.mrb[124].mxu0 %vm616_vm4, %v1283_v24 }
 0x40a   :  { %v1068_v31 = vpop.f32.mrb[72].mxu0 }
 0x40b   :  { %v1122_v32 = vadd.f32 %v1068_v31, %v2674_v57  ;;  %v2004_v34 = vpop.f32.mrb[73].mxu0 }
 0x40c   :  { %v1071_v35 = vpop.f32.mrb[74].mxu0 }
 0x40d   :  { %v1123_v36 = vadd.f32 %v1071_v35, %v2676_v62  ;;  %v2005_v37 = vpop.f32.mrb[75].mxu0 }
 0x412   :  { %v1076_v39 = vpop.f32.mrb[76].mxu0 }
 0x413   :  { %v1124_v40 = vadd.f32 %v1076_v39, %v2678_v3  ;;  %v2008_v43 = vpop.f32.mrb[77].mxu0 }
 0x414   :  { %v1079_v13 = vpop.f32.mrb[78].mxu0 }
 0x415   :  { %v1125_v44 = vadd.f32 %v1079_v13, %v2680_v10  ;;  %v2009_v46 = vpop.f32.mrb[79].mxu0 }
 0x41a   :  { %v1084_v28 = vpop.f32.mrb[80].mxu0 }
 0x41b   :  { %v1126_v27 = vadd.f32 %v1084_v28, %v2682_v16  ;;  %v2012_v41 = vpop.f32.mrb[81].mxu0 }
 0x41c   :  { %v1087_v55 = vpop.f32.mrb[82].mxu0 }
 0x41d   :  { %v1127_v57 = vadd.f32 %v1087_v55, %v2684_v21  ;;  %v2013_v56 = vpop.f32.mrb[83].mxu0 }
 0x422   :  { %v1092_v5 = vpop.f32.mrb[84].mxu0 }
 0x423   :  { %v2748_v62 = vadd.f32 %v1092_v5, %v2686_v26  ;;  %v2016_v6 = vpop.f32.mrb[85].mxu0 }
 0x424   :  { %v1095_v48 = vpop.f32.mrb[86].mxu0 }
 0x425   :  { %v2751_v3 = vadd.f32 %v1095_v48, %v2688_v33  ;;  %v2017_v49 = vpop.f32.mrb[87].mxu0 }
 0x42a   :  { %v1100_v10 = vpop.f32.mrb[88].mxu0 }
 0x42b   :  { %v2754_v50 = vadd.f32 %v1100_v10, %v2690_v38  ;;  %v2020_v16 = vpop.f32.mrb[89].mxu0 }
 0x42c   :  { %v1103_v51 = vpop.f32.mrb[90].mxu0 }
 0x42d   :  { %v2757_v52 = vadd.f32 %v1103_v51, %v2692_v45  ;;  %v2021_v21 = vpop.f32.mrb[91].mxu0 }
 0x432   :  { %v1108_v54 = vpop.f32.mrb[92].mxu0 }
 0x433   :  { %v2760_v26 = vadd.f32 %v1108_v54, %v2694_v42  ;;  %v2024_v58 = vpop.f32.mrb[93].mxu0 }
 0x434   :  { %v1111_v59 = vpop.f32.mrb[94].mxu0 }
 0x435   :  { %v2763_v33 = vadd.f32 %v1111_v59, %v2696_v47  ;;  %v2025_v60 = vpop.f32.mrb[95].mxu0 }
 0x43a   :  { %v1116_v61 = vpop.f32.mrb[96].mxu0 }
 0x43b   :  { %v2766_v38 = vadd.f32 %v1116_v61, %v2698_v53  ;;  %v2028_v63 = vpop.f32.mrb[97].mxu0 }
 0x43c   :  { %v1119_v0 = vpop.f32.mrb[98].mxu0 }
 0x43d   :  { %v2029_v1 = vpop.f32.mrb[99].mxu0 }
 0x442   :  { %v1356_v45 = vpop.f32.mrb[100].mxu0 }
 0x443   :  { %v1410_v4 = vadd.f32 %v1356_v45, %v1122_v32  ;;  %v2080_v7 = vpop.f32.mrb[101].mxu0 }
 0x444   :  { %v1359_v42 = vpop.f32.mrb[102].mxu0 }
 0x445   :  { %v1430_v8 = vadd.f32 %v2768_v2, %v1410_v4  ;;  %v1411_v9 = vadd.f32 %v1359_v42, %v1123_v36  ;;  %v2081_v11 = vpop.f32.mrb[103].mxu0 }
 0x447   :  { %v1443_v47 = vmax.f32 %v1430_v8, 0.0  ;;  %v1431_v12 = vadd.f32 %v2768_v2, %v1411_v9 }
 0x449   :  { %v1666_v14 = vpack.c.bf16 %v1443_v47, %v1443_v47  ;;  %v1444_v53 = vmax.f32 %v1431_v12, 0.0 }
 0x44a   :  { %v1364_v15 = vpop.f32.mrb[104].mxu0 }
 0x44b   :  { %1510 = vst.msk [vmem:[%s2847_s6] sm:$0xf] %vm1509_vm5, %v1666_v14  ;;  %v1667_v17 = vpack.c.bf16 %v1444_v53, %v1444_v53  ;;  %v1412_v18 = vadd.f32 %v1364_v15, %v1124_v40  ;;  %v2084_v19 = vpop.f32.mrb[105].mxu0 }
 0x44c   :  { %v1367_v20 = vpop.f32.mrb[106].mxu0 }
 0x44d   :  { %1511 = vst.msk [vmem:[%s2847_s6 + $0x4] sm:$0xf] %vm1509_vm5, %v1667_v17  ;;  %v1432_v22 = vadd.f32 %v2768_v2, %v1412_v18  ;;  %v1413_v23 = vadd.f32 %v1367_v20, %v1125_v44  ;;  %v2085_v24 = vpop.f32.mrb[107].mxu0 }
 0x44f   :  { %v1445_v25 = vmax.f32 %v1432_v22, 0.0  ;;  %v1433_v29 = vadd.f32 %v2768_v2, %v1413_v23 }
 0x451   :  { %v1668_v30 = vpack.c.bf16 %v1445_v25, %v1445_v25  ;;  %v1446_v31 = vmax.f32 %v1433_v29, 0.0 }
 0x452   :  { %v1372_v32 = vpop.f32.mrb[108].mxu0 }
 0x453   :  { %1512 = vst.msk [vmem:[%s2847_s6 + $0x8] sm:$0xf] %vm1509_vm5, %v1668_v30  ;;  %v1669_v34 = vpack.c.bf16 %v1446_v31, %v1446_v31  ;;  %v1414_v35 = vadd.f32 %v1372_v32, %v1126_v27  ;;  %v2088_v36 = vpop.f32.mrb[109].mxu0 }
 0x454   :  { %v1375_v37 = vpop.f32.mrb[110].mxu0 }
 0x455   :  { %1513 = vst.msk [vmem:[%s2847_s6 + $0xc] sm:$0xf] %vm1509_vm5, %v1669_v34  ;;  %v1434_v39 = vadd.f32 %v2768_v2, %v1414_v35  ;;  %v1415_v40 = vadd.f32 %v1375_v37, %v1127_v57  ;;  %v2089_v43 = vpop.f32.mrb[111].mxu0 }
 0x457   :  { %v1447_v13 = vmax.f32 %v1434_v39, 0.0  ;;  %v1435_v44 = vadd.f32 %v2768_v2, %v1415_v40 }
 0x459   :  { %v1670_v46 = vpack.c.bf16 %v1447_v13, %v1447_v13  ;;  %v1448_v28 = vmax.f32 %v1435_v44, 0.0 }
 0x45a   :  { %v1380_v41 = vpop.f32.mrb[112].mxu0 }
 0x45b   :  { %1514 = vst.msk [vmem:[%s2847_s6 + $0x10] sm:$0xf] %vm1509_vm5, %v1670_v46  ;;  %v1671_v27 = vpack.c.bf16 %v1448_v28, %v1448_v28  ;;  %v1416_v55 = vadd.f32 %v1380_v41, %v2748_v62  ;;  %v2092_v56 = vpop.f32.mrb[113].mxu0 }
 0x45c   :  { %v1383_v5 = vpop.f32.mrb[114].mxu0 }
 0x45d   :  { %1515 = vst.msk [vmem:[%s2847_s6 + $0x14] sm:$0xf] %vm1509_vm5, %v1671_v27  ;;  %v1436_v57 = vadd.f32 %v2768_v2, %v1416_v55  ;;  %v1417_v6 = vadd.f32 %v1383_v5, %v2751_v3  ;;  %v2093_v48 = vpop.f32.mrb[115].mxu0 }
 0x45f   :  { %v1449_v49 = vmax.f32 %v1436_v57, 0.0  ;;  %v1437_v10 = vadd.f32 %v2768_v2, %v1417_v6 }
 0x461   :  { %v1672_v16 = vpack.c.bf16 %v1449_v49, %v1449_v49  ;;  %v1450_v51 = vmax.f32 %v1437_v10, 0.0 }
 0x462   :  { %v1388_v21 = vpop.f32.mrb[116].mxu0 }
 0x463   :  { %1516 = vst.msk [vmem:[%s2847_s6 + $0x18] sm:$0xf] %vm1509_vm5, %v1672_v16  ;;  %v1673_v62 = vpack.c.bf16 %v1450_v51, %v1450_v51  ;;  %v1418_v54 = vadd.f32 %v1388_v21, %v2754_v50  ;;  %v2096_v58 = vpop.f32.mrb[117].mxu0 }
 0x464   :  { %v1391_v59 = vpop.f32.mrb[118].mxu0 }
 0x465   :  { %1517 = vst.msk [vmem:[%s2847_s6 + $0x1c] sm:$0xf] %vm1509_vm5, %v1673_v62  ;;  %v1438_v3 = vadd.f32 %v2768_v2, %v1418_v54  ;;  %v1419_v60 = vadd.f32 %v1391_v59, %v2757_v52  ;;  %v2097_v61 = vpop.f32.mrb[119].mxu0 }
 0x467   :  { %v1451_v63 = vmax.f32 %v1438_v3, 0.0  ;;  %v1439_v0 = vadd.f32 %v2768_v2, %v1419_v60 }
 0x469   :  { %v1674_v1 = vpack.c.bf16 %v1451_v63, %v1451_v63  ;;  %v1452_v45 = vmax.f32 %v1439_v0, 0.0 }
 0x46a   :  { %v1396_v4 = vpop.f32.mrb[120].mxu0 }
 0x46b   :  { %1518 = vst.msk [vmem:[%s2847_s6 + $0x20] sm:$0xf] %vm1509_vm5, %v1674_v1  ;;  %v1675_v50 = vpack.c.bf16 %v1452_v45, %v1452_v45  ;;  %v1420_v7 = vadd.f32 %v1396_v4, %v2760_v26  ;;  %v2100_v42 = vpop.f32.mrb[121].mxu0 }
 0x46c   :  { %v1399_v8 = vpop.f32.mrb[122].mxu0 }
 0x46d   :  { %1519 = vst.msk [vmem:[%s2847_s6 + $0x24] sm:$0xf] %vm1509_vm5, %v1675_v50  ;;  %v1440_v52 = vadd.f32 %v2768_v2, %v1420_v7  ;;  %v1421_v9 = vadd.f32 %v1399_v8, %v2763_v33  ;;  %v2101_v11 = vpop.f32.mrb[123].mxu0 }
 0x46f   :  { %v1453_v47 = vmax.f32 %v1440_v52, 0.0  ;;  %v1441_v12 = vadd.f32 %v2768_v2, %v1421_v9 }
 0x471   :  { %v1676_v14 = vpack.c.bf16 %v1453_v47, %v1453_v47  ;;  %v1454_v53 = vmax.f32 %v1441_v12, 0.0 }
 0x472   :  { %v1404_v15 = vpop.f32.mrb[124].mxu0 }
 0x473   :  { %1520 = vst.msk [vmem:[%s2847_s6 + $0x28] sm:$0xf] %vm1509_vm5, %v1676_v14  ;;  %v1677_v26 = vpack.c.bf16 %v1454_v53, %v1454_v53  ;;  %v1422_v17 = vadd.f32 %v1404_v15, %v2766_v38  ;;  %v2104_v18 = vpop.f32.mrb[125].mxu0 }
 0x474   :  { %v1407_v19 = vpop.f32.mrb[126].mxu0 }
 0x475   :  { %1521 = vst.msk [vmem:[%s2847_s6 + $0x2c] sm:$0xf] %vm1509_vm5, %v1677_v26  ;;  %v1442_v33 = vadd.f32 %v2768_v2, %v1422_v17  ;;  %v2105_v20 = vpop.f32.mrb[127].mxu0 }
 0x477   :  { %v1455_v22 = vmax.f32 %v1442_v33, 0.0 }
 0x479   :  { %v1678_v23 = vpack.c.bf16 %v1455_v22, %v1455_v22 }
 0x47b   :  { %1523 = vst.msk [vmem:[%s2847_s6 + $0x30] sm:$0x1] %vm1522_vm6, %v1678_v23 }
 0x47c   :  { %1528 = vsyncpa [#allocation3], 1 }
 0x47d   :  { %1529 = vsyncpa [#allocation5], 1 }
 0x47e   :  { %1530 = vsyncpa [#allocation8], 1 }

// kernel: net_full_forward.3
= control target key start
LH: loop header
LB: loop body
LE: loop exit
PB: predicated region body
PF: predicated region fallthrough
CT: control target
= control target key end

     0   :  { %9 = vsyncpa [#allocation3], 0  ;;  %s20537_s0 = inlined_call_operand.vmem [shape: bf16[2,3136], index: 0, kind: input, shape index: {}]   ;;  %s20538_s1 = inlined_call_operand.hbm [shape: bf16[2,3136,1024], index: 1, kind: input, shape index: {}]   ;;  %s20539_s2 = inlined_call_operand.hbm [shape: f32[1,2048], index: 2, kind: input, shape index: {}]   ;;  %s20540_s3 = inlined_call_operand.hbm [shape: bf16[2048,768], index: 3, kind: input, shape index: {}]   ;;  %s20541_s4 = inlined_call_operand.vmem [shape: f32[2,2,768], index: 4, kind: output, shape index: {}]  }
   0x1   :  { %11 = vsyncpa [#allocation3 + $0x1], 0 }
   0x2   :  { %12 = vsyncpa [#allocation5], 0 }
   0x3   :  { %14 = vsyncpa [#allocation5 + $0x1], 0  ;;  %s18050_s15 = smov 0   ;;  %s18052_s16 = smov 0  }
   0x4   :  { %s18054_s17 = smov 0   ;;  %s18056_s18 = smov 0  }
   0x5 LB: > { %s18069_s19 = sadd.s32 4294967295, %s18013_s18   ;;  %s18072_s20 = sadd.s32 1, %s18013_s18   ;;  %s18013_s18 = sphi %s18056_s18, %s20552_s18   ;;  %s18009_s17 = sphi %s18054_s17, %s20551_s17   ;;  %s18005_s16 = sphi %s18052_s16, %s20550_s16   ;;  %s18001_s15 = sphi %s18050_s15, %s20549_s15  }
   0x6   : > { %s45_s21 = ssub.s32 %s18013_s18, %s18072_s20  ;;  %s48_s22 = sadd.s32 1, %s18009_s17 }
   0x7   : > { %p46_p0 = scmp.eq.s32.totalorder %s45_s21, 0  ;;  %p55_p1 = scmp.ne.s32.totalorder %s18009_s17, %s18005_s16 }
   0x8   : > { %p56_p2 = scmp.eq.s32.totalorder %s18013_s18, 0  ;;  %p61_p3 = scmp.ne.s32.totalorder %s18005_s16, %s18001_s15 }
   0x9   : > { %s18082_s23 = scalar_select %p46_p0, %s18009_s17, %s48_s22  }
   0xa   : > { %p57_p4 = por %p56_p2, %p55_p1  ;;  %p62_p5 = scmp.eq.s32.totalorder %s18069_s19, 0 }
   0xb   : > { %p17264_p6 = scmp.lt.s32.totalorder %s18013_s18, 2  ;;  %s18091_s25 = sand.u32 1, %s18009_s17  }
   0xc   : > { %p18086_p7 = por %p62_p5, %p61_p3  ;;  %s187_s27 = sand.u32 1, %s18013_s18  }
   0xd   : > { %p18093_p8 = pnand %p17264_p6, %p57_p4  ;;  %s15037_s28 = sshll.u32 %s18091_s25, 3 }
   0xe   : > { %s20543_s24 = scalar_select %p18086_p7, 1, 0 }
   0xf   : > { %s17006_s29 = sshll.u32 %s18013_s18, 7  ;;  %s191_s30 = scalar_lea.vmem [#allocation4], %s15037_s28 }
  0x10   : > { %s199_s5 = sshll.u32 %s191_s30, 4  ;;  %s18103_s8 = scalar_lea.hbm %s20539_s2, %s17006_s29  ;;  %s18105_s5 = int_to_ptr.vmem [resolvable:$true] %s199_s5 }
  0x11   : > { %s18107_s9 = scalar_lea.sflag [#allocation5], %s187_s27  ;;  %s17885_s10 = scalar_lea.hbm %s18103_s8, 128 }
  0x12   : > { %p17886_p9 = scmp.ne.s32.totalorder %s18103_s8, %s17885_s10  ;;  %p18113_p10 = pneg %p18093_p8 }
  0x13   : > { %s17890_s14 = scalar_lea.hbm %s20539_s2, 256  ;;  %p17891_p13 = scmp.lt.u32.totalorder %s18103_s8, %s20539_s2 }
  0x14   : > { %p17888_p11 = pnand %p18113_p10, %p17886_p9  ;;  %p17892_p0 = scmp.lt.u32.totalorder %s17890_s14, %s17885_s10 }
  0x15   : > { %p17894_p2 = scmp.lt.u32.totalorder %s17885_s10, %s18103_s8 }
  0x16   : > { %p17889_p12 = pneg %p17888_p11  ;;  %p17893_p1 = por %p17892_p0, %p17891_p13 }
  0x18   : > { %p17895_p3 = por %p17894_p2, %p17893_p1 }
  0x1a   : > { %p17896_p4 = pnand %p17895_p3, %p17889_p12 }
  0x1c   : > { %17899 = shalt.err (!%p17896_p4)
}
  0x1d   : > { %s17900_s22 = scalar_lea.vmem %s18105_s5, 128  ;;  %s18015_s27 = smov [#allocation4]  }
  0x1e   : > { %p17901_p5 = scmp.ne.s32.totalorder %s18105_s5, %s17900_s22  ;;  %s17905_s28 = sshll.u32 %s18015_s27, 4  ;;  %s17906_s28 = int_to_ptr.vmem [resolvable:$false] %s17905_s28 }
  0x1f   : > { %s17907_s29 = scalar_lea.vmem %s17906_s28, 256  ;;  %p17908_p11 = scmp.lt.s32.totalorder %s18105_s5, %s17906_s28 }
  0x20   : > { %p17903_p6 = pnand %p17901_p5, %p18113_p10  ;;  %p17909_p7 = scmp.lt.s32.totalorder %s17907_s29, %s17900_s22 }
  0x22   : > { %p17904_p9 = pneg %p17903_p6  ;;  %p17910_p13 = por %p17909_p7, %p17908_p11 }
  0x24   : > { %p17911_p0 = pnand %p17910_p13, %p17904_p9 }
  0x26   : > { %17914 = shalt.err (!%p17911_p0)
}
  0x27   : > { %17260 = dma.hbm_to_vmem [thread:$0]  (!%p18093_p8), %s18103_s8, 128, %s18105_s5, %s18107_s9  }
  0x28   : > { %s17243_s30 = smul.u32 3072, %s18091_s25  ;;  %p15043_p12 = scmp.ge.s32.totalorder %s18013_s18, 1 }
  0x29   : > { %p226_p1 = scmp.lt.s32.totalorder %s18013_s18, 3  ;;  %s17241_s6 = smul.u32 12544, %s18091_s25 }
  0x2a   : > { %s17242_s10 = smul.u32 200704, %s18013_s18  ;;  %s167_s8 = scalar_lea.sflag [#allocation3], %s18091_s25 }
  0x2b   : > { %p18141_p7 = pnand %p15043_p12, %p226_p1  ;;  %s170_s15 = scalar_lea.vmem [#allocation2], %s17241_s6 }
  0x2c   : > { %s18149_s14 = scalar_lea.hbm %s20538_s1, %s17242_s10  ;;  %s177_s5 = sshll.u32 %s170_s15, 4  ;;  %s18151_s5 = int_to_ptr.vmem [resolvable:$true] %s177_s5 }
  0x2d   : > { %s20546_s7 = scalar_select %p18141_p7, 1, 0 }
  0x2e   : > { %s17915_s21 = scalar_lea.hbm %s18149_s14, 200704  ;;  %s17920_s28 = scalar_lea.hbm %s20538_s1, 401408 }
  0x2f   : > { %p17916_p2 = scmp.ne.s32.totalorder %s18149_s14, %s17915_s21  ;;  %p17921_p5 = scmp.lt.u32.totalorder %s18149_s14, %s20538_s1 }
  0x30   : > { %p17922_p6 = scmp.lt.u32.totalorder %s17920_s28, %s17915_s21  ;;  %p17924_p11 = scmp.lt.u32.totalorder %s17915_s21, %s18149_s14 }
  0x31   : > { %p17918_p3 = pnand %p17916_p2, %p18113_p10 }
  0x32   : > { %p17923_p9 = por %p17922_p6, %p17921_p5 }
  0x33   : > { %p17919_p4 = pneg %p17918_p3 }
  0x34   : > { %p17925_p13 = por %p17924_p11, %p17923_p9 }
  0x36   : > { %p17926_p0 = pnand %p17925_p13, %p17919_p4 }
  0x38   : > { %17929 = shalt.err (!%p17926_p0)
}
  0x39   : > { %s17930_s6 = scalar_lea.vmem %s18151_s5, 200704  ;;  %s18016_s12 = smov [#allocation2]  }
  0x3a   : > { %p17931_p12 = scmp.ne.s32.totalorder %s18151_s5, %s17930_s6  ;;  %s17935_s13 = sshll.u32 %s18016_s12, 4  ;;  %s17936_s13 = int_to_ptr.vmem [resolvable:$false] %s17935_s13 }
  0x3b   : > { %s17937_s15 = scalar_lea.vmem %s17936_s13, 401408  ;;  %p17938_p3 = scmp.lt.s32.totalorder %s18151_s5, %s17936_s13 }
  0x3c   : > { %p17933_p1 = pnand %p17931_p12, %p18113_p10  ;;  %p17939_p7 = scmp.lt.s32.totalorder %s17937_s15, %s17930_s6 }
  0x3e   : > { %p17934_p2 = pneg %p17933_p1  ;;  %p17940_p5 = por %p17939_p7, %p17938_p3 }
  0x40   : > { %p17941_p6 = pnand %p17940_p5, %p17934_p2 }
  0x42   : > { %17944 = shalt.err (!%p17941_p6)
}
  0x43   : > { %s18017_s21 = smov 512   ;;  %s18018_s22 = smov 32  }
  0x44   : > { %17257 = dma.hbm_to_vmem [thread:$0]  (!%p18093_p8), %s18149_s14, 200704, %s18151_s5, %s167_s8, %s18017_s21, %s18017_s21, %s18018_s22  }
  0x45   : > { %s17244_s27 = smul.u32 49152, %s18013_s18  ;;  %s210_s28 = scalar_lea.vmem [#allocation6], %s17243_s30 }
  0x46   : > { %s218_s29 = sshll.u32 %s210_s28, 4  ;;  %s17950_s30 = scalar_lea.hbm %s20540_s3, 98304  ;;  %s18180_s29 = int_to_ptr.vmem [resolvable:$true] %s218_s29 }
  0x47   : > { %s18185_s12 = scalar_lea.hbm %s20540_s3, %s17244_s27 }
  0x48   : > { %s17945_s13 = scalar_lea.hbm %s18185_s12, 49152  ;;  %p17951_p11 = scmp.lt.u32.totalorder %s18185_s12, %s20540_s3 }
  0x49   : > { %p17946_p7 = scmp.ne.s32.totalorder %s18185_s12, %s17945_s13  ;;  %p17952_p13 = scmp.lt.u32.totalorder %s17950_s30, %s17945_s13 }
  0x4a   : > { %p17954_p12 = scmp.lt.u32.totalorder %s17945_s13, %s18185_s12 }
  0x4b   : > { %p17948_p4 = pnand %p17946_p7, %p18113_p10  ;;  %p17953_p0 = por %p17952_p13, %p17951_p11 }
  0x4d   : > { %p17949_p9 = pneg %p17948_p4  ;;  %p17955_p1 = por %p17954_p12, %p17953_p0 }
  0x4f   : > { %p17956_p2 = pnand %p17955_p1, %p17949_p9 }
  0x51   : > { %17959 = shalt.err (!%p17956_p2)
}
  0x52   : > { %s17960_s8 = scalar_lea.vmem %s18180_s29, 49152  ;;  %s18019_s15 = smov [#allocation6]  }
  0x53   : > { %p17961_p3 = scmp.ne.s32.totalorder %s18180_s29, %s17960_s8  ;;  %s17965_s21 = sshll.u32 %s18019_s15, 4  ;;  %s17966_s21 = int_to_ptr.vmem [resolvable:$false] %s17965_s21 }
  0x54   : > { %s17967_s22 = scalar_lea.vmem %s17966_s21, 98304  ;;  %p17968_p7 = scmp.lt.s32.totalorder %s18180_s29, %s17966_s21 }
  0x55   : > { %p17963_p5 = pnand %p17961_p3, %p18113_p10  ;;  %p17969_p4 = scmp.lt.s32.totalorder %s17967_s22, %s17960_s8 }
  0x57   : > { %p17964_p6 = pneg %p17963_p5  ;;  %p17970_p11 = por %p17969_p4, %p17968_p7 }
  0x59   : > { %p17971_p13 = pnand %p17970_p11, %p17964_p6 }
  0x5b   : > { %17974 = shalt.err (!%p17971_p13)
}
  0x5c   : > { %s18020_s27 = smov 384   ;;  %s18021_s28 = smov 24  }
  0x5d   : > { %17263 = dma.hbm_to_vmem [thread:$0]  (!%p18093_p8), %s18185_s12, 49152, %s18180_s29, %s18107_s9, %s18020_s27, %s18020_s27, %s18021_s28  }
  0x5e   : > { %p20547_p10 = scmp.ne.s32.totalorder %s20546_s7, 0 }
  0x5f   : > { %s18212_s11 = sand.u32 (!%p20547_p10), 1, %s18005_s16   ;;  %p20548_p9 = scmp.ne.s32.totalorder (!%p20547_p10), %s20543_s24, 0 }
  0x60   : > { %230 = sbr.rel (%p20547_p10) target bundleno = 2500 (0x9c4), region = 36  ;;  %s233_s6 = scalar_lea.sflag (!%p20547_p10), [#allocation3], %s18212_s11 }
  0x61   : > { %s17245_s10 = smul.u32 (!%p20547_p10), 12544, %s18212_s11 }
  0x63   : > { %s18216_s13 = scalar_lea.vmem (!%p20547_p10), [#allocation2], %s17245_s10 }
  0x67   : > { %17992 = dma.done.wait (%p20548_p9), %s233_s6, 200704  }
  0x68   : > { %17994 = vsyncadd (%p20548_p9), %s233_s6, 4294766592  ;;  %s241_s26 = sand.u32 1, %s18069_s19   ;;  %s15044_s9 = sshll.u32 %s18212_s11, 3 }
  0x69   : > { %s242_s7 = scalar_lea.sflag [#allocation5], %s241_s26  ;;  %s18224_s29 = scalar_lea.vmem [#allocation4], %s15044_s9 }
  0x6a   : > { %17996 = dma.done.wait (%p20548_p9), %s242_s7, 49280  }
  0x6b   : > { %17998 = vsyncadd (%p20548_p9), %s242_s7, 4294918016  ;;  %v301_v0 = vld [vmem:[%s18216_s13] sm:$0xff]  ;;  %v1871_v32 = vlaneseq  ;;  %v18022_v33 = vmov 1966171168   ;;  %vm9940_vm0 = vcmask 523264   ;;  %s17246_s15 = smul.u32 3072, %s18212_s11 }
  0x6c   : > { %v305_v1 = vld [vmem:[%s18216_s13 + $0x20] sm:$0xff]  ;;  %v1917_v34 = vunpack.c.l.s4 %v18022_v33  ;;  %p291_p8 = scmp.lt.s32.totalorder %s18069_s19, 1 }
  0x6d   : > { %v557_v2 = vld [vmem:[%s18216_s13 + $0x800] sm:$0xff]  ;;  %v15048_v3 = vcombine.high %v301_v0, %v305_v1  ;;  %v15047_v5 = vcombine.low %v301_v0, %v305_v1  ;;  %v18252_v43 = vshrl.u32 %v1871_v32, 7  ;;  %s19809_s21 = scalar_lea.vmem [#allocation6], %s17246_s15 }
  0x6e   : > { %v561_v4 = vld [vmem:[%s18216_s13 + $0x820] sm:$0xff]  ;;  %v1918_v44 = vunpack.c.0.s8 %v1917_v34  ;;  %s20554_s19 = smov (!%p291_p8, %s18069_s19), 1 }
  0x6f   : > { %v309_v6 = vld [vmem:[%s18216_s13 + $0x40] sm:$0xff]  ;;  %v15304_v8 = vcombine.high %v557_v2, %v561_v4  ;;  %v15303_v9 = vcombine.low %v557_v2, %v561_v4  ;;  %9944 = vmatprep.subr.bf16.mxu1 %v15048_v3  ;;  %s17247_s22 = smul.u32 12, %s20554_s19 }
  0x70   : > { %v313_v7 = vld [vmem:[%s18216_s13 + $0x60] sm:$0xff]  ;;  %9945 = vmatpush1.bf16.msra.mxu1 %v15047_v5  ;;  %v18259_v53 = vsub.s32 %v1918_v44, %v18252_v43 }
  0x71   : > { %v15056_v10 = vcombine.high %v309_v6, %v313_v7  ;;  %v565_v11 = vld [vmem:[%s18216_s13 + $0x840] sm:$0xff]  ;;  %10026 = vmatprep.subr.bf16.mxu0 %v15304_v8  ;;  %v15055_v18 = vcombine.low %v309_v6, %v313_v7  ;;  %s295_s11 = scalar_lea.vmem %s20541_s4, %s17247_s22 }
  0x72   : > { %v569_v12 = vld [vmem:[%s18216_s13 + $0x860] sm:$0xff]  ;;  %10027 = vmatpush1.bf16.msra.mxu0 %v15303_v9 }
  0x73   : > { %v317_v13 = vld [vmem:[%s18216_s13 + $0x80] sm:$0xff]  ;;  %v15312_v14 = vcombine.high %v565_v11, %v569_v12  ;;  %9946 = vmatprep.subr.bf16.mxu1 %v15056_v10  ;;  %v15311_v19 = vcombine.low %v565_v11, %v569_v12 }
  0x74   : > { %v321_v15 = vld [vmem:[%s18216_s13 + $0xa0] sm:$0xff]  ;;  %9947 = vmatpush1.bf16.msra.mxu1 %v15055_v18 }
  0x75   : > { %v573_v16 = vld [vmem:[%s18216_s13 + $0x880] sm:$0xff]  ;;  %v15064_v20 = vcombine.high %v317_v13, %v321_v15  ;;  %10028 = vmatprep.subr.bf16.mxu0 %v15312_v14  ;;  %v15063_v26 = vcombine.low %v317_v13, %v321_v15 }
  0x76   : > { %v577_v17 = vld [vmem:[%s18216_s13 + $0x8a0] sm:$0xff]  ;;  %10029 = vmatpush1.bf16.msra.mxu0 %v15311_v19 }
  0x77   : > { %v15320_v21 = vcombine.high %v573_v16, %v577_v17  ;;  %v325_v22 = vld [vmem:[%s18216_s13 + $0xc0] sm:$0xff]  ;;  %9948 = vmatprep.subr.bf16.mxu1 %v15064_v20  ;;  %v15319_v27 = vcombine.low %v573_v16, %v577_v17 }
  0x78   : > { %v329_v23 = vld [vmem:[%s18216_s13 + $0xe0] sm:$0xff]  ;;  %9949 = vmatpush1.bf16.msra.mxu1 %v15063_v26 }
  0x79   : > { %v581_v24 = vld [vmem:[%s18216_s13 + $0x8c0] sm:$0xff]  ;;  %v15072_v28 = vcombine.high %v325_v22, %v329_v23  ;;  %10030 = vmatprep.subr.bf16.mxu0 %v15320_v21  ;;  %v15071_v37 = vcombine.low %v325_v22, %v329_v23 }
  0x7a   : > { %v585_v25 = vld [vmem:[%s18216_s13 + $0x8e0] sm:$0xff]  ;;  %10031 = vmatpush1.bf16.msra.mxu0 %v15319_v27 }
  0x7b   : > { %v15328_v29 = vcombine.high %v581_v24, %v585_v25  ;;  %v333_v30 = vld [vmem:[%s18216_s13 + $0x100] sm:$0xff]  ;;  %9950 = vmatprep.subr.bf16.mxu1 %v15072_v28  ;;  %v15327_v38 = vcombine.low %v581_v24, %v585_v25 }
  0x7c   : > { %v337_v31 = vld [vmem:[%s18216_s13 + $0x120] sm:$0xff]  ;;  %9951 = vmatpush1.bf16.msra.mxu1 %v15071_v37 }
  0x7d   : > { %v589_v35 = vld [vmem:[%s18216_s13 + $0x900] sm:$0xff]  ;;  %v15080_v39 = vcombine.high %v333_v30, %v337_v31  ;;  %10032 = vmatprep.subr.bf16.mxu0 %v15328_v29  ;;  %v15079_v47 = vcombine.low %v333_v30, %v337_v31 }
  0x7e   : > { %v593_v36 = vld [vmem:[%s18216_s13 + $0x920] sm:$0xff]  ;;  %10033 = vmatpush1.bf16.msra.mxu0 %v15327_v38 }
  0x7f   : > { %v15336_v40 = vcombine.high %v589_v35, %v593_v36  ;;  %v341_v41 = vld [vmem:[%s18216_s13 + $0x140] sm:$0xff]  ;;  %9952 = vmatprep.subr.bf16.mxu1 %v15080_v39  ;;  %v15335_v48 = vcombine.low %v589_v35, %v593_v36 }
  0x80   : > { %v345_v42 = vld [vmem:[%s18216_s13 + $0x160] sm:$0xff]  ;;  %9953 = vmatpush1.bf16.msra.mxu1 %v15079_v47 }
  0x81   : > { %v597_v45 = vld [vmem:[%s18216_s13 + $0x940] sm:$0xff]  ;;  %v15088_v49 = vcombine.high %v341_v41, %v345_v42  ;;  %10034 = vmatprep.subr.bf16.mxu0 %v15336_v40  ;;  %v15087_v56 = vcombine.low %v341_v41, %v345_v42 }
  0x82   : > { %v601_v46 = vld [vmem:[%s18216_s13 + $0x960] sm:$0xff]  ;;  %10035 = vmatpush1.bf16.msra.mxu0 %v15335_v48 }
  0x83   : > { %v15344_v50 = vcombine.high %v597_v45, %v601_v46  ;;  %v349_v51 = vld [vmem:[%s18216_s13 + $0x180] sm:$0xff]  ;;  %9954 = vmatprep.subr.bf16.mxu1 %v15088_v49  ;;  %v15343_v57 = vcombine.low %v597_v45, %v601_v46 }
  0x84   : > { %v353_v52 = vld [vmem:[%s18216_s13 + $0x1a0] sm:$0xff]  ;;  %9955 = vmatpush1.bf16.msra.mxu1 %v15087_v56 }
  0x85   : > { %v605_v54 = vld [vmem:[%s18216_s13 + $0x980] sm:$0xff]  ;;  %v15096_v58 = vcombine.high %v349_v51, %v353_v52  ;;  %10036 = vmatprep.subr.bf16.mxu0 %v15344_v50  ;;  %v15095_v3 = vcombine.low %v349_v51, %v353_v52 }
  0x86   : > { %v609_v55 = vld [vmem:[%s18216_s13 + $0x9a0] sm:$0xff]  ;;  %10037 = vmatpush1.bf16.msra.mxu0 %v15343_v57 }
  0x87   : > { %v297_v59 = vld [vmem:[%s20537_s0] sm:$0xff]  ;;  %v15352_v60 = vcombine.high %v605_v54, %v609_v55  ;;  %9956 = vmatprep.subr.bf16.mxu1 %v15096_v58  ;;  %v15351_v6 = vcombine.low %v605_v54, %v609_v55 }
  0x88   : > { %v357_v61 = vld [vmem:[%s18216_s13 + $0x1c0] sm:$0xff]  ;;  %v18269_v63 = vrot.slane %v297_v59, %v18259_v53  ;;  %v1915_v0 = vcombine.high %v297_v59, %v297_v59  ;;  %9957 = vmatpush1.bf16.msra.mxu1 %v15095_v3 }
  0x89   : > { %v361_v62 = vld [vmem:[%s18216_s13 + $0x1e0] sm:$0xff]  ;;  %10038 = vmatprep.subr.bf16.mxu0 %v15352_v60 }
  0x8a   : > { %v613_v1 = vld [vmem:[%s18216_s13 + $0x9c0] sm:$0xff]  ;;  %v1930_v4 = vcombine.high %v18269_v63, %v18269_v63  ;;  %v18276_v5 = vrot.slane %v1915_v0, %v18259_v53  ;;  %v15104_v7 = vcombine.high %v357_v61, %v361_v62  ;;  %v15103_v15 = vcombine.low %v357_v61, %v361_v62  ;;  %10039 = vmatpush1.bf16.msra.mxu0 %v15351_v6 }
  0x8b   : > { %v617_v2 = vld [vmem:[%s18216_s13 + $0x9e0] sm:$0xff] }
  0x8c   : > { %v15360_v8 = vcombine.high %v613_v1, %v617_v2  ;;  %v365_v9 = vld [vmem:[%s18216_s13 + $0x200] sm:$0xff]  ;;  %v18281_v11 = vrot.slane %v1930_v4, %v18259_v53  ;;  %v1931_v12 = vcombine.high %v18276_v5, %v18276_v5  ;;  %9958 = vmatprep.subr.bf16.mxu1 %v15104_v7  ;;  %v15359_v17 = vcombine.low %v613_v1, %v617_v2 }
  0x8d   : > { %v369_v10 = vld [vmem:[%s18216_s13 + $0x220] sm:$0xff]  ;;  %9959 = vmatpush1.bf16.msra.mxu1 %v15103_v15 }
  0x8e   : > { %v621_v13 = vld [vmem:[%s18216_s13 + $0xa00] sm:$0xff]  ;;  %9976 = vmatprep.mubr.bf16.mxu1 %v18281_v11  ;;  %v18289_v16 = vrot.slane %v1931_v12, %v18259_v53  ;;  %v15112_v18 = vcombine.high %v365_v9, %v369_v10  ;;  %10040 = vmatprep.subr.bf16.mxu0 %v15360_v8  ;;  %v15111_v24 = vcombine.low %v365_v9, %v369_v10 }
  0x8f   : > { %v625_v14 = vld [vmem:[%s18216_s13 + $0xa20] sm:$0xff]  ;;  %10041 = vmatpush1.bf16.msra.mxu0 %v15359_v17 }
  0x90   : > { %v15368_v19 = vcombine.high %v621_v13, %v625_v14  ;;  %v373_v20 = vld [vmem:[%s18216_s13 + $0x240] sm:$0xff]  ;;  %10058 = vmatprep.mubr.bf16.mxu0 %v18289_v16  ;;  %9960 = vmatprep.subr.bf16.mxu1 %v15112_v18  ;;  %v15367_v25 = vcombine.low %v621_v13, %v625_v14 }
  0x91   : > { %v377_v21 = vld [vmem:[%s18216_s13 + $0x260] sm:$0xff]  ;;  %9961 = vmatpush1.bf16.msra.mxu1 %v15111_v24 }
  0x92   : > { %v629_v22 = vld [vmem:[%s18216_s13 + $0xa40] sm:$0xff]  ;;  %v15120_v26 = vcombine.high %v373_v20, %v377_v21  ;;  %10042 = vmatprep.subr.bf16.mxu0 %v15368_v19  ;;  %v15119_v32 = vcombine.low %v373_v20, %v377_v21 }
  0x93   : > { %v633_v23 = vld [vmem:[%s18216_s13 + $0xa60] sm:$0xff]  ;;  %10043 = vmatpush1.bf16.msra.mxu0 %v15367_v25 }
  0x94   : > { %v15376_v27 = vcombine.high %v629_v22, %v633_v23  ;;  %v381_v28 = vld [vmem:[%s18216_s13 + $0x280] sm:$0xff]  ;;  %9962 = vmatprep.subr.bf16.mxu1 %v15120_v26  ;;  %v15375_v33 = vcombine.low %v629_v22, %v633_v23 }
  0x95   : > { %v385_v29 = vld [vmem:[%s18216_s13 + $0x2a0] sm:$0xff]  ;;  %9963 = vmatpush1.bf16.msra.mxu1 %v15119_v32  ;;  %v18334_v32 = vrot.slane %v18276_v5, %v18259_v53 }
  0x96   : > { %v637_v30 = vld [vmem:[%s18216_s13 + $0xa80] sm:$0xff]  ;;  %v15128_v34 = vcombine.high %v381_v28, %v385_v29  ;;  %10044 = vmatprep.subr.bf16.mxu0 %v15376_v27  ;;  %v15127_v40 = vcombine.low %v381_v28, %v385_v29  ;;  %v18328_v28 = vrot.slane %v18269_v63, %v18259_v53 }
  0x97   : > { %v641_v31 = vld [vmem:[%s18216_s13 + $0xaa0] sm:$0xff]  ;;  %10045 = vmatpush1.bf16.msra.mxu0 %v15375_v33 }
  0x98   : > { %v15384_v35 = vcombine.high %v637_v30, %v641_v31  ;;  %v389_v36 = vld [vmem:[%s18216_s13 + $0x2c0] sm:$0xff]  ;;  %9964 = vmatprep.subr.bf16.mxu1 %v15128_v34  ;;  %v15383_v41 = vcombine.low %v637_v30, %v641_v31 }
  0x99   : > { %v393_v37 = vld [vmem:[%s18216_s13 + $0x2e0] sm:$0xff]  ;;  %9965 = vmatpush1.bf16.msra.mxu1 %v15127_v40 }
  0x9a   : > { %v645_v38 = vld [vmem:[%s18216_s13 + $0xac0] sm:$0xff]  ;;  %v15136_v42 = vcombine.high %v389_v36, %v393_v37  ;;  %10046 = vmatprep.subr.bf16.mxu0 %v15384_v35  ;;  %v15135_v49 = vcombine.low %v389_v36, %v393_v37  ;;  %v18340_v37 = vcombine.high %v18281_v11, %v18281_v11 }
  0x9b   : > { %v649_v39 = vld [vmem:[%s18216_s13 + $0xae0] sm:$0xff]  ;;  %10047 = vmatpush1.bf16.msra.mxu0 %v15383_v41 }
  0x9c   : > { %v15392_v44 = vcombine.high %v645_v38, %v649_v39  ;;  %v397_v45 = vld [vmem:[%s18216_s13 + $0x300] sm:$0xff]  ;;  %9966 = vmatprep.subr.bf16.mxu1 %v15136_v42  ;;  %v15391_v50 = vcombine.low %v645_v38, %v649_v39  ;;  %v18347_v39 = vcombine.high %v18289_v16, %v18289_v16 }
  0x9d   : > { %v401_v46 = vld [vmem:[%s18216_s13 + $0x320] sm:$0xff]  ;;  %9967 = vmatpush1.bf16.msra.mxu1 %v15135_v49 }
  0x9e   : > { %v653_v47 = vld [vmem:[%s18216_s13 + $0xb00] sm:$0xff]  ;;  %v15144_v51 = vcombine.high %v397_v45, %v401_v46  ;;  %10048 = vmatprep.subr.bf16.mxu0 %v15392_v44  ;;  %v15143_v58 = vcombine.low %v397_v45, %v401_v46 }
  0x9f   : > { %v657_v48 = vld [vmem:[%s18216_s13 + $0xb20] sm:$0xff]  ;;  %10049 = vmatpush1.bf16.msra.mxu0 %v15391_v50 }
  0xa0   : > { %v15400_v52 = vcombine.high %v653_v47, %v657_v48  ;;  %v405_v54 = vld [vmem:[%s18216_s13 + $0x340] sm:$0xff]  ;;  %9968 = vmatprep.subr.bf16.mxu1 %v15144_v51  ;;  %v15399_v59 = vcombine.low %v653_v47, %v657_v48 }
  0xa1   : > { %v409_v55 = vld [vmem:[%s18216_s13 + $0x360] sm:$0xff]  ;;  %9969 = vmatpush1.bf16.msra.mxu1 %v15143_v58 }
  0xa2   : > { %v661_v56 = vld [vmem:[%s18216_s13 + $0xb40] sm:$0xff]  ;;  %v15152_v60 = vcombine.high %v405_v54, %v409_v55  ;;  %10050 = vmatprep.subr.bf16.mxu0 %v15400_v52  ;;  %v15151_v3 = vcombine.low %v405_v54, %v409_v55 }
  0xa3   : > { %v665_v57 = vld [vmem:[%s18216_s13 + $0xb60] sm:$0xff]  ;;  %10051 = vmatpush1.bf16.msra.mxu0 %v15399_v59 }
  0xa4   : > { %v15408_v61 = vcombine.high %v661_v56, %v665_v57  ;;  %v413_v62 = vld [vmem:[%s18216_s13 + $0x380] sm:$0xff]  ;;  %9970 = vmatprep.subr.bf16.mxu1 %v15152_v60  ;;  %v15407_v4 = vcombine.low %v661_v56, %v665_v57 }
  0xa5   : > { %v417_v0 = vld [vmem:[%s18216_s13 + $0x3a0] sm:$0xff]  ;;  %9971 = vmatpush1.bf16.msra.mxu1 %v15151_v3 }
  0xa6   : > { %v669_v1 = vld [vmem:[%s18216_s13 + $0xb80] sm:$0xff]  ;;  %v15160_v6 = vcombine.high %v413_v62, %v417_v0  ;;  %10052 = vmatprep.subr.bf16.mxu0 %v15408_v61  ;;  %v15159_v13 = vcombine.low %v413_v62, %v417_v0 }
  0xa7   : > { %v673_v2 = vld [vmem:[%s18216_s13 + $0xba0] sm:$0xff]  ;;  %10053 = vmatpush1.bf16.msra.mxu0 %v15407_v4 }
  0xa8   : > { %v15416_v7 = vcombine.high %v669_v1, %v673_v2  ;;  %v421_v8 = vld [vmem:[%s18216_s13 + $0x3c0] sm:$0xff]  ;;  %9972 = vmatprep.subr.bf16.mxu1 %v15160_v6  ;;  %v15415_v14 = vcombine.low %v669_v1, %v673_v2 }
  0xa9   : > { %v425_v9 = vld [vmem:[%s18216_s13 + $0x3e0] sm:$0xff]  ;;  %9973 = vmatpush1.bf16.msra.mxu1 %v15159_v13 }
  0xaa   : > { %v677_v10 = vld [vmem:[%s18216_s13 + $0xbc0] sm:$0xff]  ;;  %v15168_v15 = vcombine.high %v421_v8, %v425_v9  ;;  %10054 = vmatprep.subr.bf16.mxu0 %v15416_v7  ;;  %v15167_v22 = vcombine.low %v421_v8, %v425_v9 }
  0xab   : > { %v681_v12 = vld [vmem:[%s18216_s13 + $0xbe0] sm:$0xff]  ;;  %10055 = vmatpush1.bf16.msra.mxu0 %v15415_v14 }
  0xac   : > { %v15424_v17 = vcombine.high %v677_v10, %v681_v12  ;;  %v429_v18 = vld [vmem:[%s18216_s13 + $0x400] sm:$0xff]  ;;  %9974 = vmatprep.subr.bf16.mxu1 %v15168_v15  ;;  %v15423_v23 = vcombine.low %v677_v10, %v681_v12 }
  0xad   : > { %v433_v19 = vld [vmem:[%s18216_s13 + $0x420] sm:$0xff]  ;;  %9975 = vmatpush1.bf16.msra.mxu1 %v15167_v22 }
  0xae   : > { %v685_v20 = vld [vmem:[%s18216_s13 + $0xc00] sm:$0xff]  ;;  %v15176_v24 = vcombine.high %v429_v18, %v433_v19  ;;  %10056 = vmatprep.subr.bf16.mxu0 %v15424_v17  ;;  %v15175_v31 = vcombine.low %v429_v18, %v433_v19 }
  0xaf   : > { %v689_v21 = vld [vmem:[%s18216_s13 + $0xc20] sm:$0xff]  ;;  %10057 = vmatpush1.bf16.msra.mxu0 %v15423_v23 }
  0xb0   : > { %v15432_v25 = vcombine.high %v685_v20, %v689_v21  ;;  %v437_v26 = vld [vmem:[%s18216_s13 + $0x440] sm:$0xff]  ;;  %9985 = vmatprep.subr.bf16.mxu1 %v15176_v24  ;;  %v15431_v33 = vcombine.low %v685_v20, %v689_v21  ;;  %9977 = vmatmul.mubr.bf16.vlgmr.msra.gmra.mrb[0].mxu1 %v18328_v28 }
  0xb1   : > { %v441_v27 = vld [vmem:[%s18216_s13 + $0x460] sm:$0xff]  ;;  %9986 = vmatpush1.bf16.msra.mxu1 %v15175_v31  ;;  %10017 = vmatprep.mubr.bf16.mxu1 %v18340_v37 }
  0xb2   : > { %v693_v29 = vld [vmem:[%s18216_s13 + $0xc40] sm:$0xff]  ;;  %v15184_v34 = vcombine.high %v437_v26, %v441_v27  ;;  %10067 = vmatprep.subr.bf16.mxu0 %v15432_v25  ;;  %10059 = vmatmul.mubr.bf16.vlgmr.msra.gmra.mrb[0].mxu0 %v18334_v32  ;;  %v15183_v40 = vcombine.low %v437_v26, %v441_v27 }
  0xb3   : > { %v697_v30 = vld [vmem:[%s18216_s13 + $0xc60] sm:$0xff]  ;;  %10068 = vmatpush1.bf16.msra.mxu0 %v15431_v33  ;;  %10099 = vmatprep.mubr.bf16.mxu0 %v18347_v39 }
  0xb4   : > { %v15440_v35 = vcombine.high %v693_v29, %v697_v30  ;;  %v445_v36 = vld [vmem:[%s18216_s13 + $0x480] sm:$0xff]  ;;  %9987 = vmatprep.subr.bf16.mxu1 %v15184_v34  ;;  %v15439_v41 = vcombine.low %v693_v29, %v697_v30 }
  0xb5   : > { %v449_v63 = vld [vmem:[%s18216_s13 + $0x4a0] sm:$0xff]  ;;  %9988 = vmatpush1.bf16.msra.mxu1 %v15183_v40 }
  0xb6   : > { %v701_v38 = vld [vmem:[%s18216_s13 + $0xc80] sm:$0xff]  ;;  %v15192_v42 = vcombine.high %v445_v36, %v449_v63  ;;  %10069 = vmatprep.subr.bf16.mxu0 %v15440_v35  ;;  %v15191_v49 = vcombine.low %v445_v36, %v449_v63 }
  0xb7   : > { %v705_v5 = vld [vmem:[%s18216_s13 + $0xca0] sm:$0xff]  ;;  %10070 = vmatpush1.bf16.msra.mxu0 %v15439_v41 }
  0xb8   : > { %v15448_v44 = vcombine.high %v701_v38, %v705_v5  ;;  %v453_v45 = vld [vmem:[%s18216_s13 + $0x4c0] sm:$0xff]  ;;  %9989 = vmatprep.subr.bf16.mxu1 %v15192_v42  ;;  %v15447_v50 = vcombine.low %v701_v38, %v705_v5 }
  0xb9   : > { %v457_v46 = vld [vmem:[%s18216_s13 + $0x4e0] sm:$0xff]  ;;  %9990 = vmatpush1.bf16.msra.mxu1 %v15191_v49 }
  0xba   : > { %v709_v47 = vld [vmem:[%s18216_s13 + $0xcc0] sm:$0xff]  ;;  %v15200_v51 = vcombine.high %v453_v45, %v457_v46  ;;  %10071 = vmatprep.subr.bf16.mxu0 %v15448_v44  ;;  %v15199_v58 = vcombine.low %v453_v45, %v457_v46 }
  0xbb   : > { %v713_v48 = vld [vmem:[%s18216_s13 + $0xce0] sm:$0xff]  ;;  %10072 = vmatpush1.bf16.msra.mxu0 %v15447_v50 }
  0xbc   : > { %v15456_v52 = vcombine.high %v709_v47, %v713_v48  ;;  %v461_v54 = vld [vmem:[%s18216_s13 + $0x500] sm:$0xff]  ;;  %9991 = vmatprep.subr.bf16.mxu1 %v15200_v51  ;;  %v15455_v59 = vcombine.low %v709_v47, %v713_v48 }
  0xbd   : > { %v465_v55 = vld [vmem:[%s18216_s13 + $0x520] sm:$0xff]  ;;  %9992 = vmatpush1.bf16.msra.mxu1 %v15199_v58 }
  0xbe   : > { %v717_v56 = vld [vmem:[%s18216_s13 + $0xd00] sm:$0xff]  ;;  %v15208_v60 = vcombine.high %v461_v54, %v465_v55  ;;  %10073 = vmatprep.subr.bf16.mxu0 %v15456_v52  ;;  %v15207_v3 = vcombine.low %v461_v54, %v465_v55 }
  0xbf   : > { %v721_v57 = vld [vmem:[%s18216_s13 + $0xd20] sm:$0xff]  ;;  %10074 = vmatpush1.bf16.msra.mxu0 %v15455_v59 }
  0xc0   : > { %v15464_v61 = vcombine.high %v717_v56, %v721_v57  ;;  %v469_v62 = vld [vmem:[%s18216_s13 + $0x540] sm:$0xff]  ;;  %9993 = vmatprep.subr.bf16.mxu1 %v15208_v60  ;;  %v15463_v4 = vcombine.low %v717_v56, %v721_v57 }
  0xc1   : > { %v473_v0 = vld [vmem:[%s18216_s13 + $0x560] sm:$0xff]  ;;  %9994 = vmatpush1.bf16.msra.mxu1 %v15207_v3 }
  0xc2   : > { %v725_v1 = vld [vmem:[%s18216_s13 + $0xd40] sm:$0xff]  ;;  %v15216_v6 = vcombine.high %v469_v62, %v473_v0  ;;  %10075 = vmatprep.subr.bf16.mxu0 %v15464_v61  ;;  %v15215_v13 = vcombine.low %v469_v62, %v473_v0 }
  0xc3   : > { %v729_v2 = vld [vmem:[%s18216_s13 + $0xd60] sm:$0xff]  ;;  %10076 = vmatpush1.bf16.msra.mxu0 %v15463_v4 }
  0xc4   : > { %v15472_v7 = vcombine.high %v725_v1, %v729_v2  ;;  %v477_v8 = vld [vmem:[%s18216_s13 + $0x580] sm:$0xff]  ;;  %9995 = vmatprep.subr.bf16.mxu1 %v15216_v6  ;;  %v15471_v14 = vcombine.low %v725_v1, %v729_v2 }
  0xc5   : > { %v481_v9 = vld [vmem:[%s18216_s13 + $0x5a0] sm:$0xff]  ;;  %9996 = vmatpush1.bf16.msra.mxu1 %v15215_v13 }
  0xc6   : > { %v733_v10 = vld [vmem:[%s18216_s13 + $0xd80] sm:$0xff]  ;;  %v15224_v15 = vcombine.high %v477_v8, %v481_v9  ;;  %10077 = vmatprep.subr.bf16.mxu0 %v15472_v7  ;;  %v15223_v22 = vcombine.low %v477_v8, %v481_v9 }
  0xc7   : > { %v737_v12 = vld [vmem:[%s18216_s13 + $0xda0] sm:$0xff]  ;;  %10078 = vmatpush1.bf16.msra.mxu0 %v15471_v14 }
  0xc8   : > { %v15480_v17 = vcombine.high %v733_v10, %v737_v12  ;;  %v485_v18 = vld [vmem:[%s18216_s13 + $0x5c0] sm:$0xff]  ;;  %9997 = vmatprep.subr.bf16.mxu1 %v15224_v15  ;;  %v15479_v23 = vcombine.low %v733_v10, %v737_v12 }
  0xc9   : > { %v489_v19 = vld [vmem:[%s18216_s13 + $0x5e0] sm:$0xff]  ;;  %9998 = vmatpush1.bf16.msra.mxu1 %v15223_v22 }
  0xca   : > { %v741_v20 = vld [vmem:[%s18216_s13 + $0xdc0] sm:$0xff]  ;;  %v15232_v24 = vcombine.high %v485_v18, %v489_v19  ;;  %10079 = vmatprep.subr.bf16.mxu0 %v15480_v17  ;;  %v15231_v31 = vcombine.low %v485_v18, %v489_v19 }
  0xcb   : > { %v745_v21 = vld [vmem:[%s18216_s13 + $0xde0] sm:$0xff]  ;;  %10080 = vmatpush1.bf16.msra.mxu0 %v15479_v23 }
  0xcc   : > { %v15488_v25 = vcombine.high %v741_v20, %v745_v21  ;;  %v493_v26 = vld [vmem:[%s18216_s13 + $0x600] sm:$0xff]  ;;  %9999 = vmatprep.subr.bf16.mxu1 %v15232_v24  ;;  %v15487_v33 = vcombine.low %v741_v20, %v745_v21 }
  0xcd   : > { %v497_v27 = vld [vmem:[%s18216_s13 + $0x620] sm:$0xff]  ;;  %10000 = vmatpush1.bf16.msra.mxu1 %v15231_v31  ;;  %v18407_v31 = vld [vmem:[%s20537_s0 + $0x8] sm:$0xff] }
  0xce   : > { %v749_v29 = vld [vmem:[%s18216_s13 + $0xe00] sm:$0xff]  ;;  %v15240_v34 = vcombine.high %v493_v26, %v497_v27  ;;  %10081 = vmatprep.subr.bf16.mxu0 %v15488_v25  ;;  %v15239_v40 = vcombine.low %v493_v26, %v497_v27 }
  0xcf   : > { %v753_v30 = vld [vmem:[%s18216_s13 + $0xe20] sm:$0xff]  ;;  %10082 = vmatpush1.bf16.msra.mxu0 %v15487_v33 }
  0xd0   : > { %v15496_v35 = vcombine.high %v749_v29, %v753_v30  ;;  %v501_v36 = vld [vmem:[%s18216_s13 + $0x640] sm:$0xff]  ;;  %10001 = vmatprep.subr.bf16.mxu1 %v15240_v34  ;;  %v15495_v41 = vcombine.low %v749_v29, %v753_v30 }
  0xd1   : > { %v505_v63 = vld [vmem:[%s18216_s13 + $0x660] sm:$0xff]  ;;  %10002 = vmatpush1.bf16.msra.mxu1 %v15239_v40 }
  0xd2   : > { %v757_v38 = vld [vmem:[%s18216_s13 + $0xe40] sm:$0xff]  ;;  %v15248_v42 = vcombine.high %v501_v36, %v505_v63  ;;  %10083 = vmatprep.subr.bf16.mxu0 %v15496_v35  ;;  %v15247_v49 = vcombine.low %v501_v36, %v505_v63  ;;  %v302_v63 = vld [vmem:[%s18216_s13 + $0x8] sm:$0xff] }
  0xd3   : > { %v761_v5 = vld [vmem:[%s18216_s13 + $0xe60] sm:$0xff]  ;;  %10084 = vmatpush1.bf16.msra.mxu0 %v15495_v41 }
  0xd4   : > { %v15504_v44 = vcombine.high %v757_v38, %v761_v5  ;;  %v509_v45 = vld [vmem:[%s18216_s13 + $0x680] sm:$0xff]  ;;  %10003 = vmatprep.subr.bf16.mxu1 %v15248_v42  ;;  %v15503_v50 = vcombine.low %v757_v38, %v761_v5  ;;  %v306_v38 = vld [vmem:[%s18216_s13 + $0x28] sm:$0xff]  ;;  %v18413_v5 = vrot.slane %v18407_v31, %v18259_v53 }
  0xd5   : > { %v513_v46 = vld [vmem:[%s18216_s13 + $0x6a0] sm:$0xff]  ;;  %10004 = vmatpush1.bf16.msra.mxu1 %v15247_v49 }
  0xd6   : > { %v765_v47 = vld [vmem:[%s18216_s13 + $0xe80] sm:$0xff]  ;;  %v15256_v51 = vcombine.high %v509_v45, %v513_v46  ;;  %10085 = vmatprep.subr.bf16.mxu0 %v15504_v44  ;;  %v15255_v58 = vcombine.low %v509_v45, %v513_v46  ;;  %v15050_v45 = vcombine.high %v302_v63, %v306_v38  ;;  %v1979_v49 = vcombine.high %v18413_v5, %v18413_v5 }
  0xd7   : > { %v769_v48 = vld [vmem:[%s18216_s13 + $0xea0] sm:$0xff]  ;;  %10086 = vmatpush1.bf16.msra.mxu0 %v15503_v50  ;;  %v18423_v50 = vcombine.high %v18328_v28, %v18328_v28 }
  0xd8   : > { %v15512_v52 = vcombine.high %v765_v47, %v769_v48  ;;  %v517_v54 = vld [vmem:[%s18216_s13 + $0x6c0] sm:$0xff]  ;;  %10005 = vmatprep.subr.bf16.mxu1 %v15256_v51  ;;  %v15511_v59 = vcombine.low %v765_v47, %v769_v48  ;;  %v310_v47 = vld [vmem:[%s18216_s13 + $0x48] sm:$0xff] }
  0xd9   : > { %v521_v55 = vld [vmem:[%s18216_s13 + $0x6e0] sm:$0xff]  ;;  %10006 = vmatpush1.bf16.msra.mxu1 %v15255_v58  ;;  %v314_v48 = vld [vmem:[%s18216_s13 + $0x68] sm:$0xff] }
  0xda   : > { %v773_v56 = vld [vmem:[%s18216_s13 + $0xec0] sm:$0xff]  ;;  %v15264_v60 = vcombine.high %v517_v54, %v521_v55  ;;  %10087 = vmatprep.subr.bf16.mxu0 %v15512_v52  ;;  %v15263_v3 = vcombine.low %v517_v54, %v521_v55  ;;  %v15049_v54 = vcombine.low %v302_v63, %v306_v38  ;;  %v18429_v55 = vcombine.high %v18334_v32, %v18334_v32 }
  0xdb   : > { %v777_v57 = vld [vmem:[%s18216_s13 + $0xee0] sm:$0xff]  ;;  %10088 = vmatpush1.bf16.msra.mxu0 %v15511_v59  ;;  %v318_v59 = vld [vmem:[%s18216_s13 + $0x88] sm:$0xff] }
  0xdc   : > { %v15520_v61 = vcombine.high %v773_v56, %v777_v57  ;;  %v525_v62 = vld [vmem:[%s18216_s13 + $0x700] sm:$0xff]  ;;  %10007 = vmatprep.subr.bf16.mxu1 %v15264_v60  ;;  %v15519_v4 = vcombine.low %v773_v56, %v777_v57  ;;  %v15058_v57 = vcombine.high %v310_v47, %v314_v48  ;;  %v322_v60 = vld [vmem:[%s18216_s13 + $0xa8] sm:$0xff] }
  0xdd   : > { %v529_v0 = vld [vmem:[%s18216_s13 + $0x720] sm:$0xff]  ;;  %10008 = vmatpush1.bf16.msra.mxu1 %v15263_v3  ;;  %v15066_v3 = vcombine.high %v318_v59, %v322_v60 }
  0xde   : > { %v781_v1 = vld [vmem:[%s18216_s13 + $0xf00] sm:$0xff]  ;;  %v15272_v6 = vcombine.high %v525_v62, %v529_v0  ;;  %10089 = vmatprep.subr.bf16.mxu0 %v15520_v61  ;;  %v15271_v13 = vcombine.low %v525_v62, %v529_v0  ;;  %v18434_v61 = vrot.slane %v1979_v49, %v18259_v53 }
  0xdf   : > { %v785_v2 = vld [vmem:[%s18216_s13 + $0xf20] sm:$0xff]  ;;  %10090 = vmatpush1.bf16.msra.mxu0 %v15519_v4 }
  0xe0   : > { %v15528_v7 = vcombine.high %v781_v1, %v785_v2  ;;  %v533_v8 = vld [vmem:[%s18216_s13 + $0x740] sm:$0xff]  ;;  %10009 = vmatprep.subr.bf16.mxu1 %v15272_v6  ;;  %v15527_v14 = vcombine.low %v781_v1, %v785_v2  ;;  %v15057_v1 = vcombine.low %v310_v47, %v314_v48  ;;  %v326_v6 = vld [vmem:[%s18216_s13 + $0xc8] sm:$0xff] }
  0xe1   : > { %v537_v9 = vld [vmem:[%s18216_s13 + $0x760] sm:$0xff]  ;;  %10010 = vmatpush1.bf16.msra.mxu1 %v15271_v13 }
  0xe2   : > { %v789_v10 = vld [vmem:[%s18216_s13 + $0xf40] sm:$0xff]  ;;  %v15280_v15 = vcombine.high %v533_v8, %v537_v9  ;;  %10091 = vmatprep.subr.bf16.mxu0 %v15528_v7  ;;  %v15279_v22 = vcombine.low %v533_v8, %v537_v9  ;;  %v330_v7 = vld [vmem:[%s18216_s13 + $0xe8] sm:$0xff] }
  0xe3   : > { %v793_v12 = vld [vmem:[%s18216_s13 + $0xf60] sm:$0xff]  ;;  %10092 = vmatpush1.bf16.msra.mxu0 %v15527_v14  ;;  %v15074_v13 = vcombine.high %v326_v6, %v330_v7 }
  0xe4   : > { %v15536_v17 = vcombine.high %v789_v10, %v793_v12  ;;  %v541_v18 = vld [vmem:[%s18216_s13 + $0x780] sm:$0xff]  ;;  %10011 = vmatprep.subr.bf16.mxu1 %v15280_v15  ;;  %v15535_v23 = vcombine.low %v789_v10, %v793_v12  ;;  %v15065_v10 = vcombine.low %v318_v59, %v322_v60  ;;  %v334_v15 = vld [vmem:[%s18216_s13 + $0x108] sm:$0xff] }
  0xe5   : > { %v545_v19 = vld [vmem:[%s18216_s13 + $0x7a0] sm:$0xff]  ;;  %10012 = vmatpush1.bf16.msra.mxu1 %v15279_v22 }
  0xe6   : > { %v797_v20 = vld [vmem:[%s18216_s13 + $0xf80] sm:$0xff]  ;;  %v15288_v24 = vcombine.high %v541_v18, %v545_v19  ;;  %10093 = vmatprep.subr.bf16.mxu0 %v15536_v17  ;;  %v15287_v33 = vcombine.low %v541_v18, %v545_v19  ;;  %v338_v17 = vld [vmem:[%s18216_s13 + $0x128] sm:$0xff] }
  0xe7   : > { %v801_v21 = vld [vmem:[%s18216_s13 + $0xfa0] sm:$0xff]  ;;  %10094 = vmatpush1.bf16.msra.mxu0 %v15535_v23  ;;  %v15082_v22 = vcombine.high %v334_v15, %v338_v17 }
  0xe8   : > { %v15544_v25 = vcombine.high %v797_v20, %v801_v21  ;;  %v549_v26 = vld [vmem:[%s18216_s13 + $0x7c0] sm:$0xff]  ;;  %10013 = vmatprep.subr.bf16.mxu1 %v15288_v24  ;;  %v15543_v34 = vcombine.low %v797_v20, %v801_v21  ;;  %v15073_v20 = vcombine.low %v326_v6, %v330_v7  ;;  %v342_v24 = vld [vmem:[%s18216_s13 + $0x148] sm:$0xff] }
  0xe9   : > { %v553_v27 = vld [vmem:[%s18216_s13 + $0x7e0] sm:$0xff]  ;;  %10014 = vmatpush1.bf16.msra.mxu1 %v15287_v33 }
  0xea   : > { %v805_v29 = vld [vmem:[%s18216_s13 + $0xfc0] sm:$0xff]  ;;  %v15296_v35 = vcombine.high %v549_v26, %v553_v27  ;;  %10095 = vmatprep.subr.bf16.mxu0 %v15544_v25  ;;  %v15295_v42 = vcombine.low %v549_v26, %v553_v27  ;;  %v346_v25 = vld [vmem:[%s18216_s13 + $0x168] sm:$0xff] }
  0xeb   : > { %v809_v30 = vld [vmem:[%s18216_s13 + $0xfe0] sm:$0xff]  ;;  %10096 = vmatpush1.bf16.msra.mxu0 %v15543_v34  ;;  %v15090_v33 = vcombine.high %v342_v24, %v346_v25 }
  0xec   : > { %v15552_v36 = vcombine.high %v805_v29, %v809_v30  ;;  %v813_v40 = vld [vmem:[%s18216_s13 + $0x1000] sm:$0xff]  ;;  %10015 = vmatprep.subr.bf16.mxu1 %v15296_v35  ;;  %v15551_v44 = vcombine.low %v805_v29, %v809_v30  ;;  %v15081_v29 = vcombine.low %v334_v15, %v338_v17  ;;  %v350_v35 = vld [vmem:[%s18216_s13 + $0x188] sm:$0xff] }
  0xed   : > { %v817_v41 = vld [vmem:[%s18216_s13 + $0x1020] sm:$0xff]  ;;  %10016 = vmatpush1.bf16.msra.mxu1 %v15295_v42 }
  0xee   : > { %10097 = vmatprep.subr.bf16.mxu0 %v15552_v36  ;;  %v15560_v46 = vcombine.high %v813_v40, %v817_v41  ;;  %v821_v51 = vld [vmem:[%s18216_s13 + $0x1040] sm:$0xff]  ;;  %v15559_v56 = vcombine.low %v813_v40, %v817_v41  ;;  %10477 = vmatprep.subr.bf16.mxu1 %v15050_v45  ;;  %v354_v36 = vld [vmem:[%s18216_s13 + $0x1a8] sm:$0xff]  ;;  %v15089_v40 = vcombine.low %v342_v24, %v346_v25 }
  0xef   : > { %v825_v52 = vld [vmem:[%s18216_s13 + $0x1060] sm:$0xff]  ;;  %10098 = vmatpush1.bf16.msra.mxu0 %v15551_v44  ;;  %v15098_v42 = vcombine.high %v350_v35, %v354_v36  ;;  %v358_v45 = vld [vmem:[%s18216_s13 + $0x1c8] sm:$0xff]  ;;  %v15097_v49 = vcombine.low %v350_v35, %v354_v36 }
  0xf0   : > { %10108 = vmatprep.subr.bf16.mxu0 %v15560_v46  ;;  %v15568_v58 = vcombine.high %v821_v51, %v825_v52  ;;  %10018 = vmatmul.mubr.bf16.vlgmr.msra.gmra.mrb[0].mxu1 %v18423_v50  ;;  %v829_v62 = vld [vmem:[%s18216_s13 + $0x1080] sm:$0xff]  ;;  %v15567_v2 = vcombine.low %v821_v51, %v825_v52  ;;  %v362_v46 = vld [vmem:[%s18216_s13 + $0x1e8] sm:$0xff] }
  0xf1   : > { %v833_v0 = vld [vmem:[%s18216_s13 + $0x10a0] sm:$0xff]  ;;  %10478 = vmatpush1.bf16.msra.mxu1 %v15049_v54  ;;  %10509 = vmatprep.mubr.bf16.mxu1 %v18281_v11  ;;  %v15106_v52 = vcombine.high %v358_v45, %v362_v46  ;;  %v15105_v60 = vcombine.low %v358_v45, %v362_v46 }
  0xf2   : > { %10100 = vmatmul.mubr.bf16.vlgmr.msra.gmra.mrb[0].mxu0 %v18429_v55  ;;  %10479 = vmatprep.subr.bf16.mxu1 %v15058_v57  ;;  %v15576_v4 = vcombine.high %v829_v62, %v833_v0  ;;  %v837_v8 = vld [vmem:[%s18216_s13 + $0x10c0] sm:$0xff]  ;;  %v15575_v12 = vcombine.low %v829_v62, %v833_v0  ;;  %v370_v57 = vld [vmem:[%s18216_s13 + $0x228] sm:$0xff] }
  0xf3   : > { %10109 = vmatpush1.bf16.msra.mxu0 %v15559_v56  ;;  %10140 = vmatprep.mubr.bf16.mxu0 %v18434_v61  ;;  %v841_v9 = vld [vmem:[%s18216_s13 + $0x10e0] sm:$0xff]  ;;  %v366_v56 = vld [vmem:[%s18216_s13 + $0x208] sm:$0xff] }
  0xf4   : > { %10110 = vmatprep.subr.bf16.mxu0 %v15568_v58  ;;  %v15584_v14 = vcombine.high %v837_v8, %v841_v9  ;;  %v845_v18 = vld [vmem:[%s18216_s13 + $0x1100] sm:$0xff]  ;;  %v15583_v21 = vcombine.low %v837_v8, %v841_v9  ;;  %v15114_v0 = vcombine.high %v366_v56, %v370_v57  ;;  %v15113_v7 = vcombine.low %v366_v56, %v370_v57 }
  0xf5   : > { %10480 = vmatpush1.bf16.msra.mxu1 %v15057_v1  ;;  %v849_v19 = vld [vmem:[%s18216_s13 + $0x1120] sm:$0xff] }
  0xf6   : > { %10481 = vmatprep.subr.bf16.mxu1 %v15066_v3  ;;  %v15592_v23 = vcombine.high %v845_v18, %v849_v19  ;;  %v853_v26 = vld [vmem:[%s18216_s13 + $0x1140] sm:$0xff]  ;;  %v15591_v30 = vcombine.low %v845_v18, %v849_v19  ;;  %v378_v3 = vld [vmem:[%s18216_s13 + $0x268] sm:$0xff] }
  0xf7   : > { %10111 = vmatpush1.bf16.msra.mxu0 %v15567_v2  ;;  %v857_v27 = vld [vmem:[%s18216_s13 + $0x1160] sm:$0xff]  ;;  %v374_v2 = vld [vmem:[%s18216_s13 + $0x248] sm:$0xff] }
  0xf8   : > { %10112 = vmatprep.subr.bf16.mxu0 %v15576_v4  ;;  %v15600_v34 = vcombine.high %v853_v26, %v857_v27  ;;  %v861_v63 = vld [vmem:[%s18216_s13 + $0x1180] sm:$0xff]  ;;  %v15599_v41 = vcombine.low %v853_v26, %v857_v27  ;;  %v15122_v9 = vcombine.high %v374_v2, %v378_v3  ;;  %v15121_v17 = vcombine.low %v374_v2, %v378_v3 }
  0xf9   : > { %10482 = vmatpush1.bf16.msra.mxu1 %v15065_v10  ;;  %v865_v38 = vld [vmem:[%s18216_s13 + $0x11a0] sm:$0xff] }
  0xfa   : > { %10483 = vmatprep.subr.bf16.mxu1 %v15074_v13  ;;  %v15608_v44 = vcombine.high %v861_v63, %v865_v38  ;;  %v869_v47 = vld [vmem:[%s18216_s13 + $0x11c0] sm:$0xff]  ;;  %v15607_v51 = vcombine.low %v861_v63, %v865_v38  ;;  %v386_v13 = vld [vmem:[%s18216_s13 + $0x2a8] sm:$0xff] }
  0xfb   : > { %10113 = vmatpush1.bf16.msra.mxu0 %v15575_v12  ;;  %v873_v48 = vld [vmem:[%s18216_s13 + $0x11e0] sm:$0xff]  ;;  %v382_v12 = vld [vmem:[%s18216_s13 + $0x288] sm:$0xff] }
  0xfc   : > { %10114 = vmatprep.subr.bf16.mxu0 %v15584_v14  ;;  %v15616_v54 = vcombine.high %v869_v47, %v873_v48  ;;  %v877_v58 = vld [vmem:[%s18216_s13 + $0x1200] sm:$0xff]  ;;  %v15615_v62 = vcombine.low %v869_v47, %v873_v48  ;;  %v15130_v19 = vcombine.high %v382_v12, %v386_v13  ;;  %v15129_v25 = vcombine.low %v382_v12, %v386_v13 }
  0xfd   : > { %10484 = vmatpush1.bf16.msra.mxu1 %v15073_v20  ;;  %v881_v59 = vld [vmem:[%s18216_s13 + $0x1220] sm:$0xff] }
  0xfe   : > { %10485 = vmatprep.subr.bf16.mxu1 %v15082_v22  ;;  %v15624_v1 = vcombine.high %v877_v58, %v881_v59  ;;  %v885_v4 = vld [vmem:[%s18216_s13 + $0x1240] sm:$0xff]  ;;  %v15623_v8 = vcombine.low %v877_v58, %v881_v59  ;;  %v394_v22 = vld [vmem:[%s18216_s13 + $0x2e8] sm:$0xff] }
  0xff   : > { %10115 = vmatpush1.bf16.msra.mxu0 %v15583_v21  ;;  %v889_v6 = vld [vmem:[%s18216_s13 + $0x1260] sm:$0xff]  ;;  %v390_v21 = vld [vmem:[%s18216_s13 + $0x2c8] sm:$0xff] }
 0x100   : > { %10116 = vmatprep.subr.bf16.mxu0 %v15592_v23  ;;  %v15632_v10 = vcombine.high %v885_v4, %v889_v6  ;;  %v893_v14 = vld [vmem:[%s18216_s13 + $0x1280] sm:$0xff]  ;;  %v15631_v18 = vcombine.low %v885_v4, %v889_v6  ;;  %v15138_v27 = vcombine.high %v390_v21, %v394_v22  ;;  %v15137_v36 = vcombine.low %v390_v21, %v394_v22 }
 0x101   : > { %10486 = vmatpush1.bf16.msra.mxu1 %v15081_v29  ;;  %v897_v15 = vld [vmem:[%s18216_s13 + $0x12a0] sm:$0xff] }
 0x102   : > { %10487 = vmatprep.subr.bf16.mxu1 %v15090_v33  ;;  %v15640_v20 = vcombine.high %v893_v14, %v897_v15  ;;  %v901_v23 = vld [vmem:[%s18216_s13 + $0x12c0] sm:$0xff]  ;;  %v15639_v26 = vcombine.low %v893_v14, %v897_v15  ;;  %v402_v33 = vld [vmem:[%s18216_s13 + $0x328] sm:$0xff] }
 0x103   : > { %10117 = vmatpush1.bf16.msra.mxu0 %v15591_v30  ;;  %v905_v24 = vld [vmem:[%s18216_s13 + $0x12e0] sm:$0xff]  ;;  %v398_v30 = vld [vmem:[%s18216_s13 + $0x308] sm:$0xff] }
 0x104   : > { %10118 = vmatprep.subr.bf16.mxu0 %v15600_v34  ;;  %v15648_v29 = vcombine.high %v901_v23, %v905_v24  ;;  %v909_v34 = vld [vmem:[%s18216_s13 + $0x1300] sm:$0xff]  ;;  %v15647_v63 = vcombine.low %v901_v23, %v905_v24  ;;  %v15146_v38 = vcombine.high %v398_v30, %v402_v33  ;;  %v15145_v46 = vcombine.low %v398_v30, %v402_v33 }
 0x105   : > { %10488 = vmatpush1.bf16.msra.mxu1 %v15089_v40  ;;  %v913_v35 = vld [vmem:[%s18216_s13 + $0x1320] sm:$0xff]  ;;  %v18504_v23 = vrot.slane %v18413_v5, %v18259_v53  ;;  %v18510_v30 = vcombine.high %v18434_v61, %v18434_v61 }
 0x106   : > { %10489 = vmatprep.subr.bf16.mxu1 %v15098_v42  ;;  %v15656_v40 = vcombine.high %v909_v34, %v913_v35  ;;  %v410_v42 = vld [vmem:[%s18216_s13 + $0x368] sm:$0xff]  ;;  %v921_v45 = vld [vmem:[%s18216_s13 + $0x1360] sm:$0xff]  ;;  %v15655_v47 = vcombine.low %v909_v34, %v913_v35 }
 0x107   : > { %10119 = vmatpush1.bf16.msra.mxu0 %v15599_v41  ;;  %v406_v41 = vld [vmem:[%s18216_s13 + $0x348] sm:$0xff]  ;;  %v929_v56 = vld [vmem:[%s18216_s13 + $0x13a0] sm:$0xff] }
 0x108   : > { %10120 = vmatprep.subr.bf16.mxu0 %v15608_v44  ;;  %v917_v44 = vld [vmem:[%s18216_s13 + $0x1340] sm:$0xff]  ;;  %v15154_v48 = vcombine.high %v406_v41, %v410_v42  ;;  %v15153_v57 = vcombine.low %v406_v41, %v410_v42 }
 0x109   : > { %10490 = vmatpush1.bf16.msra.mxu1 %v15097_v49  ;;  %v15664_v49 = vcombine.high %v917_v44, %v921_v45  ;;  %v15663_v58 = vcombine.low %v917_v44, %v921_v45  ;;  %v937_v2 = vld [vmem:[%s18216_s13 + $0x13e0] sm:$0xff] }
 0x10a   : > { %10491 = vmatprep.subr.bf16.mxu1 %v15106_v52  ;;  %v418_v52 = vld [vmem:[%s18216_s13 + $0x3a8] sm:$0xff]  ;;  %v945_v12 = vld [vmem:[%s18216_s13 + $0x1420] sm:$0xff] }
 0x10b   : > { %10121 = vmatpush1.bf16.msra.mxu0 %v15607_v51  ;;  %v414_v51 = vld [vmem:[%s18216_s13 + $0x388] sm:$0xff]  ;;  %v953_v21 = vld [vmem:[%s18216_s13 + $0x1460] sm:$0xff] }
 0x10c   : > { %10122 = vmatprep.subr.bf16.mxu0 %v15616_v54  ;;  %v925_v54 = vld [vmem:[%s18216_s13 + $0x1380] sm:$0xff]  ;;  %v15162_v59 = vcombine.high %v414_v51, %v418_v52  ;;  %v15161_v3 = vcombine.low %v414_v51, %v418_v52 }
 0x10d   : > { %10492 = vmatpush1.bf16.msra.mxu1 %v15105_v60  ;;  %v15672_v60 = vcombine.high %v925_v54, %v929_v56  ;;  %v15671_v4 = vcombine.low %v925_v54, %v929_v56  ;;  %v957_v5 = vld [vmem:[%s18216_s13 + $0x1480] sm:$0xff] }
 0x10e   : > { %10493 = vmatprep.subr.bf16.mxu1 %v15114_v0  ;;  %v426_v0 = vld [vmem:[%s18216_s13 + $0x3e8] sm:$0xff]  ;;  %v961_v33 = vld [vmem:[%s18216_s13 + $0x14a0] sm:$0xff] }
 0x10f   : > { %10123 = vmatpush1.bf16.msra.mxu0 %v15615_v62  ;;  %v422_v62 = vld [vmem:[%s18216_s13 + $0x3c8] sm:$0xff]  ;;  %v965_v41 = vld [vmem:[%s18216_s13 + $0x14c0] sm:$0xff]  ;;  %v15703_v45 = vcombine.low %v957_v5, %v961_v33 }
 0x110   : > { %10124 = vmatprep.subr.bf16.mxu0 %v15624_v1  ;;  %v933_v1 = vld [vmem:[%s18216_s13 + $0x13c0] sm:$0xff]  ;;  %v15170_v6 = vcombine.high %v422_v62, %v426_v0  ;;  %v15169_v13 = vcombine.low %v422_v62, %v426_v0 }
 0x111   : > { %10494 = vmatpush1.bf16.msra.mxu1 %v15113_v7  ;;  %v15680_v7 = vcombine.high %v933_v1, %v937_v2  ;;  %v15679_v14 = vcombine.low %v933_v1, %v937_v2  ;;  %v969_v42 = vld [vmem:[%s18216_s13 + $0x14e0] sm:$0xff] }
 0x112   : > { %10495 = vmatprep.subr.bf16.mxu1 %v15122_v9  ;;  %v434_v9 = vld [vmem:[%s18216_s13 + $0x428] sm:$0xff]  ;;  %v973_v51 = vld [vmem:[%s18216_s13 + $0x1500] sm:$0xff]  ;;  %v15711_v56 = vcombine.low %v965_v41, %v969_v42 }
 0x113   : > { %10125 = vmatpush1.bf16.msra.mxu0 %v15623_v8  ;;  %v430_v8 = vld [vmem:[%s18216_s13 + $0x408] sm:$0xff]  ;;  %v977_v52 = vld [vmem:[%s18216_s13 + $0x1520] sm:$0xff] }
 0x114   : > { %10126 = vmatprep.subr.bf16.mxu0 %v15632_v10  ;;  %v941_v10 = vld [vmem:[%s18216_s13 + $0x1400] sm:$0xff]  ;;  %v15178_v15 = vcombine.high %v430_v8, %v434_v9  ;;  %v15177_v22 = vcombine.low %v430_v8, %v434_v9  ;;  %v15719_v2 = vcombine.low %v973_v51, %v977_v52 }
 0x115   : > { %10496 = vmatpush1.bf16.msra.mxu1 %v15121_v17  ;;  %v15688_v17 = vcombine.high %v941_v10, %v945_v12  ;;  %v15687_v24 = vcombine.low %v941_v10, %v945_v12  ;;  %v981_v62 = vld [vmem:[%s18216_s13 + $0x1540] sm:$0xff] }
 0x116   : > { %10497 = vmatprep.subr.bf16.mxu1 %v15130_v19  ;;  %v442_v19 = vld [vmem:[%s18216_s13 + $0x468] sm:$0xff]  ;;  %v985_v0 = vld [vmem:[%s18216_s13 + $0x1560] sm:$0xff] }
 0x117   : > { %10127 = vmatpush1.bf16.msra.mxu0 %v15631_v18  ;;  %v438_v18 = vld [vmem:[%s18216_s13 + $0x448] sm:$0xff]  ;;  %v989_v8 = vld [vmem:[%s18216_s13 + $0x1580] sm:$0xff]  ;;  %v15727_v12 = vcombine.low %v981_v62, %v985_v0 }
 0x118   : > { %10128 = vmatprep.subr.bf16.mxu0 %v15640_v20  ;;  %v949_v20 = vld [vmem:[%s18216_s13 + $0x1440] sm:$0xff]  ;;  %v15185_v34 = vcombine.low %v438_v18, %v442_v19 }
 0x119   : > { %10498 = vmatpush1.bf16.msra.mxu1 %v15129_v25  ;;  %v15186_v25 = vcombine.high %v438_v18, %v442_v19  ;;  %v15695_v35 = vcombine.low %v949_v20, %v953_v21  ;;  %v993_v9 = vld [vmem:[%s18216_s13 + $0x15a0] sm:$0xff] }
 0x11a   : > { %10499 = vmatprep.subr.bf16.mxu1 %v15138_v27  ;;  %v446_v27 = vld [vmem:[%s18216_s13 + $0x488] sm:$0xff]  ;;  %v997_v18 = vld [vmem:[%s18216_s13 + $0x15c0] sm:$0xff] }
 0x11b   : > { %10129 = vmatpush1.bf16.msra.mxu0 %v15639_v26  ;;  %v15696_v26 = vcombine.high %v949_v20, %v953_v21  ;;  %v1001_v19 = vld [vmem:[%s18216_s13 + $0x15e0] sm:$0xff]  ;;  %v15735_v21 = vcombine.low %v989_v8, %v993_v9 }
 0x11c   : > { %10130 = vmatprep.subr.bf16.mxu0 %v15648_v29  ;;  %v450_v29 = vld [vmem:[%s18216_s13 + $0x4a8] sm:$0xff] }
 0x11d   : > { %10500 = vmatpush1.bf16.msra.mxu1 %v15137_v36  ;;  %v15194_v36 = vcombine.high %v446_v27, %v450_v29  ;;  %v15193_v44 = vcombine.low %v446_v27, %v450_v29  ;;  %v1005_v27 = vld [vmem:[%s18216_s13 + $0x1600] sm:$0xff] }
 0x11e   : > { %10501 = vmatprep.subr.bf16.mxu1 %v15146_v38  ;;  %v454_v38 = vld [vmem:[%s18216_s13 + $0x4c8] sm:$0xff]  ;;  %v1009_v29 = vld [vmem:[%s18216_s13 + $0x1620] sm:$0xff] }
 0x11f   : > { %10131 = vmatpush1.bf16.msra.mxu0 %v15647_v63  ;;  %v15704_v63 = vcombine.high %v957_v5, %v961_v33  ;;  %v15743_v33 = vcombine.low %v997_v18, %v1001_v19 }
 0x120   : > { %10132 = vmatprep.subr.bf16.mxu0 %v15656_v40  ;;  %v458_v40 = vld [vmem:[%s18216_s13 + $0x4e8] sm:$0xff] }
 0x121   : > { %10502 = vmatpush1.bf16.msra.mxu1 %v15145_v46  ;;  %v15202_v46 = vcombine.high %v454_v38, %v458_v40  ;;  %v15201_v54 = vcombine.low %v454_v38, %v458_v40  ;;  %v1013_v38 = vld [vmem:[%s18216_s13 + $0x1640] sm:$0xff] }
 0x122   : > { %10503 = vmatprep.subr.bf16.mxu1 %v15154_v48  ;;  %v462_v48 = vld [vmem:[%s18216_s13 + $0x508] sm:$0xff]  ;;  %v1017_v40 = vld [vmem:[%s18216_s13 + $0x1660] sm:$0xff] }
 0x123   : > { %10133 = vmatpush1.bf16.msra.mxu0 %v15655_v47  ;;  %v15712_v47 = vcombine.high %v965_v41, %v969_v42  ;;  %v15751_v42 = vcombine.low %v1005_v27, %v1009_v29 }
 0x124   : > { %10134 = vmatprep.subr.bf16.mxu0 %v15664_v49  ;;  %v466_v49 = vld [vmem:[%s18216_s13 + $0x528] sm:$0xff] }
 0x125   : > { %10504 = vmatpush1.bf16.msra.mxu1 %v15153_v57  ;;  %v15210_v57 = vcombine.high %v462_v48, %v466_v49  ;;  %v15209_v1 = vcombine.low %v462_v48, %v466_v49  ;;  %v1021_v48 = vld [vmem:[%s18216_s13 + $0x1680] sm:$0xff] }
 0x126   : > { %10505 = vmatprep.subr.bf16.mxu1 %v15162_v59  ;;  %v470_v59 = vld [vmem:[%s18216_s13 + $0x548] sm:$0xff]  ;;  %v1025_v49 = vld [vmem:[%s18216_s13 + $0x16a0] sm:$0xff] }
 0x127   : > { %10135 = vmatpush1.bf16.msra.mxu0 %v15663_v58  ;;  %v15720_v58 = vcombine.high %v973_v51, %v977_v52  ;;  %v15759_v52 = vcombine.low %v1013_v38, %v1017_v40 }
 0x128   : > { %10136 = vmatprep.subr.bf16.mxu0 %v15672_v60  ;;  %v474_v60 = vld [vmem:[%s18216_s13 + $0x568] sm:$0xff] }
 0x129   : > { %10506 = vmatpush1.bf16.msra.mxu1 %v15161_v3  ;;  %v15218_v3 = vcombine.high %v470_v59, %v474_v60  ;;  %v15217_v10 = vcombine.low %v470_v59, %v474_v60  ;;  %v1029_v59 = vld [vmem:[%s18216_s13 + $0x16c0] sm:$0xff] }
 0x12a   : > { %10507 = vmatprep.subr.bf16.mxu1 %v15170_v6  ;;  %v478_v6 = vld [vmem:[%s18216_s13 + $0x588] sm:$0xff]  ;;  %v1033_v60 = vld [vmem:[%s18216_s13 + $0x16e0] sm:$0xff] }
 0x12b   : > { %10137 = vmatpush1.bf16.msra.mxu0 %v15671_v4  ;;  %v15728_v4 = vcombine.high %v981_v62, %v985_v0  ;;  %v15767_v0 = vcombine.low %v1021_v48, %v1025_v49 }
 0x12c   : > { %10138 = vmatprep.subr.bf16.mxu0 %v15680_v7  ;;  %v482_v7 = vld [vmem:[%s18216_s13 + $0x5a8] sm:$0xff] }
 0x12d   : > { %10508 = vmatpush1.bf16.msra.mxu1 %v15169_v13  ;;  %v15226_v13 = vcombine.high %v478_v6, %v482_v7  ;;  %v15225_v20 = vcombine.low %v478_v6, %v482_v7  ;;  %v1037_v6 = vld [vmem:[%s18216_s13 + $0x1700] sm:$0xff] }
 0x12e   : > { %10518 = vmatprep.subr.bf16.mxu1 %v15178_v15  ;;  %v486_v15 = vld [vmem:[%s18216_s13 + $0x5c8] sm:$0xff]  ;;  %v1041_v7 = vld [vmem:[%s18216_s13 + $0x1720] sm:$0xff] }
 0x12f   : > { %10139 = vmatpush1.bf16.msra.mxu0 %v15679_v14  ;;  %v15736_v14 = vcombine.high %v989_v8, %v993_v9  ;;  %v15775_v9 = vcombine.low %v1029_v59, %v1033_v60 }
 0x130   : > { %10149 = vmatprep.subr.bf16.mxu0 %v15688_v17  ;;  %10510 = vmatmul.mubr.bf16.vlgmr.msra.gmra.mrb[4].mxu1 %v18328_v28  ;;  %v490_v17 = vld [vmem:[%s18216_s13 + $0x5e8] sm:$0xff] }
 0x131   : > { %10519 = vmatpush1.bf16.msra.mxu1 %v15177_v22  ;;  %10550 = vmatprep.mubr.bf16.mxu1 %v18340_v37  ;;  %v15234_v22 = vcombine.high %v486_v15, %v490_v17  ;;  %v15233_v5 = vcombine.low %v486_v15, %v490_v17  ;;  %v1045_v15 = vld [vmem:[%s18216_s13 + $0x1740] sm:$0xff] }
 0x132   : > { %10141 = vmatmul.mubr.bf16.vlgmr.msra.gmra.mrb[0].mxu0 %v18504_v23  ;;  %10520 = vmatprep.subr.bf16.mxu1 %v15186_v25  ;;  %v494_v25 = vld [vmem:[%s18216_s13 + $0x608] sm:$0xff]  ;;  %v1049_v17 = vld [vmem:[%s18216_s13 + $0x1760] sm:$0xff] }
 0x133   : > { %10150 = vmatpush1.bf16.msra.mxu0 %v15687_v24  ;;  %10181 = vmatprep.mubr.bf16.mxu0 %v18510_v30  ;;  %v15744_v24 = vcombine.high %v997_v18, %v1001_v19  ;;  %v15783_v19 = vcombine.low %v1037_v6, %v1041_v7 }
 0x134   : > { %10151 = vmatprep.subr.bf16.mxu0 %v15696_v26  ;;  %v498_v26 = vld [vmem:[%s18216_s13 + $0x628] sm:$0xff] }
 0x135   : > { %10521 = vmatpush1.bf16.msra.mxu1 %v15185_v34  ;;  %v15242_v34 = vcombine.high %v494_v25, %v498_v26  ;;  %v15241_v41 = vcombine.low %v494_v25, %v498_v26  ;;  %v1053_v25 = vld [vmem:[%s18216_s13 + $0x1780] sm:$0xff] }
 0x136   : > { %10522 = vmatprep.subr.bf16.mxu1 %v15194_v36  ;;  %v502_v36 = vld [vmem:[%s18216_s13 + $0x648] sm:$0xff]  ;;  %v1057_v26 = vld [vmem:[%s18216_s13 + $0x17a0] sm:$0xff] }
 0x137   : > { %10152 = vmatpush1.bf16.msra.mxu0 %v15695_v35  ;;  %v15752_v35 = vcombine.high %v1005_v27, %v1009_v29  ;;  %v15791_v29 = vcombine.low %v1045_v15, %v1049_v17 }
 0x138   : > { %10153 = vmatprep.subr.bf16.mxu0 %v15704_v63  ;;  %v506_v63 = vld [vmem:[%s18216_s13 + $0x668] sm:$0xff] }
 0x139   : > { %10523 = vmatpush1.bf16.msra.mxu1 %v15193_v44  ;;  %v15250_v44 = vcombine.high %v502_v36, %v506_v63  ;;  %v15249_v51 = vcombine.low %v502_v36, %v506_v63  ;;  %v1964_v36 = vcombine.high %v18407_v31, %v18407_v31  ;;  %v1061_v63 = vld [vmem:[%s18216_s13 + $0x17c0] sm:$0xff] }
 0x13a   : > { %10524 = vmatprep.subr.bf16.mxu1 %v15202_v46  ;;  %v510_v46 = vld [vmem:[%s18216_s13 + $0x688] sm:$0xff]  ;;  %v1069_v31 = vld [vmem:[%s18216_s13 + $0x1800] sm:$0xff] }
 0x13b   : > { %10154 = vmatpush1.bf16.msra.mxu0 %v15703_v45  ;;  %v15760_v45 = vcombine.high %v1013_v38, %v1017_v40  ;;  %v1065_v38 = vld [vmem:[%s18216_s13 + $0x17e0] sm:$0xff] }
 0x13c   : > { %10155 = vmatprep.subr.bf16.mxu0 %v15712_v47  ;;  %v514_v47 = vld [vmem:[%s18216_s13 + $0x6a8] sm:$0xff] }
 0x13d   : > { %10525 = vmatpush1.bf16.msra.mxu1 %v15201_v54  ;;  %v15258_v54 = vcombine.high %v510_v46, %v514_v47  ;;  %v15257_v62 = vcombine.low %v510_v46, %v514_v47  ;;  %v562_v46 = vld [vmem:[%s18216_s13 + $0x828] sm:$0xff]  ;;  %v18575_v47 = vrot.slane %v1964_v36, %v18259_v53 }
 0x13e   : > { %10526 = vmatprep.subr.bf16.mxu1 %v15210_v57  ;;  %v518_v57 = vld [vmem:[%s18216_s13 + $0x6c8] sm:$0xff] }
 0x13f   : > { %10156 = vmatpush1.bf16.msra.mxu0 %v15711_v56  ;;  %v15768_v56 = vcombine.high %v1021_v48, %v1025_v49  ;;  %v1073_v48 = vld [vmem:[%s18216_s13 + $0x1820] sm:$0xff]  ;;  %v598_v36 = vld [vmem:[%s18216_s13 + $0x948] sm:$0xff] }
 0x140   : > { %10157 = vmatprep.subr.bf16.mxu0 %v15720_v58  ;;  %v522_v58 = vld [vmem:[%s18216_s13 + $0x6e8] sm:$0xff] }
 0x141   : > { %10527 = vmatpush1.bf16.msra.mxu1 %v15209_v1  ;;  %v15266_v1 = vcombine.high %v518_v57, %v522_v58  ;;  %v15265_v8 = vcombine.low %v518_v57, %v522_v58  ;;  %v570_v57 = vld [vmem:[%s18216_s13 + $0x868] sm:$0xff]  ;;  %v1980_v58 = vcombine.high %v18575_v47, %v18575_v47 }
 0x142   : > { %10528 = vmatprep.subr.bf16.mxu1 %v15218_v3  ;;  %v526_v3 = vld [vmem:[%s18216_s13 + $0x708] sm:$0xff] }
 0x143   : > { %10158 = vmatpush1.bf16.msra.mxu0 %v15719_v2  ;;  %v15776_v2 = vcombine.high %v1029_v59, %v1033_v60  ;;  %v1077_v59 = vld [vmem:[%s18216_s13 + $0x1840] sm:$0xff] }
 0x144   : > { %10159 = vmatprep.subr.bf16.mxu0 %v15728_v4  ;;  %v530_v4 = vld [vmem:[%s18216_s13 + $0x728] sm:$0xff]  ;;  %v1081_v60 = vld [vmem:[%s18216_s13 + $0x1860] sm:$0xff] }
 0x145   : > { %10529 = vmatpush1.bf16.msra.mxu1 %v15217_v10  ;;  %v15274_v10 = vcombine.high %v526_v3, %v530_v4  ;;  %v15273_v18 = vcombine.low %v526_v3, %v530_v4  ;;  %v15824_v3 = vcombine.high %v1077_v59, %v1081_v60  ;;  %v574_v4 = vld [vmem:[%s18216_s13 + $0x888] sm:$0xff] }
 0x146   : > { %10530 = vmatprep.subr.bf16.mxu1 %v15226_v13  ;;  %v534_v13 = vld [vmem:[%s18216_s13 + $0x748] sm:$0xff] }
 0x147   : > { %10160 = vmatpush1.bf16.msra.mxu0 %v15727_v12  ;;  %v15784_v12 = vcombine.high %v1037_v6, %v1041_v7  ;;  %v578_v6 = vld [vmem:[%s18216_s13 + $0x8a8] sm:$0xff]  ;;  %v18592_v7 = vrot.slane %v1980_v58, %v18259_v53 }
 0x148   : > { %10161 = vmatprep.subr.bf16.mxu0 %v15736_v14  ;;  %v538_v14 = vld [vmem:[%s18216_s13 + $0x768] sm:$0xff] }
 0x149   : > { %10531 = vmatpush1.bf16.msra.mxu1 %v15225_v20  ;;  %v15282_v20 = vcombine.high %v534_v13, %v538_v14  ;;  %v15281_v27 = vcombine.low %v534_v13, %v538_v14  ;;  %v15322_v13 = vcombine.high %v574_v4, %v578_v6  ;;  %v618_v58 = vld [vmem:[%s18216_s13 + $0x9e8] sm:$0xff] }
 0x14a   : > { %10532 = vmatprep.subr.bf16.mxu1 %v15234_v22  ;;  %v542_v22 = vld [vmem:[%s18216_s13 + $0x788] sm:$0xff] }
 0x14b   : > { %10162 = vmatpush1.bf16.msra.mxu0 %v15735_v21  ;;  %v15792_v21 = vcombine.high %v1045_v15, %v1049_v17  ;;  %v582_v15 = vld [vmem:[%s18216_s13 + $0x8c8] sm:$0xff] }
 0x14c   : > { %10163 = vmatprep.subr.bf16.mxu0 %v15744_v24  ;;  %v546_v24 = vld [vmem:[%s18216_s13 + $0x7a8] sm:$0xff] }
 0x14d   : > { %10533 = vmatpush1.bf16.msra.mxu1 %v15233_v5  ;;  %v15290_v5 = vcombine.high %v542_v22, %v546_v24  ;;  %v15289_v40 = vcombine.low %v542_v22, %v546_v24  ;;  %v586_v17 = vld [vmem:[%s18216_s13 + $0x8e8] sm:$0xff] }
 0x14e   : > { %10534 = vmatprep.subr.bf16.mxu1 %v15242_v34  ;;  %v550_v34 = vld [vmem:[%s18216_s13 + $0x7c8] sm:$0xff]  ;;  %v15330_v22 = vcombine.high %v582_v15, %v586_v17 }
 0x14f   : > { %10164 = vmatpush1.bf16.msra.mxu0 %v15743_v33  ;;  %v15800_v33 = vcombine.high %v1053_v25, %v1057_v26 }
 0x150   : > { %10165 = vmatprep.subr.bf16.mxu0 %v15752_v35  ;;  %v554_v35 = vld [vmem:[%s18216_s13 + $0x7e8] sm:$0xff] }
 0x151   : > { %10535 = vmatpush1.bf16.msra.mxu1 %v15241_v41  ;;  %v15799_v41 = vcombine.low %v1053_v25, %v1057_v26  ;;  %v15297_v49 = vcombine.low %v550_v34, %v554_v35  ;;  %v590_v25 = vld [vmem:[%s18216_s13 + $0x908] sm:$0xff] }
 0x152   : > { %10536 = vmatprep.subr.bf16.mxu1 %v15250_v44  ;;  %v15808_v44 = vcombine.high %v1061_v63, %v1065_v38  ;;  %v594_v26 = vld [vmem:[%s18216_s13 + $0x928] sm:$0xff] }
 0x153   : > { %10166 = vmatpush1.bf16.msra.mxu0 %v15751_v42  ;;  %v15298_v42 = vcombine.high %v550_v34, %v554_v35  ;;  %v15338_v34 = vcombine.high %v590_v25, %v594_v26 }
 0x154   : > { %10167 = vmatprep.subr.bf16.mxu0 %v15760_v45  ;;  %v558_v45 = vld [vmem:[%s18216_s13 + $0x808] sm:$0xff] }
 0x155   : > { %10537 = vmatpush1.bf16.msra.mxu1 %v15249_v51  ;;  %v15807_v51 = vcombine.low %v1061_v63, %v1065_v38  ;;  %v602_v63 = vld [vmem:[%s18216_s13 + $0x968] sm:$0xff]  ;;  %v1109_v38 = vld [vmem:[%s18216_s13 + $0x1940] sm:$0xff] }
 0x156   : > { %10538 = vmatprep.subr.bf16.mxu1 %v15258_v54  ;;  %v15816_v54 = vcombine.high %v1069_v31, %v1073_v48 }
 0x157   : > { %10168 = vmatpush1.bf16.msra.mxu0 %v15759_v52  ;;  %v15306_v52 = vcombine.high %v558_v45, %v562_v46 }
 0x158   : > { %10169 = vmatprep.subr.bf16.mxu0 %v15768_v56  ;;  %v566_v56 = vld [vmem:[%s18216_s13 + $0x848] sm:$0xff] }
 0x159   : > { %10539 = vmatpush1.bf16.msra.mxu1 %v15257_v62  ;;  %v15305_v62 = vcombine.low %v558_v45, %v562_v46  ;;  %v606_v46 = vld [vmem:[%s18216_s13 + $0x988] sm:$0xff] }
 0x15a   : > { %10540 = vmatprep.subr.bf16.mxu1 %v15266_v1  ;;  %v15815_v1 = vcombine.low %v1069_v31, %v1073_v48  ;;  %v610_v31 = vld [vmem:[%s18216_s13 + $0x9a8] sm:$0xff]  ;;  %v1117_v48 = vld [vmem:[%s18216_s13 + $0x1980] sm:$0xff] }
 0x15b   : > { %10170 = vmatpush1.bf16.msra.mxu0 %v15767_v0  ;;  %v18587_v0 = vcombine.high %v18504_v23, %v18504_v23 }
 0x15c   : > { %10171 = vmatprep.subr.bf16.mxu0 %v15776_v2  ;;  %v15314_v2 = vcombine.high %v566_v56, %v570_v57 }
 0x15d   : > { %10541 = vmatpush1.bf16.msra.mxu1 %v15265_v8  ;;  %v1085_v8 = vld [vmem:[%s18216_s13 + $0x1880] sm:$0xff] }
 0x15e   : > { %10542 = vmatprep.subr.bf16.mxu1 %v15274_v10  ;;  %v15313_v10 = vcombine.low %v566_v56, %v570_v57  ;;  %v614_v57 = vld [vmem:[%s18216_s13 + $0x9c8] sm:$0xff] }
 0x15f   : > { %10172 = vmatpush1.bf16.msra.mxu0 %v15775_v9  ;;  %v1089_v9 = vld [vmem:[%s18216_s13 + $0x18a0] sm:$0xff] }
 0x160   : > { %10173 = vmatprep.subr.bf16.mxu0 %v15784_v12  ;;  %v15823_v12 = vcombine.low %v1077_v59, %v1081_v60  ;;  %v15832_v14 = vcombine.high %v1085_v8, %v1089_v9  ;;  %v1125_v59 = vld [vmem:[%s18216_s13 + $0x19c0] sm:$0xff] }
 0x161   : > { %10543 = vmatpush1.bf16.msra.mxu1 %v15273_v18  ;;  %v1093_v18 = vld [vmem:[%s18216_s13 + $0x18c0] sm:$0xff] }
 0x162   : > { %10544 = vmatprep.subr.bf16.mxu1 %v15282_v20  ;;  %v15321_v20 = vcombine.low %v574_v4, %v578_v6  ;;  %v1129_v60 = vld [vmem:[%s18216_s13 + $0x19e0] sm:$0xff]  ;;  %v622_v4 = vld [vmem:[%s18216_s13 + $0xa08] sm:$0xff] }
 0x163   : > { %10174 = vmatpush1.bf16.msra.mxu0 %v15783_v19  ;;  %v1097_v19 = vld [vmem:[%s18216_s13 + $0x18e0] sm:$0xff]  ;;  %v626_v6 = vld [vmem:[%s18216_s13 + $0xa28] sm:$0xff] }
 0x164   : > { %10175 = vmatprep.subr.bf16.mxu0 %v15792_v21  ;;  %v15831_v21 = vcombine.low %v1085_v8, %v1089_v9  ;;  %v15840_v24 = vcombine.high %v1093_v18, %v1097_v19  ;;  %v1133_v8 = vld [vmem:[%s18216_s13 + $0x1a00] sm:$0xff] }
 0x165   : > { %10545 = vmatpush1.bf16.msra.mxu1 %v15281_v27  ;;  %v1101_v27 = vld [vmem:[%s18216_s13 + $0x1900] sm:$0xff] }
 0x166   : > { %10546 = vmatprep.subr.bf16.mxu1 %v15290_v5  ;;  %v15329_v5 = vcombine.low %v582_v15, %v586_v17  ;;  %v1137_v9 = vld [vmem:[%s18216_s13 + $0x1a20] sm:$0xff]  ;;  %v630_v15 = vld [vmem:[%s18216_s13 + $0xa48] sm:$0xff] }
 0x167   : > { %10176 = vmatpush1.bf16.msra.mxu0 %v15791_v29  ;;  %v1105_v29 = vld [vmem:[%s18216_s13 + $0x1920] sm:$0xff]  ;;  %v634_v17 = vld [vmem:[%s18216_s13 + $0xa68] sm:$0xff] }
 0x168   : > { %10177 = vmatprep.subr.bf16.mxu0 %v15800_v33  ;;  %v15839_v33 = vcombine.low %v1093_v18, %v1097_v19  ;;  %v15848_v35 = vcombine.high %v1101_v27, %v1105_v29  ;;  %v1141_v18 = vld [vmem:[%s18216_s13 + $0x1a40] sm:$0xff] }
 0x169   : > { %10547 = vmatpush1.bf16.msra.mxu1 %v15289_v40  ;;  %v1113_v40 = vld [vmem:[%s18216_s13 + $0x1960] sm:$0xff] }
 0x16a   : > { %10548 = vmatprep.subr.bf16.mxu1 %v15298_v42  ;;  %v15847_v42 = vcombine.low %v1101_v27, %v1105_v29  ;;  %v15856_v45 = vcombine.high %v1109_v38, %v1113_v40  ;;  %v1145_v19 = vld [vmem:[%s18216_s13 + $0x1a60] sm:$0xff] }
 0x16b   : > { %10178 = vmatpush1.bf16.msra.mxu0 %v15799_v41  ;;  %v15337_v41 = vcombine.low %v590_v25, %v594_v26  ;;  %v638_v25 = vld [vmem:[%s18216_s13 + $0xa88] sm:$0xff]  ;;  %v1149_v27 = vld [vmem:[%s18216_s13 + $0x1a80] sm:$0xff] }
 0x16c   : > { %10179 = vmatprep.subr.bf16.mxu0 %v15808_v44  ;;  %v15346_v44 = vcombine.high %v598_v36, %v602_v63  ;;  %v642_v26 = vld [vmem:[%s18216_s13 + $0xaa8] sm:$0xff]  ;;  %v1153_v29 = vld [vmem:[%s18216_s13 + $0x1aa0] sm:$0xff] }
 0x16d   : > { %10549 = vmatpush1.bf16.msra.mxu1 %v15297_v49  ;;  %v1121_v49 = vld [vmem:[%s18216_s13 + $0x19a0] sm:$0xff] }
 0x16e   : > { %10559 = vmatprep.subr.bf16.mxu1 %v15306_v52  ;;  %v15855_v52 = vcombine.low %v1109_v38, %v1113_v40  ;;  %v15864_v56 = vcombine.high %v1117_v48, %v1121_v49  ;;  %v1157_v38 = vld [vmem:[%s18216_s13 + $0x1ac0] sm:$0xff] }
 0x16f   : > { %10180 = vmatpush1.bf16.msra.mxu0 %v15807_v51  ;;  %v15345_v51 = vcombine.low %v598_v36, %v602_v63  ;;  %v646_v36 = vld [vmem:[%s18216_s13 + $0xac8] sm:$0xff]  ;;  %v1161_v40 = vld [vmem:[%s18216_s13 + $0x1ae0] sm:$0xff] }
 0x170   : > { %10190 = vmatprep.subr.bf16.mxu0 %v15816_v54  ;;  %10551 = vmatmul.mubr.bf16.vlgmr.msra.gmra.mrb[4].mxu1 %v18423_v50  ;;  %v15354_v54 = vcombine.high %v606_v46, %v610_v31  ;;  %v650_v63 = vld [vmem:[%s18216_s13 + $0xae8] sm:$0xff] }
 0x171   : > { %10560 = vmatpush1.bf16.msra.mxu1 %v15305_v62  ;;  %10591 = vmatprep.mubr.bf16.mxu1 %v18289_v16  ;;  %v15353_v62 = vcombine.low %v606_v46, %v610_v31  ;;  %v654_v46 = vld [vmem:[%s18216_s13 + $0xb08] sm:$0xff] }
 0x172   : > { %10182 = vmatmul.mubr.bf16.vlgmr.msra.gmra.mrb[0].mxu0 %v18587_v0  ;;  %10561 = vmatprep.subr.bf16.mxu1 %v15314_v2  ;;  %v15362_v2 = vcombine.high %v614_v57, %v618_v58  ;;  %v658_v31 = vld [vmem:[%s18216_s13 + $0xb28] sm:$0xff] }
 0x173   : > { %10191 = vmatpush1.bf16.msra.mxu0 %v15815_v1  ;;  %10222 = vmatprep.mubr.bf16.mxu0 %v18592_v7  ;;  %v15863_v1 = vcombine.low %v1117_v48, %v1121_v49  ;;  %v1165_v48 = vld [vmem:[%s18216_s13 + $0x1b00] sm:$0xff] }
 0x174   : > { %10192 = vmatprep.subr.bf16.mxu0 %v15824_v3  ;;  %v15872_v3 = vcombine.high %v1125_v59, %v1129_v60  ;;  %v1169_v49 = vld [vmem:[%s18216_s13 + $0x1b20] sm:$0xff] }
 0x175   : > { %10562 = vmatpush1.bf16.msra.mxu1 %v15313_v10  ;;  %v15361_v10 = vcombine.low %v614_v57, %v618_v58  ;;  %v662_v57 = vld [vmem:[%s18216_s13 + $0xb48] sm:$0xff] }
 0x176   : > { %10563 = vmatprep.subr.bf16.mxu1 %v15322_v13  ;;  %v15370_v13 = vcombine.high %v622_v4, %v626_v6  ;;  %v666_v58 = vld [vmem:[%s18216_s13 + $0xb68] sm:$0xff] }
 0x177   : > { %10193 = vmatpush1.bf16.msra.mxu0 %v15823_v12  ;;  %v15871_v12 = vcombine.low %v1125_v59, %v1129_v60  ;;  %v1173_v59 = vld [vmem:[%s18216_s13 + $0x1b40] sm:$0xff] }
 0x178   : > { %10194 = vmatprep.subr.bf16.mxu0 %v15832_v14  ;;  %v15880_v14 = vcombine.high %v1133_v8, %v1137_v9  ;;  %v1177_v60 = vld [vmem:[%s18216_s13 + $0x1b60] sm:$0xff] }
 0x179   : > { %10564 = vmatpush1.bf16.msra.mxu1 %v15321_v20  ;;  %v15369_v20 = vcombine.low %v622_v4, %v626_v6  ;;  %v670_v4 = vld [vmem:[%s18216_s13 + $0xb88] sm:$0xff] }
 0x17a   : > { %10565 = vmatprep.subr.bf16.mxu1 %v15330_v22  ;;  %v15378_v22 = vcombine.high %v630_v15, %v634_v17  ;;  %v674_v6 = vld [vmem:[%s18216_s13 + $0xba8] sm:$0xff] }
 0x17b   : > { %10195 = vmatpush1.bf16.msra.mxu0 %v15831_v21  ;;  %v15879_v21 = vcombine.low %v1133_v8, %v1137_v9  ;;  %v1181_v8 = vld [vmem:[%s18216_s13 + $0x1b80] sm:$0xff] }
 0x17c   : > { %10196 = vmatprep.subr.bf16.mxu0 %v15840_v24  ;;  %v15888_v24 = vcombine.high %v1141_v18, %v1145_v19  ;;  %v1185_v9 = vld [vmem:[%s18216_s13 + $0x1ba0] sm:$0xff] }
 0x17d   : > { %10566 = vmatpush1.bf16.msra.mxu1 %v15329_v5  ;;  %v15377_v5 = vcombine.low %v630_v15, %v634_v17  ;;  %v678_v15 = vld [vmem:[%s18216_s13 + $0xbc8] sm:$0xff] }
 0x17e   : > { %10567 = vmatprep.subr.bf16.mxu1 %v15338_v34  ;;  %v15386_v34 = vcombine.high %v638_v25, %v642_v26  ;;  %v682_v17 = vld [vmem:[%s18216_s13 + $0xbe8] sm:$0xff] }
 0x17f   : > { %10197 = vmatpush1.bf16.msra.mxu0 %v15839_v33  ;;  %v15887_v33 = vcombine.low %v1141_v18, %v1145_v19  ;;  %v1189_v18 = vld [vmem:[%s18216_s13 + $0x1bc0] sm:$0xff] }
 0x180   : > { %10198 = vmatprep.subr.bf16.mxu0 %v15848_v35  ;;  %v15896_v35 = vcombine.high %v1149_v27, %v1153_v29  ;;  %v1193_v19 = vld [vmem:[%s18216_s13 + $0x1be0] sm:$0xff] }
 0x181   : > { %10568 = vmatpush1.bf16.msra.mxu1 %v15337_v41  ;;  %v15385_v41 = vcombine.low %v638_v25, %v642_v26  ;;  %v686_v25 = vld [vmem:[%s18216_s13 + $0xc08] sm:$0xff] }
 0x182   : > { %10569 = vmatprep.subr.bf16.mxu1 %v15346_v44  ;;  %v15394_v44 = vcombine.high %v646_v36, %v650_v63  ;;  %v690_v26 = vld [vmem:[%s18216_s13 + $0xc28] sm:$0xff] }
 0x183   : > { %10199 = vmatpush1.bf16.msra.mxu0 %v15847_v42  ;;  %v15895_v42 = vcombine.low %v1149_v27, %v1153_v29  ;;  %v1197_v27 = vld [vmem:[%s18216_s13 + $0x1c00] sm:$0xff] }
 0x184   : > { %10200 = vmatprep.subr.bf16.mxu0 %v15856_v45  ;;  %v15904_v45 = vcombine.high %v1157_v38, %v1161_v40  ;;  %v1201_v29 = vld [vmem:[%s18216_s13 + $0x1c20] sm:$0xff] }
 0x185   : > { %10570 = vmatpush1.bf16.msra.mxu1 %v15345_v51  ;;  %v15393_v51 = vcombine.low %v646_v36, %v650_v63  ;;  %v694_v36 = vld [vmem:[%s18216_s13 + $0xc48] sm:$0xff] }
 0x186   : > { %10571 = vmatprep.subr.bf16.mxu1 %v15354_v54  ;;  %v15402_v54 = vcombine.high %v654_v46, %v658_v31  ;;  %v698_v63 = vld [vmem:[%s18216_s13 + $0xc68] sm:$0xff] }
 0x187   : > { %10201 = vmatpush1.bf16.msra.mxu0 %v15855_v52  ;;  %v15903_v52 = vcombine.low %v1157_v38, %v1161_v40  ;;  %v1205_v38 = vld [vmem:[%s18216_s13 + $0x1c40] sm:$0xff] }
 0x188   : > { %10202 = vmatprep.subr.bf16.mxu0 %v15864_v56  ;;  %v15912_v56 = vcombine.high %v1165_v48, %v1169_v49  ;;  %v1209_v40 = vld [vmem:[%s18216_s13 + $0x1c60] sm:$0xff] }
 0x189   : > { %10572 = vmatpush1.bf16.msra.mxu1 %v15353_v62  ;;  %v15401_v62 = vcombine.low %v654_v46, %v658_v31  ;;  %v15952_v46 = vcombine.high %v1205_v38, %v1209_v40  ;;  %v702_v31 = vld [vmem:[%s18216_s13 + $0xc88] sm:$0xff] }
 0x18a   : > { %10573 = vmatprep.subr.bf16.mxu1 %v15362_v2  ;;  %v15410_v2 = vcombine.high %v662_v57, %v666_v58 }
 0x18b   : > { %10203 = vmatpush1.bf16.msra.mxu0 %v15863_v1  ;;  %v15911_v1 = vcombine.low %v1165_v48, %v1169_v49  ;;  %v706_v48 = vld [vmem:[%s18216_s13 + $0xca8] sm:$0xff]  ;;  %v18668_v49 = vcombine.high %v18592_v7, %v18592_v7 }
 0x18c   : > { %10204 = vmatprep.subr.bf16.mxu0 %v15872_v3  ;;  %v15920_v3 = vcombine.high %v1173_v59, %v1177_v60 }
 0x18d   : > { %10574 = vmatpush1.bf16.msra.mxu1 %v15361_v10  ;;  %v15409_v10 = vcombine.low %v662_v57, %v666_v58  ;;  %v710_v58 = vld [vmem:[%s18216_s13 + $0xcc8] sm:$0xff] }
 0x18e   : > { %10575 = vmatprep.subr.bf16.mxu1 %v15370_v13  ;;  %v15418_v13 = vcombine.high %v670_v4, %v674_v6 }
 0x18f   : > { %10205 = vmatpush1.bf16.msra.mxu0 %v15871_v12  ;;  %v15919_v12 = vcombine.low %v1173_v59, %v1177_v60  ;;  %v714_v59 = vld [vmem:[%s18216_s13 + $0xce8] sm:$0xff]  ;;  %v1221_v60 = vld [vmem:[%s18216_s13 + $0x1cc0] sm:$0xff] }
 0x190   : > { %10206 = vmatprep.subr.bf16.mxu0 %v15880_v14  ;;  %v15928_v14 = vcombine.high %v1181_v8, %v1185_v9 }
 0x191   : > { %10576 = vmatpush1.bf16.msra.mxu1 %v15369_v20  ;;  %v15417_v20 = vcombine.low %v670_v4, %v674_v6  ;;  %v718_v6 = vld [vmem:[%s18216_s13 + $0xd08] sm:$0xff] }
 0x192   : > { %10577 = vmatprep.subr.bf16.mxu1 %v15378_v22  ;;  %v15426_v22 = vcombine.high %v678_v15, %v682_v17 }
 0x193   : > { %10207 = vmatpush1.bf16.msra.mxu0 %v15879_v21  ;;  %v15927_v21 = vcombine.low %v1181_v8, %v1185_v9  ;;  %v722_v8 = vld [vmem:[%s18216_s13 + $0xd28] sm:$0xff]  ;;  %v1229_v9 = vld [vmem:[%s18216_s13 + $0x1d00] sm:$0xff] }
 0x194   : > { %10208 = vmatprep.subr.bf16.mxu0 %v15888_v24  ;;  %v15936_v24 = vcombine.high %v1189_v18, %v1193_v19 }
 0x195   : > { %10578 = vmatpush1.bf16.msra.mxu1 %v15377_v5  ;;  %v15425_v5 = vcombine.low %v678_v15, %v682_v17  ;;  %v726_v17 = vld [vmem:[%s18216_s13 + $0xd48] sm:$0xff] }
 0x196   : > { %10579 = vmatprep.subr.bf16.mxu1 %v15386_v34  ;;  %v15434_v34 = vcombine.high %v686_v25, %v690_v26 }
 0x197   : > { %10209 = vmatpush1.bf16.msra.mxu0 %v15887_v33  ;;  %v15935_v33 = vcombine.low %v1189_v18, %v1193_v19  ;;  %v730_v18 = vld [vmem:[%s18216_s13 + $0xd68] sm:$0xff]  ;;  %v1237_v19 = vld [vmem:[%s18216_s13 + $0x1d40] sm:$0xff] }
 0x198   : > { %10210 = vmatprep.subr.bf16.mxu0 %v15896_v35  ;;  %v15944_v35 = vcombine.high %v1197_v27, %v1201_v29 }
 0x199   : > { %10580 = vmatpush1.bf16.msra.mxu1 %v15385_v41  ;;  %v15433_v41 = vcombine.low %v686_v25, %v690_v26  ;;  %v734_v26 = vld [vmem:[%s18216_s13 + $0xd88] sm:$0xff] }
 0x19a   : > { %10581 = vmatprep.subr.bf16.mxu1 %v15394_v44  ;;  %v15943_v44 = vcombine.low %v1197_v27, %v1201_v29  ;;  %v738_v27 = vld [vmem:[%s18216_s13 + $0xda8] sm:$0xff]  ;;  %v1245_v29 = vld [vmem:[%s18216_s13 + $0x1d80] sm:$0xff] }
 0x19b   : > { %10211 = vmatpush1.bf16.msra.mxu0 %v15895_v42  ;;  %v18662_v42 = vrot.slane %v18575_v47, %v18259_v53  ;;  %v1213_v47 = vld [vmem:[%s18216_s13 + $0x1c80] sm:$0xff] }
 0x19c   : > { %10212 = vmatprep.subr.bf16.mxu0 %v15904_v45  ;;  %v15442_v45 = vcombine.high %v694_v36, %v698_v63 }
 0x19d   : > { %10582 = vmatpush1.bf16.msra.mxu1 %v15393_v51  ;;  %v1217_v51 = vld [vmem:[%s18216_s13 + $0x1ca0] sm:$0xff] }
 0x19e   : > { %10583 = vmatprep.subr.bf16.mxu1 %v15402_v54  ;;  %v15951_v54 = vcombine.low %v1205_v38, %v1209_v40  ;;  %v15960_v57 = vcombine.high %v1213_v47, %v1217_v51  ;;  %v742_v38 = vld [vmem:[%s18216_s13 + $0xdc8] sm:$0xff] }
 0x19f   : > { %10213 = vmatpush1.bf16.msra.mxu0 %v15903_v52  ;;  %v15441_v52 = vcombine.low %v694_v36, %v698_v63  ;;  %v746_v40 = vld [vmem:[%s18216_s13 + $0xde8] sm:$0xff] }
 0x1a0   : > { %10214 = vmatprep.subr.bf16.mxu0 %v15912_v56  ;;  %v15450_v56 = vcombine.high %v702_v31, %v706_v48 }
 0x1a1   : > { %10584 = vmatpush1.bf16.msra.mxu1 %v15401_v62  ;;  %v1225_v62 = vld [vmem:[%s18216_s13 + $0x1ce0] sm:$0xff] }
 0x1a2   : > { %10585 = vmatprep.subr.bf16.mxu1 %v15410_v2  ;;  %v15959_v2 = vcombine.low %v1213_v47, %v1217_v51  ;;  %v15968_v4 = vcombine.high %v1221_v60, %v1225_v62  ;;  %v15490_v51 = vcombine.high %v742_v38, %v746_v40 }
 0x1a3   : > { %10215 = vmatpush1.bf16.msra.mxu0 %v15911_v1  ;;  %v15449_v1 = vcombine.low %v702_v31, %v706_v48  ;;  %v15481_v31 = vcombine.low %v734_v26, %v738_v27 }
 0x1a4   : > { %10216 = vmatprep.subr.bf16.mxu0 %v15920_v3  ;;  %v15458_v3 = vcombine.high %v710_v58, %v714_v59 }
 0x1a5   : > { %10586 = vmatpush1.bf16.msra.mxu1 %v15409_v10  ;;  %v1233_v10 = vld [vmem:[%s18216_s13 + $0x1d20] sm:$0xff] }
 0x1a6   : > { %10587 = vmatprep.subr.bf16.mxu1 %v15418_v13  ;;  %v15967_v13 = vcombine.low %v1221_v60, %v1225_v62  ;;  %v15976_v15 = vcombine.high %v1229_v9, %v1233_v10 }
 0x1a7   : > { %10217 = vmatpush1.bf16.msra.mxu0 %v15919_v12  ;;  %v15457_v12 = vcombine.low %v710_v58, %v714_v59  ;;  %v1265_v58 = vld [vmem:[%s18216_s13 + $0x1e20] sm:$0xff]  ;;  %v15489_v59 = vcombine.low %v742_v38, %v746_v40 }
 0x1a8   : > { %10218 = vmatprep.subr.bf16.mxu0 %v15928_v14  ;;  %v15466_v14 = vcombine.high %v718_v6, %v722_v8  ;;  %v1297_v38 = vld [vmem:[%s18216_s13 + $0x1f20] sm:$0xff] }
 0x1a9   : > { %10588 = vmatpush1.bf16.msra.mxu1 %v15417_v20  ;;  %v1241_v20 = vld [vmem:[%s18216_s13 + $0x1d60] sm:$0xff] }
 0x1aa   : > { %10589 = vmatprep.subr.bf16.mxu1 %v15426_v22  ;;  %v15975_v22 = vcombine.low %v1229_v9, %v1233_v10  ;;  %v15984_v25 = vcombine.high %v1237_v19, %v1241_v20 }
 0x1ab   : > { %10219 = vmatpush1.bf16.msra.mxu0 %v15927_v21  ;;  %v15465_v21 = vcombine.low %v718_v6, %v722_v8  ;;  %v1273_v6 = vld [vmem:[%s18216_s13 + $0x1e60] sm:$0xff] }
 0x1ac   : > { %10220 = vmatprep.subr.bf16.mxu0 %v15936_v24  ;;  %v15474_v24 = vcombine.high %v726_v17, %v730_v18 }
 0x1ad   : > { %10590 = vmatpush1.bf16.msra.mxu1 %v15425_v5  ;;  %v1249_v5 = vld [vmem:[%s18216_s13 + $0x1da0] sm:$0xff] }
 0x1ae   : > { %10600 = vmatprep.subr.bf16.mxu1 %v15434_v34  ;;  %v15983_v34 = vcombine.low %v1237_v19, %v1241_v20  ;;  %v15992_v63 = vcombine.high %v1245_v29, %v1249_v5  ;;  %v15991_v47 = vcombine.low %v1245_v29, %v1249_v5 }
 0x1af   : > { %10221 = vmatpush1.bf16.msra.mxu0 %v15935_v33  ;;  %v15473_v33 = vcombine.low %v726_v17, %v730_v18  ;;  %v1281_v17 = vld [vmem:[%s18216_s13 + $0x1ea0] sm:$0xff] }
 0x1b0   : > { %10231 = vmatprep.subr.bf16.mxu0 %v15944_v35  ;;  %10592 = vmatmul.mubr.bf16.vlgmr.msra.gmra.mrb[4].mxu1 %v18334_v32  ;;  %v15482_v35 = vcombine.high %v734_v26, %v738_v27  ;;  %v1289_v26 = vld [vmem:[%s18216_s13 + $0x1ee0] sm:$0xff] }
 0x1b1   : > { %10601 = vmatpush1.bf16.msra.mxu1 %v15433_v41  ;;  %10632 = vmatprep.mubr.bf16.mxu1 %v18347_v39 }
 0x1b2   : > { %10223 = vmatmul.mubr.bf16.vlgmr.msra.gmra.mrb[0].mxu0 %v18662_v42  ;;  %10602 = vmatprep.subr.bf16.mxu1 %v15442_v45  ;;  %v1257_v45 = vld [vmem:[%s18216_s13 + $0x1de0] sm:$0xff] }
 0x1b3   : > { %10232 = vmatpush1.bf16.msra.mxu0 %v15943_v44  ;;  %10263 = vmatprep.mubr.bf16.mxu0 %v18668_v49  ;;  %v1253_v44 = vld [vmem:[%s18216_s13 + $0x1dc0] sm:$0xff] }
 0x1b4   : > { %10233 = vmatprep.subr.bf16.mxu0 %v15952_v46  ;;  %v15999_v60 = vcombine.low %v1253_v44, %v1257_v45 }
 0x1b5   : > { %10603 = vmatpush1.bf16.msra.mxu1 %v15441_v52  ;;  %v16000_v52 = vcombine.high %v1253_v44, %v1257_v45 }
 0x1b6   : > { %10604 = vmatprep.subr.bf16.mxu1 %v15450_v56  ;;  %v754_v56 = vld [vmem:[%s18216_s13 + $0xe28] sm:$0xff] }
 0x1b7   : > { %10234 = vmatpush1.bf16.msra.mxu0 %v15951_v54  ;;  %v750_v54 = vld [vmem:[%s18216_s13 + $0xe08] sm:$0xff] }
 0x1b8   : > { %10235 = vmatprep.subr.bf16.mxu0 %v15960_v57  ;;  %v1261_v57 = vld [vmem:[%s18216_s13 + $0x1e00] sm:$0xff]  ;;  %v15498_v62 = vcombine.high %v750_v54, %v754_v56  ;;  %v15497_v8 = vcombine.low %v750_v54, %v754_v56 }
 0x1b9   : > { %10605 = vmatpush1.bf16.msra.mxu1 %v15449_v1  ;;  %v16008_v1 = vcombine.high %v1261_v57, %v1265_v58  ;;  %v16007_v9 = vcombine.low %v1261_v57, %v1265_v58  ;;  %v798_v58 = vld [vmem:[%s18216_s13 + $0xf88] sm:$0xff] }
 0x1ba   : > { %10606 = vmatprep.subr.bf16.mxu1 %v15458_v3  ;;  %v762_v3 = vld [vmem:[%s18216_s13 + $0xe68] sm:$0xff] }
 0x1bb   : > { %10236 = vmatpush1.bf16.msra.mxu0 %v15959_v2  ;;  %v758_v2 = vld [vmem:[%s18216_s13 + $0xe48] sm:$0xff] }
 0x1bc   : > { %10237 = vmatprep.subr.bf16.mxu0 %v15968_v4  ;;  %v1269_v4 = vld [vmem:[%s18216_s13 + $0x1e40] sm:$0xff]  ;;  %v15506_v10 = vcombine.high %v758_v2, %v762_v3  ;;  %v15505_v18 = vcombine.low %v758_v2, %v762_v3 }
 0x1bd   : > { %10607 = vmatpush1.bf16.msra.mxu1 %v15457_v12  ;;  %v16016_v12 = vcombine.high %v1269_v4, %v1273_v6  ;;  %v16015_v19 = vcombine.low %v1269_v4, %v1273_v6  ;;  %v806_v6 = vld [vmem:[%s18216_s13 + $0xfc8] sm:$0xff] }
 0x1be   : > { %10608 = vmatprep.subr.bf16.mxu1 %v15466_v14  ;;  %v770_v14 = vld [vmem:[%s18216_s13 + $0xea8] sm:$0xff] }
 0x1bf   : > { %10238 = vmatpush1.bf16.msra.mxu0 %v15967_v13  ;;  %v766_v13 = vld [vmem:[%s18216_s13 + $0xe88] sm:$0xff] }
 0x1c0   : > { %10239 = vmatprep.subr.bf16.mxu0 %v15976_v15  ;;  %v1277_v15 = vld [vmem:[%s18216_s13 + $0x1e80] sm:$0xff]  ;;  %v15514_v20 = vcombine.high %v766_v13, %v770_v14  ;;  %v15513_v27 = vcombine.low %v766_v13, %v770_v14 }
 0x1c1   : > { %10609 = vmatpush1.bf16.msra.mxu1 %v15465_v21  ;;  %v16024_v21 = vcombine.high %v1277_v15, %v1281_v17  ;;  %v16023_v29 = vcombine.low %v1277_v15, %v1281_v17 }
 0x1c2   : > { %10610 = vmatprep.subr.bf16.mxu1 %v15474_v24  ;;  %v778_v24 = vld [vmem:[%s18216_s13 + $0xee8] sm:$0xff] }
 0x1c3   : > { %10240 = vmatpush1.bf16.msra.mxu0 %v15975_v22  ;;  %v18692_v36 = vpop.f32.mrb[0].mxu1  ;;  %v774_v22 = vld [vmem:[%s18216_s13 + $0xec8] sm:$0xff] }
 0x1c4   : > { %10241 = vmatprep.subr.bf16.mxu0 %v15984_v25  ;;  %v18696_v41 = vpop.f32.mrb[1].mxu1  ;;  %v1285_v25 = vld [vmem:[%s18216_s13 + $0x1ec0] sm:$0xff]  ;;  %v15522_v5 = vcombine.high %v774_v22, %v778_v24  ;;  %v15521_v40 = vcombine.low %v774_v22, %v778_v24 }
 0x1c5   : > { %v10023_v46 = vpop.f32.mrb[2].mxu1  ;;  %10611 = vmatpush1.bf16.msra.mxu1 %v15473_v33  ;;  %v16032_v33 = vcombine.high %v1285_v25, %v1289_v26  ;;  %v16031_v44 = vcombine.low %v1285_v25, %v1289_v26  ;;  %v1329_v22 = vld [vmem:[%s18216_s13 + $0x2020] sm:$0xff] }
 0x1c6   : > { %v10024_v48 = vpop.f32.mrb[3].mxu1  ;;  %10612 = vmatprep.subr.bf16.mxu1 %v15482_v35  ;;  %v786_v35 = vld [vmem:[%s18216_s13 + $0xf28] sm:$0xff] }
 0x1c7   : > { %10242 = vmatpush1.bf16.msra.mxu0 %v15983_v34  ;;  %v782_v34 = vld [vmem:[%s18216_s13 + $0xf08] sm:$0xff] }
 0x1c8   : > { %10243 = vmatprep.subr.bf16.mxu0 %v15992_v63  ;;  %v1293_v63 = vld [vmem:[%s18216_s13 + $0x1f00] sm:$0xff]  ;;  %v15530_v45 = vcombine.high %v782_v34, %v786_v35  ;;  %v794_v48 = vld [vmem:[%s18216_s13 + $0xf68] sm:$0xff] }
 0x1c9   : > { %10613 = vmatpush1.bf16.msra.mxu1 %v15481_v31  ;;  %v16040_v46 = vcombine.high %v1293_v63, %v1297_v38  ;;  %v790_v31 = vld [vmem:[%s18216_s13 + $0xf48] sm:$0xff]  ;;  %v16039_v54 = vcombine.low %v1293_v63, %v1297_v38  ;;  %v18753_v38 = vcombine.high %v18662_v42, %v18662_v42 }
 0x1ca   : > { %10614 = vmatprep.subr.bf16.mxu1 %v15490_v51  ;;  %v1305_v51 = vld [vmem:[%s18216_s13 + $0x1f60] sm:$0xff]  ;;  %v15538_v56 = vcombine.high %v790_v31, %v794_v48 }
 0x1cb   : > { %10244 = vmatpush1.bf16.msra.mxu0 %v15991_v47  ;;  %v1301_v47 = vld [vmem:[%s18216_s13 + $0x1f40] sm:$0xff] }
 0x1cc   : > { %10245 = vmatprep.subr.bf16.mxu0 %v16000_v52  ;;  %v15529_v52 = vcombine.low %v782_v34, %v786_v35  ;;  %v16048_v57 = vcombine.high %v1301_v47, %v1305_v51  ;;  %v16047_v2 = vcombine.low %v1301_v47, %v1305_v51  ;;  %v1333_v34 = vld [vmem:[%s18216_s13 + $0x2040] sm:$0xff] }
 0x1cd   : > { %10615 = vmatpush1.bf16.msra.mxu1 %v15489_v59  ;;  %v802_v59 = vld [vmem:[%s18216_s13 + $0xfa8] sm:$0xff]  ;;  %v1337_v35 = vld [vmem:[%s18216_s13 + $0x2060] sm:$0xff] }
 0x1ce   : > { %10616 = vmatprep.subr.bf16.mxu1 %v15498_v62  ;;  %v1313_v62 = vld [vmem:[%s18216_s13 + $0x1fa0] sm:$0xff]  ;;  %v15546_v3 = vcombine.high %v798_v58, %v802_v59  ;;  %v15545_v13 = vcombine.low %v798_v58, %v802_v59  ;;  %v838_v58 = vld [vmem:[%s18216_s13 + $0x10c8] sm:$0xff] }
 0x1cf   : > { %10246 = vmatpush1.bf16.msra.mxu0 %v15999_v60  ;;  %v1309_v60 = vld [vmem:[%s18216_s13 + $0x1f80] sm:$0xff]  ;;  %v842_v59 = vld [vmem:[%s18216_s13 + $0x10e8] sm:$0xff] }
 0x1d0   : > { %10247 = vmatprep.subr.bf16.mxu0 %v16008_v1  ;;  %v15537_v1 = vcombine.low %v790_v31, %v794_v48  ;;  %v16056_v4 = vcombine.high %v1309_v60, %v1313_v62  ;;  %v16055_v14 = vcombine.low %v1309_v60, %v1313_v62  ;;  %v834_v31 = vld [vmem:[%s18216_s13 + $0x10a8] sm:$0xff]  ;;  %v1341_v47 = vld [vmem:[%s18216_s13 + $0x2080] sm:$0xff] }
 0x1d1   : > { %10617 = vmatpush1.bf16.msra.mxu1 %v15497_v8  ;;  %v810_v8 = vld [vmem:[%s18216_s13 + $0xfe8] sm:$0xff]  ;;  %v1345_v51 = vld [vmem:[%s18216_s13 + $0x20a0] sm:$0xff] }
 0x1d2   : > { %10618 = vmatprep.subr.bf16.mxu1 %v15506_v10  ;;  %v1321_v10 = vld [vmem:[%s18216_s13 + $0x1fe0] sm:$0xff]  ;;  %v15554_v15 = vcombine.high %v806_v6, %v810_v8  ;;  %v15553_v24 = vcombine.low %v806_v6, %v810_v8  ;;  %v846_v6 = vld [vmem:[%s18216_s13 + $0x1108] sm:$0xff] }
 0x1d3   : > { %10248 = vmatpush1.bf16.msra.mxu0 %v16007_v9  ;;  %v1317_v9 = vld [vmem:[%s18216_s13 + $0x1fc0] sm:$0xff]  ;;  %v850_v8 = vld [vmem:[%s18216_s13 + $0x1128] sm:$0xff] }
 0x1d4   : > { %10249 = vmatprep.subr.bf16.mxu0 %v16016_v12  ;;  %v18735_v12 = vld [vmem:[%s20537_s0 + $0x10] sm:$0xff]  ;;  %v16064_v17 = vcombine.high %v1317_v9, %v1321_v10  ;;  %v16063_v25 = vcombine.low %v1317_v9, %v1321_v10  ;;  %v1349_v60 = vld [vmem:[%s18216_s13 + $0x20c0] sm:$0xff] }
 0x1d5   : > { %10619 = vmatpush1.bf16.msra.mxu1 %v15505_v18  ;;  %v814_v18 = vld [vmem:[%s18216_s13 + $0x1008] sm:$0xff]  ;;  %v1353_v62 = vld [vmem:[%s18216_s13 + $0x20e0] sm:$0xff] }
 0x1d6   : > { %10620 = vmatprep.subr.bf16.mxu1 %v15514_v20  ;;  %v18741_v20 = vrot.slane %v18735_v12, %v18259_v53  ;;  %v1357_v9 = vld [vmem:[%s18216_s13 + $0x2100] sm:$0xff] }
 0x1d7   : > { %10250 = vmatpush1.bf16.msra.mxu0 %v16015_v19  ;;  %v818_v19 = vld [vmem:[%s18216_s13 + $0x1028] sm:$0xff]  ;;  %v1361_v10 = vld [vmem:[%s18216_s13 + $0x2120] sm:$0xff] }
 0x1d8   : > { %10251 = vmatprep.subr.bf16.mxu0 %v16024_v21  ;;  %v1325_v21 = vld [vmem:[%s18216_s13 + $0x2000] sm:$0xff]  ;;  %v15562_v26 = vcombine.high %v814_v18, %v818_v19  ;;  %v15561_v63 = vcombine.low %v814_v18, %v818_v19  ;;  %v854_v18 = vld [vmem:[%s18216_s13 + $0x1148] sm:$0xff] }
 0x1d9   : > { %10621 = vmatpush1.bf16.msra.mxu1 %v15513_v27  ;;  %v16072_v27 = vcombine.high %v1325_v21, %v1329_v22  ;;  %v858_v19 = vld [vmem:[%s18216_s13 + $0x1168] sm:$0xff] }
 0x1da   : > { %10622 = vmatprep.subr.bf16.mxu1 %v15522_v5  ;;  %v826_v5 = vld [vmem:[%s18216_s13 + $0x1068] sm:$0xff] }
 0x1db   : > { %10252 = vmatpush1.bf16.msra.mxu0 %v16023_v29  ;;  %v822_v29 = vld [vmem:[%s18216_s13 + $0x1048] sm:$0xff] }
 0x1dc   : > { %10253 = vmatprep.subr.bf16.mxu0 %v16032_v33  ;;  %v2028_v33 = vcombine.high %v18741_v20, %v18741_v20 }
 0x1dd   : > { %10623 = vmatpush1.bf16.msra.mxu1 %v15521_v40  ;;  %v16071_v40 = vcombine.low %v1325_v21, %v1329_v22  ;;  %v1365_v21 = vld [vmem:[%s18216_s13 + $0x2140] sm:$0xff] }
 0x1de   : > { %10624 = vmatprep.subr.bf16.mxu1 %v15530_v45  ;;  %v16080_v45 = vcombine.high %v1333_v34, %v1337_v35  ;;  %v18758_v48 = vrot.slane %v2028_v33, %v18259_v53  ;;  %v1369_v22 = vld [vmem:[%s18216_s13 + $0x2160] sm:$0xff] }
 0x1df   : > { %10254 = vmatpush1.bf16.msra.mxu0 %v16031_v44  ;;  %v15570_v44 = vcombine.high %v822_v29, %v826_v5  ;;  %v1373_v33 = vld [vmem:[%s18216_s13 + $0x2180] sm:$0xff] }
 0x1e0   : > { %10255 = vmatprep.subr.bf16.mxu0 %v16040_v46  ;;  %v830_v46 = vld [vmem:[%s18216_s13 + $0x1088] sm:$0xff] }
 0x1e1   : > { %10625 = vmatpush1.bf16.msra.mxu1 %v15529_v52  ;;  %v15569_v52 = vcombine.low %v822_v29, %v826_v5  ;;  %v862_v29 = vld [vmem:[%s18216_s13 + $0x1188] sm:$0xff] }
 0x1e2   : > { %10626 = vmatprep.subr.bf16.mxu1 %v15538_v56  ;;  %v15578_v56 = vcombine.high %v830_v46, %v834_v31  ;;  %v866_v5 = vld [vmem:[%s18216_s13 + $0x11a8] sm:$0xff] }
 0x1e3   : > { %10256 = vmatpush1.bf16.msra.mxu0 %v16039_v54  ;;  %v16079_v54 = vcombine.low %v1333_v34, %v1337_v35  ;;  %v1377_v34 = vld [vmem:[%s18216_s13 + $0x21a0] sm:$0xff]  ;;  %v15601_v35 = vcombine.low %v854_v18, %v858_v19 }
 0x1e4   : > { %10257 = vmatprep.subr.bf16.mxu0 %v16048_v57  ;;  %v16088_v57 = vcombine.high %v1341_v47, %v1345_v51 }
 0x1e5   : > { %10627 = vmatpush1.bf16.msra.mxu1 %v15537_v1  ;;  %v15577_v1 = vcombine.low %v830_v46, %v834_v31  ;;  %v874_v46 = vld [vmem:[%s18216_s13 + $0x11e8] sm:$0xff]  ;;  %v1381_v31 = vld [vmem:[%s18216_s13 + $0x21c0] sm:$0xff] }
 0x1e6   : > { %10628 = vmatprep.subr.bf16.mxu1 %v15546_v3  ;;  %v15586_v3 = vcombine.high %v838_v58, %v842_v59 }
 0x1e7   : > { %10258 = vmatpush1.bf16.msra.mxu0 %v16047_v2  ;;  %v16087_v2 = vcombine.low %v1341_v47, %v1345_v51  ;;  %v1385_v47 = vld [vmem:[%s18216_s13 + $0x21e0] sm:$0xff]  ;;  %v15609_v51 = vcombine.low %v862_v29, %v866_v5 }
 0x1e8   : > { %10259 = vmatprep.subr.bf16.mxu0 %v16056_v4  ;;  %v16096_v4 = vcombine.high %v1349_v60, %v1353_v62 }
 0x1e9   : > { %10629 = vmatpush1.bf16.msra.mxu1 %v15545_v13  ;;  %v15585_v13 = vcombine.low %v838_v58, %v842_v59  ;;  %v882_v58 = vld [vmem:[%s18216_s13 + $0x1228] sm:$0xff]  ;;  %v1389_v59 = vld [vmem:[%s18216_s13 + $0x2200] sm:$0xff] }
 0x1ea   : > { %10630 = vmatprep.subr.bf16.mxu1 %v15554_v15  ;;  %v15594_v15 = vcombine.high %v846_v6, %v850_v8 }
 0x1eb   : > { %10260 = vmatpush1.bf16.msra.mxu0 %v16055_v14  ;;  %v16095_v14 = vcombine.low %v1349_v60, %v1353_v62  ;;  %v1393_v60 = vld [vmem:[%s18216_s13 + $0x2220] sm:$0xff] }
 0x1ec   : > { %10261 = vmatprep.subr.bf16.mxu0 %v16064_v17  ;;  %v16104_v17 = vcombine.high %v1357_v9, %v1361_v10 }
 0x1ed   : > { %10631 = vmatpush1.bf16.msra.mxu1 %v15553_v24  ;;  %v15593_v24 = vcombine.low %v846_v6, %v850_v8  ;;  %v890_v6 = vld [vmem:[%s18216_s13 + $0x1268] sm:$0xff]  ;;  %v1397_v8 = vld [vmem:[%s18216_s13 + $0x2240] sm:$0xff] }
 0x1ee   : > { %10641 = vmatprep.subr.bf16.mxu1 %v15562_v26  ;;  %v15602_v26 = vcombine.high %v854_v18, %v858_v19  ;;  %v898_v18 = vld [vmem:[%s18216_s13 + $0x12a8] sm:$0xff]  ;;  %v1405_v19 = vld [vmem:[%s18216_s13 + $0x2280] sm:$0xff] }
 0x1ef   : > { %10262 = vmatpush1.bf16.msra.mxu0 %v16063_v25  ;;  %v16103_v25 = vcombine.low %v1357_v9, %v1361_v10  ;;  %v1401_v9 = vld [vmem:[%s18216_s13 + $0x2260] sm:$0xff] }
 0x1f0   : > { %10272 = vmatprep.subr.bf16.mxu0 %v16072_v27  ;;  %10633 = vmatmul.mubr.bf16.vlgmr.msra.gmra.mrb[4].mxu1 %v18429_v55  ;;  %v16112_v27 = vcombine.high %v1365_v21, %v1369_v22 }
 0x1f1   : > { %10642 = vmatpush1.bf16.msra.mxu1 %v15561_v63  ;;  %10673 = vmatprep.mubr.bf16.mxu1 %v18434_v61  ;;  %v16111_v63 = vcombine.low %v1365_v21, %v1369_v22  ;;  %v1409_v21 = vld [vmem:[%s18216_s13 + $0x22a0] sm:$0xff] }
 0x1f2   : > { %10264 = vmatmul.mubr.bf16.vlgmr.msra.gmra.mrb[0].mxu0 %v18753_v38  ;;  %10643 = vmatprep.subr.bf16.mxu1 %v15570_v44  ;;  %v16120_v44 = vcombine.high %v1373_v33, %v1377_v34 }
 0x1f3   : > { %10273 = vmatpush1.bf16.msra.mxu0 %v16071_v40  ;;  %10304 = vmatprep.mubr.bf16.mxu0 %v18758_v48  ;;  %v15610_v40 = vcombine.high %v862_v29, %v866_v5  ;;  %v906_v29 = vld [vmem:[%s18216_s13 + $0x12e8] sm:$0xff]  ;;  %v1413_v5 = vld [vmem:[%s18216_s13 + $0x22c0] sm:$0xff] }
 0x1f4   : > { %10274 = vmatprep.subr.bf16.mxu0 %v16080_v45  ;;  %v870_v45 = vld [vmem:[%s18216_s13 + $0x11c8] sm:$0xff] }
 0x1f5   : > { %10644 = vmatpush1.bf16.msra.mxu1 %v15569_v52  ;;  %v16119_v52 = vcombine.low %v1373_v33, %v1377_v34  ;;  %v15617_v62 = vcombine.low %v870_v45, %v874_v46  ;;  %v1417_v33 = vld [vmem:[%s18216_s13 + $0x22e0] sm:$0xff] }
 0x1f6   : > { %10645 = vmatprep.subr.bf16.mxu1 %v15578_v56  ;;  %v16128_v56 = vcombine.high %v1381_v31, %v1385_v47 }
 0x1f7   : > { %10275 = vmatpush1.bf16.msra.mxu0 %v16079_v54  ;;  %v15618_v54 = vcombine.high %v870_v45, %v874_v46  ;;  %v914_v45 = vld [vmem:[%s18216_s13 + $0x1328] sm:$0xff]  ;;  %v1421_v46 = vld [vmem:[%s18216_s13 + $0x2300] sm:$0xff] }
 0x1f8   : > { %10276 = vmatprep.subr.bf16.mxu0 %v16088_v57  ;;  %v878_v57 = vld [vmem:[%s18216_s13 + $0x1208] sm:$0xff] }
 0x1f9   : > { %10646 = vmatpush1.bf16.msra.mxu1 %v15577_v1  ;;  %v16127_v1 = vcombine.low %v1381_v31, %v1385_v47  ;;  %v15625_v10 = vcombine.low %v878_v57, %v882_v58  ;;  %v1425_v31 = vld [vmem:[%s18216_s13 + $0x2320] sm:$0xff] }
 0x1fa   : > { %10647 = vmatprep.subr.bf16.mxu1 %v15586_v3  ;;  %v16136_v3 = vcombine.high %v1389_v59, %v1393_v60 }
 0x1fb   : > { %10277 = vmatpush1.bf16.msra.mxu0 %v16087_v2  ;;  %v15626_v2 = vcombine.high %v878_v57, %v882_v58  ;;  %v922_v57 = vld [vmem:[%s18216_s13 + $0x1368] sm:$0xff]  ;;  %v1429_v58 = vld [vmem:[%s18216_s13 + $0x2340] sm:$0xff] }
 0x1fc   : > { %10278 = vmatprep.subr.bf16.mxu0 %v16096_v4  ;;  %v886_v4 = vld [vmem:[%s18216_s13 + $0x1248] sm:$0xff] }
 0x1fd   : > { %10648 = vmatpush1.bf16.msra.mxu1 %v15585_v13  ;;  %v16135_v13 = vcombine.low %v1389_v59, %v1393_v60  ;;  %v15633_v22 = vcombine.low %v886_v4, %v890_v6  ;;  %v1433_v59 = vld [vmem:[%s18216_s13 + $0x2360] sm:$0xff] }
 0x1fe   : > { %10649 = vmatprep.subr.bf16.mxu1 %v15594_v15  ;;  %v16144_v15 = vcombine.high %v1397_v8, %v1401_v9 }
 0x1ff   : > { %10279 = vmatpush1.bf16.msra.mxu0 %v16095_v14  ;;  %v15634_v14 = vcombine.high %v886_v4, %v890_v6  ;;  %v930_v4 = vld [vmem:[%s18216_s13 + $0x13a8] sm:$0xff]  ;;  %v1437_v6 = vld [vmem:[%s18216_s13 + $0x2380] sm:$0xff] }
 0x200   : > { %10280 = vmatprep.subr.bf16.mxu0 %v16104_v17  ;;  %v894_v17 = vld [vmem:[%s18216_s13 + $0x1288] sm:$0xff] }
 0x201   : > { %10650 = vmatpush1.bf16.msra.mxu1 %v15593_v24  ;;  %v16143_v24 = vcombine.low %v1397_v8, %v1401_v9  ;;  %v15641_v34 = vcombine.low %v894_v17, %v898_v18  ;;  %v1441_v8 = vld [vmem:[%s18216_s13 + $0x23a0] sm:$0xff] }
 0x202   : > { %10651 = vmatprep.subr.bf16.mxu1 %v15602_v26  ;;  %v16152_v26 = vcombine.high %v1405_v19, %v1409_v21 }
 0x203   : > { %10281 = vmatpush1.bf16.msra.mxu0 %v16103_v25  ;;  %v15642_v25 = vcombine.high %v894_v17, %v898_v18  ;;  %v938_v17 = vld [vmem:[%s18216_s13 + $0x13e8] sm:$0xff]  ;;  %v1445_v18 = vld [vmem:[%s18216_s13 + $0x23c0] sm:$0xff] }
 0x204   : > { %10282 = vmatprep.subr.bf16.mxu0 %v16112_v27  ;;  %v902_v27 = vld [vmem:[%s18216_s13 + $0x12c8] sm:$0xff] }
 0x205   : > { %10652 = vmatpush1.bf16.msra.mxu1 %v15601_v35  ;;  %v16151_v35 = vcombine.low %v1405_v19, %v1409_v21  ;;  %v15649_v47 = vcombine.low %v902_v27, %v906_v29  ;;  %v1449_v19 = vld [vmem:[%s18216_s13 + $0x23e0] sm:$0xff] }
 0x206   : > { %10653 = vmatprep.subr.bf16.mxu1 %v15610_v40  ;;  %v16160_v40 = vcombine.high %v1413_v5, %v1417_v33 }
 0x207   : > { %10283 = vmatpush1.bf16.msra.mxu0 %v16111_v63  ;;  %v15650_v63 = vcombine.high %v902_v27, %v906_v29  ;;  %v946_v27 = vld [vmem:[%s18216_s13 + $0x1428] sm:$0xff]  ;;  %v1453_v29 = vld [vmem:[%s18216_s13 + $0x2400] sm:$0xff] }
 0x208   : > { %10284 = vmatprep.subr.bf16.mxu0 %v16120_v44  ;;  %v910_v44 = vld [vmem:[%s18216_s13 + $0x1308] sm:$0xff] }
 0x209   : > { %10654 = vmatpush1.bf16.msra.mxu1 %v15609_v51  ;;  %v16159_v51 = vcombine.low %v1413_v5, %v1417_v33  ;;  %v15657_v60 = vcombine.low %v910_v44, %v914_v45  ;;  %v1457_v5 = vld [vmem:[%s18216_s13 + $0x2420] sm:$0xff] }
 0x20a   : > { %10655 = vmatprep.subr.bf16.mxu1 %v15618_v54  ;;  %v16168_v54 = vcombine.high %v1421_v46, %v1425_v31 }
 0x20b   : > { %10285 = vmatpush1.bf16.msra.mxu0 %v16119_v52  ;;  %v15658_v52 = vcombine.high %v910_v44, %v914_v45  ;;  %v954_v44 = vld [vmem:[%s18216_s13 + $0x1468] sm:$0xff]  ;;  %v1461_v45 = vld [vmem:[%s18216_s13 + $0x2440] sm:$0xff] }
 0x20c   : > { %10286 = vmatprep.subr.bf16.mxu0 %v16128_v56  ;;  %v918_v56 = vld [vmem:[%s18216_s13 + $0x1348] sm:$0xff] }
 0x20d   : > { %10656 = vmatpush1.bf16.msra.mxu1 %v15617_v62  ;;  %v16167_v62 = vcombine.low %v1421_v46, %v1425_v31  ;;  %v15665_v9 = vcombine.low %v918_v56, %v922_v57  ;;  %v1465_v46 = vld [vmem:[%s18216_s13 + $0x2460] sm:$0xff] }
 0x20e   : > { %10657 = vmatprep.subr.bf16.mxu1 %v15626_v2  ;;  %v16176_v2 = vcombine.high %v1429_v58, %v1433_v59 }
 0x20f   : > { %10287 = vmatpush1.bf16.msra.mxu0 %v16127_v1  ;;  %v15666_v1 = vcombine.high %v918_v56, %v922_v57  ;;  %v958_v56 = vld [vmem:[%s18216_s13 + $0x1488] sm:$0xff] }
 0x210   : > { %10288 = vmatprep.subr.bf16.mxu0 %v16136_v3  ;;  %v926_v3 = vld [vmem:[%s18216_s13 + $0x1388] sm:$0xff] }
 0x211   : > { %10658 = vmatpush1.bf16.msra.mxu1 %v15625_v10  ;;  %v16175_v10 = vcombine.low %v1429_v58, %v1433_v59  ;;  %v15673_v21 = vcombine.low %v926_v3, %v930_v4  ;;  %v962_v57 = vld [vmem:[%s18216_s13 + $0x14a8] sm:$0xff]  ;;  %v18834_v58 = vcombine.high %v18758_v48, %v18758_v48  ;;  %v1473_v59 = vld [vmem:[%s18216_s13 + $0x24a0] sm:$0xff] }
 0x212   : > { %10659 = vmatprep.subr.bf16.mxu1 %v15634_v14  ;;  %v16184_v14 = vcombine.high %v1437_v6, %v1441_v8 }
 0x213   : > { %10289 = vmatpush1.bf16.msra.mxu0 %v16135_v13  ;;  %v15674_v13 = vcombine.high %v926_v3, %v930_v4  ;;  %v966_v3 = vld [vmem:[%s18216_s13 + $0x14c8] sm:$0xff] }
 0x214   : > { %10290 = vmatprep.subr.bf16.mxu0 %v16144_v15  ;;  %v934_v15 = vld [vmem:[%s18216_s13 + $0x13c8] sm:$0xff] }
 0x215   : > { %10660 = vmatpush1.bf16.msra.mxu1 %v15633_v22  ;;  %v16183_v22 = vcombine.low %v1437_v6, %v1441_v8  ;;  %v15681_v33 = vcombine.low %v934_v15, %v938_v17  ;;  %v970_v4 = vld [vmem:[%s18216_s13 + $0x14e8] sm:$0xff]  ;;  %v1477_v6 = vld [vmem:[%s18216_s13 + $0x24c0] sm:$0xff] }
 0x216   : > { %10661 = vmatprep.subr.bf16.mxu1 %v15642_v25  ;;  %v16192_v25 = vcombine.high %v1445_v18, %v1449_v19  ;;  %v1481_v8 = vld [vmem:[%s18216_s13 + $0x24e0] sm:$0xff] }
 0x217   : > { %10291 = vmatpush1.bf16.msra.mxu0 %v16143_v24  ;;  %v15682_v24 = vcombine.high %v934_v15, %v938_v17  ;;  %v974_v15 = vld [vmem:[%s18216_s13 + $0x1508] sm:$0xff] }
 0x218   : > { %10292 = vmatprep.subr.bf16.mxu0 %v16152_v26  ;;  %v942_v26 = vld [vmem:[%s18216_s13 + $0x1408] sm:$0xff] }
 0x219   : > { %10662 = vmatpush1.bf16.msra.mxu1 %v15641_v34  ;;  %v16191_v34 = vcombine.low %v1445_v18, %v1449_v19  ;;  %v15689_v31 = vcombine.low %v942_v26, %v946_v27  ;;  %v978_v17 = vld [vmem:[%s18216_s13 + $0x1528] sm:$0xff]  ;;  %v1485_v18 = vld [vmem:[%s18216_s13 + $0x2500] sm:$0xff] }
 0x21a   : > { %10663 = vmatprep.subr.bf16.mxu1 %v15650_v63  ;;  %v16200_v63 = vcombine.high %v1453_v29, %v1457_v5  ;;  %v1489_v19 = vld [vmem:[%s18216_s13 + $0x2520] sm:$0xff] }
 0x21b   : > { %10293 = vmatpush1.bf16.msra.mxu0 %v16151_v35  ;;  %v15690_v35 = vcombine.high %v942_v26, %v946_v27  ;;  %v982_v26 = vld [vmem:[%s18216_s13 + $0x1548] sm:$0xff] }
 0x21c   : > { %10294 = vmatprep.subr.bf16.mxu0 %v16160_v40  ;;  %v950_v40 = vld [vmem:[%s18216_s13 + $0x1448] sm:$0xff] }
 0x21d   : > { %10664 = vmatpush1.bf16.msra.mxu1 %v15649_v47  ;;  %v18828_v47 = vrot.slane %v18741_v20, %v18259_v53  ;;  %v1469_v20 = vld [vmem:[%s18216_s13 + $0x2480] sm:$0xff]  ;;  %v986_v27 = vld [vmem:[%s18216_s13 + $0x1568] sm:$0xff] }
 0x21e   : > { %10665 = vmatprep.subr.bf16.mxu1 %v15658_v52  ;;  %v15698_v52 = vcombine.high %v950_v40, %v954_v44 }
 0x21f   : > { %10295 = vmatpush1.bf16.msra.mxu0 %v16159_v51  ;;  %v16199_v51 = vcombine.low %v1453_v29, %v1457_v5  ;;  %v1493_v29 = vld [vmem:[%s18216_s13 + $0x2540] sm:$0xff] }
 0x220   : > { %10296 = vmatprep.subr.bf16.mxu0 %v16168_v54  ;;  %v16208_v54 = vcombine.high %v1461_v45, %v1465_v46  ;;  %v1497_v5 = vld [vmem:[%s18216_s13 + $0x2560] sm:$0xff] }
 0x221   : > { %10666 = vmatpush1.bf16.msra.mxu1 %v15657_v60  ;;  %v15697_v60 = vcombine.low %v950_v40, %v954_v44  ;;  %v990_v40 = vld [vmem:[%s18216_s13 + $0x1588] sm:$0xff] }
 0x222   : > { %10667 = vmatprep.subr.bf16.mxu1 %v15666_v1  ;;  %v15706_v1 = vcombine.high %v958_v56, %v962_v57  ;;  %v994_v44 = vld [vmem:[%s18216_s13 + $0x15a8] sm:$0xff] }
 0x223   : > { %10297 = vmatpush1.bf16.msra.mxu0 %v16167_v62  ;;  %v16207_v62 = vcombine.low %v1461_v45, %v1465_v46  ;;  %v1501_v45 = vld [vmem:[%s18216_s13 + $0x2580] sm:$0xff] }
 0x224   : > { %10298 = vmatprep.subr.bf16.mxu0 %v16176_v2  ;;  %v16216_v2 = vcombine.high %v1469_v20, %v1473_v59  ;;  %v1505_v46 = vld [vmem:[%s18216_s13 + $0x25a0] sm:$0xff] }
 0x225   : > { %10668 = vmatpush1.bf16.msra.mxu1 %v15665_v9  ;;  %v15705_v9 = vcombine.low %v958_v56, %v962_v57  ;;  %v998_v56 = vld [vmem:[%s18216_s13 + $0x15c8] sm:$0xff] }
 0x226   : > { %10669 = vmatprep.subr.bf16.mxu1 %v15674_v13  ;;  %v15714_v13 = vcombine.high %v966_v3, %v970_v4  ;;  %v1002_v57 = vld [vmem:[%s18216_s13 + $0x15e8] sm:$0xff] }
 0x227   : > { %10299 = vmatpush1.bf16.msra.mxu0 %v16175_v10  ;;  %v16215_v10 = vcombine.low %v1469_v20, %v1473_v59  ;;  %v1509_v20 = vld [vmem:[%s18216_s13 + $0x25c0] sm:$0xff] }
 0x228   : > { %10300 = vmatprep.subr.bf16.mxu0 %v16184_v14  ;;  %v16224_v14 = vcombine.high %v1477_v6, %v1481_v8  ;;  %v1513_v59 = vld [vmem:[%s18216_s13 + $0x25e0] sm:$0xff] }
 0x229   : > { %10670 = vmatpush1.bf16.msra.mxu1 %v15673_v21  ;;  %v15713_v21 = vcombine.low %v966_v3, %v970_v4  ;;  %v1006_v3 = vld [vmem:[%s18216_s13 + $0x1608] sm:$0xff] }
 0x22a   : > { %10671 = vmatprep.subr.bf16.mxu1 %v15682_v24  ;;  %v15722_v24 = vcombine.high %v974_v15, %v978_v17  ;;  %v1010_v4 = vld [vmem:[%s18216_s13 + $0x1628] sm:$0xff] }
 0x22b   : > { %10301 = vmatpush1.bf16.msra.mxu0 %v16183_v22  ;;  %v16223_v22 = vcombine.low %v1477_v6, %v1481_v8  ;;  %v1517_v6 = vld [vmem:[%s18216_s13 + $0x2600] sm:$0xff] }
 0x22c   : > { %10302 = vmatprep.subr.bf16.mxu0 %v16192_v25  ;;  %v16232_v25 = vcombine.high %v1485_v18, %v1489_v19  ;;  %v1521_v8 = vld [vmem:[%s18216_s13 + $0x2620] sm:$0xff] }
 0x22d   : > { %10672 = vmatpush1.bf16.msra.mxu1 %v15681_v33  ;;  %v15721_v33 = vcombine.low %v974_v15, %v978_v17  ;;  %v1014_v15 = vld [vmem:[%s18216_s13 + $0x1648] sm:$0xff] }
 0x22e   : > { %10682 = vmatprep.subr.bf16.mxu1 %v15690_v35  ;;  %v15730_v35 = vcombine.high %v982_v26, %v986_v27  ;;  %v1018_v17 = vld [vmem:[%s18216_s13 + $0x1668] sm:$0xff] }
 0x22f   : > { %10303 = vmatpush1.bf16.msra.mxu0 %v16191_v34  ;;  %v16231_v34 = vcombine.low %v1485_v18, %v1489_v19  ;;  %v1525_v18 = vld [vmem:[%s18216_s13 + $0x2640] sm:$0xff] }
 0x230   : > { %10313 = vmatprep.subr.bf16.mxu0 %v16200_v63  ;;  %10674 = vmatmul.mubr.bf16.vlgmr.msra.gmra.mrb[4].mxu1 %v18504_v23  ;;  %v16240_v63 = vcombine.high %v1493_v29, %v1497_v5  ;;  %v1529_v19 = vld [vmem:[%s18216_s13 + $0x2660] sm:$0xff] }
 0x231   : > { %10683 = vmatpush1.bf16.msra.mxu1 %v15689_v31  ;;  %10714 = vmatprep.mubr.bf16.mxu1 %v18510_v30  ;;  %v15729_v31 = vcombine.low %v982_v26, %v986_v27  ;;  %v1022_v26 = vld [vmem:[%s18216_s13 + $0x1688] sm:$0xff] }
 0x232   : > { %10305 = vmatmul.mubr.bf16.vlgmr.msra.gmra.mrb[0].mxu0 %v18828_v47  ;;  %10684 = vmatprep.subr.bf16.mxu1 %v15698_v52  ;;  %v15738_v52 = vcombine.high %v990_v40, %v994_v44  ;;  %v1026_v27 = vld [vmem:[%s18216_s13 + $0x16a8] sm:$0xff] }
 0x233   : > { %10314 = vmatpush1.bf16.msra.mxu0 %v16199_v51  ;;  %10345 = vmatprep.mubr.bf16.mxu0 %v18834_v58  ;;  %v16239_v51 = vcombine.low %v1493_v29, %v1497_v5  ;;  %v1533_v29 = vld [vmem:[%s18216_s13 + $0x2680] sm:$0xff] }
 0x234   : > { %10315 = vmatprep.subr.bf16.mxu0 %v16208_v54  ;;  %v16248_v54 = vcombine.high %v1501_v45, %v1505_v46  ;;  %v1537_v5 = vld [vmem:[%s18216_s13 + $0x26a0] sm:$0xff] }
 0x235   : > { %10685 = vmatpush1.bf16.msra.mxu1 %v15697_v60  ;;  %v15737_v60 = vcombine.low %v990_v40, %v994_v44  ;;  %v1030_v40 = vld [vmem:[%s18216_s13 + $0x16c8] sm:$0xff] }
 0x236   : > { %10686 = vmatprep.subr.bf16.mxu1 %v15706_v1  ;;  %v15746_v1 = vcombine.high %v998_v56, %v1002_v57  ;;  %v1034_v44 = vld [vmem:[%s18216_s13 + $0x16e8] sm:$0xff] }
 0x237   : > { %10316 = vmatpush1.bf16.msra.mxu0 %v16207_v62  ;;  %v16247_v62 = vcombine.low %v1501_v45, %v1505_v46  ;;  %v1541_v45 = vld [vmem:[%s18216_s13 + $0x26c0] sm:$0xff] }
 0x238   : > { %10317 = vmatprep.subr.bf16.mxu0 %v16216_v2  ;;  %v16256_v2 = vcombine.high %v1509_v20, %v1513_v59  ;;  %v1545_v46 = vld [vmem:[%s18216_s13 + $0x26e0] sm:$0xff] }
 0x239   : > { %10687 = vmatpush1.bf16.msra.mxu1 %v15705_v9  ;;  %v15745_v9 = vcombine.low %v998_v56, %v1002_v57  ;;  %v1038_v56 = vld [vmem:[%s18216_s13 + $0x1708] sm:$0xff] }
 0x23a   : > { %10688 = vmatprep.subr.bf16.mxu1 %v15714_v13  ;;  %v15754_v13 = vcombine.high %v1006_v3, %v1010_v4  ;;  %v1042_v57 = vld [vmem:[%s18216_s13 + $0x1728] sm:$0xff] }
 0x23b   : > { %10318 = vmatpush1.bf16.msra.mxu0 %v16215_v10  ;;  %v16255_v10 = vcombine.low %v1509_v20, %v1513_v59  ;;  %v1549_v20 = vld [vmem:[%s18216_s13 + $0x2700] sm:$0xff] }
 0x23c   : > { %10319 = vmatprep.subr.bf16.mxu0 %v16224_v14  ;;  %v16264_v14 = vcombine.high %v1517_v6, %v1521_v8  ;;  %v1553_v59 = vld [vmem:[%s18216_s13 + $0x2720] sm:$0xff] }
 0x23d   : > { %10689 = vmatpush1.bf16.msra.mxu1 %v15713_v21  ;;  %v15753_v21 = vcombine.low %v1006_v3, %v1010_v4  ;;  %v1046_v3 = vld [vmem:[%s18216_s13 + $0x1748] sm:$0xff] }
 0x23e   : > { %10690 = vmatprep.subr.bf16.mxu1 %v15722_v24  ;;  %v15762_v24 = vcombine.high %v1014_v15, %v1018_v17  ;;  %v1050_v4 = vld [vmem:[%s18216_s13 + $0x1768] sm:$0xff] }
 0x23f   : > { %10320 = vmatpush1.bf16.msra.mxu0 %v16223_v22  ;;  %v16263_v22 = vcombine.low %v1517_v6, %v1521_v8  ;;  %v1557_v6 = vld [vmem:[%s18216_s13 + $0x2740] sm:$0xff] }
 0x240   : > { %10321 = vmatprep.subr.bf16.mxu0 %v16232_v25  ;;  %v16272_v25 = vcombine.high %v1525_v18, %v1529_v19  ;;  %v1561_v8 = vld [vmem:[%s18216_s13 + $0x2760] sm:$0xff] }
 0x241   : > { %10691 = vmatpush1.bf16.msra.mxu1 %v15721_v33  ;;  %v15761_v33 = vcombine.low %v1014_v15, %v1018_v17  ;;  %v1054_v15 = vld [vmem:[%s18216_s13 + $0x1788] sm:$0xff] }
 0x242   : > { %10692 = vmatprep.subr.bf16.mxu1 %v15730_v35  ;;  %v15770_v35 = vcombine.high %v1022_v26, %v1026_v27  ;;  %v1058_v17 = vld [vmem:[%s18216_s13 + $0x17a8] sm:$0xff] }
 0x243   : > { %10322 = vmatpush1.bf16.msra.mxu0 %v16231_v34  ;;  %v16271_v34 = vcombine.low %v1525_v18, %v1529_v19  ;;  %v1565_v18 = vld [vmem:[%s18216_s13 + $0x2780] sm:$0xff] }
 0x244   : > { %10323 = vmatprep.subr.bf16.mxu0 %v16240_v63  ;;  %v16280_v63 = vcombine.high %v1533_v29, %v1537_v5  ;;  %v1569_v19 = vld [vmem:[%s18216_s13 + $0x27a0] sm:$0xff] }
 0x245   : > { %10693 = vmatpush1.bf16.msra.mxu1 %v15729_v31  ;;  %v15769_v31 = vcombine.low %v1022_v26, %v1026_v27  ;;  %v1062_v26 = vld [vmem:[%s18216_s13 + $0x17c8] sm:$0xff] }
 0x246   : > { %10694 = vmatprep.subr.bf16.mxu1 %v15738_v52  ;;  %v15778_v52 = vcombine.high %v1030_v40, %v1034_v44  ;;  %v1066_v27 = vld [vmem:[%s18216_s13 + $0x17e8] sm:$0xff] }
 0x247   : > { %10324 = vmatpush1.bf16.msra.mxu0 %v16239_v51  ;;  %v16279_v51 = vcombine.low %v1533_v29, %v1537_v5  ;;  %v2013_v29 = vcombine.high %v18735_v12, %v18735_v12  ;;  %v1573_v5 = vld [vmem:[%s18216_s13 + $0x27c0] sm:$0xff] }
 0x248   : > { %10325 = vmatprep.subr.bf16.mxu0 %v16248_v54  ;;  %v16288_v54 = vcombine.high %v1541_v45, %v1545_v46  ;;  %v1581_v12 = vld [vmem:[%s18216_s13 + $0x2800] sm:$0xff] }
 0x249   : > { %10695 = vmatpush1.bf16.msra.mxu1 %v15737_v60  ;;  %v15777_v60 = vcombine.low %v1030_v40, %v1034_v44  ;;  %v1070_v44 = vld [vmem:[%s18216_s13 + $0x1808] sm:$0xff] }
 0x24a   : > { %10696 = vmatprep.subr.bf16.mxu1 %v15746_v1  ;;  %v15786_v1 = vcombine.high %v1038_v56, %v1042_v57 }
 0x24b   : > { %10326 = vmatpush1.bf16.msra.mxu0 %v16247_v62  ;;  %v16287_v62 = vcombine.low %v1541_v45, %v1545_v46  ;;  %v1074_v45 = vld [vmem:[%s18216_s13 + $0x1828] sm:$0xff]  ;;  %v18899_v46 = vrot.slane %v2013_v29, %v18259_v53 }
 0x24c   : > { %10327 = vmatprep.subr.bf16.mxu0 %v16256_v2  ;;  %v16296_v2 = vcombine.high %v1549_v20, %v1553_v59 }
 0x24d   : > { %10697 = vmatpush1.bf16.msra.mxu1 %v15745_v9  ;;  %v15785_v9 = vcombine.low %v1038_v56, %v1042_v57  ;;  %v1078_v57 = vld [vmem:[%s18216_s13 + $0x1848] sm:$0xff] }
 0x24e   : > { %10698 = vmatprep.subr.bf16.mxu1 %v15754_v13  ;;  %v15794_v13 = vcombine.high %v1046_v3, %v1050_v4 }
 0x24f   : > { %10328 = vmatpush1.bf16.msra.mxu0 %v16255_v10  ;;  %v16295_v10 = vcombine.low %v1549_v20, %v1553_v59  ;;  %v1082_v20 = vld [vmem:[%s18216_s13 + $0x1868] sm:$0xff]  ;;  %v2029_v59 = vcombine.high %v18899_v46, %v18899_v46 }
 0x250   : > { %10329 = vmatprep.subr.bf16.mxu0 %v16264_v14  ;;  %v16304_v14 = vcombine.high %v1557_v6, %v1561_v8 }
 0x251   : > { %10699 = vmatpush1.bf16.msra.mxu1 %v15753_v21  ;;  %v15793_v21 = vcombine.low %v1046_v3, %v1050_v4  ;;  %v15826_v4 = vcombine.high %v1078_v57, %v1082_v20 }
 0x252   : > { %10700 = vmatprep.subr.bf16.mxu1 %v15762_v24  ;;  %v15802_v24 = vcombine.high %v1054_v15, %v1058_v17 }
 0x253   : > { %10330 = vmatpush1.bf16.msra.mxu0 %v16263_v22  ;;  %v16303_v22 = vcombine.low %v1557_v6, %v1561_v8  ;;  %v1086_v8 = vld [vmem:[%s18216_s13 + $0x1888] sm:$0xff] }
 0x254   : > { %10331 = vmatprep.subr.bf16.mxu0 %v16272_v25  ;;  %v16312_v25 = vcombine.high %v1565_v18, %v1569_v19 }
 0x255   : > { %10701 = vmatpush1.bf16.msra.mxu1 %v15761_v33  ;;  %v1577_v33 = vld [vmem:[%s18216_s13 + $0x27e0] sm:$0xff] }
 0x256   : > { %10702 = vmatprep.subr.bf16.mxu1 %v15770_v35  ;;  %v16311_v35 = vcombine.low %v1565_v18, %v1569_v19  ;;  %v16320_v40 = vcombine.high %v1573_v5, %v1577_v33 }
 0x257   : > { %10332 = vmatpush1.bf16.msra.mxu0 %v16271_v34  ;;  %v15801_v34 = vcombine.low %v1054_v15, %v1058_v17  ;;  %v15825_v15 = vcombine.low %v1078_v57, %v1082_v20 }
 0x258   : > { %10333 = vmatprep.subr.bf16.mxu0 %v16280_v63  ;;  %v15810_v63 = vcombine.high %v1062_v26, %v1066_v27 }
 0x259   : > { %10703 = vmatpush1.bf16.msra.mxu1 %v15769_v31  ;;  %v1585_v31 = vld [vmem:[%s18216_s13 + $0x2820] sm:$0xff] }
 0x25a   : > { %10704 = vmatprep.subr.bf16.mxu1 %v15778_v52  ;;  %v16319_v52 = vcombine.low %v1573_v5, %v1577_v33  ;;  %v16328_v56 = vcombine.high %v1581_v12, %v1585_v31  ;;  %v16327_v3 = vcombine.low %v1581_v12, %v1585_v31  ;;  %v1102_v33 = vld [vmem:[%s18216_s13 + $0x1908] sm:$0xff] }
 0x25b   : > { %10334 = vmatpush1.bf16.msra.mxu0 %v16279_v51  ;;  %v15809_v51 = vcombine.low %v1062_v26, %v1066_v27  ;;  %v1110_v31 = vld [vmem:[%s18216_s13 + $0x1948] sm:$0xff] }
 0x25c   : > { %10335 = vmatprep.subr.bf16.mxu0 %v16288_v54  ;;  %v15818_v54 = vcombine.high %v1070_v44, %v1074_v45 }
 0x25d   : > { %10705 = vmatpush1.bf16.msra.mxu1 %v15777_v60  ;;  %v1589_v60 = vld [vmem:[%s18216_s13 + $0x2840] sm:$0xff] }
 0x25e   : > { %10706 = vmatprep.subr.bf16.mxu1 %v15786_v1  ;;  %v15817_v1 = vcombine.low %v1070_v44, %v1074_v45 }
 0x25f   : > { %10336 = vmatpush1.bf16.msra.mxu0 %v16287_v62  ;;  %v1593_v62 = vld [vmem:[%s18216_s13 + $0x2860] sm:$0xff] }
 0x260   : > { %10337 = vmatprep.subr.bf16.mxu0 %v16296_v2  ;;  %v18911_v2 = vcombine.high %v18828_v47, %v18828_v47  ;;  %v16336_v6 = vcombine.high %v1589_v60, %v1593_v62  ;;  %v16335_v17 = vcombine.low %v1589_v60, %v1593_v62  ;;  %v1118_v60 = vld [vmem:[%s18216_s13 + $0x1988] sm:$0xff] }
 0x261   : > { %10707 = vmatpush1.bf16.msra.mxu1 %v15785_v9  ;;  %v1090_v9 = vld [vmem:[%s18216_s13 + $0x18a8] sm:$0xff] }
 0x262   : > { %10708 = vmatprep.subr.bf16.mxu1 %v15794_v13  ;;  %v1597_v13 = vld [vmem:[%s18216_s13 + $0x2880] sm:$0xff]  ;;  %v15834_v18 = vcombine.high %v1086_v8, %v1090_v9  ;;  %v15833_v26 = vcombine.low %v1086_v8, %v1090_v9  ;;  %v1122_v62 = vld [vmem:[%s18216_s13 + $0x19a8] sm:$0xff] }
 0x263   : > { %10338 = vmatpush1.bf16.msra.mxu0 %v16295_v10  ;;  %v18916_v10 = vrot.slane %v2029_v59, %v18259_v53  ;;  %v15866_v8 = vcombine.high %v1118_v60, %v1122_v62 }
 0x264   : > { %10339 = vmatprep.subr.bf16.mxu0 %v16304_v14  ;;  %v1601_v14 = vld [vmem:[%s18216_s13 + $0x28a0] sm:$0xff] }
 0x265   : > { %10709 = vmatpush1.bf16.msra.mxu1 %v15793_v21  ;;  %v16344_v19 = vcombine.high %v1597_v13, %v1601_v14  ;;  %v1094_v21 = vld [vmem:[%s18216_s13 + $0x18c8] sm:$0xff]  ;;  %v16343_v27 = vcombine.low %v1597_v13, %v1601_v14 }
 0x266   : > { %10710 = vmatprep.subr.bf16.mxu1 %v15802_v24  ;;  %v1605_v24 = vld [vmem:[%s18216_s13 + $0x28c0] sm:$0xff]  ;;  %v1126_v13 = vld [vmem:[%s18216_s13 + $0x19c8] sm:$0xff] }
 0x267   : > { %10340 = vmatpush1.bf16.msra.mxu0 %v16303_v22  ;;  %v1098_v22 = vld [vmem:[%s18216_s13 + $0x18e8] sm:$0xff] }
 0x268   : > { %10341 = vmatprep.subr.bf16.mxu0 %v16312_v25  ;;  %v1609_v25 = vld [vmem:[%s18216_s13 + $0x28e0] sm:$0xff]  ;;  %v15842_v29 = vcombine.high %v1094_v21, %v1098_v22  ;;  %v1130_v14 = vld [vmem:[%s18216_s13 + $0x19e8] sm:$0xff] }
 0x269   : > { %10711 = vmatpush1.bf16.msra.mxu1 %v15801_v34  ;;  %v16352_v5 = vcombine.high %v1605_v24, %v1609_v25  ;;  %v1106_v34 = vld [vmem:[%s18216_s13 + $0x1928] sm:$0xff]  ;;  %v16351_v44 = vcombine.low %v1605_v24, %v1609_v25 }
 0x26a   : > { %10712 = vmatprep.subr.bf16.mxu1 %v15810_v63  ;;  %v1617_v63 = vld [vmem:[%s18216_s13 + $0x2920] sm:$0xff]  ;;  %v15850_v45 = vcombine.high %v1102_v33, %v1106_v34  ;;  %v1134_v24 = vld [vmem:[%s18216_s13 + $0x1a08] sm:$0xff] }
 0x26b   : > { %10342 = vmatpush1.bf16.msra.mxu0 %v16311_v35  ;;  %v1613_v35 = vld [vmem:[%s18216_s13 + $0x2900] sm:$0xff]  ;;  %v1138_v25 = vld [vmem:[%s18216_s13 + $0x1a28] sm:$0xff] }
 0x26c   : > { %10343 = vmatprep.subr.bf16.mxu0 %v16320_v40  ;;  %v15841_v40 = vcombine.low %v1094_v21, %v1098_v22  ;;  %v16360_v12 = vcombine.high %v1613_v35, %v1617_v63  ;;  %v16359_v57 = vcombine.low %v1613_v35, %v1617_v63  ;;  %v15874_v21 = vcombine.high %v1126_v13, %v1130_v14  ;;  %v1142_v35 = vld [vmem:[%s18216_s13 + $0x1a48] sm:$0xff] }
 0x26d   : > { %10713 = vmatpush1.bf16.msra.mxu1 %v15809_v51  ;;  %v1114_v51 = vld [vmem:[%s18216_s13 + $0x1968] sm:$0xff] }
 0x26e   : > { %10723 = vmatprep.subr.bf16.mxu1 %v15818_v54  ;;  %v1625_v54 = vld [vmem:[%s18216_s13 + $0x2960] sm:$0xff]  ;;  %v15858_v20 = vcombine.high %v1110_v31, %v1114_v51  ;;  %v1146_v63 = vld [vmem:[%s18216_s13 + $0x1a68] sm:$0xff] }
 0x26f   : > { %10344 = vmatpush1.bf16.msra.mxu0 %v16319_v52  ;;  %v1621_v52 = vld [vmem:[%s18216_s13 + $0x2940] sm:$0xff] }
 0x270   : > { %10354 = vmatprep.subr.bf16.mxu0 %v16328_v56  ;;  %10715 = vmatmul.mubr.bf16.vlgmr.msra.gmra.mrb[4].mxu1 %v18587_v0  ;;  %v15849_v56 = vcombine.low %v1102_v33, %v1106_v34  ;;  %v16368_v59 = vcombine.high %v1621_v52, %v1625_v54  ;;  %v15882_v33 = vcombine.high %v1134_v24, %v1138_v25 }
 0x271   : > { %10724 = vmatpush1.bf16.msra.mxu1 %v15817_v1  ;;  %10755 = vmatprep.mubr.bf16.mxu1 %v18592_v7  ;;  %v1629_v1 = vld [vmem:[%s18216_s13 + $0x2980] sm:$0xff] }
 0x272   : > { %10346 = vmatmul.mubr.bf16.vlgmr.msra.gmra.mrb[0].mxu0 %v18911_v2  ;;  %10725 = vmatprep.subr.bf16.mxu1 %v15826_v4  ;;  %v15857_v4 = vcombine.low %v1110_v31, %v1114_v51  ;;  %v15890_v31 = vcombine.high %v1142_v35, %v1146_v63 }
 0x273   : > { %10355 = vmatpush1.bf16.msra.mxu0 %v16327_v3  ;;  %10386 = vmatprep.mubr.bf16.mxu0 %v18916_v10  ;;  %v1633_v3 = vld [vmem:[%s18216_s13 + $0x29a0] sm:$0xff] }
 0x274   : > { %10356 = vmatprep.subr.bf16.mxu0 %v16336_v6  ;;  %v16367_v6 = vcombine.low %v1621_v52, %v1625_v54  ;;  %v16376_v9 = vcombine.high %v1629_v1, %v1633_v3  ;;  %v1150_v52 = vld [vmem:[%s18216_s13 + $0x1a88] sm:$0xff] }
 0x275   : > { %10726 = vmatpush1.bf16.msra.mxu1 %v15825_v15  ;;  %v1637_v15 = vld [vmem:[%s18216_s13 + $0x29c0] sm:$0xff]  ;;  %v1154_v54 = vld [vmem:[%s18216_s13 + $0x1aa8] sm:$0xff] }
 0x276   : > { %10727 = vmatprep.subr.bf16.mxu1 %v15834_v18  ;;  %v15865_v18 = vcombine.low %v1118_v60, %v1122_v62  ;;  %v15898_v60 = vcombine.high %v1150_v52, %v1154_v54 }
 0x277   : > { %10357 = vmatpush1.bf16.msra.mxu0 %v16335_v17  ;;  %v1641_v17 = vld [vmem:[%s18216_s13 + $0x29e0] sm:$0xff] }
 0x278   : > { %10358 = vmatprep.subr.bf16.mxu0 %v16344_v19  ;;  %v16375_v19 = vcombine.low %v1629_v1, %v1633_v3  ;;  %v16384_v22 = vcombine.high %v1637_v15, %v1641_v17  ;;  %v1158_v1 = vld [vmem:[%s18216_s13 + $0x1ac8] sm:$0xff] }
 0x279   : > { %10728 = vmatpush1.bf16.msra.mxu1 %v15833_v26  ;;  %v1645_v26 = vld [vmem:[%s18216_s13 + $0x2a00] sm:$0xff]  ;;  %v1162_v3 = vld [vmem:[%s18216_s13 + $0x1ae8] sm:$0xff] }
 0x27a   : > { %10729 = vmatprep.subr.bf16.mxu1 %v15842_v29  ;;  %v15873_v29 = vcombine.low %v1126_v13, %v1130_v14  ;;  %v15906_v13 = vcombine.high %v1158_v1, %v1162_v3 }
 0x27b   : > { %10359 = vmatpush1.bf16.msra.mxu0 %v16343_v27  ;;  %v1649_v27 = vld [vmem:[%s18216_s13 + $0x2a20] sm:$0xff] }
 0x27c   : > { %10360 = vmatprep.subr.bf16.mxu0 %v16352_v5  ;;  %v16383_v5 = vcombine.low %v1637_v15, %v1641_v17  ;;  %v16392_v34 = vcombine.high %v1645_v26, %v1649_v27  ;;  %v1166_v15 = vld [vmem:[%s18216_s13 + $0x1b08] sm:$0xff] }
 0x27d   : > { %10730 = vmatpush1.bf16.msra.mxu1 %v15841_v40  ;;  %v1653_v40 = vld [vmem:[%s18216_s13 + $0x2a40] sm:$0xff]  ;;  %v1170_v17 = vld [vmem:[%s18216_s13 + $0x1b28] sm:$0xff] }
 0x27e   : > { %10731 = vmatprep.subr.bf16.mxu1 %v15850_v45  ;;  %v15881_v45 = vcombine.low %v1134_v24, %v1138_v25  ;;  %v15914_v24 = vcombine.high %v1166_v15, %v1170_v17 }
 0x27f   : > { %10361 = vmatpush1.bf16.msra.mxu0 %v16351_v44  ;;  %v1657_v44 = vld [vmem:[%s18216_s13 + $0x2a60] sm:$0xff] }
 0x280   : > { %10362 = vmatprep.subr.bf16.mxu0 %v16360_v12  ;;  %v16391_v12 = vcombine.low %v1645_v26, %v1649_v27  ;;  %v16400_v51 = vcombine.high %v1653_v40, %v1657_v44  ;;  %v1174_v26 = vld [vmem:[%s18216_s13 + $0x1b48] sm:$0xff] }
 0x281   : > { %10732 = vmatpush1.bf16.msra.mxu1 %v15849_v56  ;;  %v1661_v56 = vld [vmem:[%s18216_s13 + $0x2a80] sm:$0xff]  ;;  %v1178_v27 = vld [vmem:[%s18216_s13 + $0x1b68] sm:$0xff] }
 0x282   : > { %10733 = vmatprep.subr.bf16.mxu1 %v15858_v20  ;;  %v15889_v20 = vcombine.low %v1142_v35, %v1146_v63  ;;  %v15922_v35 = vcombine.high %v1174_v26, %v1178_v27 }
 0x283   : > { %10363 = vmatpush1.bf16.msra.mxu0 %v16359_v57  ;;  %v1665_v57 = vld [vmem:[%s18216_s13 + $0x2aa0] sm:$0xff] }
 0x284   : > { %10364 = vmatprep.subr.bf16.mxu0 %v16368_v59  ;;  %v16399_v59 = vcombine.low %v1653_v40, %v1657_v44  ;;  %v16408_v62 = vcombine.high %v1661_v56, %v1665_v57  ;;  %v1182_v40 = vld [vmem:[%s18216_s13 + $0x1b88] sm:$0xff] }
 0x285   : > { %10734 = vmatpush1.bf16.msra.mxu1 %v15857_v4  ;;  %v1669_v4 = vld [vmem:[%s18216_s13 + $0x2ac0] sm:$0xff]  ;;  %v1186_v44 = vld [vmem:[%s18216_s13 + $0x1ba8] sm:$0xff] }
 0x286   : > { %10735 = vmatprep.subr.bf16.mxu1 %v15866_v8  ;;  %v15897_v8 = vcombine.low %v1150_v52, %v1154_v54  ;;  %v15930_v52 = vcombine.high %v1182_v40, %v1186_v44 }
 0x287   : > { %10365 = vmatpush1.bf16.msra.mxu0 %v16367_v6  ;;  %v1673_v6 = vld [vmem:[%s18216_s13 + $0x2ae0] sm:$0xff] }
 0x288   : > { %10366 = vmatprep.subr.bf16.mxu0 %v16376_v9  ;;  %v16407_v9 = vcombine.low %v1661_v56, %v1665_v57  ;;  %v16416_v14 = vcombine.high %v1669_v4, %v1673_v6  ;;  %v1190_v56 = vld [vmem:[%s18216_s13 + $0x1bc8] sm:$0xff] }
 0x289   : > { %10736 = vmatpush1.bf16.msra.mxu1 %v15865_v18  ;;  %v1677_v18 = vld [vmem:[%s18216_s13 + $0x2b00] sm:$0xff]  ;;  %v1194_v57 = vld [vmem:[%s18216_s13 + $0x1be8] sm:$0xff] }
 0x28a   : > { %10737 = vmatprep.subr.bf16.mxu1 %v15874_v21  ;;  %v15905_v21 = vcombine.low %v1158_v1, %v1162_v3  ;;  %v15938_v1 = vcombine.high %v1190_v56, %v1194_v57 }
 0x28b   : > { %10367 = vmatpush1.bf16.msra.mxu0 %v16375_v19  ;;  %v1681_v19 = vld [vmem:[%s18216_s13 + $0x2b20] sm:$0xff] }
 0x28c   : > { %10368 = vmatprep.subr.bf16.mxu0 %v16384_v22  ;;  %v16415_v22 = vcombine.low %v1669_v4, %v1673_v6  ;;  %v16424_v25 = vcombine.high %v1677_v18, %v1681_v19  ;;  %v1198_v4 = vld [vmem:[%s18216_s13 + $0x1c08] sm:$0xff] }
 0x28d   : > { %10738 = vmatpush1.bf16.msra.mxu1 %v15873_v29  ;;  %v1685_v29 = vld [vmem:[%s18216_s13 + $0x2b40] sm:$0xff]  ;;  %v1202_v6 = vld [vmem:[%s18216_s13 + $0x1c28] sm:$0xff] }
 0x28e   : > { %10739 = vmatprep.subr.bf16.mxu1 %v15882_v33  ;;  %v15913_v33 = vcombine.low %v1166_v15, %v1170_v17  ;;  %v15946_v15 = vcombine.high %v1198_v4, %v1202_v6 }
 0x28f   : > { %10369 = vmatpush1.bf16.msra.mxu0 %v16383_v5  ;;  %v1689_v5 = vld [vmem:[%s18216_s13 + $0x2b60] sm:$0xff] }
 0x290   : > { %10370 = vmatprep.subr.bf16.mxu0 %v16392_v34  ;;  %v16423_v34 = vcombine.low %v1677_v18, %v1681_v19  ;;  %v16432_v63 = vcombine.high %v1685_v29, %v1689_v5  ;;  %v1206_v18 = vld [vmem:[%s18216_s13 + $0x1c48] sm:$0xff] }
 0x291   : > { %10740 = vmatpush1.bf16.msra.mxu1 %v15881_v45  ;;  %v1693_v45 = vld [vmem:[%s18216_s13 + $0x2b80] sm:$0xff]  ;;  %v1210_v19 = vld [vmem:[%s18216_s13 + $0x1c68] sm:$0xff] }
 0x292   : > { %10741 = vmatprep.subr.bf16.mxu1 %v15890_v31  ;;  %v15921_v31 = vcombine.low %v1174_v26, %v1178_v27  ;;  %v15954_v27 = vcombine.high %v1206_v18, %v1210_v19 }
 0x293   : > { %10371 = vmatpush1.bf16.msra.mxu0 %v16391_v12  ;;  %v1697_v12 = vld [vmem:[%s18216_s13 + $0x2ba0] sm:$0xff] }
 0x294   : > { %10372 = vmatprep.subr.bf16.mxu0 %v16400_v51  ;;  %v16431_v51 = vcombine.low %v1685_v29, %v1689_v5  ;;  %v16440_v54 = vcombine.high %v1693_v45, %v1697_v12  ;;  %v1214_v5 = vld [vmem:[%s18216_s13 + $0x1c88] sm:$0xff] }
 0x295   : > { %10742 = vmatpush1.bf16.msra.mxu1 %v15889_v20  ;;  %v1701_v20 = vld [vmem:[%s18216_s13 + $0x2bc0] sm:$0xff] }
 0x296   : > { %10743 = vmatprep.subr.bf16.mxu1 %v15898_v60  ;;  %v15929_v60 = vcombine.low %v1182_v40, %v1186_v44 }
 0x297   : > { %10373 = vmatpush1.bf16.msra.mxu0 %v16399_v59  ;;  %v1705_v59 = vld [vmem:[%s18216_s13 + $0x2be0] sm:$0xff] }
 0x298   : > { %10374 = vmatprep.subr.bf16.mxu0 %v16408_v62  ;;  %v16439_v62 = vcombine.low %v1693_v45, %v1697_v12  ;;  %v16448_v3 = vcombine.high %v1701_v20, %v1705_v59  ;;  %v1222_v12 = vld [vmem:[%s18216_s13 + $0x1cc8] sm:$0xff] }
 0x299   : > { %10744 = vmatpush1.bf16.msra.mxu1 %v15897_v8  ;;  %v1709_v8 = vld [vmem:[%s18216_s13 + $0x2c00] sm:$0xff] }
 0x29a   : > { %10745 = vmatprep.subr.bf16.mxu1 %v15906_v13  ;;  %v15937_v13 = vcombine.low %v1190_v56, %v1194_v57 }
 0x29b   : > { %10375 = vmatpush1.bf16.msra.mxu0 %v16407_v9  ;;  %v1713_v9 = vld [vmem:[%s18216_s13 + $0x2c20] sm:$0xff] }
 0x29c   : > { %10376 = vmatprep.subr.bf16.mxu0 %v16416_v14  ;;  %v16447_v14 = vcombine.low %v1701_v20, %v1705_v59  ;;  %v16456_v17 = vcombine.high %v1709_v8, %v1713_v9  ;;  %v16455_v26 = vcombine.low %v1709_v8, %v1713_v9  ;;  %v1230_v59 = vld [vmem:[%s18216_s13 + $0x1d08] sm:$0xff] }
 0x29d   : > { %10746 = vmatpush1.bf16.msra.mxu1 %v15905_v21  ;;  %v1717_v21 = vld [vmem:[%s18216_s13 + $0x2c40] sm:$0xff]  ;;  %v1238_v9 = vld [vmem:[%s18216_s13 + $0x1d48] sm:$0xff] }
 0x29e   : > { %10747 = vmatprep.subr.bf16.mxu1 %v15914_v24  ;;  %v15945_v24 = vcombine.low %v1198_v4, %v1202_v6 }
 0x29f   : > { %10377 = vmatpush1.bf16.msra.mxu0 %v16415_v22  ;;  %v1721_v22 = vld [vmem:[%s18216_s13 + $0x2c60] sm:$0xff] }
 0x2a0   : > { %10378 = vmatprep.subr.bf16.mxu0 %v16424_v25  ;;  %v18986_v25 = vrot.slane %v18899_v46, %v18259_v53  ;;  %v16464_v29 = vcombine.high %v1717_v21, %v1721_v22  ;;  %v1725_v46 = vld [vmem:[%s18216_s13 + $0x2c80] sm:$0xff]  ;;  %v16463_v40 = vcombine.low %v1717_v21, %v1721_v22  ;;  %v1246_v22 = vld [vmem:[%s18216_s13 + $0x1d88] sm:$0xff] }
 0x2a1   : > { %10748 = vmatpush1.bf16.msra.mxu1 %v15913_v33  ;;  %v1218_v33 = vld [vmem:[%s18216_s13 + $0x1ca8] sm:$0xff] }
 0x2a2   : > { %10749 = vmatprep.subr.bf16.mxu1 %v15922_v35  ;;  %v1729_v35 = vld [vmem:[%s18216_s13 + $0x2ca0] sm:$0xff]  ;;  %v15962_v44 = vcombine.high %v1214_v5, %v1218_v33 }
 0x2a3   : > { %10379 = vmatpush1.bf16.msra.mxu0 %v16423_v34  ;;  %v18992_v34 = vcombine.high %v18916_v10, %v18916_v10  ;;  %v16472_v45 = vcombine.high %v1725_v46, %v1729_v35  ;;  %v16471_v56 = vcombine.low %v1725_v46, %v1729_v35  ;;  %v1254_v35 = vld [vmem:[%s18216_s13 + $0x1dc8] sm:$0xff] }
 0x2a4   : > { %10380 = vmatprep.subr.bf16.mxu0 %v16432_v63  ;;  %v15953_v63 = vcombine.low %v1206_v18, %v1210_v19 }
 0x2a5   : > { %10750 = vmatpush1.bf16.msra.mxu1 %v15921_v31  ;;  %v1226_v31 = vld [vmem:[%s18216_s13 + $0x1ce8] sm:$0xff] }
 0x2a6   : > { %10751 = vmatprep.subr.bf16.mxu1 %v15930_v52  ;;  %v1737_v52 = vld [vmem:[%s18216_s13 + $0x2ce0] sm:$0xff]  ;;  %v15970_v57 = vcombine.high %v1222_v12, %v1226_v31 }
 0x2a7   : > { %10381 = vmatpush1.bf16.msra.mxu0 %v16431_v51  ;;  %v1733_v51 = vld [vmem:[%s18216_s13 + $0x2cc0] sm:$0xff] }
 0x2a8   : > { %10382 = vmatprep.subr.bf16.mxu0 %v16440_v54  ;;  %v15961_v54 = vcombine.low %v1214_v5, %v1218_v33  ;;  %v16480_v20 = vcombine.high %v1733_v51, %v1737_v52  ;;  %v16479_v4 = vcombine.low %v1733_v51, %v1737_v52  ;;  %v1262_v52 = vld [vmem:[%s18216_s13 + $0x1e08] sm:$0xff] }
 0x2a9   : > { %10752 = vmatpush1.bf16.msra.mxu1 %v15929_v60  ;;  %v1234_v60 = vld [vmem:[%s18216_s13 + $0x1d28] sm:$0xff] }
 0x2aa   : > { %10753 = vmatprep.subr.bf16.mxu1 %v15938_v1  ;;  %v1745_v1 = vld [vmem:[%s18216_s13 + $0x2d20] sm:$0xff]  ;;  %v15978_v6 = vcombine.high %v1230_v59, %v1234_v60 }
 0x2ab   : > { %10383 = vmatpush1.bf16.msra.mxu0 %v16439_v62  ;;  %v1741_v62 = vld [vmem:[%s18216_s13 + $0x2d00] sm:$0xff] }
 0x2ac   : > { %10384 = vmatprep.subr.bf16.mxu0 %v16448_v3  ;;  %v15969_v3 = vcombine.low %v1222_v12, %v1226_v31  ;;  %v16488_v8 = vcombine.high %v1741_v62, %v1745_v1  ;;  %v16487_v18 = vcombine.low %v1741_v62, %v1745_v1  ;;  %v1270_v1 = vld [vmem:[%s18216_s13 + $0x1e48] sm:$0xff] }
 0x2ad   : > { %10754 = vmatpush1.bf16.msra.mxu1 %v15937_v13  ;;  %v1242_v13 = vld [vmem:[%s18216_s13 + $0x1d68] sm:$0xff] }
 0x2ae   : > { %10764 = vmatprep.subr.bf16.mxu1 %v15946_v15  ;;  %v1753_v15 = vld [vmem:[%s18216_s13 + $0x2d60] sm:$0xff]  ;;  %v15986_v19 = vcombine.high %v1238_v9, %v1242_v13 }
 0x2af   : > { %10385 = vmatpush1.bf16.msra.mxu0 %v16447_v14  ;;  %v1749_v14 = vld [vmem:[%s18216_s13 + $0x2d40] sm:$0xff] }
 0x2b0   : > { %10395 = vmatprep.subr.bf16.mxu0 %v16456_v17  ;;  %10756 = vmatmul.mubr.bf16.vlgmr.msra.gmra.mrb[4].mxu1 %v18662_v42  ;;  %v15977_v17 = vcombine.low %v1230_v59, %v1234_v60  ;;  %v16496_v21 = vcombine.high %v1749_v14, %v1753_v15  ;;  %v16495_v5 = vcombine.low %v1749_v14, %v1753_v15  ;;  %v1278_v15 = vld [vmem:[%s18216_s13 + $0x1e88] sm:$0xff] }
 0x2b1   : > { %10765 = vmatpush1.bf16.msra.mxu1 %v15945_v24  ;;  %10796 = vmatprep.mubr.bf16.mxu1 %v18668_v49  ;;  %v1250_v24 = vld [vmem:[%s18216_s13 + $0x1da8] sm:$0xff] }
 0x2b2   : > { %10387 = vmatmul.mubr.bf16.vlgmr.msra.gmra.mrb[0].mxu0 %v18986_v25  ;;  %10766 = vmatprep.subr.bf16.mxu1 %v15954_v27  ;;  %v1761_v27 = vld [vmem:[%s18216_s13 + $0x2da0] sm:$0xff]  ;;  %v15994_v33 = vcombine.high %v1246_v22, %v1250_v24 }
 0x2b3   : > { %10396 = vmatpush1.bf16.msra.mxu0 %v16455_v26  ;;  %10427 = vmatprep.mubr.bf16.mxu0 %v18992_v34  ;;  %v1757_v26 = vld [vmem:[%s18216_s13 + $0x2d80] sm:$0xff] }
 0x2b4   : > { %10397 = vmatprep.subr.bf16.mxu0 %v16464_v29  ;;  %v15985_v29 = vcombine.low %v1238_v9, %v1242_v13  ;;  %v16504_v46 = vcombine.high %v1757_v26, %v1761_v27  ;;  %v16503_v12 = vcombine.low %v1757_v26, %v1761_v27  ;;  %v1286_v27 = vld [vmem:[%s18216_s13 + $0x1ec8] sm:$0xff] }
 0x2b5   : > { %10767 = vmatpush1.bf16.msra.mxu1 %v15953_v63  ;;  %v1258_v63 = vld [vmem:[%s18216_s13 + $0x1de8] sm:$0xff] }
 0x2b6   : > { %10768 = vmatprep.subr.bf16.mxu1 %v15962_v44  ;;  %v1769_v44 = vld [vmem:[%s18216_s13 + $0x2de0] sm:$0xff]  ;;  %v16002_v31 = vcombine.high %v1254_v35, %v1258_v63 }
 0x2b7   : > { %10398 = vmatpush1.bf16.msra.mxu0 %v16463_v40  ;;  %v1765_v40 = vld [vmem:[%s18216_s13 + $0x2dc0] sm:$0xff] }
 0x2b8   : > { %10399 = vmatprep.subr.bf16.mxu0 %v16472_v45  ;;  %v15993_v45 = vcombine.low %v1246_v22, %v1250_v24  ;;  %v16512_v51 = vcombine.high %v1765_v40, %v1769_v44  ;;  %v16511_v59 = vcombine.low %v1765_v40, %v1769_v44  ;;  %v1294_v44 = vld [vmem:[%s18216_s13 + $0x1f08] sm:$0xff] }
 0x2b9   : > { %10769 = vmatpush1.bf16.msra.mxu1 %v15961_v54  ;;  %v1266_v54 = vld [vmem:[%s18216_s13 + $0x1e28] sm:$0xff] }
 0x2ba   : > { %10770 = vmatprep.subr.bf16.mxu1 %v15970_v57  ;;  %v1777_v57 = vld [vmem:[%s18216_s13 + $0x2e20] sm:$0xff]  ;;  %v16010_v60 = vcombine.high %v1262_v52, %v1266_v54 }
 0x2bb   : > { %10400 = vmatpush1.bf16.msra.mxu0 %v16471_v56  ;;  %v1773_v56 = vld [vmem:[%s18216_s13 + $0x2e00] sm:$0xff] }
 0x2bc   : > { %10401 = vmatprep.subr.bf16.mxu0 %v16480_v20  ;;  %v16001_v20 = vcombine.low %v1254_v35, %v1258_v63  ;;  %v16520_v62 = vcombine.high %v1773_v56, %v1777_v57  ;;  %v16519_v9 = vcombine.low %v1773_v56, %v1777_v57  ;;  %v1302_v57 = vld [vmem:[%s18216_s13 + $0x1f48] sm:$0xff] }
 0x2bd   : > { %10771 = vmatpush1.bf16.msra.mxu1 %v15969_v3  ;;  %v1274_v3 = vld [vmem:[%s18216_s13 + $0x1e68] sm:$0xff] }
 0x2be   : > { %10772 = vmatprep.subr.bf16.mxu1 %v15978_v6  ;;  %v1785_v6 = vld [vmem:[%s18216_s13 + $0x2e60] sm:$0xff]  ;;  %v16018_v13 = vcombine.high %v1270_v1, %v1274_v3 }
 0x2bf   : > { %10402 = vmatpush1.bf16.msra.mxu0 %v16479_v4  ;;  %v1781_v4 = vld [vmem:[%s18216_s13 + $0x2e40] sm:$0xff] }
 0x2c0   : > { %10403 = vmatprep.subr.bf16.mxu0 %v16488_v8  ;;  %v16009_v8 = vcombine.low %v1262_v52, %v1266_v54  ;;  %v16528_v14 = vcombine.high %v1781_v4, %v1785_v6  ;;  %v16527_v22 = vcombine.low %v1781_v4, %v1785_v6  ;;  %v1310_v6 = vld [vmem:[%s18216_s13 + $0x1f88] sm:$0xff] }
 0x2c1   : > { %10773 = vmatpush1.bf16.msra.mxu1 %v15977_v17  ;;  %v1282_v17 = vld [vmem:[%s18216_s13 + $0x1ea8] sm:$0xff] }
 0x2c2   : > { %10774 = vmatprep.subr.bf16.mxu1 %v15986_v19  ;;  %v1793_v19 = vld [vmem:[%s18216_s13 + $0x2ea0] sm:$0xff]  ;;  %v16026_v24 = vcombine.high %v1278_v15, %v1282_v17 }
 0x2c3   : > { %10404 = vmatpush1.bf16.msra.mxu0 %v16487_v18  ;;  %v1789_v18 = vld [vmem:[%s18216_s13 + $0x2e80] sm:$0xff] }
 0x2c4   : > { %10405 = vmatprep.subr.bf16.mxu0 %v16496_v21  ;;  %v16017_v21 = vcombine.low %v1270_v1, %v1274_v3  ;;  %v16536_v26 = vcombine.high %v1789_v18, %v1793_v19  ;;  %v16535_v35 = vcombine.low %v1789_v18, %v1793_v19  ;;  %v1318_v19 = vld [vmem:[%s18216_s13 + $0x1fc8] sm:$0xff] }
 0x2c5   : > { %10775 = vmatpush1.bf16.msra.mxu1 %v15985_v29  ;;  %v1290_v29 = vld [vmem:[%s18216_s13 + $0x1ee8] sm:$0xff] }
 0x2c6   : > { %10776 = vmatprep.subr.bf16.mxu1 %v15994_v33  ;;  %v1801_v33 = vld [vmem:[%s18216_s13 + $0x2ee0] sm:$0xff]  ;;  %v16034_v63 = vcombine.high %v1286_v27, %v1290_v29 }
 0x2c7   : > { %10406 = vmatpush1.bf16.msra.mxu0 %v16495_v5  ;;  %v1797_v5 = vld [vmem:[%s18216_s13 + $0x2ec0] sm:$0xff] }
 0x2c8   : > { %10407 = vmatprep.subr.bf16.mxu0 %v16504_v46  ;;  %v16025_v46 = vcombine.low %v1278_v15, %v1282_v17  ;;  %v16544_v40 = vcombine.high %v1797_v5, %v1801_v33  ;;  %v16543_v52 = vcombine.low %v1797_v5, %v1801_v33  ;;  %v1326_v33 = vld [vmem:[%s18216_s13 + $0x2008] sm:$0xff] }
 0x2c9   : > { %10777 = vmatpush1.bf16.msra.mxu1 %v15993_v45  ;;  %v1298_v45 = vld [vmem:[%s18216_s13 + $0x1f28] sm:$0xff] }
 0x2ca   : > { %10778 = vmatprep.subr.bf16.mxu1 %v16002_v31  ;;  %v1809_v31 = vld [vmem:[%s18216_s13 + $0x2f20] sm:$0xff]  ;;  %v16042_v54 = vcombine.high %v1294_v44, %v1298_v45 }
 0x2cb   : > { %10408 = vmatpush1.bf16.msra.mxu0 %v16503_v12  ;;  %v1805_v12 = vld [vmem:[%s18216_s13 + $0x2f00] sm:$0xff] }
 0x2cc   : > { %10409 = vmatprep.subr.bf16.mxu0 %v16512_v51  ;;  %v16033_v51 = vcombine.low %v1286_v27, %v1290_v29  ;;  %v16552_v56 = vcombine.high %v1805_v12, %v1809_v31  ;;  %v16551_v1 = vcombine.low %v1805_v12, %v1809_v31  ;;  %v1334_v31 = vld [vmem:[%s18216_s13 + $0x2048] sm:$0xff] }
 0x2cd   : > { %10779 = vmatpush1.bf16.msra.mxu1 %v16001_v20  ;;  %v1306_v20 = vld [vmem:[%s18216_s13 + $0x1f68] sm:$0xff] }
 0x2ce   : > { %10780 = vmatprep.subr.bf16.mxu1 %v16010_v60  ;;  %v1817_v60 = vld [vmem:[%s18216_s13 + $0x2f60] sm:$0xff]  ;;  %v16050_v3 = vcombine.high %v1302_v57, %v1306_v20 }
 0x2cf   : > { %10410 = vmatpush1.bf16.msra.mxu0 %v16511_v59  ;;  %v1813_v59 = vld [vmem:[%s18216_s13 + $0x2f40] sm:$0xff] }
 0x2d0   : > { %10411 = vmatprep.subr.bf16.mxu0 %v16520_v62  ;;  %v16041_v62 = vcombine.low %v1294_v44, %v1298_v45  ;;  %v16560_v4 = vcombine.high %v1813_v59, %v1817_v60  ;;  %v16559_v15 = vcombine.low %v1813_v59, %v1817_v60 }
 0x2d1   : > { %10781 = vmatpush1.bf16.msra.mxu1 %v16009_v8  ;;  %v1314_v8 = vld [vmem:[%s18216_s13 + $0x1fa8] sm:$0xff] }
 0x2d2   : > { %10782 = vmatprep.subr.bf16.mxu1 %v16018_v13  ;;  %v1825_v13 = vld [vmem:[%s18216_s13 + $0x2fa0] sm:$0xff]  ;;  %v16058_v17 = vcombine.high %v1310_v6, %v1314_v8 }
 0x2d3   : > { %10412 = vmatpush1.bf16.msra.mxu0 %v16519_v9  ;;  %v1821_v9 = vld [vmem:[%s18216_s13 + $0x2f80] sm:$0xff] }
 0x2d4   : > { %10413 = vmatprep.subr.bf16.mxu0 %v16528_v14  ;;  %v16049_v14 = vcombine.low %v1302_v57, %v1306_v20  ;;  %v16568_v18 = vcombine.high %v1821_v9, %v1825_v13  ;;  %v16567_v27 = vcombine.low %v1821_v9, %v1825_v13  ;;  %v19062_v57 = vcombine.high %v18986_v25, %v18986_v25 }
 0x2d5   : > { %10783 = vmatpush1.bf16.msra.mxu1 %v16017_v21  ;;  %v1322_v21 = vld [vmem:[%s18216_s13 + $0x1fe8] sm:$0xff] }
 0x2d6   : > { %10784 = vmatprep.subr.bf16.mxu1 %v16026_v24  ;;  %v1833_v24 = vld [vmem:[%s18216_s13 + $0x2fe0] sm:$0xff]  ;;  %v16066_v29 = vcombine.high %v1318_v19, %v1322_v21 }
 0x2d7   : > { %10414 = vmatpush1.bf16.msra.mxu0 %v16527_v22  ;;  %v1829_v22 = vld [vmem:[%s18216_s13 + $0x2fc0] sm:$0xff] }
 0x2d8   : > { %10415 = vmatprep.subr.bf16.mxu0 %v16536_v26  ;;  %v16057_v26 = vcombine.low %v1310_v6, %v1314_v8  ;;  %v16576_v5 = vcombine.high %v1829_v22, %v1833_v24  ;;  %v16575_v44 = vcombine.low %v1829_v22, %v1833_v24 }
 0x2d9   : > { %10785 = vmatpush1.bf16.msra.mxu1 %v16025_v46  ;;  %v1330_v46 = vld [vmem:[%s18216_s13 + $0x2028] sm:$0xff] }
 0x2da   : > { %10786 = vmatprep.subr.bf16.mxu1 %v16034_v63  ;;  %v1841_v63 = vld [vmem:[%s18216_s13 + $0x3020] sm:$0xff]  ;;  %v16074_v45 = vcombine.high %v1326_v33, %v1330_v46 }
 0x2db   : > { %10416 = vmatpush1.bf16.msra.mxu0 %v16535_v35  ;;  %v1837_v35 = vld [vmem:[%s18216_s13 + $0x3000] sm:$0xff] }
 0x2dc   : > { %10417 = vmatprep.subr.bf16.mxu0 %v16544_v40  ;;  %v16065_v40 = vcombine.low %v1318_v19, %v1322_v21  ;;  %v16584_v12 = vcombine.high %v1837_v35, %v1841_v63  ;;  %v16583_v20 = vcombine.low %v1837_v35, %v1841_v63  ;;  %v1865_v19 = vld [vmem:[%s18216_s13 + $0x30e0] sm:$0xff]  ;;  %v15046_v63 = vld.sshfl [vmem:[%s20537_s0 + $0x18] sm:$0x1 pattern:$0x75316420] }
 0x2dd   : > { %10787 = vmatpush1.bf16.msra.mxu1 %v16033_v51  ;;  %v1338_v51 = vld [vmem:[%s18216_s13 + $0x2068] sm:$0xff] }
 0x2de   : > { %10788 = vmatprep.subr.bf16.mxu1 %v16042_v54  ;;  %v1849_v54 = vld [vmem:[%s18216_s13 + $0x3060] sm:$0xff]  ;;  %v16082_v59 = vcombine.high %v1334_v31, %v1338_v51  ;;  %v16081_v6 = vcombine.low %v1334_v31, %v1338_v51  ;;  %v311_v31 = vld [vmem:[%s18216_s13 + $0x50] sm:$0xff] }
 0x2df   : > { %10418 = vmatpush1.bf16.msra.mxu0 %v16543_v52  ;;  %v1845_v52 = vld [vmem:[%s18216_s13 + $0x3040] sm:$0xff]  ;;  %v315_v51 = vld [vmem:[%s18216_s13 + $0x70] sm:$0xff] }
 0x2e0   : > { %10419 = vmatprep.subr.bf16.mxu0 %v16552_v56  ;;  %v16073_v56 = vcombine.low %v1326_v33, %v1330_v46  ;;  %v16592_v60 = vcombine.high %v1845_v52, %v1849_v54  ;;  %v16591_v8 = vcombine.low %v1845_v52, %v1849_v54  ;;  %v307_v33 = vld [vmem:[%s18216_s13 + $0x30] sm:$0xff]  ;;  %v19088_v52 = vrot.slane %v15046_v63, %v18259_v53  ;;  %v1398_v63 = vld [vmem:[%s18216_s13 + $0x2248] sm:$0xff] }
 0x2e1   : > { %10789 = vmatpush1.bf16.msra.mxu1 %v16041_v62  ;;  %v1342_v62 = vld [vmem:[%s18216_s13 + $0x2088] sm:$0xff] }
 0x2e2   : > { %10790 = vmatprep.subr.bf16.mxu1 %v16050_v3  ;;  %v1853_v3 = vld [vmem:[%s18216_s13 + $0x3080] sm:$0xff] }
 0x2e3   : > { %10420 = vmatpush1.bf16.msra.mxu0 %v16551_v1  ;;  %v1346_v1 = vld [vmem:[%s18216_s13 + $0x20a8] sm:$0xff] }
 0x2e4   : > { %10421 = vmatprep.subr.bf16.mxu0 %v16560_v4  ;;  %v1857_v4 = vld [vmem:[%s18216_s13 + $0x30a0] sm:$0xff]  ;;  %v16090_v9 = vcombine.high %v1342_v62, %v1346_v1  ;;  %v16089_v21 = vcombine.low %v1342_v62, %v1346_v1  ;;  %v1378_v62 = vld [vmem:[%s18216_s13 + $0x21a8] sm:$0xff]  ;;  %v319_v1 = vld [vmem:[%s18216_s13 + $0x90] sm:$0xff] }
 0x2e5   : > { %10791 = vmatpush1.bf16.msra.mxu1 %v16049_v14  ;;  %v16600_v13 = vcombine.high %v1853_v3, %v1857_v4  ;;  %v1350_v14 = vld [vmem:[%s18216_s13 + $0x20c8] sm:$0xff]  ;;  %v16599_v22 = vcombine.low %v1853_v3, %v1857_v4  ;;  %v323_v3 = vld [vmem:[%s18216_s13 + $0xb0] sm:$0xff]  ;;  %v15059_v4 = vcombine.low %v311_v31, %v315_v51 }
 0x2e6   : > { %10792 = vmatprep.subr.bf16.mxu1 %v16058_v17  ;;  %v18023_v17 = vmov 0  }
 0x2e7   : > { %10422 = vmatpush1.bf16.msra.mxu0 %v16559_v15  ;;  %v1354_v15 = vld [vmem:[%s18216_s13 + $0x20e8] sm:$0xff] }
 0x2e8   : > { %10423 = vmatprep.subr.bf16.mxu0 %v16568_v18  ;;  %v1861_v18 = vld [vmem:[%s18216_s13 + $0x30c0] sm:$0xff]  ;;  %v16098_v24 = vcombine.high %v1350_v14, %v1354_v15  ;;  %v16097_v46 = vcombine.low %v1350_v14, %v1354_v15  ;;  %v327_v14 = vld [vmem:[%s18216_s13 + $0xd0] sm:$0xff] }
 0x2e9   : > { %10793 = vmatpush1.bf16.msra.mxu1 %v16057_v26  ;;  %v16608_v26 = vcombine.high %v1861_v18, %v1865_v19  ;;  %v16607_v35 = vcombine.low %v1861_v18, %v1865_v19  ;;  %v331_v15 = vld [vmem:[%s18216_s13 + $0xf0] sm:$0xff]  ;;  %v15067_v19 = vcombine.low %v319_v1, %v323_v3 }
 0x2ea   : > { %10794 = vmatprep.subr.bf16.mxu1 %v16066_v29  ;;  %v1362_v29 = vld [vmem:[%s18216_s13 + $0x2128] sm:$0xff] }
 0x2eb   : > { %10424 = vmatpush1.bf16.msra.mxu0 %v16567_v27  ;;  %v1358_v27 = vld [vmem:[%s18216_s13 + $0x2108] sm:$0xff] }
 0x2ec   : > { %10425 = vmatprep.subr.bf16.mxu0 %v16576_v5  ;;  %v303_v5 = vld [vmem:[%s18216_s13 + $0x10] sm:$0xff]  ;;  %v16105_v54 = vcombine.low %v1358_v27, %v1362_v29 }
 0x2ed   : > { %10795 = vmatpush1.bf16.msra.mxu1 %v16065_v40  ;;  %v16106_v40 = vcombine.high %v1358_v27, %v1362_v29  ;;  %v335_v27 = vld [vmem:[%s18216_s13 + $0x110] sm:$0xff] }
 0x2ee   : > { %10805 = vmatprep.subr.bf16.mxu1 %v16074_v45  ;;  %v1366_v45 = vld [vmem:[%s18216_s13 + $0x2148] sm:$0xff]  ;;  %v339_v29 = vld [vmem:[%s18216_s13 + $0x130] sm:$0xff] }
 0x2ef   : > { %10426 = vmatpush1.bf16.msra.mxu0 %v16575_v44  ;;  %v15052_v44 = vcombine.high %v303_v5, %v307_v33 }
 0x2f0   : > { %10436 = vmatprep.subr.bf16.mxu0 %v16584_v12  ;;  %10797 = vmatmul.mubr.bf16.vlgmr.msra.gmra.mrb[4].mxu1 %v18753_v38  ;;  %v1370_v12 = vld [vmem:[%s18216_s13 + $0x2168] sm:$0xff] }
 0x2f1   : > { %10806 = vmatpush1.bf16.msra.mxu1 %v16073_v56  ;;  %10837 = vmatprep.mubr.bf16.mxu1 %v18758_v48  ;;  %v15051_v56 = vcombine.low %v303_v5, %v307_v33  ;;  %v16113_v53 = vcombine.low %v1366_v45, %v1370_v12  ;;  %v15075_v33 = vcombine.low %v327_v14, %v331_v15 }
 0x2f2   : > { %10428 = vmatmul.mubr.bf16.vlgmr.msra.gmra.mrb[0].mxu0 %v19062_v57  ;;  %10807 = vmatprep.subr.bf16.mxu1 %v16082_v59  ;;  %v15060_v59 = vcombine.high %v311_v31, %v315_v51  ;;  %v15083_v31 = vcombine.low %v335_v27, %v339_v29 }
 0x2f3   : > { %10437 = vmatpush1.bf16.msra.mxu0 %v16583_v20  ;;  %10468 = vmatprep.mubr.bf16.mxu0 %v18023_v17  ;;  %v16114_v20 = vcombine.high %v1366_v45, %v1370_v12  ;;  %v347_v45 = vld [vmem:[%s18216_s13 + $0x170] sm:$0xff] }
 0x2f4   : > { %10438 = vmatprep.subr.bf16.mxu0 %v16592_v60  ;;  %v1374_v60 = vld [vmem:[%s18216_s13 + $0x2188] sm:$0xff] }
 0x2f5   : > { %10808 = vmatpush1.bf16.msra.mxu1 %v16081_v6  ;;  %v16122_v6 = vcombine.high %v1374_v60, %v1378_v62  ;;  %v16121_v18 = vcombine.low %v1374_v60, %v1378_v62  ;;  %v355_v60 = vld [vmem:[%s18216_s13 + $0x1b0] sm:$0xff] }
 0x2f6   : > { %10809 = vmatprep.subr.bf16.mxu1 %v16090_v9  ;;  %v1382_v9 = vld [vmem:[%s18216_s13 + $0x21c8] sm:$0xff] }
 0x2f7   : > { %10439 = vmatpush1.bf16.msra.mxu0 %v16591_v8  ;;  %v15068_v8 = vcombine.high %v319_v1, %v323_v3 }
 0x2f8   : > { %10440 = vmatprep.subr.bf16.mxu0 %v16600_v13  ;;  %v1386_v13 = vld [vmem:[%s18216_s13 + $0x21e8] sm:$0xff] }
 0x2f9   : > { %10810 = vmatpush1.bf16.msra.mxu1 %v16089_v21  ;;  %v16130_v21 = vcombine.high %v1382_v9, %v1386_v13  ;;  %v16129_v5 = vcombine.low %v1382_v9, %v1386_v13  ;;  %v363_v9 = vld [vmem:[%s18216_s13 + $0x1f0] sm:$0xff] }
 0x2fa   : > { %10811 = vmatprep.subr.bf16.mxu1 %v16098_v24  ;;  %v1390_v24 = vld [vmem:[%s18216_s13 + $0x2208] sm:$0xff] }
 0x2fb   : > { %10441 = vmatpush1.bf16.msra.mxu0 %v16599_v22  ;;  %v15076_v22 = vcombine.high %v327_v14, %v331_v15 }
 0x2fc   : > { %10442 = vmatprep.subr.bf16.mxu0 %v16608_v26  ;;  %v1394_v26 = vld [vmem:[%s18216_s13 + $0x2228] sm:$0xff] }
 0x2fd   : > { %10812 = vmatpush1.bf16.msra.mxu1 %v16097_v46  ;;  %v16138_v46 = vcombine.high %v1390_v24, %v1394_v26  ;;  %v16137_v12 = vcombine.low %v1390_v24, %v1394_v26  ;;  %v371_v24 = vld [vmem:[%s18216_s13 + $0x230] sm:$0xff] }
 0x2fe   : > { %10813 = vmatprep.subr.bf16.mxu1 %v16106_v40  ;;  %v1402_v40 = vld [vmem:[%s18216_s13 + $0x2268] sm:$0xff] }
 0x2ff   : > { %10443 = vmatpush1.bf16.msra.mxu0 %v16607_v35  ;;  %v15084_v35 = vcombine.high %v335_v27, %v339_v29  ;;  %v16146_v51 = vcombine.high %v1398_v63, %v1402_v40  ;;  %v16145_v62 = vcombine.low %v1398_v63, %v1402_v40  ;;  %v379_v63 = vld [vmem:[%s18216_s13 + $0x270] sm:$0xff] }
 0x300   : > { %11010 = vmatprep.subr.bf16.mxu0 %v15052_v44  ;;  %v343_v44 = vld [vmem:[%s18216_s13 + $0x150] sm:$0xff] }
 0x301   : > { %10814 = vmatpush1.bf16.msra.mxu1 %v16105_v54  ;;  %v15092_v54 = vcombine.high %v343_v44, %v347_v45  ;;  %v15091_v1 = vcombine.low %v343_v44, %v347_v45 }
 0x302   : > { %16615 = vmatmul.mubr.msk.bf16.vlgmr.msra.gmra.mrb[0].mxu0 %vm9940_vm0, %v19088_v52  ;;  %10815 = vmatprep.subr.bf16.mxu1 %v16114_v20  ;;  %v1410_v20 = vld [vmem:[%s18216_s13 + $0x22a8] sm:$0xff] }
 0x303   : > { %11011 = vmatpush1.bf16.msra.mxu0 %v15051_v56  ;;  %11042 = vmatprep.mubr.bf16.mxu0 %v18281_v11  ;;  %v1406_v56 = vld [vmem:[%s18216_s13 + $0x2288] sm:$0xff] }
 0x304   : > { %11012 = vmatprep.subr.bf16.mxu0 %v15060_v59  ;;  %v351_v59 = vld [vmem:[%s18216_s13 + $0x190] sm:$0xff]  ;;  %v16154_v3 = vcombine.high %v1406_v56, %v1410_v20  ;;  %v16153_v13 = vcombine.low %v1406_v56, %v1410_v20 }
 0x305   : > { %10816 = vmatpush1.bf16.msra.mxu1 %v16113_v53  ;;  %v15100_v53 = vcombine.high %v351_v59, %v355_v60  ;;  %v15099_v14 = vcombine.low %v351_v59, %v355_v60  ;;  %v387_v56 = vld [vmem:[%s18216_s13 + $0x2b0] sm:$0xff] }
 0x306   : > { %10817 = vmatprep.subr.bf16.mxu1 %v16122_v6  ;;  %v1418_v6 = vld [vmem:[%s18216_s13 + $0x22e8] sm:$0xff] }
 0x307   : > { %11013 = vmatpush1.bf16.msra.mxu0 %v15059_v4  ;;  %v1414_v4 = vld [vmem:[%s18216_s13 + $0x22c8] sm:$0xff] }
 0x308   : > { %11014 = vmatprep.subr.bf16.mxu0 %v15068_v8  ;;  %v359_v8 = vld [vmem:[%s18216_s13 + $0x1d0] sm:$0xff]  ;;  %v16162_v15 = vcombine.high %v1414_v4, %v1418_v6  ;;  %v16161_v26 = vcombine.low %v1414_v4, %v1418_v6 }
 0x309   : > { %10818 = vmatpush1.bf16.msra.mxu1 %v16121_v18  ;;  %v15108_v18 = vcombine.high %v359_v8, %v363_v9  ;;  %v15107_v27 = vcombine.low %v359_v8, %v363_v9  ;;  %v395_v4 = vld [vmem:[%s18216_s13 + $0x2f0] sm:$0xff] }
 0x30a   : > { %10819 = vmatprep.subr.bf16.mxu1 %v16130_v21  ;;  %v1426_v21 = vld [vmem:[%s18216_s13 + $0x2328] sm:$0xff] }
 0x30b   : > { %11015 = vmatpush1.bf16.msra.mxu0 %v15067_v19  ;;  %v1422_v19 = vld [vmem:[%s18216_s13 + $0x2308] sm:$0xff] }
 0x30c   : > { %11016 = vmatprep.subr.bf16.mxu0 %v15076_v22  ;;  %v367_v22 = vld [vmem:[%s18216_s13 + $0x210] sm:$0xff]  ;;  %v16170_v29 = vcombine.high %v1422_v19, %v1426_v21  ;;  %v16169_v40 = vcombine.low %v1422_v19, %v1426_v21 }
 0x30d   : > { %10820 = vmatpush1.bf16.msra.mxu1 %v16129_v5  ;;  %v15116_v5 = vcombine.high %v367_v22, %v371_v24  ;;  %v15115_v44 = vcombine.low %v367_v22, %v371_v24  ;;  %v403_v19 = vld [vmem:[%s18216_s13 + $0x330] sm:$0xff] }
 0x30e   : > { %10821 = vmatprep.subr.bf16.mxu1 %v16138_v46  ;;  %v1434_v46 = vld [vmem:[%s18216_s13 + $0x2368] sm:$0xff] }
 0x30f   : > { %11017 = vmatpush1.bf16.msra.mxu0 %v15075_v33  ;;  %v1430_v33 = vld [vmem:[%s18216_s13 + $0x2348] sm:$0xff] }
 0x310   : > { %11018 = vmatprep.subr.bf16.mxu0 %v15084_v35  ;;  %v375_v35 = vld [vmem:[%s18216_s13 + $0x250] sm:$0xff]  ;;  %v16178_v45 = vcombine.high %v1430_v33, %v1434_v46  ;;  %v16177_v20 = vcombine.low %v1430_v33, %v1434_v46 }
 0x311   : > { %10822 = vmatpush1.bf16.msra.mxu1 %v16137_v12  ;;  %v15124_v12 = vcombine.high %v375_v35, %v379_v63  ;;  %v15123_v59 = vcombine.low %v375_v35, %v379_v63  ;;  %v411_v33 = vld [vmem:[%s18216_s13 + $0x370] sm:$0xff] }
 0x312   : > { %10823 = vmatprep.subr.bf16.mxu1 %v16146_v51  ;;  %v1442_v51 = vld [vmem:[%s18216_s13 + $0x23a8] sm:$0xff] }
 0x313   : > { %11019 = vmatpush1.bf16.msra.mxu0 %v15083_v31  ;;  %v1438_v31 = vld [vmem:[%s18216_s13 + $0x2388] sm:$0xff] }
 0x314   : > { %11020 = vmatprep.subr.bf16.mxu0 %v15092_v54  ;;  %v383_v54 = vld [vmem:[%s18216_s13 + $0x290] sm:$0xff]  ;;  %v16186_v60 = vcombine.high %v1438_v31, %v1442_v51  ;;  %v16185_v6 = vcombine.low %v1438_v31, %v1442_v51 }
 0x315   : > { %10824 = vmatpush1.bf16.msra.mxu1 %v16145_v62  ;;  %v15132_v62 = vcombine.high %v383_v54, %v387_v56  ;;  %v15131_v8 = vcombine.low %v383_v54, %v387_v56  ;;  %v419_v31 = vld [vmem:[%s18216_s13 + $0x3b0] sm:$0xff] }
 0x316   : > { %10825 = vmatprep.subr.bf16.mxu1 %v16154_v3  ;;  %v1450_v3 = vld [vmem:[%s18216_s13 + $0x23e8] sm:$0xff] }
 0x317   : > { %11021 = vmatpush1.bf16.msra.mxu0 %v15091_v1  ;;  %v1446_v1 = vld [vmem:[%s18216_s13 + $0x23c8] sm:$0xff] }
 0x318   : > { %11022 = vmatprep.subr.bf16.mxu0 %v15100_v53  ;;  %v391_v53 = vld [vmem:[%s18216_s13 + $0x2d0] sm:$0xff]  ;;  %v16194_v9 = vcombine.high %v1446_v1, %v1450_v3  ;;  %v16193_v21 = vcombine.low %v1446_v1, %v1450_v3 }
 0x319   : > { %10826 = vmatpush1.bf16.msra.mxu1 %v16153_v13  ;;  %v15140_v13 = vcombine.high %v391_v53, %v395_v4  ;;  %v15139_v22 = vcombine.low %v391_v53, %v395_v4  ;;  %v427_v1 = vld [vmem:[%s18216_s13 + $0x3f0] sm:$0xff] }
 0x31a   : > { %10827 = vmatprep.subr.bf16.mxu1 %v16162_v15  ;;  %v1458_v15 = vld [vmem:[%s18216_s13 + $0x2428] sm:$0xff] }
 0x31b   : > { %11023 = vmatpush1.bf16.msra.mxu0 %v15099_v14  ;;  %v1454_v14 = vld [vmem:[%s18216_s13 + $0x2408] sm:$0xff] }
 0x31c   : > { %11024 = vmatprep.subr.bf16.mxu0 %v15108_v18  ;;  %v399_v18 = vld [vmem:[%s18216_s13 + $0x310] sm:$0xff]  ;;  %v16202_v24 = vcombine.high %v1454_v14, %v1458_v15  ;;  %v16201_v46 = vcombine.low %v1454_v14, %v1458_v15 }
 0x31d   : > { %10828 = vmatpush1.bf16.msra.mxu1 %v16161_v26  ;;  %v15148_v26 = vcombine.high %v399_v18, %v403_v19  ;;  %v15147_v35 = vcombine.low %v399_v18, %v403_v19  ;;  %v435_v14 = vld [vmem:[%s18216_s13 + $0x430] sm:$0xff] }
 0x31e   : > { %10829 = vmatprep.subr.bf16.mxu1 %v16170_v29  ;;  %v1466_v29 = vld [vmem:[%s18216_s13 + $0x2468] sm:$0xff] }
 0x31f   : > { %11025 = vmatpush1.bf16.msra.mxu0 %v15107_v27  ;;  %v1462_v27 = vld [vmem:[%s18216_s13 + $0x2448] sm:$0xff] }
 0x320   : > { %11026 = vmatprep.subr.bf16.mxu0 %v15116_v5  ;;  %v407_v5 = vld [vmem:[%s18216_s13 + $0x350] sm:$0xff]  ;;  %v16210_v63 = vcombine.high %v1462_v27, %v1466_v29  ;;  %v16209_v51 = vcombine.low %v1462_v27, %v1466_v29 }
 0x321   : > { %10830 = vmatpush1.bf16.msra.mxu1 %v16169_v40  ;;  %v15156_v40 = vcombine.high %v407_v5, %v411_v33  ;;  %v15155_v54 = vcombine.low %v407_v5, %v411_v33  ;;  %v443_v27 = vld [vmem:[%s18216_s13 + $0x470] sm:$0xff] }
 0x322   : > { %10831 = vmatprep.subr.bf16.mxu1 %v16178_v45  ;;  %v1474_v45 = vld [vmem:[%s18216_s13 + $0x24a8] sm:$0xff] }
 0x323   : > { %11027 = vmatpush1.bf16.msra.mxu0 %v15115_v44  ;;  %v1470_v44 = vld [vmem:[%s18216_s13 + $0x2488] sm:$0xff] }
 0x324   : > { %11028 = vmatprep.subr.bf16.mxu0 %v15124_v12  ;;  %v415_v12 = vld [vmem:[%s18216_s13 + $0x390] sm:$0xff]  ;;  %v16218_v56 = vcombine.high %v1470_v44, %v1474_v45  ;;  %v16217_v3 = vcombine.low %v1470_v44, %v1474_v45 }
 0x325   : > { %10832 = vmatpush1.bf16.msra.mxu1 %v16177_v20  ;;  %v15164_v20 = vcombine.high %v415_v12, %v419_v31  ;;  %v15163_v53 = vcombine.low %v415_v12, %v419_v31  ;;  %v451_v44 = vld [vmem:[%s18216_s13 + $0x4b0] sm:$0xff] }
 0x326   : > { %10833 = vmatprep.subr.bf16.mxu1 %v16186_v60  ;;  %v1482_v60 = vld [vmem:[%s18216_s13 + $0x24e8] sm:$0xff] }
 0x327   : > { %11029 = vmatpush1.bf16.msra.mxu0 %v15123_v59  ;;  %v1478_v59 = vld [vmem:[%s18216_s13 + $0x24c8] sm:$0xff] }
 0x328   : > { %11030 = vmatprep.subr.bf16.mxu0 %v15132_v62  ;;  %v423_v62 = vld [vmem:[%s18216_s13 + $0x3d0] sm:$0xff]  ;;  %v16226_v4 = vcombine.high %v1478_v59, %v1482_v60  ;;  %v16225_v15 = vcombine.low %v1478_v59, %v1482_v60 }
 0x329   : > { %10834 = vmatpush1.bf16.msra.mxu1 %v16185_v6  ;;  %v15172_v6 = vcombine.high %v423_v62, %v427_v1  ;;  %v15171_v18 = vcombine.low %v423_v62, %v427_v1  ;;  %v459_v59 = vld [vmem:[%s18216_s13 + $0x4f0] sm:$0xff] }
 0x32a   : > { %10835 = vmatprep.subr.bf16.mxu1 %v16194_v9  ;;  %v1490_v9 = vld [vmem:[%s18216_s13 + $0x2528] sm:$0xff] }
 0x32b   : > { %11031 = vmatpush1.bf16.msra.mxu0 %v15131_v8  ;;  %v1486_v8 = vld [vmem:[%s18216_s13 + $0x2508] sm:$0xff] }
 0x32c   : > { %11032 = vmatprep.subr.bf16.mxu0 %v15140_v13  ;;  %v431_v13 = vld [vmem:[%s18216_s13 + $0x410] sm:$0xff]  ;;  %v16234_v19 = vcombine.high %v1486_v8, %v1490_v9  ;;  %v16233_v29 = vcombine.low %v1486_v8, %v1490_v9 }
 0x32d   : > { %10836 = vmatpush1.bf16.msra.mxu1 %v16193_v21  ;;  %v15180_v21 = vcombine.high %v431_v13, %v435_v14  ;;  %v15179_v5 = vcombine.low %v431_v13, %v435_v14  ;;  %v467_v8 = vld [vmem:[%s18216_s13 + $0x530] sm:$0xff] }
 0x32e   : > { %10846 = vmatprep.subr.bf16.mxu1 %v16202_v24  ;;  %v1498_v24 = vld [vmem:[%s18216_s13 + $0x2568] sm:$0xff] }
 0x32f   : > { %11033 = vmatpush1.bf16.msra.mxu0 %v15139_v22  ;;  %v1494_v22 = vld [vmem:[%s18216_s13 + $0x2548] sm:$0xff] }
 0x330   : > { %11034 = vmatprep.subr.bf16.mxu0 %v15148_v26  ;;  %10838 = vmatmul.mubr.bf16.vlgmr.msra.gmra.mrb[4].mxu1 %v18828_v47  ;;  %v439_v26 = vld [vmem:[%s18216_s13 + $0x450] sm:$0xff]  ;;  %v16242_v33 = vcombine.high %v1494_v22, %v1498_v24  ;;  %v16241_v45 = vcombine.low %v1494_v22, %v1498_v24 }
 0x331   : > { %10847 = vmatpush1.bf16.msra.mxu1 %v16201_v46  ;;  %10878 = vmatprep.mubr.bf16.mxu1 %v18834_v58  ;;  %v15188_v46 = vcombine.high %v439_v26, %v443_v27  ;;  %v15187_v12 = vcombine.low %v439_v26, %v443_v27  ;;  %v475_v22 = vld [vmem:[%s18216_s13 + $0x570] sm:$0xff] }
 0x332   : > { %10848 = vmatprep.subr.bf16.mxu1 %v16210_v63  ;;  %v1506_v63 = vld [vmem:[%s18216_s13 + $0x25a8] sm:$0xff] }
 0x333   : > { %11035 = vmatpush1.bf16.msra.mxu0 %v15147_v35  ;;  %v1502_v35 = vld [vmem:[%s18216_s13 + $0x2588] sm:$0xff] }
 0x334   : > { %11036 = vmatprep.subr.bf16.mxu0 %v15156_v40  ;;  %v447_v40 = vld [vmem:[%s18216_s13 + $0x490] sm:$0xff]  ;;  %v16250_v31 = vcombine.high %v1502_v35, %v1506_v63  ;;  %v16249_v60 = vcombine.low %v1502_v35, %v1506_v63 }
 0x335   : > { %10849 = vmatpush1.bf16.msra.mxu1 %v16209_v51  ;;  %v15196_v51 = vcombine.high %v447_v40, %v451_v44  ;;  %v15195_v62 = vcombine.low %v447_v40, %v451_v44  ;;  %v483_v35 = vld [vmem:[%s18216_s13 + $0x5b0] sm:$0xff] }
 0x336   : > { %10850 = vmatprep.subr.bf16.mxu1 %v16218_v56  ;;  %v1514_v56 = vld [vmem:[%s18216_s13 + $0x25e8] sm:$0xff] }
 0x337   : > { %11037 = vmatpush1.bf16.msra.mxu0 %v15155_v54  ;;  %v1510_v54 = vld [vmem:[%s18216_s13 + $0x25c8] sm:$0xff] }
 0x338   : > { %11038 = vmatprep.subr.bf16.mxu0 %v15164_v20  ;;  %v455_v20 = vld [vmem:[%s18216_s13 + $0x4d0] sm:$0xff]  ;;  %v16258_v1 = vcombine.high %v1510_v54, %v1514_v56  ;;  %v16257_v9 = vcombine.low %v1510_v54, %v1514_v56 }
 0x339   : > { %10851 = vmatpush1.bf16.msra.mxu1 %v16217_v3  ;;  %v15204_v3 = vcombine.high %v455_v20, %v459_v59  ;;  %v15203_v13 = vcombine.low %v455_v20, %v459_v59  ;;  %v491_v54 = vld [vmem:[%s18216_s13 + $0x5f0] sm:$0xff] }
 0x33a   : > { %10852 = vmatprep.subr.bf16.mxu1 %v16226_v4  ;;  %v1522_v4 = vld [vmem:[%s18216_s13 + $0x2628] sm:$0xff] }
 0x33b   : > { %11039 = vmatpush1.bf16.msra.mxu0 %v15163_v53  ;;  %v1518_v53 = vld [vmem:[%s18216_s13 + $0x2608] sm:$0xff] }
 0x33c   : > { %11040 = vmatprep.subr.bf16.mxu0 %v15172_v6  ;;  %v463_v6 = vld [vmem:[%s18216_s13 + $0x510] sm:$0xff]  ;;  %v16266_v14 = vcombine.high %v1518_v53, %v1522_v4  ;;  %v16265_v24 = vcombine.low %v1518_v53, %v1522_v4 }
 0x33d   : > { %10853 = vmatpush1.bf16.msra.mxu1 %v16225_v15  ;;  %v15212_v15 = vcombine.high %v463_v6, %v467_v8  ;;  %v15211_v26 = vcombine.low %v463_v6, %v467_v8  ;;  %v499_v53 = vld [vmem:[%s18216_s13 + $0x630] sm:$0xff] }
 0x33e   : > { %10854 = vmatprep.subr.bf16.mxu1 %v16234_v19  ;;  %v1530_v19 = vld [vmem:[%s18216_s13 + $0x2668] sm:$0xff] }
 0x33f   : > { %11041 = vmatpush1.bf16.msra.mxu0 %v15171_v18  ;;  %v1526_v18 = vld [vmem:[%s18216_s13 + $0x2648] sm:$0xff] }
 0x340   : > { %11051 = vmatprep.subr.bf16.mxu0 %v15180_v21  ;;  %v471_v21 = vld [vmem:[%s18216_s13 + $0x550] sm:$0xff]  ;;  %v16274_v27 = vcombine.high %v1526_v18, %v1530_v19  ;;  %v16273_v63 = vcombine.low %v1526_v18, %v1530_v19 }
 0x341   : > { %10855 = vmatpush1.bf16.msra.mxu1 %v16233_v29  ;;  %v15220_v29 = vcombine.high %v471_v21, %v475_v22  ;;  %v15219_v40 = vcombine.low %v471_v21, %v475_v22  ;;  %v507_v18 = vld [vmem:[%s18216_s13 + $0x670] sm:$0xff] }
 0x342   : > { %11043 = vmatmul.mubr.bf16.vlgmr.msra.gmra.mrb[4].mxu0 %v18328_v28  ;;  %10856 = vmatprep.subr.bf16.mxu1 %v16242_v33  ;;  %v1538_v33 = vld [vmem:[%s18216_s13 + $0x26a8] sm:$0xff] }
 0x343   : > { %11052 = vmatpush1.bf16.msra.mxu0 %v15179_v5  ;;  %11083 = vmatprep.mubr.bf16.mxu0 %v18340_v37  ;;  %v1534_v5 = vld [vmem:[%s18216_s13 + $0x2688] sm:$0xff] }
 0x344   : > { %11053 = vmatprep.subr.bf16.mxu0 %v15188_v46  ;;  %v479_v46 = vld [vmem:[%s18216_s13 + $0x590] sm:$0xff]  ;;  %v16282_v44 = vcombine.high %v1534_v5, %v1538_v33  ;;  %v16281_v56 = vcombine.low %v1534_v5, %v1538_v33 }
 0x345   : > { %10857 = vmatpush1.bf16.msra.mxu1 %v16241_v45  ;;  %v15228_v45 = vcombine.high %v479_v46, %v483_v35  ;;  %v15227_v20 = vcombine.low %v479_v46, %v483_v35  ;;  %v515_v5 = vld [vmem:[%s18216_s13 + $0x6b0] sm:$0xff] }
 0x346   : > { %10858 = vmatprep.subr.bf16.mxu1 %v16250_v31  ;;  %v1546_v31 = vld [vmem:[%s18216_s13 + $0x26e8] sm:$0xff] }
 0x347   : > { %11054 = vmatpush1.bf16.msra.mxu0 %v15187_v12  ;;  %v1542_v12 = vld [vmem:[%s18216_s13 + $0x26c8] sm:$0xff] }
 0x348   : > { %11055 = vmatprep.subr.bf16.mxu0 %v15196_v51  ;;  %v487_v51 = vld [vmem:[%s18216_s13 + $0x5d0] sm:$0xff]  ;;  %v16290_v59 = vcombine.high %v1542_v12, %v1546_v31  ;;  %v16289_v4 = vcombine.low %v1542_v12, %v1546_v31 }
 0x349   : > { %10859 = vmatpush1.bf16.msra.mxu1 %v16249_v60  ;;  %v15236_v60 = vcombine.high %v487_v51, %v491_v54  ;;  %v15235_v6 = vcombine.low %v487_v51, %v491_v54  ;;  %v523_v12 = vld [vmem:[%s18216_s13 + $0x6f0] sm:$0xff] }
 0x34a   : > { %10860 = vmatprep.subr.bf16.mxu1 %v16258_v1  ;;  %v1554_v1 = vld [vmem:[%s18216_s13 + $0x2728] sm:$0xff] }
 0x34b   : > { %11056 = vmatpush1.bf16.msra.mxu0 %v15195_v62  ;;  %v1550_v62 = vld [vmem:[%s18216_s13 + $0x2708] sm:$0xff] }
 0x34c   : > { %11057 = vmatprep.subr.bf16.mxu0 %v15204_v3  ;;  %v495_v3 = vld [vmem:[%s18216_s13 + $0x610] sm:$0xff]  ;;  %v16298_v8 = vcombine.high %v1550_v62, %v1554_v1  ;;  %v16297_v19 = vcombine.low %v1550_v62, %v1554_v1 }
 0x34d   : > { %10861 = vmatpush1.bf16.msra.mxu1 %v16257_v9  ;;  %v15244_v9 = vcombine.high %v495_v3, %v499_v53  ;;  %v15243_v21 = vcombine.low %v495_v3, %v499_v53  ;;  %v531_v62 = vld [vmem:[%s18216_s13 + $0x730] sm:$0xff] }
 0x34e   : > { %10862 = vmatprep.subr.bf16.mxu1 %v16266_v14  ;;  %v1562_v14 = vld [vmem:[%s18216_s13 + $0x2768] sm:$0xff] }
 0x34f   : > { %11058 = vmatpush1.bf16.msra.mxu0 %v15203_v13  ;;  %v1558_v13 = vld [vmem:[%s18216_s13 + $0x2748] sm:$0xff] }
 0x350   : > { %11059 = vmatprep.subr.bf16.mxu0 %v15212_v15  ;;  %v503_v15 = vld [vmem:[%s18216_s13 + $0x650] sm:$0xff]  ;;  %v16306_v22 = vcombine.high %v1558_v13, %v1562_v14  ;;  %v16305_v33 = vcombine.low %v1558_v13, %v1562_v14 }
 0x351   : > { %10863 = vmatpush1.bf16.msra.mxu1 %v16265_v24  ;;  %v15252_v24 = vcombine.high %v503_v15, %v507_v18  ;;  %v15251_v46 = vcombine.low %v503_v15, %v507_v18  ;;  %v539_v13 = vld [vmem:[%s18216_s13 + $0x770] sm:$0xff] }
 0x352   : > { %10864 = vmatprep.subr.bf16.mxu1 %v16274_v27  ;;  %v1570_v27 = vld [vmem:[%s18216_s13 + $0x27a8] sm:$0xff] }
 0x353   : > { %11060 = vmatpush1.bf16.msra.mxu0 %v15211_v26  ;;  %v1566_v26 = vld [vmem:[%s18216_s13 + $0x2788] sm:$0xff] }
 0x354   : > { %11061 = vmatprep.subr.bf16.mxu0 %v15220_v29  ;;  %v511_v29 = vld [vmem:[%s18216_s13 + $0x690] sm:$0xff]  ;;  %v16314_v35 = vcombine.high %v1566_v26, %v1570_v27  ;;  %v16313_v31 = vcombine.low %v1566_v26, %v1570_v27 }
 0x355   : > { %10865 = vmatpush1.bf16.msra.mxu1 %v16273_v63  ;;  %v15260_v63 = vcombine.high %v511_v29, %v515_v5  ;;  %v15259_v51 = vcombine.low %v511_v29, %v515_v5  ;;  %v547_v26 = vld [vmem:[%s18216_s13 + $0x7b0] sm:$0xff] }
 0x356   : > { %10866 = vmatprep.subr.bf16.mxu1 %v16282_v44  ;;  %v1578_v44 = vld [vmem:[%s18216_s13 + $0x27e8] sm:$0xff] }
 0x357   : > { %11062 = vmatpush1.bf16.msra.mxu0 %v15219_v40  ;;  %v1574_v40 = vld [vmem:[%s18216_s13 + $0x27c8] sm:$0xff] }
 0x358   : > { %11063 = vmatprep.subr.bf16.mxu0 %v15228_v45  ;;  %v519_v45 = vld [vmem:[%s18216_s13 + $0x6d0] sm:$0xff]  ;;  %v16322_v54 = vcombine.high %v1574_v40, %v1578_v44  ;;  %v16321_v1 = vcombine.low %v1574_v40, %v1578_v44 }
 0x359   : > { %10867 = vmatpush1.bf16.msra.mxu1 %v16281_v56  ;;  %v15268_v56 = vcombine.high %v519_v45, %v523_v12  ;;  %v15267_v3 = vcombine.low %v519_v45, %v523_v12  ;;  %v555_v40 = vld [vmem:[%s18216_s13 + $0x7f0] sm:$0xff] }
 0x35a   : > { %10868 = vmatprep.subr.bf16.mxu1 %v16290_v59  ;;  %v1586_v59 = vld [vmem:[%s18216_s13 + $0x2828] sm:$0xff] }
 0x35b   : > { %11064 = vmatpush1.bf16.msra.mxu0 %v15227_v20  ;;  %v1582_v20 = vld [vmem:[%s18216_s13 + $0x2808] sm:$0xff] }
 0x35c   : > { %11065 = vmatprep.subr.bf16.mxu0 %v15236_v60  ;;  %v527_v60 = vld [vmem:[%s18216_s13 + $0x710] sm:$0xff]  ;;  %v16330_v53 = vcombine.high %v1582_v20, %v1586_v59  ;;  %v16329_v14 = vcombine.low %v1582_v20, %v1586_v59 }
 0x35d   : > { %10869 = vmatpush1.bf16.msra.mxu1 %v16289_v4  ;;  %v15276_v4 = vcombine.high %v527_v60, %v531_v62  ;;  %v15275_v15 = vcombine.low %v527_v60, %v531_v62  ;;  %v563_v20 = vld [vmem:[%s18216_s13 + $0x830] sm:$0xff] }
 0x35e   : > { %10870 = vmatprep.subr.bf16.mxu1 %v16298_v8  ;;  %v1594_v8 = vld [vmem:[%s18216_s13 + $0x2868] sm:$0xff] }
 0x35f   : > { %11066 = vmatpush1.bf16.msra.mxu0 %v15235_v6  ;;  %v1590_v6 = vld [vmem:[%s18216_s13 + $0x2848] sm:$0xff] }
 0x360   : > { %11067 = vmatprep.subr.bf16.mxu0 %v15244_v9  ;;  %v535_v9 = vld [vmem:[%s18216_s13 + $0x750] sm:$0xff]  ;;  %v16338_v18 = vcombine.high %v1590_v6, %v1594_v8  ;;  %v16337_v27 = vcombine.low %v1590_v6, %v1594_v8 }
 0x361   : > { %10871 = vmatpush1.bf16.msra.mxu1 %v16297_v19  ;;  %v15284_v19 = vcombine.high %v535_v9, %v539_v13  ;;  %v15283_v29 = vcombine.low %v535_v9, %v539_v13  ;;  %v571_v6 = vld [vmem:[%s18216_s13 + $0x870] sm:$0xff] }
 0x362   : > { %10872 = vmatprep.subr.bf16.mxu1 %v16306_v22  ;;  %v1602_v22 = vld [vmem:[%s18216_s13 + $0x28a8] sm:$0xff] }
 0x363   : > { %11068 = vmatpush1.bf16.msra.mxu0 %v15243_v21  ;;  %v1598_v21 = vld [vmem:[%s18216_s13 + $0x2888] sm:$0xff] }
 0x364   : > { %11069 = vmatprep.subr.bf16.mxu0 %v15252_v24  ;;  %v543_v24 = vld [vmem:[%s18216_s13 + $0x790] sm:$0xff]  ;;  %v16346_v5 = vcombine.high %v1598_v21, %v1602_v22  ;;  %v16345_v44 = vcombine.low %v1598_v21, %v1602_v22 }
 0x365   : > { %10873 = vmatpush1.bf16.msra.mxu1 %v16305_v33  ;;  %v15292_v33 = vcombine.high %v543_v24, %v547_v26  ;;  %v15291_v45 = vcombine.low %v543_v24, %v547_v26  ;;  %v579_v21 = vld [vmem:[%s18216_s13 + $0x8b0] sm:$0xff] }
 0x366   : > { %10874 = vmatprep.subr.bf16.mxu1 %v16314_v35  ;;  %v1610_v35 = vld [vmem:[%s18216_s13 + $0x28e8] sm:$0xff] }
 0x367   : > { %11070 = vmatpush1.bf16.msra.mxu0 %v15251_v46  ;;  %v1606_v46 = vld [vmem:[%s18216_s13 + $0x28c8] sm:$0xff] }
 0x368   : > { %11071 = vmatprep.subr.bf16.mxu0 %v15260_v63  ;;  %v551_v63 = vld [vmem:[%s18216_s13 + $0x7d0] sm:$0xff]  ;;  %v16354_v12 = vcombine.high %v1606_v46, %v1610_v35  ;;  %v16353_v59 = vcombine.low %v1606_v46, %v1610_v35 }
 0x369   : > { %10875 = vmatpush1.bf16.msra.mxu1 %v16313_v31  ;;  %v15300_v31 = vcombine.high %v551_v63, %v555_v40  ;;  %v15299_v60 = vcombine.low %v551_v63, %v555_v40  ;;  %v587_v46 = vld [vmem:[%s18216_s13 + $0x8f0] sm:$0xff] }
 0x36a   : > { %10876 = vmatprep.subr.bf16.mxu1 %v16322_v54  ;;  %v1618_v54 = vld [vmem:[%s18216_s13 + $0x2928] sm:$0xff] }
 0x36b   : > { %11072 = vmatpush1.bf16.msra.mxu0 %v15259_v51  ;;  %v1614_v51 = vld [vmem:[%s18216_s13 + $0x2908] sm:$0xff] }
 0x36c   : > { %11073 = vmatprep.subr.bf16.mxu0 %v15268_v56  ;;  %v559_v56 = vld [vmem:[%s18216_s13 + $0x810] sm:$0xff]  ;;  %v16362_v62 = vcombine.high %v1614_v51, %v1618_v54  ;;  %v16361_v8 = vcombine.low %v1614_v51, %v1618_v54 }
 0x36d   : > { %10877 = vmatpush1.bf16.msra.mxu1 %v16321_v1  ;;  %v15308_v1 = vcombine.high %v559_v56, %v563_v20  ;;  %v15307_v9 = vcombine.low %v559_v56, %v563_v20  ;;  %v595_v51 = vld [vmem:[%s18216_s13 + $0x930] sm:$0xff] }
 0x36e   : > { %10887 = vmatprep.subr.bf16.mxu1 %v16330_v53  ;;  %v1626_v53 = vld [vmem:[%s18216_s13 + $0x2968] sm:$0xff] }
 0x36f   : > { %11074 = vmatpush1.bf16.msra.mxu0 %v15267_v3  ;;  %v1622_v3 = vld [vmem:[%s18216_s13 + $0x2948] sm:$0xff] }
 0x370   : > { %11075 = vmatprep.subr.bf16.mxu0 %v15276_v4  ;;  %10879 = vmatmul.mubr.bf16.vlgmr.msra.gmra.mrb[4].mxu1 %v18911_v2  ;;  %v567_v4 = vld [vmem:[%s18216_s13 + $0x850] sm:$0xff]  ;;  %v16370_v13 = vcombine.high %v1622_v3, %v1626_v53  ;;  %v16369_v22 = vcombine.low %v1622_v3, %v1626_v53 }
 0x371   : > { %10888 = vmatpush1.bf16.msra.mxu1 %v16329_v14  ;;  %10919 = vmatprep.mubr.bf16.mxu1 %v18916_v10  ;;  %v15316_v14 = vcombine.high %v567_v4, %v571_v6  ;;  %v15315_v24 = vcombine.low %v567_v4, %v571_v6  ;;  %v603_v3 = vld [vmem:[%s18216_s13 + $0x970] sm:$0xff] }
 0x372   : > { %10889 = vmatprep.subr.bf16.mxu1 %v16338_v18  ;;  %v1634_v18 = vld [vmem:[%s18216_s13 + $0x29a8] sm:$0xff] }
 0x373   : > { %11076 = vmatpush1.bf16.msra.mxu0 %v15275_v15  ;;  %v1630_v15 = vld [vmem:[%s18216_s13 + $0x2988] sm:$0xff] }
 0x374   : > { %11077 = vmatprep.subr.bf16.mxu0 %v15284_v19  ;;  %v575_v19 = vld [vmem:[%s18216_s13 + $0x890] sm:$0xff]  ;;  %v16378_v26 = vcombine.high %v1630_v15, %v1634_v18  ;;  %v16377_v35 = vcombine.low %v1630_v15, %v1634_v18 }
 0x375   : > { %10890 = vmatpush1.bf16.msra.mxu1 %v16337_v27  ;;  %v15324_v27 = vcombine.high %v575_v19, %v579_v21  ;;  %v15323_v63 = vcombine.low %v575_v19, %v579_v21  ;;  %v611_v15 = vld [vmem:[%s18216_s13 + $0x9b0] sm:$0xff] }
 0x376   : > { %10891 = vmatprep.subr.bf16.mxu1 %v16346_v5  ;;  %v1642_v5 = vld [vmem:[%s18216_s13 + $0x29e8] sm:$0xff] }
 0x377   : > { %11078 = vmatpush1.bf16.msra.mxu0 %v15283_v29  ;;  %v1638_v29 = vld [vmem:[%s18216_s13 + $0x29c8] sm:$0xff] }
 0x378   : > { %11079 = vmatprep.subr.bf16.mxu0 %v15292_v33  ;;  %v583_v33 = vld [vmem:[%s18216_s13 + $0x8d0] sm:$0xff]  ;;  %v16386_v40 = vcombine.high %v1638_v29, %v1642_v5  ;;  %v16385_v54 = vcombine.low %v1638_v29, %v1642_v5 }
 0x379   : > { %10892 = vmatpush1.bf16.msra.mxu1 %v16345_v44  ;;  %v15332_v44 = vcombine.high %v583_v33, %v587_v46  ;;  %v15331_v56 = vcombine.low %v583_v33, %v587_v46  ;;  %v619_v29 = vld [vmem:[%s18216_s13 + $0x9f0] sm:$0xff] }
 0x37a   : > { %10893 = vmatprep.subr.bf16.mxu1 %v16354_v12  ;;  %v1650_v12 = vld [vmem:[%s18216_s13 + $0x2a28] sm:$0xff] }
 0x37b   : > { %11080 = vmatpush1.bf16.msra.mxu0 %v15291_v45  ;;  %v1646_v45 = vld [vmem:[%s18216_s13 + $0x2a08] sm:$0xff] }
 0x37c   : > { %11081 = vmatprep.subr.bf16.mxu0 %v15300_v31  ;;  %v591_v31 = vld [vmem:[%s18216_s13 + $0x910] sm:$0xff]  ;;  %v16394_v20 = vcombine.high %v1646_v45, %v1650_v12  ;;  %v16393_v53 = vcombine.low %v1646_v45, %v1650_v12 }
 0x37d   : > { %10894 = vmatpush1.bf16.msra.mxu1 %v16353_v59  ;;  %v15340_v59 = vcombine.high %v591_v31, %v595_v51  ;;  %v15339_v4 = vcombine.low %v591_v31, %v595_v51  ;;  %v627_v45 = vld [vmem:[%s18216_s13 + $0xa30] sm:$0xff] }
 0x37e   : > { %10895 = vmatprep.subr.bf16.mxu1 %v16362_v62  ;;  %v1658_v62 = vld [vmem:[%s18216_s13 + $0x2a68] sm:$0xff] }
 0x37f   : > { %11082 = vmatpush1.bf16.msra.mxu0 %v15299_v60  ;;  %v1654_v60 = vld [vmem:[%s18216_s13 + $0x2a48] sm:$0xff] }
 0x380   : > { %11092 = vmatprep.subr.bf16.mxu0 %v15308_v1  ;;  %v599_v1 = vld [vmem:[%s18216_s13 + $0x950] sm:$0xff]  ;;  %v16402_v6 = vcombine.high %v1654_v60, %v1658_v62  ;;  %v16401_v18 = vcombine.low %v1654_v60, %v1658_v62 }
 0x381   : > { %10896 = vmatpush1.bf16.msra.mxu1 %v16361_v8  ;;  %v15348_v8 = vcombine.high %v599_v1, %v603_v3  ;;  %v15347_v19 = vcombine.low %v599_v1, %v603_v3  ;;  %v635_v60 = vld [vmem:[%s18216_s13 + $0xa70] sm:$0xff] }
 0x382   : > { %11084 = vmatmul.mubr.bf16.vlgmr.msra.gmra.mrb[4].mxu0 %v18423_v50  ;;  %10897 = vmatprep.subr.bf16.mxu1 %v16370_v13  ;;  %v1666_v13 = vld [vmem:[%s18216_s13 + $0x2aa8] sm:$0xff] }
 0x383   : > { %11093 = vmatpush1.bf16.msra.mxu0 %v15307_v9  ;;  %11124 = vmatprep.mubr.bf16.mxu0 %v18289_v16  ;;  %v1662_v9 = vld [vmem:[%s18216_s13 + $0x2a88] sm:$0xff] }
 0x384   : > { %11094 = vmatprep.subr.bf16.mxu0 %v15316_v14  ;;  %v607_v14 = vld [vmem:[%s18216_s13 + $0x990] sm:$0xff]  ;;  %v16410_v21 = vcombine.high %v1662_v9, %v1666_v13  ;;  %v16409_v5 = vcombine.low %v1662_v9, %v1666_v13 }
 0x385   : > { %10898 = vmatpush1.bf16.msra.mxu1 %v16369_v22  ;;  %v15356_v22 = vcombine.high %v607_v14, %v611_v15  ;;  %v15355_v33 = vcombine.low %v607_v14, %v611_v15  ;;  %v643_v9 = vld [vmem:[%s18216_s13 + $0xab0] sm:$0xff] }
 0x386   : > { %10899 = vmatprep.subr.bf16.mxu1 %v16378_v26  ;;  %v1674_v26 = vld [vmem:[%s18216_s13 + $0x2ae8] sm:$0xff] }
 0x387   : > { %11095 = vmatpush1.bf16.msra.mxu0 %v15315_v24  ;;  %v1670_v24 = vld [vmem:[%s18216_s13 + $0x2ac8] sm:$0xff] }
 0x388   : > { %11096 = vmatprep.subr.bf16.mxu0 %v15324_v27  ;;  %v615_v27 = vld [vmem:[%s18216_s13 + $0x9d0] sm:$0xff]  ;;  %v16418_v46 = vcombine.high %v1670_v24, %v1674_v26  ;;  %v16417_v12 = vcombine.low %v1670_v24, %v1674_v26 }
 0x389   : > { %10900 = vmatpush1.bf16.msra.mxu1 %v16377_v35  ;;  %v15364_v35 = vcombine.high %v615_v27, %v619_v29  ;;  %v15363_v31 = vcombine.low %v615_v27, %v619_v29  ;;  %v651_v24 = vld [vmem:[%s18216_s13 + $0xaf0] sm:$0xff] }
 0x38a   : > { %10901 = vmatprep.subr.bf16.mxu1 %v16386_v40  ;;  %v1682_v40 = vld [vmem:[%s18216_s13 + $0x2b28] sm:$0xff] }
 0x38b   : > { %11097 = vmatpush1.bf16.msra.mxu0 %v15323_v63  ;;  %v1678_v63 = vld [vmem:[%s18216_s13 + $0x2b08] sm:$0xff] }
 0x38c   : > { %11098 = vmatprep.subr.bf16.mxu0 %v15332_v44  ;;  %v623_v44 = vld [vmem:[%s18216_s13 + $0xa10] sm:$0xff]  ;;  %v16426_v51 = vcombine.high %v1678_v63, %v1682_v40  ;;  %v16425_v62 = vcombine.low %v1678_v63, %v1682_v40 }
 0x38d   : > { %10902 = vmatpush1.bf16.msra.mxu1 %v16385_v54  ;;  %v15372_v54 = vcombine.high %v623_v44, %v627_v45  ;;  %v15371_v1 = vcombine.low %v623_v44, %v627_v45  ;;  %v659_v63 = vld [vmem:[%s18216_s13 + $0xb30] sm:$0xff] }
 0x38e   : > { %10903 = vmatprep.subr.bf16.mxu1 %v16394_v20  ;;  %v1690_v20 = vld [vmem:[%s18216_s13 + $0x2b68] sm:$0xff] }
 0x38f   : > { %11099 = vmatpush1.bf16.msra.mxu0 %v15331_v56  ;;  %v1686_v56 = vld [vmem:[%s18216_s13 + $0x2b48] sm:$0xff] }
 0x390   : > { %11100 = vmatprep.subr.bf16.mxu0 %v15340_v59  ;;  %v631_v59 = vld [vmem:[%s18216_s13 + $0xa50] sm:$0xff]  ;;  %v16434_v3 = vcombine.high %v1686_v56, %v1690_v20  ;;  %v16433_v13 = vcombine.low %v1686_v56, %v1690_v20 }
 0x391   : > { %10904 = vmatpush1.bf16.msra.mxu1 %v16393_v53  ;;  %v15380_v53 = vcombine.high %v631_v59, %v635_v60  ;;  %v15379_v14 = vcombine.low %v631_v59, %v635_v60  ;;  %v667_v56 = vld [vmem:[%s18216_s13 + $0xb70] sm:$0xff] }
 0x392   : > { %10905 = vmatprep.subr.bf16.mxu1 %v16402_v6  ;;  %v1698_v6 = vld [vmem:[%s18216_s13 + $0x2ba8] sm:$0xff] }
 0x393   : > { %11101 = vmatpush1.bf16.msra.mxu0 %v15339_v4  ;;  %v1694_v4 = vld [vmem:[%s18216_s13 + $0x2b88] sm:$0xff] }
 0x394   : > { %11102 = vmatprep.subr.bf16.mxu0 %v15348_v8  ;;  %v639_v8 = vld [vmem:[%s18216_s13 + $0xa90] sm:$0xff]  ;;  %v16442_v15 = vcombine.high %v1694_v4, %v1698_v6  ;;  %v16441_v26 = vcombine.low %v1694_v4, %v1698_v6 }
 0x395   : > { %10906 = vmatpush1.bf16.msra.mxu1 %v16401_v18  ;;  %v15388_v18 = vcombine.high %v639_v8, %v643_v9  ;;  %v15387_v27 = vcombine.low %v639_v8, %v643_v9  ;;  %v675_v4 = vld [vmem:[%s18216_s13 + $0xbb0] sm:$0xff] }
 0x396   : > { %10907 = vmatprep.subr.bf16.mxu1 %v16410_v21  ;;  %v1706_v21 = vld [vmem:[%s18216_s13 + $0x2be8] sm:$0xff] }
 0x397   : > { %11103 = vmatpush1.bf16.msra.mxu0 %v15347_v19  ;;  %v1702_v19 = vld [vmem:[%s18216_s13 + $0x2bc8] sm:$0xff] }
 0x398   : > { %11104 = vmatprep.subr.bf16.mxu0 %v15356_v22  ;;  %v647_v22 = vld [vmem:[%s18216_s13 + $0xad0] sm:$0xff]  ;;  %v16450_v29 = vcombine.high %v1702_v19, %v1706_v21  ;;  %v16449_v40 = vcombine.low %v1702_v19, %v1706_v21 }
 0x399   : > { %10908 = vmatpush1.bf16.msra.mxu1 %v16409_v5  ;;  %v15396_v5 = vcombine.high %v647_v22, %v651_v24  ;;  %v15395_v44 = vcombine.low %v647_v22, %v651_v24  ;;  %v683_v19 = vld [vmem:[%s18216_s13 + $0xbf0] sm:$0xff] }
 0x39a   : > { %10909 = vmatprep.subr.bf16.mxu1 %v16418_v46  ;;  %v1714_v46 = vld [vmem:[%s18216_s13 + $0x2c28] sm:$0xff] }
 0x39b   : > { %11105 = vmatpush1.bf16.msra.mxu0 %v15355_v33  ;;  %v1710_v33 = vld [vmem:[%s18216_s13 + $0x2c08] sm:$0xff] }
 0x39c   : > { %11106 = vmatprep.subr.bf16.mxu0 %v15364_v35  ;;  %v655_v35 = vld [vmem:[%s18216_s13 + $0xb10] sm:$0xff]  ;;  %v16458_v45 = vcombine.high %v1710_v33, %v1714_v46  ;;  %v16457_v20 = vcombine.low %v1710_v33, %v1714_v46 }
 0x39d   : > { %10910 = vmatpush1.bf16.msra.mxu1 %v16417_v12  ;;  %v15404_v12 = vcombine.high %v655_v35, %v659_v63  ;;  %v15403_v59 = vcombine.low %v655_v35, %v659_v63  ;;  %v691_v33 = vld [vmem:[%s18216_s13 + $0xc30] sm:$0xff] }
 0x39e   : > { %10911 = vmatprep.subr.bf16.mxu1 %v16426_v51  ;;  %v1722_v51 = vld [vmem:[%s18216_s13 + $0x2c68] sm:$0xff] }
 0x39f   : > { %11107 = vmatpush1.bf16.msra.mxu0 %v15363_v31  ;;  %v1718_v31 = vld [vmem:[%s18216_s13 + $0x2c48] sm:$0xff] }
 0x3a0   : > { %11108 = vmatprep.subr.bf16.mxu0 %v15372_v54  ;;  %v663_v54 = vld [vmem:[%s18216_s13 + $0xb50] sm:$0xff]  ;;  %v16466_v60 = vcombine.high %v1718_v31, %v1722_v51  ;;  %v16465_v6 = vcombine.low %v1718_v31, %v1722_v51 }
 0x3a1   : > { %10912 = vmatpush1.bf16.msra.mxu1 %v16425_v62  ;;  %v15412_v62 = vcombine.high %v663_v54, %v667_v56  ;;  %v15411_v8 = vcombine.low %v663_v54, %v667_v56  ;;  %v699_v31 = vld [vmem:[%s18216_s13 + $0xc70] sm:$0xff] }
 0x3a2   : > { %10913 = vmatprep.subr.bf16.mxu1 %v16434_v3  ;;  %v1730_v3 = vld [vmem:[%s18216_s13 + $0x2ca8] sm:$0xff] }
 0x3a3   : > { %11109 = vmatpush1.bf16.msra.mxu0 %v15371_v1  ;;  %v1726_v1 = vld [vmem:[%s18216_s13 + $0x2c88] sm:$0xff] }
 0x3a4   : > { %11110 = vmatprep.subr.bf16.mxu0 %v15380_v53  ;;  %v671_v53 = vld [vmem:[%s18216_s13 + $0xb90] sm:$0xff]  ;;  %v16474_v9 = vcombine.high %v1726_v1, %v1730_v3  ;;  %v16473_v21 = vcombine.low %v1726_v1, %v1730_v3 }
 0x3a5   : > { %10914 = vmatpush1.bf16.msra.mxu1 %v16433_v13  ;;  %v15420_v13 = vcombine.high %v671_v53, %v675_v4  ;;  %v15419_v22 = vcombine.low %v671_v53, %v675_v4  ;;  %v707_v1 = vld [vmem:[%s18216_s13 + $0xcb0] sm:$0xff] }
 0x3a6   : > { %10915 = vmatprep.subr.bf16.mxu1 %v16442_v15  ;;  %v1738_v15 = vld [vmem:[%s18216_s13 + $0x2ce8] sm:$0xff] }
 0x3a7   : > { %11111 = vmatpush1.bf16.msra.mxu0 %v15379_v14  ;;  %v1734_v14 = vld [vmem:[%s18216_s13 + $0x2cc8] sm:$0xff] }
 0x3a8   : > { %11112 = vmatprep.subr.bf16.mxu0 %v15388_v18  ;;  %v679_v18 = vld [vmem:[%s18216_s13 + $0xbd0] sm:$0xff]  ;;  %v16482_v24 = vcombine.high %v1734_v14, %v1738_v15  ;;  %v16481_v46 = vcombine.low %v1734_v14, %v1738_v15 }
 0x3a9   : > { %10916 = vmatpush1.bf16.msra.mxu1 %v16441_v26  ;;  %v15428_v26 = vcombine.high %v679_v18, %v683_v19  ;;  %v15427_v35 = vcombine.low %v679_v18, %v683_v19  ;;  %v715_v14 = vld [vmem:[%s18216_s13 + $0xcf0] sm:$0xff] }
 0x3aa   : > { %10917 = vmatprep.subr.bf16.mxu1 %v16450_v29  ;;  %v1746_v29 = vld [vmem:[%s18216_s13 + $0x2d28] sm:$0xff] }
 0x3ab   : > { %11113 = vmatpush1.bf16.msra.mxu0 %v15387_v27  ;;  %v1742_v27 = vld [vmem:[%s18216_s13 + $0x2d08] sm:$0xff] }
 0x3ac   : > { %11114 = vmatprep.subr.bf16.mxu0 %v15396_v5  ;;  %v687_v5 = vld [vmem:[%s18216_s13 + $0xc10] sm:$0xff]  ;;  %v16490_v63 = vcombine.high %v1742_v27, %v1746_v29  ;;  %v16489_v51 = vcombine.low %v1742_v27, %v1746_v29 }
 0x3ad   : > { %10918 = vmatpush1.bf16.msra.mxu1 %v16449_v40  ;;  %v15436_v40 = vcombine.high %v687_v5, %v691_v33  ;;  %v15435_v54 = vcombine.low %v687_v5, %v691_v33  ;;  %v723_v27 = vld [vmem:[%s18216_s13 + $0xd30] sm:$0xff] }
 0x3ae   : > { %10928 = vmatprep.subr.bf16.mxu1 %v16458_v45  ;;  %v1754_v45 = vld [vmem:[%s18216_s13 + $0x2d68] sm:$0xff] }
 0x3af   : > { %11115 = vmatpush1.bf16.msra.mxu0 %v15395_v44  ;;  %v1750_v44 = vld [vmem:[%s18216_s13 + $0x2d48] sm:$0xff] }
 0x3b0   : > { %11116 = vmatprep.subr.bf16.mxu0 %v15404_v12  ;;  %10920 = vmatmul.mubr.bf16.vlgmr.msra.gmra.mrb[4].mxu1 %v18986_v25  ;;  %v695_v12 = vld [vmem:[%s18216_s13 + $0xc50] sm:$0xff]  ;;  %v16498_v56 = vcombine.high %v1750_v44, %v1754_v45  ;;  %v16497_v3 = vcombine.low %v1750_v44, %v1754_v45  ;;  %v1869_v44 = vld [vmem:[%s18224_s29] sm:$0xff]  ;;  %v1877_v45 = vsub.s32 1, %v18252_v43 }
 0x3b1   : > { %10929 = vmatpush1.bf16.msra.mxu1 %v16457_v20  ;;  %10960 = vmatprep.mubr.bf16.mxu1 %v18992_v34  ;;  %v15444_v20 = vcombine.high %v695_v12, %v699_v31  ;;  %v15443_v53 = vcombine.low %v695_v12, %v699_v31  ;;  %v727_v12 = vld [vmem:[%s18216_s13 + $0xd50] sm:$0xff] }
 0x3b2   : > { %10930 = vmatprep.subr.bf16.mxu1 %v16466_v60  ;;  %v1762_v60 = vld [vmem:[%s18216_s13 + $0x2da8] sm:$0xff]  ;;  %v731_v31 = vld [vmem:[%s18216_s13 + $0xd70] sm:$0xff] }
 0x3b3   : > { %11117 = vmatpush1.bf16.msra.mxu0 %v15403_v59  ;;  %v1758_v59 = vld [vmem:[%s18216_s13 + $0x2d88] sm:$0xff] }
 0x3b4   : > { %11118 = vmatprep.subr.bf16.mxu0 %v15412_v62  ;;  %v703_v62 = vld [vmem:[%s18216_s13 + $0xc90] sm:$0xff]  ;;  %v16506_v4 = vcombine.high %v1758_v59, %v1762_v60  ;;  %v16505_v15 = vcombine.low %v1758_v59, %v1762_v60  ;;  %v15476_v59 = vcombine.high %v727_v12, %v731_v31  ;;  %v1790_v60 = vld [vmem:[%s18216_s13 + $0x2e88] sm:$0xff] }
 0x3b5   : > { %10931 = vmatpush1.bf16.msra.mxu1 %v16465_v6  ;;  %v15452_v6 = vcombine.high %v703_v62, %v707_v1  ;;  %v15451_v18 = vcombine.low %v703_v62, %v707_v1  ;;  %v1794_v62 = vld [vmem:[%s18216_s13 + $0x2ea8] sm:$0xff]  ;;  %v1878_v1 = vrot.slane %v1869_v44, %v1877_v45 }
 0x3b6   : > { %10932 = vmatprep.subr.bf16.mxu1 %v16474_v9  ;;  %v1770_v9 = vld [vmem:[%s18216_s13 + $0x2de8] sm:$0xff] }
 0x3b7   : > { %11119 = vmatpush1.bf16.msra.mxu0 %v15411_v8  ;;  %v1766_v8 = vld [vmem:[%s18216_s13 + $0x2dc8] sm:$0xff] }
 0x3b8   : > { %11120 = vmatprep.subr.bf16.mxu0 %v15420_v13  ;;  %v711_v13 = vld [vmem:[%s18216_s13 + $0xcd0] sm:$0xff]  ;;  %v16514_v19 = vcombine.high %v1766_v8, %v1770_v9  ;;  %v16513_v29 = vcombine.low %v1766_v8, %v1770_v9  ;;  %v16538_v8 = vcombine.high %v1790_v60, %v1794_v62 }
 0x3b9   : > { %10933 = vmatpush1.bf16.msra.mxu1 %v16473_v21  ;;  %v15460_v21 = vcombine.high %v711_v13, %v715_v14  ;;  %v15459_v5 = vcombine.low %v711_v13, %v715_v14  ;;  %v1798_v14 = vld [vmem:[%s18216_s13 + $0x2ec8] sm:$0xff] }
 0x3ba   : > { %10934 = vmatprep.subr.bf16.mxu1 %v16482_v24  ;;  %v1778_v24 = vld [vmem:[%s18216_s13 + $0x2e28] sm:$0xff] }
 0x3bb   : > { %11121 = vmatpush1.bf16.msra.mxu0 %v15419_v22  ;;  %v1774_v22 = vld [vmem:[%s18216_s13 + $0x2e08] sm:$0xff] }
 0x3bc   : > { %11122 = vmatprep.subr.bf16.mxu0 %v15428_v26  ;;  %v719_v26 = vld [vmem:[%s18216_s13 + $0xd10] sm:$0xff]  ;;  %v16522_v33 = vcombine.high %v1774_v22, %v1778_v24 }
 0x3bd   : > { %10935 = vmatpush1.bf16.msra.mxu1 %v16481_v46  ;;  %v1873_v46 = vsub.s32 0, %v18252_v43 }
 0x3be   : > { %10936 = vmatprep.subr.bf16.mxu1 %v16490_v63  ;;  %v1782_v63 = vld [vmem:[%s18216_s13 + $0x2e48] sm:$0xff] }
 0x3bf   : > { %11123 = vmatpush1.bf16.msra.mxu0 %v15427_v35  ;;  %v15468_v35 = vcombine.high %v719_v26, %v723_v27 }
 0x3c0   : > { %11133 = vmatprep.subr.bf16.mxu0 %v15436_v40  ;;  %v1786_v40 = vld [vmem:[%s18216_s13 + $0x2e68] sm:$0xff] }
 0x3c1   : > { %10937 = vmatpush1.bf16.msra.mxu1 %v16489_v51  ;;  %v16521_v51 = vcombine.low %v1774_v22, %v1778_v24  ;;  %v747_v22 = vld [vmem:[%s18216_s13 + $0xdf0] sm:$0xff] }
 0x3c2   : > { %11125 = vmatmul.mubr.bf16.vlgmr.msra.gmra.mrb[4].mxu0 %v18334_v32  ;;  %10938 = vmatprep.subr.bf16.mxu1 %v16498_v56  ;;  %v16530_v56 = vcombine.high %v1782_v63, %v1786_v40 }
 0x3c3   : > { %11134 = vmatpush1.bf16.msra.mxu0 %v15435_v54  ;;  %11165 = vmatprep.mubr.bf16.mxu0 %v18347_v39  ;;  %v15467_v54 = vcombine.low %v719_v26, %v723_v27  ;;  %v16537_v27 = vcombine.low %v1790_v60, %v1794_v62 }
 0x3c4   : > { %11135 = vmatprep.subr.bf16.mxu0 %v15444_v20  ;;  %v1874_v20 = vrot.slane %v1869_v44, %v1873_v46  ;;  %v755_v44 = vld [vmem:[%s18216_s13 + $0xe30] sm:$0xff] }
 0x3c5   : > { %10939 = vmatpush1.bf16.msra.mxu1 %v16497_v3  ;;  %v735_v3 = vld [vmem:[%s18216_s13 + $0xd90] sm:$0xff] }
 0x3c6   : > { %10940 = vmatprep.subr.bf16.mxu1 %v16506_v4  ;;  %v16529_v4 = vcombine.low %v1782_v63, %v1786_v40  ;;  %v17007_v9 = vadd.f32 %v18692_v36, %v1874_v20  ;;  %v1810_v63 = vld [vmem:[%s18216_s13 + $0x2f28] sm:$0xff]  ;;  %v751_v40 = vld [vmem:[%s18216_s13 + $0xe10] sm:$0xff] }
 0x3c7   : > { %11136 = vmatpush1.bf16.msra.mxu0 %v15443_v53  ;;  %v739_v53 = vld [vmem:[%s18216_s13 + $0xdb0] sm:$0xff]  ;;  %v15499_v62 = vcombine.low %v751_v40, %v755_v44 }
 0x3c8   : > { %11137 = vmatprep.subr.bf16.mxu0 %v15452_v6  ;;  %v15475_v6 = vcombine.low %v727_v12, %v731_v31  ;;  %v15484_v13 = vcombine.high %v735_v3, %v739_v53  ;;  %v759_v20 = vld [vmem:[%s18216_s13 + $0xe50] sm:$0xff] }
 0x3c9   : > { %10941 = vmatpush1.bf16.msra.mxu1 %v16505_v15  ;;  %v1802_v15 = vld [vmem:[%s18216_s13 + $0x2ee8] sm:$0xff] }
 0x3ca   : > { %10942 = vmatprep.subr.bf16.mxu1 %v16514_v19  ;;  %v16545_v45 = vcombine.low %v1798_v14, %v1802_v15 }
 0x3cb   : > { %11138 = vmatpush1.bf16.msra.mxu0 %v15451_v18  ;;  %v17009_v18 = vadd.f32 %v18696_v41, %v1878_v1 }
 0x3cc   : > { %11139 = vmatprep.subr.bf16.mxu0 %v15460_v21  ;;  %v743_v21 = vld [vmem:[%s18216_s13 + $0xdd0] sm:$0xff] }
 0x3cd   : > { %10943 = vmatpush1.bf16.msra.mxu1 %v16513_v29  ;;  %v15492_v46 = vcombine.high %v743_v21, %v747_v22  ;;  %v15491_v12 = vcombine.low %v743_v21, %v747_v22  ;;  %v775_v21 = vld [vmem:[%s18216_s13 + $0xed0] sm:$0xff] }
 0x3ce   : > { %10944 = vmatprep.subr.bf16.mxu1 %v16522_v33  ;;  %v16546_v33 = vcombine.high %v1798_v14, %v1802_v15  ;;  %v779_v22 = vld [vmem:[%s18216_s13 + $0xef0] sm:$0xff] }
 0x3cf   : > { %11140 = vmatpush1.bf16.msra.mxu0 %v15459_v5  ;;  %v15483_v5 = vcombine.low %v735_v3, %v739_v53  ;;  %v1822_v53 = vld [vmem:[%s18216_s13 + $0x2f88] sm:$0xff] }
 0x3d0   : > { %11141 = vmatprep.subr.bf16.mxu0 %v15468_v35  ;;  %v1806_v35 = vld [vmem:[%s18216_s13 + $0x2f08] sm:$0xff] }
 0x3d1   : > { %10945 = vmatpush1.bf16.msra.mxu1 %v16521_v51  ;;  %v16554_v31 = vcombine.high %v1806_v35, %v1810_v63  ;;  %v15500_v51 = vcombine.high %v751_v40, %v755_v44  ;;  %v16553_v60 = vcombine.low %v1806_v35, %v1810_v63  ;;  %v787_v35 = vld [vmem:[%s18216_s13 + $0xf30] sm:$0xff]  ;;  %v15523_v40 = vcombine.low %v775_v21, %v779_v22 }
 0x3d2   : > { %10946 = vmatprep.subr.bf16.mxu1 %v16530_v56  ;;  %v1818_v56 = vld [vmem:[%s18216_s13 + $0x2f68] sm:$0xff] }
 0x3d3   : > { %11142 = vmatpush1.bf16.msra.mxu0 %v15467_v54  ;;  %v1814_v54 = vld [vmem:[%s18216_s13 + $0x2f48] sm:$0xff] }
 0x3d4   : > { %11143 = vmatprep.subr.bf16.mxu0 %v15476_v59  ;;  %v763_v59 = vld [vmem:[%s18216_s13 + $0xe70] sm:$0xff]  ;;  %v16562_v1 = vcombine.high %v1814_v54, %v1818_v56 }
 0x3d5   : > { %v10470_v19 = vpop.f32.mrb[0].mxu0  ;;  %10947 = vmatpush1.bf16.msra.mxu1 %v16529_v4  ;;  %v15508_v3 = vcombine.high %v759_v20, %v763_v59  ;;  %v1826_v4 = vld [vmem:[%s18216_s13 + $0x2fa8] sm:$0xff] }
 0x3d6   : > { %v19326_v24 = vadd.f32 %v17007_v9, %v10470_v19  ;;  %v10472_v26 = vpop.f32.mrb[1].mxu0  ;;  %10948 = vmatprep.subr.bf16.mxu1 %v16538_v8  ;;  %v771_v8 = vld [vmem:[%s18216_s13 + $0xeb0] sm:$0xff]  ;;  %v16561_v9 = vcombine.low %v1814_v54, %v1818_v56  ;;  %v16570_v14 = vcombine.high %v1822_v53, %v1826_v4  ;;  %v1834_v19 = vld [vmem:[%s18216_s13 + $0x2fe8] sm:$0xff] }
 0x3d7   : > { %v19328_v29 = vadd.f32 %v17009_v18, %v10472_v26  ;;  %v10474_v36 = vpop.f32.mrb[2].mxu0  ;;  %11144 = vmatpush1.bf16.msra.mxu0 %v15475_v6  ;;  %v767_v6 = vld [vmem:[%s18216_s13 + $0xe90] sm:$0xff]  ;;  %v1830_v18 = vld [vmem:[%s18216_s13 + $0x2fc8] sm:$0xff]  ;;  %v16569_v26 = vcombine.low %v1822_v53, %v1826_v4 }
 0x3d8   : > { %v10475_v41 = vpop.f32.mrb[3].mxu0  ;;  %11145 = vmatprep.subr.bf16.mxu0 %v15484_v13  ;;  %v15507_v13 = vcombine.low %v759_v20, %v763_v59  ;;  %v15516_v15 = vcombine.high %v767_v6, %v771_v8  ;;  %v16578_v36 = vcombine.high %v1830_v18, %v1834_v19  ;;  %v16577_v63 = vcombine.low %v1830_v18, %v1834_v19  ;;  %v795_v54 = vld [vmem:[%s18216_s13 + $0xf70] sm:$0xff] }
 0x3d9   : > { %10949 = vmatpush1.bf16.msra.mxu1 %v16537_v27  ;;  %v15515_v27 = vcombine.low %v767_v6, %v771_v8  ;;  %v1842_v41 = vld [vmem:[%s18216_s13 + $0x3028] sm:$0xff]  ;;  %v803_v53 = vld [vmem:[%s18216_s13 + $0xfb0] sm:$0xff] }
 0x3da   : > { %10950 = vmatprep.subr.bf16.mxu1 %v16546_v33  ;;  %v1838_v33 = vld [vmem:[%s18216_s13 + $0x3008] sm:$0xff]  ;;  %v811_v18 = vld [vmem:[%s18216_s13 + $0xff0] sm:$0xff] }
 0x3db   : > { %11146 = vmatpush1.bf16.msra.mxu0 %v15483_v5  ;;  %v15524_v5 = vcombine.high %v775_v21, %v779_v22  ;;  %v16586_v44 = vcombine.high %v1838_v33, %v1842_v41  ;;  %v16585_v56 = vcombine.low %v1838_v33, %v1842_v41  ;;  %v819_v33 = vld [vmem:[%s18216_s13 + $0x1030] sm:$0xff] }
 0x3dc   : > { %11147 = vmatprep.subr.bf16.mxu0 %v15492_v46  ;;  %v783_v46 = vld [vmem:[%s18216_s13 + $0xf10] sm:$0xff] }
 0x3dd   : > { %10951 = vmatpush1.bf16.msra.mxu1 %v16545_v45  ;;  %v15532_v45 = vcombine.high %v783_v46, %v787_v35  ;;  %v15531_v20 = vcombine.low %v783_v46, %v787_v35 }
 0x3de   : > { %10952 = vmatprep.subr.bf16.mxu1 %v16554_v31  ;;  %v1850_v31 = vld [vmem:[%s18216_s13 + $0x3068] sm:$0xff] }
 0x3df   : > { %11148 = vmatpush1.bf16.msra.mxu0 %v15491_v12  ;;  %v1846_v12 = vld [vmem:[%s18216_s13 + $0x3048] sm:$0xff] }
 0x3e0   : > { %11149 = vmatprep.subr.bf16.mxu0 %v15500_v51  ;;  %v791_v51 = vld [vmem:[%s18216_s13 + $0xf50] sm:$0xff]  ;;  %v16594_v59 = vcombine.high %v1846_v12, %v1850_v31  ;;  %v16593_v4 = vcombine.low %v1846_v12, %v1850_v31 }
 0x3e1   : > { %10953 = vmatpush1.bf16.msra.mxu1 %v16553_v60  ;;  %v15540_v60 = vcombine.high %v791_v51, %v795_v54  ;;  %v15539_v6 = vcombine.low %v791_v51, %v795_v54  ;;  %v827_v12 = vld [vmem:[%s18216_s13 + $0x1070] sm:$0xff] }
 0x3e2   : > { %10954 = vmatprep.subr.bf16.mxu1 %v16562_v1  ;;  %v1858_v1 = vld [vmem:[%s18216_s13 + $0x30a8] sm:$0xff] }
 0x3e3   : > { %11150 = vmatpush1.bf16.msra.mxu0 %v15499_v62  ;;  %v1854_v62 = vld [vmem:[%s18216_s13 + $0x3088] sm:$0xff] }
 0x3e4   : > { %11151 = vmatprep.subr.bf16.mxu0 %v15508_v3  ;;  %v799_v3 = vld [vmem:[%s18216_s13 + $0xf90] sm:$0xff]  ;;  %v16602_v8 = vcombine.high %v1854_v62, %v1858_v1  ;;  %v16601_v19 = vcombine.low %v1854_v62, %v1858_v1 }
 0x3e5   : > { %10955 = vmatpush1.bf16.msra.mxu1 %v16561_v9  ;;  %v15548_v9 = vcombine.high %v799_v3, %v803_v53  ;;  %v15547_v21 = vcombine.low %v799_v3, %v803_v53  ;;  %v835_v62 = vld [vmem:[%s18216_s13 + $0x10b0] sm:$0xff] }
 0x3e6   : > { %10956 = vmatprep.subr.bf16.mxu1 %v16570_v14  ;;  %v1866_v14 = vld [vmem:[%s18216_s13 + $0x30e8] sm:$0xff] }
 0x3e7   : > { %11152 = vmatpush1.bf16.msra.mxu0 %v15507_v13  ;;  %v1862_v13 = vld [vmem:[%s18216_s13 + $0x30c8] sm:$0xff] }
 0x3e8   : > { %11153 = vmatprep.subr.bf16.mxu0 %v15516_v15  ;;  %v807_v15 = vld [vmem:[%s18216_s13 + $0xfd0] sm:$0xff]  ;;  %v16610_v22 = vcombine.high %v1862_v13, %v1866_v14  ;;  %v16609_v41 = vcombine.low %v1862_v13, %v1866_v14 }
 0x3e9   : > { %10957 = vmatpush1.bf16.msra.mxu1 %v16569_v26  ;;  %v15556_v26 = vcombine.high %v807_v15, %v811_v18  ;;  %v15555_v46 = vcombine.low %v807_v15, %v811_v18  ;;  %v843_v13 = vld [vmem:[%s18216_s13 + $0x10f0] sm:$0xff] }
 0x3ea   : > { %10958 = vmatprep.subr.bf16.mxu1 %v16578_v36  ;;  %v308_v36 = vld [vmem:[%s18216_s13 + $0x38] sm:$0xff] }
 0x3eb   : > { %11154 = vmatpush1.bf16.msra.mxu0 %v15515_v27  ;;  %v304_v27 = vld [vmem:[%s18216_s13 + $0x18] sm:$0xff] }
 0x3ec   : > { %11155 = vmatprep.subr.bf16.mxu0 %v15524_v5  ;;  %v815_v5 = vld [vmem:[%s18216_s13 + $0x1010] sm:$0xff]  ;;  %v15054_v35 = vcombine.high %v304_v27, %v308_v36  ;;  %v15053_v31 = vcombine.low %v304_v27, %v308_v36 }
 0x3ed   : > { %10959 = vmatpush1.bf16.msra.mxu1 %v16577_v63  ;;  %v15564_v63 = vcombine.high %v815_v5, %v819_v33  ;;  %v15563_v51 = vcombine.low %v815_v5, %v819_v33  ;;  %v851_v27 = vld [vmem:[%s18216_s13 + $0x1130] sm:$0xff] }
 0x3ee   : > { %10969 = vmatprep.subr.bf16.mxu1 %v16586_v44  ;;  %v316_v44 = vld [vmem:[%s18216_s13 + $0x78] sm:$0xff] }
 0x3ef   : > { %11156 = vmatpush1.bf16.msra.mxu0 %v15523_v40  ;;  %v312_v40 = vld [vmem:[%s18216_s13 + $0x58] sm:$0xff] }
 0x3f0   : > { %11157 = vmatprep.subr.bf16.mxu0 %v15532_v45  ;;  %10961 = vmatmul.mubr.bf16.vlgmr.msra.gmra.mrb[4].mxu1 %v19062_v57  ;;  %v823_v45 = vld [vmem:[%s18216_s13 + $0x1050] sm:$0xff]  ;;  %v15062_v54 = vcombine.high %v312_v40, %v316_v44  ;;  %v15061_v1 = vcombine.low %v312_v40, %v316_v44 }
 0x3f1   : > { %10970 = vmatpush1.bf16.msra.mxu1 %v16585_v56  ;;  %11001 = vmatprep.mubr.bf16.mxu1 %v18023_v17  ;;  %v15572_v56 = vcombine.high %v823_v45, %v827_v12  ;;  %v15571_v3 = vcombine.low %v823_v45, %v827_v12 }
 0x3f2   : > { %10971 = vmatprep.subr.bf16.mxu1 %v16594_v59  ;;  %v324_v59 = vld [vmem:[%s18216_s13 + $0xb8] sm:$0xff] }
 0x3f3   : > { %11158 = vmatpush1.bf16.msra.mxu0 %v15531_v20  ;;  %v320_v20 = vld [vmem:[%s18216_s13 + $0x98] sm:$0xff] }
 0x3f4   : > { %11159 = vmatprep.subr.bf16.mxu0 %v15540_v60  ;;  %v831_v60 = vld [vmem:[%s18216_s13 + $0x1090] sm:$0xff]  ;;  %v15070_v53 = vcombine.high %v320_v20, %v324_v59  ;;  %v15069_v14 = vcombine.low %v320_v20, %v324_v59 }
 0x3f5   : > { %10972 = vmatpush1.bf16.msra.mxu1 %v16593_v4  ;;  %v15580_v4 = vcombine.high %v831_v60, %v835_v62  ;;  %v15579_v15 = vcombine.low %v831_v60, %v835_v62 }
 0x3f6   : > { %10973 = vmatprep.subr.bf16.mxu1 %v16602_v8  ;;  %v332_v8 = vld [vmem:[%s18216_s13 + $0xf8] sm:$0xff] }
 0x3f7   : > { %11160 = vmatpush1.bf16.msra.mxu0 %v15539_v6  ;;  %v328_v6 = vld [vmem:[%s18216_s13 + $0xd8] sm:$0xff] }
 0x3f8   : > { %11161 = vmatprep.subr.bf16.mxu0 %v15548_v9  ;;  %v839_v9 = vld [vmem:[%s18216_s13 + $0x10d0] sm:$0xff]  ;;  %v15078_v18 = vcombine.high %v328_v6, %v332_v8  ;;  %v15077_v36 = vcombine.low %v328_v6, %v332_v8 }
 0x3f9   : > { %10974 = vmatpush1.bf16.msra.mxu1 %v16601_v19  ;;  %v15588_v19 = vcombine.high %v839_v9, %v843_v13 }
 0x3fa   : > { %10975 = vmatprep.subr.bf16.mxu1 %v16610_v22  ;;  %v340_v22 = vld [vmem:[%s18216_s13 + $0x138] sm:$0xff] }
 0x3fb   : > { %11162 = vmatpush1.bf16.msra.mxu0 %v15547_v21  ;;  %v336_v21 = vld [vmem:[%s18216_s13 + $0x118] sm:$0xff] }
 0x3fc   : > { %11163 = vmatprep.subr.bf16.mxu0 %v15556_v26  ;;  %v847_v26 = vld [vmem:[%s18216_s13 + $0x1110] sm:$0xff]  ;;  %v15086_v5 = vcombine.high %v336_v21, %v340_v22  ;;  %v15085_v40 = vcombine.low %v336_v21, %v340_v22 }
 0x3fd   : > { %10976 = vmatpush1.bf16.msra.mxu1 %v16609_v41  ;;  %v15596_v33 = vcombine.high %v847_v26, %v851_v27  ;;  %v344_v41 = vld [vmem:[%s18216_s13 + $0x158] sm:$0xff]  ;;  %v15595_v44 = vcombine.low %v847_v26, %v851_v27 }
 0x3fe   : > { %11543 = vmatprep.subr.bf16.mxu1 %v15054_v35  ;;  %v855_v35 = vld [vmem:[%s18216_s13 + $0x1150] sm:$0xff] }
 0x3ff   : > { %11164 = vmatpush1.bf16.msra.mxu0 %v15555_v46  ;;  %v348_v46 = vld [vmem:[%s18216_s13 + $0x178] sm:$0xff] }
 0x400   : > { %11174 = vmatprep.subr.bf16.mxu0 %v15564_v63  ;;  %16616 = vmatmul.mubr.msk.bf16.vlgmr.msra.gmra.mrb[4].mxu1 %vm9940_vm0, %v19088_v52  ;;  %v859_v63 = vld [vmem:[%s18216_s13 + $0x1170] sm:$0xff]  ;;  %v15094_v45 = vcombine.high %v344_v41, %v348_v46  ;;  %v15093_v20 = vcombine.low %v344_v41, %v348_v46 }
 0x401   : > { %11544 = vmatpush1.bf16.msra.mxu1 %v15053_v31  ;;  %11575 = vmatprep.mubr.bf16.mxu1 %v18281_v11  ;;  %v15587_v11 = vcombine.low %v839_v9, %v843_v13  ;;  %v15604_v12 = vcombine.high %v855_v35, %v859_v63  ;;  %v352_v31 = vld [vmem:[%s18216_s13 + $0x198] sm:$0xff]  ;;  %v15603_v59 = vcombine.low %v855_v35, %v859_v63 }
 0x402   : > { %11166 = vmatmul.mubr.bf16.vlgmr.msra.gmra.mrb[4].mxu0 %v18429_v55  ;;  %11545 = vmatprep.subr.bf16.mxu1 %v15062_v54  ;;  %v863_v54 = vld [vmem:[%s18216_s13 + $0x1190] sm:$0xff] }
 0x403   : > { %11175 = vmatpush1.bf16.msra.mxu0 %v15563_v51  ;;  %11206 = vmatprep.mubr.bf16.mxu0 %v18434_v61  ;;  %v356_v51 = vld [vmem:[%s18216_s13 + $0x1b8] sm:$0xff] }
 0x404   : > { %11176 = vmatprep.subr.bf16.mxu0 %v15572_v56  ;;  %v867_v56 = vld [vmem:[%s18216_s13 + $0x11b0] sm:$0xff]  ;;  %v15102_v60 = vcombine.high %v352_v31, %v356_v51  ;;  %v15101_v6 = vcombine.low %v352_v31, %v356_v51 }
 0x405   : > { %11546 = vmatpush1.bf16.msra.mxu1 %v15061_v1  ;;  %v15612_v62 = vcombine.high %v863_v54, %v867_v56  ;;  %v360_v1 = vld [vmem:[%s18216_s13 + $0x1d8] sm:$0xff]  ;;  %v15611_v8 = vcombine.low %v863_v54, %v867_v56 }
 0x406   : > { %11547 = vmatprep.subr.bf16.mxu1 %v15070_v53  ;;  %v871_v53 = vld [vmem:[%s18216_s13 + $0x11d0] sm:$0xff] }
 0x407   : > { %11177 = vmatpush1.bf16.msra.mxu0 %v15571_v3  ;;  %v364_v3 = vld [vmem:[%s18216_s13 + $0x1f8] sm:$0xff] }
 0x408   : > { %11178 = vmatprep.subr.bf16.mxu0 %v15580_v4  ;;  %v875_v4 = vld [vmem:[%s18216_s13 + $0x11f0] sm:$0xff]  ;;  %v15110_v9 = vcombine.high %v360_v1, %v364_v3  ;;  %v15109_v21 = vcombine.low %v360_v1, %v364_v3 }
 0x409   : > { %11548 = vmatpush1.bf16.msra.mxu1 %v15069_v14  ;;  %v15620_v13 = vcombine.high %v871_v53, %v875_v4  ;;  %v368_v14 = vld [vmem:[%s18216_s13 + $0x218] sm:$0xff]  ;;  %v15619_v22 = vcombine.low %v871_v53, %v875_v4 }
 0x40a   : > { %11549 = vmatprep.subr.bf16.mxu1 %v15078_v18  ;;  %v879_v18 = vld [vmem:[%s18216_s13 + $0x1210] sm:$0xff] }
 0x40b   : > { %11179 = vmatpush1.bf16.msra.mxu0 %v15579_v15  ;;  %v372_v15 = vld [vmem:[%s18216_s13 + $0x238] sm:$0xff] }
 0x40c   : > { %11180 = vmatprep.subr.bf16.mxu0 %v15588_v19  ;;  %v883_v19 = vld [vmem:[%s18216_s13 + $0x1230] sm:$0xff]  ;;  %v15118_v26 = vcombine.high %v368_v14, %v372_v15  ;;  %v15117_v41 = vcombine.low %v368_v14, %v372_v15 }
 0x40d   : > { %11550 = vmatpush1.bf16.msra.mxu1 %v15077_v36  ;;  %v15628_v27 = vcombine.high %v879_v18, %v883_v19  ;;  %v376_v36 = vld [vmem:[%s18216_s13 + $0x258] sm:$0xff]  ;;  %v15627_v46 = vcombine.low %v879_v18, %v883_v19 }
 0x40e   : > { %11551 = vmatprep.subr.bf16.mxu1 %v15086_v5  ;;  %v887_v5 = vld [vmem:[%s18216_s13 + $0x1250] sm:$0xff] }
 0x40f   : > { %11181 = vmatpush1.bf16.msra.mxu0 %v15587_v11  ;;  %v380_v11 = vld [vmem:[%s18216_s13 + $0x278] sm:$0xff] }
 0x410   : > { %11182 = vmatprep.subr.bf16.mxu0 %v15596_v33  ;;  %v891_v33 = vld [vmem:[%s18216_s13 + $0x1270] sm:$0xff]  ;;  %v15126_v35 = vcombine.high %v376_v36, %v380_v11  ;;  %v15125_v31 = vcombine.low %v376_v36, %v380_v11 }
 0x411   : > { %11552 = vmatpush1.bf16.msra.mxu1 %v15085_v40  ;;  %v15636_v63 = vcombine.high %v887_v5, %v891_v33  ;;  %v384_v40 = vld [vmem:[%s18216_s13 + $0x298] sm:$0xff]  ;;  %v15635_v51 = vcombine.low %v887_v5, %v891_v33 }
 0x412   : > { %11553 = vmatprep.subr.bf16.mxu1 %v15094_v45  ;;  %v895_v45 = vld [vmem:[%s18216_s13 + $0x1290] sm:$0xff] }
 0x413   : > { %11183 = vmatpush1.bf16.msra.mxu0 %v15595_v44  ;;  %v388_v44 = vld [vmem:[%s18216_s13 + $0x2b8] sm:$0xff] }
 0x414   : > { %11184 = vmatprep.subr.bf16.mxu0 %v15604_v12  ;;  %v899_v12 = vld [vmem:[%s18216_s13 + $0x12b0] sm:$0xff]  ;;  %v15134_v54 = vcombine.high %v384_v40, %v388_v44  ;;  %v15133_v1 = vcombine.low %v384_v40, %v388_v44 }
 0x415   : > { %11554 = vmatpush1.bf16.msra.mxu1 %v15093_v20  ;;  %v15644_v56 = vcombine.high %v895_v45, %v899_v12  ;;  %v392_v20 = vld [vmem:[%s18216_s13 + $0x2d8] sm:$0xff]  ;;  %v15643_v3 = vcombine.low %v895_v45, %v899_v12 }
 0x416   : > { %11555 = vmatprep.subr.bf16.mxu1 %v15102_v60  ;;  %v903_v60 = vld [vmem:[%s18216_s13 + $0x12d0] sm:$0xff] }
 0x417   : > { %11185 = vmatpush1.bf16.msra.mxu0 %v15603_v59  ;;  %v396_v59 = vld [vmem:[%s18216_s13 + $0x2f8] sm:$0xff] }
 0x418   : > { %11186 = vmatprep.subr.bf16.mxu0 %v15612_v62  ;;  %v907_v62 = vld [vmem:[%s18216_s13 + $0x12f0] sm:$0xff]  ;;  %v15142_v53 = vcombine.high %v392_v20, %v396_v59  ;;  %v15141_v14 = vcombine.low %v392_v20, %v396_v59 }
 0x419   : > { %11556 = vmatpush1.bf16.msra.mxu1 %v15101_v6  ;;  %v15652_v4 = vcombine.high %v903_v60, %v907_v62  ;;  %v400_v6 = vld [vmem:[%s18216_s13 + $0x318] sm:$0xff]  ;;  %v15651_v15 = vcombine.low %v903_v60, %v907_v62 }
 0x41a   : > { %11557 = vmatprep.subr.bf16.mxu1 %v15110_v9  ;;  %v911_v9 = vld [vmem:[%s18216_s13 + $0x1310] sm:$0xff] }
 0x41b   : > { %11187 = vmatpush1.bf16.msra.mxu0 %v15611_v8  ;;  %v404_v8 = vld [vmem:[%s18216_s13 + $0x338] sm:$0xff] }
 0x41c   : > { %11188 = vmatprep.subr.bf16.mxu0 %v15620_v13  ;;  %v915_v13 = vld [vmem:[%s18216_s13 + $0x1330] sm:$0xff]  ;;  %v15150_v18 = vcombine.high %v400_v6, %v404_v8  ;;  %v15149_v36 = vcombine.low %v400_v6, %v404_v8 }
 0x41d   : > { %11558 = vmatpush1.bf16.msra.mxu1 %v15109_v21  ;;  %v15660_v19 = vcombine.high %v911_v9, %v915_v13  ;;  %v408_v21 = vld [vmem:[%s18216_s13 + $0x358] sm:$0xff]  ;;  %v15659_v11 = vcombine.low %v911_v9, %v915_v13 }
 0x41e   : > { %11559 = vmatprep.subr.bf16.mxu1 %v15118_v26  ;;  %v919_v26 = vld [vmem:[%s18216_s13 + $0x1350] sm:$0xff] }
 0x41f   : > { %11189 = vmatpush1.bf16.msra.mxu0 %v15619_v22  ;;  %v412_v22 = vld [vmem:[%s18216_s13 + $0x378] sm:$0xff] }
 0x420   : > { %11190 = vmatprep.subr.bf16.mxu0 %v15628_v27  ;;  %v923_v27 = vld [vmem:[%s18216_s13 + $0x1370] sm:$0xff]  ;;  %v15158_v5 = vcombine.high %v408_v21, %v412_v22  ;;  %v15157_v40 = vcombine.low %v408_v21, %v412_v22 }
 0x421   : > { %11560 = vmatpush1.bf16.msra.mxu1 %v15117_v41  ;;  %v15668_v33 = vcombine.high %v919_v26, %v923_v27  ;;  %v416_v41 = vld [vmem:[%s18216_s13 + $0x398] sm:$0xff]  ;;  %v15667_v44 = vcombine.low %v919_v26, %v923_v27 }
 0x422   : > { %11561 = vmatprep.subr.bf16.mxu1 %v15126_v35  ;;  %v927_v35 = vld [vmem:[%s18216_s13 + $0x1390] sm:$0xff] }
 0x423   : > { %11191 = vmatpush1.bf16.msra.mxu0 %v15627_v46  ;;  %v420_v46 = vld [vmem:[%s18216_s13 + $0x3b8] sm:$0xff] }
 0x424   : > { %11192 = vmatprep.subr.bf16.mxu0 %v15636_v63  ;;  %v931_v63 = vld [vmem:[%s18216_s13 + $0x13b0] sm:$0xff]  ;;  %v15166_v45 = vcombine.high %v416_v41, %v420_v46  ;;  %v15165_v20 = vcombine.low %v416_v41, %v420_v46 }
 0x425   : > { %11562 = vmatpush1.bf16.msra.mxu1 %v15125_v31  ;;  %v15676_v12 = vcombine.high %v927_v35, %v931_v63  ;;  %v424_v31 = vld [vmem:[%s18216_s13 + $0x3d8] sm:$0xff]  ;;  %v15675_v59 = vcombine.low %v927_v35, %v931_v63 }
 0x426   : > { %11563 = vmatprep.subr.bf16.mxu1 %v15134_v54  ;;  %v935_v54 = vld [vmem:[%s18216_s13 + $0x13d0] sm:$0xff] }
 0x427   : > { %11193 = vmatpush1.bf16.msra.mxu0 %v15635_v51  ;;  %v428_v51 = vld [vmem:[%s18216_s13 + $0x3f8] sm:$0xff] }
 0x428   : > { %11194 = vmatprep.subr.bf16.mxu0 %v15644_v56  ;;  %v939_v56 = vld [vmem:[%s18216_s13 + $0x13f0] sm:$0xff]  ;;  %v15174_v60 = vcombine.high %v424_v31, %v428_v51  ;;  %v15173_v6 = vcombine.low %v424_v31, %v428_v51 }
 0x429   : > { %11564 = vmatpush1.bf16.msra.mxu1 %v15133_v1  ;;  %v15684_v62 = vcombine.high %v935_v54, %v939_v56  ;;  %v432_v1 = vld [vmem:[%s18216_s13 + $0x418] sm:$0xff]  ;;  %v15683_v8 = vcombine.low %v935_v54, %v939_v56 }
 0x42a   : > { %11565 = vmatprep.subr.bf16.mxu1 %v15142_v53  ;;  %v943_v53 = vld [vmem:[%s18216_s13 + $0x1410] sm:$0xff]  ;;  %v464_v56 = vld [vmem:[%s18216_s13 + $0x518] sm:$0xff] }
 0x42b   : > { %11195 = vmatpush1.bf16.msra.mxu0 %v15643_v3  ;;  %v436_v3 = vld [vmem:[%s18216_s13 + $0x438] sm:$0xff] }
 0x42c   : > { %11196 = vmatprep.subr.bf16.mxu0 %v15652_v4  ;;  %v947_v4 = vld [vmem:[%s18216_s13 + $0x1430] sm:$0xff]  ;;  %v15182_v9 = vcombine.high %v432_v1, %v436_v3  ;;  %v15181_v21 = vcombine.low %v432_v1, %v436_v3 }
 0x42d   : > { %11566 = vmatpush1.bf16.msra.mxu1 %v15141_v14  ;;  %v15692_v13 = vcombine.high %v943_v53, %v947_v4  ;;  %v440_v14 = vld [vmem:[%s18216_s13 + $0x458] sm:$0xff]  ;;  %v15691_v22 = vcombine.low %v943_v53, %v947_v4 }
 0x42e   : > { %11567 = vmatprep.subr.bf16.mxu1 %v15150_v18  ;;  %v951_v18 = vld [vmem:[%s18216_s13 + $0x1450] sm:$0xff]  ;;  %v472_v53 = vld [vmem:[%s18216_s13 + $0x558] sm:$0xff] }
 0x42f   : > { %11197 = vmatpush1.bf16.msra.mxu0 %v15651_v15  ;;  %v444_v15 = vld [vmem:[%s18216_s13 + $0x478] sm:$0xff] }
 0x430   : > { %11198 = vmatprep.subr.bf16.mxu0 %v15660_v19  ;;  %v955_v19 = vld [vmem:[%s18216_s13 + $0x1470] sm:$0xff]  ;;  %v15190_v26 = vcombine.high %v440_v14, %v444_v15  ;;  %v15189_v41 = vcombine.low %v440_v14, %v444_v15  ;;  %v476_v4 = vld [vmem:[%s18216_s13 + $0x578] sm:$0xff] }
 0x431   : > { %11568 = vmatpush1.bf16.msra.mxu1 %v15149_v36  ;;  %v15700_v27 = vcombine.high %v951_v18, %v955_v19  ;;  %v448_v36 = vld [vmem:[%s18216_s13 + $0x498] sm:$0xff]  ;;  %v15699_v46 = vcombine.low %v951_v18, %v955_v19  ;;  %v15222_v14 = vcombine.high %v472_v53, %v476_v4 }
 0x432   : > { %11569 = vmatprep.subr.bf16.mxu1 %v15158_v5  ;;  %v959_v5 = vld [vmem:[%s18216_s13 + $0x1490] sm:$0xff]  ;;  %v480_v18 = vld [vmem:[%s18216_s13 + $0x598] sm:$0xff] }
 0x433   : > { %11199 = vmatpush1.bf16.msra.mxu0 %v15659_v11  ;;  %v452_v11 = vld [vmem:[%s18216_s13 + $0x4b8] sm:$0xff] }
 0x434   : > { %11200 = vmatprep.subr.bf16.mxu0 %v15668_v33  ;;  %v963_v33 = vld [vmem:[%s18216_s13 + $0x14b0] sm:$0xff]  ;;  %v15198_v35 = vcombine.high %v448_v36, %v452_v11  ;;  %v484_v19 = vld [vmem:[%s18216_s13 + $0x5b8] sm:$0xff] }
 0x435   : > { %11570 = vmatpush1.bf16.msra.mxu1 %v15157_v40  ;;  %v15708_v63 = vcombine.high %v959_v5, %v963_v33  ;;  %v456_v40 = vld [vmem:[%s18216_s13 + $0x4d8] sm:$0xff]  ;;  %v15707_v31 = vcombine.low %v959_v5, %v963_v33 }
 0x436   : > { %11571 = vmatprep.subr.bf16.mxu1 %v15166_v45  ;;  %v971_v45 = vld [vmem:[%s18216_s13 + $0x14f0] sm:$0xff]  ;;  %v488_v5 = vld [vmem:[%s18216_s13 + $0x5d8] sm:$0xff] }
 0x437   : > { %11201 = vmatpush1.bf16.msra.mxu0 %v15667_v44  ;;  %v460_v44 = vld [vmem:[%s18216_s13 + $0x4f8] sm:$0xff] }
 0x438   : > { %11202 = vmatprep.subr.bf16.mxu0 %v15676_v12  ;;  %v15197_v12 = vcombine.low %v448_v36, %v452_v11  ;;  %v15206_v51 = vcombine.high %v456_v40, %v460_v44  ;;  %v15230_v36 = vcombine.high %v480_v18, %v484_v19  ;;  %v492_v33 = vld [vmem:[%s18216_s13 + $0x5f8] sm:$0xff] }
 0x439   : > { %11572 = vmatpush1.bf16.msra.mxu1 %v15165_v20  ;;  %v468_v20 = vld [vmem:[%s18216_s13 + $0x538] sm:$0xff] }
 0x43a   : > { %11573 = vmatprep.subr.bf16.mxu1 %v15174_v60  ;;  %v979_v60 = vld [vmem:[%s18216_s13 + $0x1530] sm:$0xff]  ;;  %v15214_v1 = vcombine.high %v464_v56, %v468_v20 }
 0x43b   : > { %11203 = vmatpush1.bf16.msra.mxu0 %v15675_v59  ;;  %v975_v59 = vld [vmem:[%s18216_s13 + $0x1510] sm:$0xff] }
 0x43c   : > { %11204 = vmatprep.subr.bf16.mxu0 %v15684_v62  ;;  %v15205_v62 = vcombine.low %v456_v40, %v460_v44  ;;  %v15724_v3 = vcombine.high %v975_v59, %v979_v60  ;;  %v15238_v40 = vcombine.high %v488_v5, %v492_v33 }
 0x43d   : > { %11574 = vmatpush1.bf16.msra.mxu1 %v15173_v6  ;;  %v983_v6 = vld [vmem:[%s18216_s13 + $0x1550] sm:$0xff] }
 0x43e   : > { %11584 = vmatprep.subr.bf16.mxu1 %v15182_v9  ;;  %v15213_v9 = vcombine.low %v464_v56, %v468_v20 }
 0x43f   : > { %11205 = vmatpush1.bf16.msra.mxu0 %v15683_v8  ;;  %v987_v8 = vld [vmem:[%s18216_s13 + $0x1570] sm:$0xff] }
 0x440   : > { %11215 = vmatprep.subr.bf16.mxu0 %v15692_v13  ;;  %11576 = vmatmul.mubr.bf16.vlgmr.msra.gmra.mrb[8].mxu1 %v18328_v28  ;;  %v967_v28 = vld [vmem:[%s18216_s13 + $0x14d0] sm:$0xff]  ;;  %v15723_v13 = vcombine.low %v975_v59, %v979_v60  ;;  %v15732_v15 = vcombine.high %v983_v6, %v987_v8  ;;  %v504_v59 = vld [vmem:[%s18216_s13 + $0x658] sm:$0xff] }
 0x441   : > { %11585 = vmatpush1.bf16.msra.mxu1 %v15181_v21  ;;  %11616 = vmatprep.mubr.bf16.mxu1 %v18340_v37  ;;  %v15716_v54 = vcombine.high %v967_v28, %v971_v45  ;;  %v15715_v37 = vcombine.low %v967_v28, %v971_v45  ;;  %v991_v21 = vld [vmem:[%s18216_s13 + $0x1590] sm:$0xff]  ;;  %v496_v28 = vld [vmem:[%s18216_s13 + $0x618] sm:$0xff] }
 0x442   : > { %11207 = vmatmul.mubr.bf16.vlgmr.msra.gmra.mrb[4].mxu0 %v18504_v23  ;;  %11586 = vmatprep.subr.bf16.mxu1 %v15190_v26  ;;  %v15221_v26 = vcombine.low %v472_v53, %v476_v4  ;;  %v500_v45 = vld [vmem:[%s18216_s13 + $0x638] sm:$0xff] }
 0x443   : > { %11216 = vmatpush1.bf16.msra.mxu0 %v15691_v22  ;;  %11247 = vmatprep.mubr.bf16.mxu0 %v18510_v30  ;;  %v995_v22 = vld [vmem:[%s18216_s13 + $0x15b0] sm:$0xff]  ;;  %v15246_v56 = vcombine.high %v496_v28, %v500_v45  ;;  %v508_v60 = vld [vmem:[%s18216_s13 + $0x678] sm:$0xff] }
 0x444   : > { %11217 = vmatprep.subr.bf16.mxu0 %v15700_v27  ;;  %v15731_v27 = vcombine.low %v983_v6, %v987_v8  ;;  %v15740_v11 = vcombine.high %v991_v21, %v995_v22  ;;  %v15254_v53 = vcombine.high %v504_v59, %v508_v60  ;;  %v512_v6 = vld [vmem:[%s18216_s13 + $0x698] sm:$0xff] }
 0x445   : > { %11587 = vmatpush1.bf16.msra.mxu1 %v15189_v41  ;;  %v999_v41 = vld [vmem:[%s18216_s13 + $0x15d0] sm:$0xff]  ;;  %v516_v8 = vld [vmem:[%s18216_s13 + $0x6b8] sm:$0xff] }
 0x446   : > { %11588 = vmatprep.subr.bf16.mxu1 %v15198_v35  ;;  %v15229_v35 = vcombine.low %v480_v18, %v484_v19  ;;  %v15262_v18 = vcombine.high %v512_v6, %v516_v8 }
 0x447   : > { %11218 = vmatpush1.bf16.msra.mxu0 %v15699_v46  ;;  %v1003_v46 = vld [vmem:[%s18216_s13 + $0x15f0] sm:$0xff] }
 0x448   : > { %11219 = vmatprep.subr.bf16.mxu0 %v15708_v63  ;;  %v15739_v63 = vcombine.low %v991_v21, %v995_v22  ;;  %v15748_v44 = vcombine.high %v999_v41, %v1003_v46  ;;  %v520_v21 = vld [vmem:[%s18216_s13 + $0x6d8] sm:$0xff] }
 0x449   : > { %11589 = vmatpush1.bf16.msra.mxu1 %v15197_v12  ;;  %v1007_v12 = vld [vmem:[%s18216_s13 + $0x1610] sm:$0xff]  ;;  %v524_v22 = vld [vmem:[%s18216_s13 + $0x6f8] sm:$0xff] }
 0x44a   : > { %11590 = vmatprep.subr.bf16.mxu1 %v15206_v51  ;;  %v15237_v51 = vcombine.low %v488_v5, %v492_v33  ;;  %v15270_v5 = vcombine.high %v520_v21, %v524_v22 }
 0x44b   : > { %11220 = vmatpush1.bf16.msra.mxu0 %v15707_v31  ;;  %v1011_v31 = vld [vmem:[%s18216_s13 + $0x1630] sm:$0xff] }
 0x44c   : > { %11221 = vmatprep.subr.bf16.mxu0 %v15716_v54  ;;  %v15747_v54 = vcombine.low %v999_v41, %v1003_v46  ;;  %v15756_v20 = vcombine.high %v1007_v12, %v1011_v31  ;;  %v528_v41 = vld [vmem:[%s18216_s13 + $0x718] sm:$0xff] }
 0x44d   : > { %11591 = vmatpush1.bf16.msra.mxu1 %v15205_v62  ;;  %v1015_v62 = vld [vmem:[%s18216_s13 + $0x1650] sm:$0xff]  ;;  %v532_v46 = vld [vmem:[%s18216_s13 + $0x738] sm:$0xff] }
 0x44e   : > { %11592 = vmatprep.subr.bf16.mxu1 %v15214_v1  ;;  %v15245_v1 = vcombine.low %v496_v28, %v500_v45  ;;  %v15278_v28 = vcombine.high %v528_v41, %v532_v46 }
 0x44f   : > { %11222 = vmatpush1.bf16.msra.mxu0 %v15715_v37  ;;  %v1019_v37 = vld [vmem:[%s18216_s13 + $0x1670] sm:$0xff] }
 0x450   : > { %11223 = vmatprep.subr.bf16.mxu0 %v15724_v3  ;;  %v15755_v3 = vcombine.low %v1007_v12, %v1011_v31  ;;  %v15764_v4 = vcombine.high %v1015_v62, %v1019_v37  ;;  %v536_v12 = vld [vmem:[%s18216_s13 + $0x758] sm:$0xff] }
 0x451   : > { %11593 = vmatpush1.bf16.msra.mxu1 %v15213_v9  ;;  %v1023_v9 = vld [vmem:[%s18216_s13 + $0x1690] sm:$0xff]  ;;  %v540_v31 = vld [vmem:[%s18216_s13 + $0x778] sm:$0xff] }
 0x452   : > { %11594 = vmatprep.subr.bf16.mxu1 %v15222_v14  ;;  %v15253_v14 = vcombine.low %v504_v59, %v508_v60  ;;  %v15286_v59 = vcombine.high %v536_v12, %v540_v31 }
 0x453   : > { %11224 = vmatpush1.bf16.msra.mxu0 %v15723_v13  ;;  %v1027_v13 = vld [vmem:[%s18216_s13 + $0x16b0] sm:$0xff] }
 0x454   : > { %11225 = vmatprep.subr.bf16.mxu0 %v15732_v15  ;;  %v15763_v15 = vcombine.low %v1015_v62, %v1019_v37  ;;  %v15772_v19 = vcombine.high %v1023_v9, %v1027_v13  ;;  %v544_v62 = vld [vmem:[%s18216_s13 + $0x798] sm:$0xff] }
 0x455   : > { %11595 = vmatpush1.bf16.msra.mxu1 %v15221_v26  ;;  %v1031_v26 = vld [vmem:[%s18216_s13 + $0x16d0] sm:$0xff]  ;;  %v548_v37 = vld [vmem:[%s18216_s13 + $0x7b8] sm:$0xff] }
 0x456   : > { %11596 = vmatprep.subr.bf16.mxu1 %v15230_v36  ;;  %v15261_v36 = vcombine.low %v512_v6, %v516_v8  ;;  %v15294_v6 = vcombine.high %v544_v62, %v548_v37 }
 0x457   : > { %11226 = vmatpush1.bf16.msra.mxu0 %v15731_v27  ;;  %v1035_v27 = vld [vmem:[%s18216_s13 + $0x16f0] sm:$0xff] }
 0x458   : > { %11227 = vmatprep.subr.bf16.mxu0 %v15740_v11  ;;  %v15771_v11 = vcombine.low %v1023_v9, %v1027_v13  ;;  %v15780_v33 = vcombine.high %v1031_v26, %v1035_v27  ;;  %v552_v9 = vld [vmem:[%s18216_s13 + $0x7d8] sm:$0xff] }
 0x459   : > { %11597 = vmatpush1.bf16.msra.mxu1 %v15229_v35  ;;  %v1039_v35 = vld [vmem:[%s18216_s13 + $0x1710] sm:$0xff]  ;;  %v556_v13 = vld [vmem:[%s18216_s13 + $0x7f8] sm:$0xff] }
 0x45a   : > { %11598 = vmatprep.subr.bf16.mxu1 %v15238_v40  ;;  %v15269_v40 = vcombine.low %v520_v21, %v524_v22  ;;  %v15302_v21 = vcombine.high %v552_v9, %v556_v13 }
 0x45b   : > { %11228 = vmatpush1.bf16.msra.mxu0 %v15739_v63  ;;  %v1043_v63 = vld [vmem:[%s18216_s13 + $0x1730] sm:$0xff] }
 0x45c   : > { %11229 = vmatprep.subr.bf16.mxu0 %v15748_v44  ;;  %v15779_v44 = vcombine.low %v1031_v26, %v1035_v27  ;;  %v15788_v45 = vcombine.high %v1039_v35, %v1043_v63  ;;  %v560_v26 = vld [vmem:[%s18216_s13 + $0x818] sm:$0xff] }
 0x45d   : > { %11599 = vmatpush1.bf16.msra.mxu1 %v15237_v51  ;;  %v1047_v51 = vld [vmem:[%s18216_s13 + $0x1750] sm:$0xff]  ;;  %v564_v27 = vld [vmem:[%s18216_s13 + $0x838] sm:$0xff] }
 0x45e   : > { %11600 = vmatprep.subr.bf16.mxu1 %v15246_v56  ;;  %v15277_v56 = vcombine.low %v528_v41, %v532_v46  ;;  %v15310_v41 = vcombine.high %v560_v26, %v564_v27 }
 0x45f   : > { %11230 = vmatpush1.bf16.msra.mxu0 %v15747_v54  ;;  %v1051_v54 = vld [vmem:[%s18216_s13 + $0x1770] sm:$0xff] }
 0x460   : > { %11231 = vmatprep.subr.bf16.mxu0 %v15756_v20  ;;  %v15787_v20 = vcombine.low %v1039_v35, %v1043_v63  ;;  %v15796_v60 = vcombine.high %v1047_v51, %v1051_v54  ;;  %v568_v35 = vld [vmem:[%s18216_s13 + $0x858] sm:$0xff] }
 0x461   : > { %11601 = vmatpush1.bf16.msra.mxu1 %v15245_v1  ;;  %v1055_v1 = vld [vmem:[%s18216_s13 + $0x1790] sm:$0xff]  ;;  %v572_v63 = vld [vmem:[%s18216_s13 + $0x878] sm:$0xff] }
 0x462   : > { %11602 = vmatprep.subr.bf16.mxu1 %v15254_v53  ;;  %v15285_v53 = vcombine.low %v536_v12, %v540_v31  ;;  %v15318_v12 = vcombine.high %v568_v35, %v572_v63 }
 0x463   : > { %11232 = vmatpush1.bf16.msra.mxu0 %v15755_v3  ;;  %v1059_v3 = vld [vmem:[%s18216_s13 + $0x17b0] sm:$0xff] }
 0x464   : > { %11233 = vmatprep.subr.bf16.mxu0 %v15764_v4  ;;  %v15795_v4 = vcombine.low %v1047_v51, %v1051_v54  ;;  %v15804_v8 = vcombine.high %v1055_v1, %v1059_v3  ;;  %v576_v51 = vld [vmem:[%s18216_s13 + $0x898] sm:$0xff] }
 0x465   : > { %11603 = vmatpush1.bf16.msra.mxu1 %v15253_v14  ;;  %v1063_v14 = vld [vmem:[%s18216_s13 + $0x17d0] sm:$0xff]  ;;  %v580_v54 = vld [vmem:[%s18216_s13 + $0x8b8] sm:$0xff] }
 0x466   : > { %11604 = vmatprep.subr.bf16.mxu1 %v15262_v18  ;;  %v15293_v18 = vcombine.low %v544_v62, %v548_v37  ;;  %v15326_v62 = vcombine.high %v576_v51, %v580_v54 }
 0x467   : > { %11234 = vmatpush1.bf16.msra.mxu0 %v15763_v15  ;;  %v1067_v15 = vld [vmem:[%s18216_s13 + $0x17f0] sm:$0xff] }
 0x468   : > { %11235 = vmatprep.subr.bf16.mxu0 %v15772_v19  ;;  %v15803_v19 = vcombine.low %v1055_v1, %v1059_v3  ;;  %v15812_v22 = vcombine.high %v1063_v14, %v1067_v15  ;;  %v584_v1 = vld [vmem:[%s18216_s13 + $0x8d8] sm:$0xff] }
 0x469   : > { %11605 = vmatpush1.bf16.msra.mxu1 %v15261_v36  ;;  %v1071_v36 = vld [vmem:[%s18216_s13 + $0x1810] sm:$0xff]  ;;  %v588_v3 = vld [vmem:[%s18216_s13 + $0x8f8] sm:$0xff] }
 0x46a   : > { %11606 = vmatprep.subr.bf16.mxu1 %v15270_v5  ;;  %v15301_v5 = vcombine.low %v552_v9, %v556_v13  ;;  %v592_v13 = vld [vmem:[%s18216_s13 + $0x918] sm:$0xff] }
 0x46b   : > { %11236 = vmatpush1.bf16.msra.mxu0 %v15771_v11  ;;  %v1075_v11 = vld [vmem:[%s18216_s13 + $0x1830] sm:$0xff] }
 0x46c   : > { %11237 = vmatprep.subr.bf16.mxu0 %v15780_v33  ;;  %v15811_v33 = vcombine.low %v1063_v14, %v1067_v15  ;;  %v15820_v46 = vcombine.high %v1071_v36, %v1075_v11  ;;  %v596_v14 = vld [vmem:[%s18216_s13 + $0x938] sm:$0xff]  ;;  %v1103_v15 = vld [vmem:[%s18216_s13 + $0x1910] sm:$0xff] }
 0x46d   : > { %11607 = vmatpush1.bf16.msra.mxu1 %v15269_v40  ;;  %v1079_v40 = vld [vmem:[%s18216_s13 + $0x1850] sm:$0xff] }
 0x46e   : > { %11608 = vmatprep.subr.bf16.mxu1 %v15278_v28  ;;  %v15309_v28 = vcombine.low %v560_v26, %v564_v27  ;;  %v600_v26 = vld [vmem:[%s18216_s13 + $0x958] sm:$0xff] }
 0x46f   : > { %11238 = vmatpush1.bf16.msra.mxu0 %v15779_v44  ;;  %v1083_v44 = vld [vmem:[%s18216_s13 + $0x1870] sm:$0xff]  ;;  %v604_v27 = vld [vmem:[%s18216_s13 + $0x978] sm:$0xff] }
 0x470   : > { %11239 = vmatprep.subr.bf16.mxu0 %v15788_v45  ;;  %v15819_v45 = vcombine.low %v1071_v36, %v1075_v11  ;;  %v15828_v31 = vcombine.high %v1079_v40, %v1083_v44  ;;  %v1111_v36 = vld [vmem:[%s18216_s13 + $0x1950] sm:$0xff] }
 0x471   : > { %11609 = vmatpush1.bf16.msra.mxu1 %v15277_v56  ;;  %v1087_v56 = vld [vmem:[%s18216_s13 + $0x1890] sm:$0xff] }
 0x472   : > { %11610 = vmatprep.subr.bf16.mxu1 %v15286_v59  ;;  %v15317_v59 = vcombine.low %v568_v35, %v572_v63  ;;  %v1115_v11 = vld [vmem:[%s18216_s13 + $0x1970] sm:$0xff]  ;;  %v608_v35 = vld [vmem:[%s18216_s13 + $0x998] sm:$0xff] }
 0x473   : > { %11240 = vmatpush1.bf16.msra.mxu0 %v15787_v20  ;;  %v1091_v20 = vld [vmem:[%s18216_s13 + $0x18b0] sm:$0xff]  ;;  %v612_v63 = vld [vmem:[%s18216_s13 + $0x9b8] sm:$0xff] }
 0x474   : > { %11241 = vmatprep.subr.bf16.mxu0 %v15796_v60  ;;  %v15827_v60 = vcombine.low %v1079_v40, %v1083_v44  ;;  %v15836_v37 = vcombine.high %v1087_v56, %v1091_v20  ;;  %v1119_v40 = vld [vmem:[%s18216_s13 + $0x1990] sm:$0xff] }
 0x475   : > { %11611 = vmatpush1.bf16.msra.mxu1 %v15285_v53  ;;  %v1099_v53 = vld [vmem:[%s18216_s13 + $0x18f0] sm:$0xff] }
 0x476   : > { %11612 = vmatprep.subr.bf16.mxu1 %v15294_v6  ;;  %v15835_v6 = vcombine.low %v1087_v56, %v1091_v20  ;;  %v1123_v44 = vld [vmem:[%s18216_s13 + $0x19b0] sm:$0xff] }
 0x477   : > { %11242 = vmatpush1.bf16.msra.mxu0 %v15795_v4  ;;  %v15325_v4 = vcombine.low %v576_v51, %v580_v54  ;;  %v616_v51 = vld [vmem:[%s18216_s13 + $0x9d8] sm:$0xff]  ;;  %v1127_v56 = vld [vmem:[%s18216_s13 + $0x19d0] sm:$0xff] }
 0x478   : > { %11243 = vmatprep.subr.bf16.mxu0 %v15804_v8  ;;  %v15334_v8 = vcombine.high %v584_v1, %v588_v3  ;;  %v620_v54 = vld [vmem:[%s18216_s13 + $0x9f8] sm:$0xff]  ;;  %v1131_v20 = vld [vmem:[%s18216_s13 + $0x19f0] sm:$0xff] }
 0x479   : > { %11613 = vmatpush1.bf16.msra.mxu1 %v15293_v18  ;;  %v1107_v18 = vld [vmem:[%s18216_s13 + $0x1930] sm:$0xff] }
 0x47a   : > { %11614 = vmatprep.subr.bf16.mxu1 %v15302_v21  ;;  %v15342_v21 = vcombine.high %v592_v13, %v596_v14 }
 0x47b   : > { %11244 = vmatpush1.bf16.msra.mxu0 %v15803_v19  ;;  %v15333_v19 = vcombine.low %v584_v1, %v588_v3  ;;  %v624_v1 = vld [vmem:[%s18216_s13 + $0xa18] sm:$0xff] }
 0x47c   : > { %11245 = vmatprep.subr.bf16.mxu0 %v15812_v22  ;;  %v15852_v22 = vcombine.high %v1103_v15, %v1107_v18  ;;  %v628_v3 = vld [vmem:[%s18216_s13 + $0xa38] sm:$0xff] }
 0x47d   : > { %11615 = vmatpush1.bf16.msra.mxu1 %v15301_v5  ;;  %v15341_v5 = vcombine.low %v592_v13, %v596_v14  ;;  %v632_v13 = vld [vmem:[%s18216_s13 + $0xa58] sm:$0xff] }
 0x47e   : > { %11625 = vmatprep.subr.bf16.mxu1 %v15310_v41  ;;  %v15350_v41 = vcombine.high %v600_v26, %v604_v27  ;;  %v636_v14 = vld [vmem:[%s18216_s13 + $0xa78] sm:$0xff] }
 0x47f   : > { %11246 = vmatpush1.bf16.msra.mxu0 %v15811_v33  ;;  %v15851_v33 = vcombine.low %v1103_v15, %v1107_v18  ;;  %v1143_v15 = vld [vmem:[%s18216_s13 + $0x1a50] sm:$0xff] }
 0x480   : > { %11256 = vmatprep.subr.bf16.mxu0 %v15820_v46  ;;  %11617 = vmatmul.mubr.bf16.vlgmr.msra.gmra.mrb[8].mxu1 %v18423_v50  ;;  %v1095_v50 = vld [vmem:[%s18216_s13 + $0x18d0] sm:$0xff]  ;;  %v15860_v46 = vcombine.high %v1111_v36, %v1115_v11 }
 0x481   : > { %11626 = vmatpush1.bf16.msra.mxu1 %v15309_v28  ;;  %11657 = vmatprep.mubr.bf16.mxu1 %v18289_v16  ;;  %v15844_v9 = vcombine.high %v1095_v50, %v1099_v53  ;;  %v15843_v16 = vcombine.low %v1095_v50, %v1099_v53  ;;  %v15349_v28 = vcombine.low %v600_v26, %v604_v27  ;;  %v1135_v50 = vld [vmem:[%s18216_s13 + $0x1a10] sm:$0xff]  ;;  %v640_v26 = vld [vmem:[%s18216_s13 + $0xa98] sm:$0xff] }
 0x482   : > { %11248 = vmatmul.mubr.bf16.vlgmr.msra.gmra.mrb[4].mxu0 %v18587_v0  ;;  %11627 = vmatprep.subr.bf16.mxu1 %v15318_v12  ;;  %v15358_v12 = vcombine.high %v608_v35, %v612_v63  ;;  %v1139_v53 = vld [vmem:[%s18216_s13 + $0x1a30] sm:$0xff]  ;;  %v644_v27 = vld [vmem:[%s18216_s13 + $0xab8] sm:$0xff] }
 0x483   : > { %11257 = vmatpush1.bf16.msra.mxu0 %v15819_v45  ;;  %11288 = vmatprep.mubr.bf16.mxu0 %v18592_v7  ;;  %v15859_v45 = vcombine.low %v1111_v36, %v1115_v11  ;;  %v1147_v18 = vld [vmem:[%s18216_s13 + $0x1a70] sm:$0xff] }
 0x484   : > { %11258 = vmatprep.subr.bf16.mxu0 %v15828_v31  ;;  %v15868_v31 = vcombine.high %v1119_v40, %v1123_v44  ;;  %v1151_v36 = vld [vmem:[%s18216_s13 + $0x1a90] sm:$0xff] }
 0x485   : > { %11628 = vmatpush1.bf16.msra.mxu1 %v15317_v59  ;;  %v15357_v59 = vcombine.low %v608_v35, %v612_v63  ;;  %v1155_v11 = vld [vmem:[%s18216_s13 + $0x1ab0] sm:$0xff]  ;;  %v648_v35 = vld [vmem:[%s18216_s13 + $0xad8] sm:$0xff] }
 0x486   : > { %11629 = vmatprep.subr.bf16.mxu1 %v15326_v62  ;;  %v15366_v62 = vcombine.high %v616_v51, %v620_v54  ;;  %v652_v63 = vld [vmem:[%s18216_s13 + $0xaf8] sm:$0xff] }
 0x487   : > { %11259 = vmatpush1.bf16.msra.mxu0 %v15827_v60  ;;  %v15867_v60 = vcombine.low %v1119_v40, %v1123_v44  ;;  %v1159_v40 = vld [vmem:[%s18216_s13 + $0x1ad0] sm:$0xff] }
 0x488   : > { %11260 = vmatprep.subr.bf16.mxu0 %v15836_v37  ;;  %v15876_v37 = vcombine.high %v1127_v56, %v1131_v20  ;;  %v1163_v44 = vld [vmem:[%s18216_s13 + $0x1af0] sm:$0xff] }
 0x489   : > { %11630 = vmatpush1.bf16.msra.mxu1 %v15325_v4  ;;  %v15365_v4 = vcombine.low %v616_v51, %v620_v54  ;;  %v656_v51 = vld [vmem:[%s18216_s13 + $0xb18] sm:$0xff] }
 0x48a   : > { %11631 = vmatprep.subr.bf16.mxu1 %v15334_v8  ;;  %v15374_v8 = vcombine.high %v624_v1, %v628_v3  ;;  %v660_v54 = vld [vmem:[%s18216_s13 + $0xb38] sm:$0xff] }
 0x48b   : > { %11261 = vmatpush1.bf16.msra.mxu0 %v15835_v6  ;;  %v15875_v6 = vcombine.low %v1127_v56, %v1131_v20  ;;  %v1167_v56 = vld [vmem:[%s18216_s13 + $0x1b10] sm:$0xff] }
 0x48c   : > { %11262 = vmatprep.subr.bf16.mxu0 %v15844_v9  ;;  %v15884_v9 = vcombine.high %v1135_v50, %v1139_v53  ;;  %v1171_v20 = vld [vmem:[%s18216_s13 + $0x1b30] sm:$0xff] }
 0x48d   : > { %11632 = vmatpush1.bf16.msra.mxu1 %v15333_v19  ;;  %v15373_v19 = vcombine.low %v624_v1, %v628_v3  ;;  %v664_v1 = vld [vmem:[%s18216_s13 + $0xb58] sm:$0xff] }
 0x48e   : > { %11633 = vmatprep.subr.bf16.mxu1 %v15342_v21  ;;  %v15382_v21 = vcombine.high %v632_v13, %v636_v14  ;;  %v668_v3 = vld [vmem:[%s18216_s13 + $0xb78] sm:$0xff] }
 0x48f   : > { %11263 = vmatpush1.bf16.msra.mxu0 %v15843_v16  ;;  %v15883_v16 = vcombine.low %v1135_v50, %v1139_v53  ;;  %v1175_v50 = vld [vmem:[%s18216_s13 + $0x1b50] sm:$0xff] }
 0x490   : > { %11264 = vmatprep.subr.bf16.mxu0 %v15852_v22  ;;  %v15892_v22 = vcombine.high %v1143_v15, %v1147_v18  ;;  %v1179_v53 = vld [vmem:[%s18216_s13 + $0x1b70] sm:$0xff] }
 0x491   : > { %11634 = vmatpush1.bf16.msra.mxu1 %v15341_v5  ;;  %v15381_v5 = vcombine.low %v632_v13, %v636_v14  ;;  %v672_v13 = vld [vmem:[%s18216_s13 + $0xb98] sm:$0xff] }
 0x492   : > { %11635 = vmatprep.subr.bf16.mxu1 %v15350_v41  ;;  %v15390_v41 = vcombine.high %v640_v26, %v644_v27  ;;  %v676_v14 = vld [vmem:[%s18216_s13 + $0xbb8] sm:$0xff] }
 0x493   : > { %11265 = vmatpush1.bf16.msra.mxu0 %v15851_v33  ;;  %v15891_v33 = vcombine.low %v1143_v15, %v1147_v18  ;;  %v1183_v15 = vld [vmem:[%s18216_s13 + $0x1b90] sm:$0xff] }
 0x494   : > { %11266 = vmatprep.subr.bf16.mxu0 %v15860_v46  ;;  %v15900_v46 = vcombine.high %v1151_v36, %v1155_v11  ;;  %v1187_v18 = vld [vmem:[%s18216_s13 + $0x1bb0] sm:$0xff] }
 0x495   : > { %11636 = vmatpush1.bf16.msra.mxu1 %v15349_v28  ;;  %v15389_v28 = vcombine.low %v640_v26, %v644_v27  ;;  %v680_v26 = vld [vmem:[%s18216_s13 + $0xbd8] sm:$0xff] }
 0x496   : > { %11637 = vmatprep.subr.bf16.mxu1 %v15358_v12  ;;  %v15398_v12 = vcombine.high %v648_v35, %v652_v63  ;;  %v684_v27 = vld [vmem:[%s18216_s13 + $0xbf8] sm:$0xff] }
 0x497   : > { %11267 = vmatpush1.bf16.msra.mxu0 %v15859_v45  ;;  %v15899_v45 = vcombine.low %v1151_v36, %v1155_v11  ;;  %v1191_v36 = vld [vmem:[%s18216_s13 + $0x1bd0] sm:$0xff] }
 0x498   : > { %11268 = vmatprep.subr.bf16.mxu0 %v15868_v31  ;;  %v15908_v31 = vcombine.high %v1159_v40, %v1163_v44  ;;  %v1195_v11 = vld [vmem:[%s18216_s13 + $0x1bf0] sm:$0xff] }
 0x499   : > { %11638 = vmatpush1.bf16.msra.mxu1 %v15357_v59  ;;  %v15397_v59 = vcombine.low %v648_v35, %v652_v63  ;;  %v688_v35 = vld [vmem:[%s18216_s13 + $0xc18] sm:$0xff] }
 0x49a   : > { %11639 = vmatprep.subr.bf16.mxu1 %v15366_v62  ;;  %v15406_v62 = vcombine.high %v656_v51, %v660_v54  ;;  %v692_v63 = vld [vmem:[%s18216_s13 + $0xc38] sm:$0xff] }
 0x49b   : > { %11269 = vmatpush1.bf16.msra.mxu0 %v15867_v60  ;;  %v15907_v60 = vcombine.low %v1159_v40, %v1163_v44  ;;  %v1199_v40 = vld [vmem:[%s18216_s13 + $0x1c10] sm:$0xff] }
 0x49c   : > { %11270 = vmatprep.subr.bf16.mxu0 %v15876_v37  ;;  %v15916_v37 = vcombine.high %v1167_v56, %v1171_v20  ;;  %v1203_v44 = vld [vmem:[%s18216_s13 + $0x1c30] sm:$0xff] }
 0x49d   : > { %11640 = vmatpush1.bf16.msra.mxu1 %v15365_v4  ;;  %v15405_v4 = vcombine.low %v656_v51, %v660_v54  ;;  %v696_v51 = vld [vmem:[%s18216_s13 + $0xc58] sm:$0xff] }
 0x49e   : > { %11641 = vmatprep.subr.bf16.mxu1 %v15374_v8  ;;  %v15414_v8 = vcombine.high %v664_v1, %v668_v3  ;;  %v700_v54 = vld [vmem:[%s18216_s13 + $0xc78] sm:$0xff] }
 0x49f   : > { %11271 = vmatpush1.bf16.msra.mxu0 %v15875_v6  ;;  %v15915_v6 = vcombine.low %v1167_v56, %v1171_v20  ;;  %v1207_v56 = vld [vmem:[%s18216_s13 + $0x1c50] sm:$0xff] }
 0x4a0   : > { %11272 = vmatprep.subr.bf16.mxu0 %v15884_v9  ;;  %v15924_v9 = vcombine.high %v1175_v50, %v1179_v53  ;;  %v1211_v20 = vld [vmem:[%s18216_s13 + $0x1c70] sm:$0xff] }
 0x4a1   : > { %11642 = vmatpush1.bf16.msra.mxu1 %v15373_v19  ;;  %v15413_v19 = vcombine.low %v664_v1, %v668_v3  ;;  %v704_v1 = vld [vmem:[%s18216_s13 + $0xc98] sm:$0xff] }
 0x4a2   : > { %11643 = vmatprep.subr.bf16.mxu1 %v15382_v21  ;;  %v15422_v21 = vcombine.high %v672_v13, %v676_v14  ;;  %v708_v3 = vld [vmem:[%s18216_s13 + $0xcb8] sm:$0xff] }
 0x4a3   : > { %11273 = vmatpush1.bf16.msra.mxu0 %v15883_v16  ;;  %v15923_v16 = vcombine.low %v1175_v50, %v1179_v53  ;;  %v1215_v50 = vld [vmem:[%s18216_s13 + $0x1c90] sm:$0xff] }
 0x4a4   : > { %11274 = vmatprep.subr.bf16.mxu0 %v15892_v22  ;;  %v15932_v22 = vcombine.high %v1183_v15, %v1187_v18  ;;  %v1219_v53 = vld [vmem:[%s18216_s13 + $0x1cb0] sm:$0xff] }
 0x4a5   : > { %11644 = vmatpush1.bf16.msra.mxu1 %v15381_v5  ;;  %v15421_v5 = vcombine.low %v672_v13, %v676_v14  ;;  %v712_v13 = vld [vmem:[%s18216_s13 + $0xcd8] sm:$0xff] }
 0x4a6   : > { %11645 = vmatprep.subr.bf16.mxu1 %v15390_v41  ;;  %v15430_v41 = vcombine.high %v680_v26, %v684_v27  ;;  %v716_v14 = vld [vmem:[%s18216_s13 + $0xcf8] sm:$0xff] }
 0x4a7   : > { %11275 = vmatpush1.bf16.msra.mxu0 %v15891_v33  ;;  %v15931_v33 = vcombine.low %v1183_v15, %v1187_v18  ;;  %v1227_v15 = vld [vmem:[%s18216_s13 + $0x1cf0] sm:$0xff]  ;;  %v15453_v18 = vcombine.low %v704_v1, %v708_v3 }
 0x4a8   : > { %11276 = vmatprep.subr.bf16.mxu0 %v15900_v46  ;;  %v15940_v46 = vcombine.high %v1191_v36, %v1195_v11 }
 0x4a9   : > { %11646 = vmatpush1.bf16.msra.mxu1 %v15389_v28  ;;  %v15429_v28 = vcombine.low %v680_v26, %v684_v27  ;;  %v724_v26 = vld [vmem:[%s18216_s13 + $0xd38] sm:$0xff]  ;;  %v1231_v27 = vld [vmem:[%s18216_s13 + $0x1d10] sm:$0xff] }
 0x4aa   : > { %11647 = vmatprep.subr.bf16.mxu1 %v15398_v12  ;;  %v15438_v12 = vcombine.high %v688_v35, %v692_v63 }
 0x4ab   : > { %11277 = vmatpush1.bf16.msra.mxu0 %v15899_v45  ;;  %v15939_v45 = vcombine.low %v1191_v36, %v1195_v11  ;;  %v1235_v36 = vld [vmem:[%s18216_s13 + $0x1d30] sm:$0xff]  ;;  %v15461_v11 = vcombine.low %v712_v13, %v716_v14 }
 0x4ac   : > { %11278 = vmatprep.subr.bf16.mxu0 %v15908_v31  ;;  %v15948_v31 = vcombine.high %v1199_v40, %v1203_v44 }
 0x4ad   : > { %11648 = vmatpush1.bf16.msra.mxu1 %v15397_v59  ;;  %v15437_v59 = vcombine.low %v688_v35, %v692_v63  ;;  %v1239_v35 = vld [vmem:[%s18216_s13 + $0x1d50] sm:$0xff] }
 0x4ae   : > { %11649 = vmatprep.subr.bf16.mxu1 %v15406_v62  ;;  %v15446_v62 = vcombine.high %v696_v51, %v700_v54  ;;  %v1243_v63 = vld [vmem:[%s18216_s13 + $0x1d70] sm:$0xff] }
 0x4af   : > { %11279 = vmatpush1.bf16.msra.mxu0 %v15907_v60  ;;  %v15947_v60 = vcombine.low %v1199_v40, %v1203_v44  ;;  %v15979_v44 = vcombine.low %v1231_v27, %v1235_v36 }
 0x4b0   : > { %11280 = vmatprep.subr.bf16.mxu0 %v15916_v37  ;;  %v15956_v37 = vcombine.high %v1207_v56, %v1211_v20 }
 0x4b1   : > { %11650 = vmatpush1.bf16.msra.mxu1 %v15405_v4  ;;  %v15445_v4 = vcombine.low %v696_v51, %v700_v54  ;;  %v1247_v51 = vld [vmem:[%s18216_s13 + $0x1d90] sm:$0xff] }
 0x4b2   : > { %11651 = vmatprep.subr.bf16.mxu1 %v15414_v8  ;;  %v15454_v8 = vcombine.high %v704_v1, %v708_v3  ;;  %v1251_v54 = vld [vmem:[%s18216_s13 + $0x1db0] sm:$0xff]  ;;  %v748_v1 = vld [vmem:[%s18216_s13 + $0xdf8] sm:$0xff] }
 0x4b3   : > { %11281 = vmatpush1.bf16.msra.mxu0 %v15915_v6  ;;  %v15955_v6 = vcombine.low %v1207_v56, %v1211_v20  ;;  %v15987_v20 = vcombine.low %v1239_v35, %v1243_v63 }
 0x4b4   : > { %11282 = vmatprep.subr.bf16.mxu0 %v15924_v9  ;;  %v15964_v9 = vcombine.high %v1215_v50, %v1219_v53 }
 0x4b5   : > { %11652 = vmatpush1.bf16.msra.mxu1 %v15413_v19  ;;  %v15963_v19 = vcombine.low %v1215_v50, %v1219_v53  ;;  %v1255_v50 = vld [vmem:[%s18216_s13 + $0x1dd0] sm:$0xff] }
 0x4b6   : > { %11653 = vmatprep.subr.bf16.mxu1 %v15422_v21  ;;  %v1259_v53 = vld [vmem:[%s18216_s13 + $0x1df0] sm:$0xff] }
 0x4b7   : > { %11283 = vmatpush1.bf16.msra.mxu0 %v15923_v16  ;;  %v15462_v16 = vcombine.high %v712_v13, %v716_v14  ;;  %v16004_v14 = vcombine.high %v1255_v50, %v1259_v53 }
 0x4b8   : > { %11284 = vmatprep.subr.bf16.mxu0 %v15932_v22  ;;  %v720_v22 = vld [vmem:[%s18216_s13 + $0xd18] sm:$0xff] }
 0x4b9   : > { %11654 = vmatpush1.bf16.msra.mxu1 %v15421_v5  ;;  %v15470_v5 = vcombine.high %v720_v22, %v724_v26  ;;  %v15469_v40 = vcombine.low %v720_v22, %v724_v26 }
 0x4ba   : > { %11655 = vmatprep.subr.bf16.mxu1 %v15430_v41  ;;  %v728_v41 = vld [vmem:[%s18216_s13 + $0xd58] sm:$0xff] }
 0x4bb   : > { %11285 = vmatpush1.bf16.msra.mxu0 %v15931_v33  ;;  %v15980_v33 = vcombine.high %v1231_v27, %v1235_v36  ;;  %v760_v27 = vld [vmem:[%s18216_s13 + $0xe58] sm:$0xff] }
 0x4bc   : > { %11286 = vmatprep.subr.bf16.mxu0 %v15940_v46  ;;  %v732_v46 = vld [vmem:[%s18216_s13 + $0xd78] sm:$0xff] }
 0x4bd   : > { %11656 = vmatpush1.bf16.msra.mxu1 %v15429_v28  ;;  %v15478_v28 = vcombine.high %v728_v41, %v732_v46  ;;  %v15477_v56 = vcombine.low %v728_v41, %v732_v46  ;;  %v764_v36 = vld [vmem:[%s18216_s13 + $0xe78] sm:$0xff] }
 0x4be   : > { %11666 = vmatprep.subr.bf16.mxu1 %v15438_v12  ;;  %v736_v12 = vld [vmem:[%s18216_s13 + $0xd98] sm:$0xff]  ;;  %v15510_v41 = vcombine.high %v760_v27, %v764_v36 }
 0x4bf   : > { %11287 = vmatpush1.bf16.msra.mxu0 %v15939_v45  ;;  %v15988_v45 = vcombine.high %v1239_v35, %v1243_v63  ;;  %v768_v35 = vld [vmem:[%s18216_s13 + $0xe98] sm:$0xff] }
 0x4c0   : > { %11297 = vmatprep.subr.bf16.mxu0 %v15948_v31  ;;  %11658 = vmatmul.mubr.bf16.vlgmr.msra.gmra.mrb[8].mxu1 %v18334_v32  ;;  %v1223_v32 = vld [vmem:[%s18216_s13 + $0x1cd0] sm:$0xff]  ;;  %v740_v31 = vld [vmem:[%s18216_s13 + $0xdb8] sm:$0xff] }
 0x4c1   : > { %11667 = vmatpush1.bf16.msra.mxu1 %v15437_v59  ;;  %11698 = vmatprep.mubr.bf16.mxu1 %v18347_v39  ;;  %v15972_v21 = vcombine.high %v1223_v32, %v1227_v15  ;;  %v15971_v39 = vcombine.low %v1223_v32, %v1227_v15  ;;  %v15486_v59 = vcombine.high %v736_v12, %v740_v31  ;;  %v752_v32 = vld [vmem:[%s18216_s13 + $0xe18] sm:$0xff] }
 0x4c2   : > { %11289 = vmatmul.mubr.bf16.vlgmr.msra.gmra.mrb[4].mxu0 %v18662_v42  ;;  %11668 = vmatprep.subr.bf16.mxu1 %v15446_v62  ;;  %v15996_v62 = vcombine.high %v1247_v51, %v1251_v54  ;;  %v756_v15 = vld [vmem:[%s18216_s13 + $0xe38] sm:$0xff] }
 0x4c3   : > { %11298 = vmatpush1.bf16.msra.mxu0 %v15947_v60  ;;  %11329 = vmatprep.mubr.bf16.mxu0 %v18668_v49  ;;  %v15502_v22 = vcombine.high %v752_v32, %v756_v15  ;;  %v772_v63 = vld [vmem:[%s18216_s13 + $0xeb8] sm:$0xff] }
 0x4c4   : > { %11299 = vmatprep.subr.bf16.mxu0 %v15956_v37  ;;  %v744_v37 = vld [vmem:[%s18216_s13 + $0xdd8] sm:$0xff] }
 0x4c5   : > { %11669 = vmatpush1.bf16.msra.mxu1 %v15445_v4  ;;  %v15494_v13 = vcombine.high %v744_v37, %v748_v1 }
 0x4c6   : > { %11670 = vmatprep.subr.bf16.mxu1 %v15454_v8 }
 0x4c7   : > { %11300 = vmatpush1.bf16.msra.mxu0 %v15955_v6  ;;  %v15485_v6 = vcombine.low %v736_v12, %v740_v31  ;;  %v15518_v12 = vcombine.high %v768_v35, %v772_v63 }
 0x4c8   : > { %11301 = vmatprep.subr.bf16.mxu0 %v15964_v9  ;;  %v15995_v9 = vcombine.low %v1247_v51, %v1251_v54  ;;  %v776_v51 = vld [vmem:[%s18216_s13 + $0xed8] sm:$0xff] }
 0x4c9   : > { %11671 = vmatpush1.bf16.msra.mxu1 %v15453_v18  ;;  %v1263_v18 = vld [vmem:[%s18216_s13 + $0x1e10] sm:$0xff]  ;;  %v780_v54 = vld [vmem:[%s18216_s13 + $0xef8] sm:$0xff] }
 0x4ca   : > { %11672 = vmatprep.subr.bf16.mxu1 %v15462_v16  ;;  %v15493_v16 = vcombine.low %v744_v37, %v748_v1  ;;  %v15526_v37 = vcombine.high %v776_v51, %v780_v54 }
 0x4cb   : > { %11302 = vmatpush1.bf16.msra.mxu0 %v15963_v19  ;;  %v1267_v19 = vld [vmem:[%s18216_s13 + $0x1e30] sm:$0xff] }
 0x4cc   : > { %11303 = vmatprep.subr.bf16.mxu0 %v15972_v21  ;;  %v16003_v21 = vcombine.low %v1255_v50, %v1259_v53  ;;  %v16012_v26 = vcombine.high %v1263_v18, %v1267_v19  ;;  %v784_v50 = vld [vmem:[%s18216_s13 + $0xf18] sm:$0xff] }
 0x4cd   : > { %11673 = vmatpush1.bf16.msra.mxu1 %v15461_v11  ;;  %v1271_v11 = vld [vmem:[%s18216_s13 + $0x1e50] sm:$0xff]  ;;  %v788_v53 = vld [vmem:[%s18216_s13 + $0xf38] sm:$0xff] }
 0x4ce   : > { %11674 = vmatprep.subr.bf16.mxu1 %v15470_v5  ;;  %v15501_v5 = vcombine.low %v752_v32, %v756_v15  ;;  %v792_v32 = vld [vmem:[%s18216_s13 + $0xf58] sm:$0xff] }
 0x4cf   : > { %11304 = vmatpush1.bf16.msra.mxu0 %v15971_v39  ;;  %v1275_v39 = vld [vmem:[%s18216_s13 + $0x1e70] sm:$0xff]  ;;  %v796_v15 = vld [vmem:[%s18216_s13 + $0xf78] sm:$0xff] }
 0x4d0   : > { %11305 = vmatprep.subr.bf16.mxu0 %v15980_v33  ;;  %v16011_v33 = vcombine.low %v1263_v18, %v1267_v19  ;;  %v16020_v46 = vcombine.high %v1271_v11, %v1275_v39  ;;  %v1303_v18 = vld [vmem:[%s18216_s13 + $0x1f50] sm:$0xff] }
 0x4d1   : > { %11675 = vmatpush1.bf16.msra.mxu1 %v15469_v40  ;;  %v1279_v40 = vld [vmem:[%s18216_s13 + $0x1e90] sm:$0xff] }
 0x4d2   : > { %11676 = vmatprep.subr.bf16.mxu1 %v15478_v28  ;;  %v15509_v28 = vcombine.low %v760_v27, %v764_v36  ;;  %v1307_v19 = vld [vmem:[%s18216_s13 + $0x1f70] sm:$0xff]  ;;  %v800_v27 = vld [vmem:[%s18216_s13 + $0xf98] sm:$0xff] }
 0x4d3   : > { %11306 = vmatpush1.bf16.msra.mxu0 %v15979_v44  ;;  %v19601_v60 = vpop.f32.mrb[4].mxu1  ;;  %v1283_v44 = vld [vmem:[%s18216_s13 + $0x1eb0] sm:$0xff]  ;;  %v804_v36 = vld [vmem:[%s18216_s13 + $0xfb8] sm:$0xff] }
 0x4d4   : > { %11307 = vmatprep.subr.bf16.mxu0 %v15988_v45  ;;  %v19605_v3 = vpop.f32.mrb[5].mxu1  ;;  %v16019_v45 = vcombine.low %v1271_v11, %v1275_v39  ;;  %v16028_v31 = vcombine.high %v1279_v40, %v1283_v44  ;;  %v1311_v11 = vld [vmem:[%s18216_s13 + $0x1f90] sm:$0xff] }
 0x4d5   : > { %v11007_v4 = vpop.f32.mrb[6].mxu1  ;;  %11677 = vmatpush1.bf16.msra.mxu1 %v15477_v56  ;;  %v1287_v56 = vld [vmem:[%s18216_s13 + $0x1ed0] sm:$0xff] }
 0x4d6   : > { %v11008_v8 = vpop.f32.mrb[7].mxu1  ;;  %11678 = vmatprep.subr.bf16.mxu1 %v15486_v59  ;;  %v15517_v59 = vcombine.low %v768_v35, %v772_v63  ;;  %v1295_v4 = vld [vmem:[%s18216_s13 + $0x1f10] sm:$0xff]  ;;  %v808_v35 = vld [vmem:[%s18216_s13 + $0xfd8] sm:$0xff] }
 0x4d7   : > { %11308 = vmatpush1.bf16.msra.mxu0 %v15987_v20  ;;  %v1291_v20 = vld [vmem:[%s18216_s13 + $0x1ef0] sm:$0xff]  ;;  %v15525_v8 = vcombine.low %v776_v51, %v780_v54  ;;  %v812_v63 = vld [vmem:[%s18216_s13 + $0xff8] sm:$0xff] }
 0x4d8   : > { %11309 = vmatprep.subr.bf16.mxu0 %v15996_v62  ;;  %v16027_v62 = vcombine.low %v1279_v40, %v1283_v44  ;;  %v16036_v1 = vcombine.high %v1287_v56, %v1291_v20  ;;  %v1315_v39 = vld [vmem:[%s18216_s13 + $0x1fb0] sm:$0xff]  ;;  %v816_v51 = vld [vmem:[%s18216_s13 + $0x1018] sm:$0xff] }
 0x4d9   : > { %11679 = vmatpush1.bf16.msra.mxu1 %v15485_v6  ;;  %v1299_v6 = vld [vmem:[%s18216_s13 + $0x1f30] sm:$0xff]  ;;  %v820_v54 = vld [vmem:[%s18216_s13 + $0x1038] sm:$0xff] }
 0x4da   : > { %11680 = vmatprep.subr.bf16.mxu1 %v15494_v13  ;;  %v15534_v13 = vcombine.high %v784_v50, %v788_v53  ;;  %v1319_v40 = vld [vmem:[%s18216_s13 + $0x1fd0] sm:$0xff] }
 0x4db   : > { %11310 = vmatpush1.bf16.msra.mxu0 %v15995_v9  ;;  %v16035_v9 = vcombine.low %v1287_v56, %v1291_v20  ;;  %v1323_v44 = vld [vmem:[%s18216_s13 + $0x1ff0] sm:$0xff] }
 0x4dc   : > { %11311 = vmatprep.subr.bf16.mxu0 %v16004_v14  ;;  %v16044_v14 = vcombine.high %v1295_v4, %v1299_v6  ;;  %v1327_v56 = vld [vmem:[%s18216_s13 + $0x2010] sm:$0xff] }
 0x4dd   : > { %11681 = vmatpush1.bf16.msra.mxu1 %v15493_v16  ;;  %v15533_v16 = vcombine.low %v784_v50, %v788_v53  ;;  %v1331_v20 = vld [vmem:[%s18216_s13 + $0x2030] sm:$0xff]  ;;  %v824_v50 = vld [vmem:[%s18216_s13 + $0x1058] sm:$0xff] }
 0x4de   : > { %11682 = vmatprep.subr.bf16.mxu1 %v15502_v22  ;;  %v15542_v22 = vcombine.high %v792_v32, %v796_v15  ;;  %v828_v53 = vld [vmem:[%s18216_s13 + $0x1078] sm:$0xff] }
 0x4df   : > { %11312 = vmatpush1.bf16.msra.mxu0 %v16003_v21  ;;  %v16043_v21 = vcombine.low %v1295_v4, %v1299_v6  ;;  %v1335_v4 = vld [vmem:[%s18216_s13 + $0x2050] sm:$0xff] }
 0x4e0   : > { %11313 = vmatprep.subr.bf16.mxu0 %v16012_v26  ;;  %v16052_v26 = vcombine.high %v1303_v18, %v1307_v19  ;;  %v1339_v6 = vld [vmem:[%s18216_s13 + $0x2070] sm:$0xff] }
 0x4e1   : > { %11683 = vmatpush1.bf16.msra.mxu1 %v15501_v5  ;;  %v15541_v5 = vcombine.low %v792_v32, %v796_v15  ;;  %v832_v32 = vld [vmem:[%s18216_s13 + $0x1098] sm:$0xff] }
 0x4e2   : > { %11684 = vmatprep.subr.bf16.mxu1 %v15510_v41  ;;  %v15550_v41 = vcombine.high %v800_v27, %v804_v36  ;;  %v836_v15 = vld [vmem:[%s18216_s13 + $0x10b8] sm:$0xff] }
 0x4e3   : > { %11314 = vmatpush1.bf16.msra.mxu0 %v16011_v33  ;;  %v16051_v33 = vcombine.low %v1303_v18, %v1307_v19  ;;  %v1343_v18 = vld [vmem:[%s18216_s13 + $0x2090] sm:$0xff] }
 0x4e4   : > { %11315 = vmatprep.subr.bf16.mxu0 %v16020_v46  ;;  %v16060_v46 = vcombine.high %v1311_v11, %v1315_v39  ;;  %v1347_v19 = vld [vmem:[%s18216_s13 + $0x20b0] sm:$0xff] }
 0x4e5   : > { %11685 = vmatpush1.bf16.msra.mxu1 %v15509_v28  ;;  %v15549_v28 = vcombine.low %v800_v27, %v804_v36  ;;  %v840_v27 = vld [vmem:[%s18216_s13 + $0x10d8] sm:$0xff] }
 0x4e6   : > { %11686 = vmatprep.subr.bf16.mxu1 %v15518_v12  ;;  %v15558_v12 = vcombine.high %v808_v35, %v812_v63  ;;  %v844_v36 = vld [vmem:[%s18216_s13 + $0x10f8] sm:$0xff] }
 0x4e7   : > { %11316 = vmatpush1.bf16.msra.mxu0 %v16019_v45  ;;  %v16059_v45 = vcombine.low %v1311_v11, %v1315_v39  ;;  %v1355_v11 = vld [vmem:[%s18216_s13 + $0x20f0] sm:$0xff]  ;;  %v15581_v39 = vcombine.low %v832_v32, %v836_v15 }
 0x4e8   : > { %11317 = vmatprep.subr.bf16.mxu0 %v16028_v31  ;;  %v16068_v31 = vcombine.high %v1319_v40, %v1323_v44 }
 0x4e9   : > { %11687 = vmatpush1.bf16.msra.mxu1 %v15517_v59  ;;  %v15557_v59 = vcombine.low %v808_v35, %v812_v63  ;;  %v852_v35 = vld [vmem:[%s18216_s13 + $0x1138] sm:$0xff]  ;;  %v1359_v63 = vld [vmem:[%s18216_s13 + $0x2110] sm:$0xff] }
 0x4ea   : > { %11688 = vmatprep.subr.bf16.mxu1 %v15526_v37  ;;  %v15566_v37 = vcombine.high %v816_v51, %v820_v54 }
 0x4eb   : > { %11318 = vmatpush1.bf16.msra.mxu0 %v16027_v62  ;;  %v16067_v62 = vcombine.low %v1319_v40, %v1323_v44  ;;  %v1363_v40 = vld [vmem:[%s18216_s13 + $0x2130] sm:$0xff]  ;;  %v15589_v44 = vcombine.low %v840_v27, %v844_v36 }
 0x4ec   : > { %11319 = vmatprep.subr.bf16.mxu0 %v16036_v1  ;;  %v16076_v1 = vcombine.high %v1327_v56, %v1331_v20 }
 0x4ed   : > { %11689 = vmatpush1.bf16.msra.mxu1 %v15525_v8  ;;  %v15565_v8 = vcombine.low %v816_v51, %v820_v54  ;;  %v1367_v51 = vld [vmem:[%s18216_s13 + $0x2150] sm:$0xff] }
 0x4ee   : > { %11690 = vmatprep.subr.bf16.mxu1 %v15534_v13  ;;  %v15574_v13 = vcombine.high %v824_v50, %v828_v53  ;;  %v1371_v54 = vld [vmem:[%s18216_s13 + $0x2170] sm:$0xff] }
 0x4ef   : > { %11320 = vmatpush1.bf16.msra.mxu0 %v16035_v9  ;;  %v16075_v9 = vcombine.low %v1327_v56, %v1331_v20  ;;  %v16107_v20 = vcombine.low %v1359_v63, %v1363_v40 }
 0x4f0   : > { %11321 = vmatprep.subr.bf16.mxu0 %v16044_v14  ;;  %v16084_v14 = vcombine.high %v1335_v4, %v1339_v6 }
 0x4f1   : > { %11691 = vmatpush1.bf16.msra.mxu1 %v15533_v16  ;;  %v15573_v16 = vcombine.low %v824_v50, %v828_v53  ;;  %v1375_v50 = vld [vmem:[%s18216_s13 + $0x2190] sm:$0xff] }
 0x4f2   : > { %11692 = vmatprep.subr.bf16.mxu1 %v15542_v22  ;;  %v15582_v22 = vcombine.high %v832_v32, %v836_v15  ;;  %v1379_v53 = vld [vmem:[%s18216_s13 + $0x21b0] sm:$0xff] }
 0x4f3   : > { %11322 = vmatpush1.bf16.msra.mxu0 %v16043_v21  ;;  %v16083_v21 = vcombine.low %v1335_v4, %v1339_v6  ;;  %v16115_v6 = vcombine.low %v1367_v51, %v1371_v54  ;;  %v1383_v32 = vld [vmem:[%s18216_s13 + $0x21d0] sm:$0xff] }
 0x4f4   : > { %11323 = vmatprep.subr.bf16.mxu0 %v16052_v26  ;;  %v16092_v26 = vcombine.high %v1343_v18, %v1347_v19  ;;  %v1387_v15 = vld [vmem:[%s18216_s13 + $0x21f0] sm:$0xff] }
 0x4f5   : > { %11693 = vmatpush1.bf16.msra.mxu1 %v15541_v5  ;;  %v16091_v5 = vcombine.low %v1343_v18, %v1347_v19  ;;  %v16123_v19 = vcombine.low %v1375_v50, %v1379_v53 }
 0x4f6   : > { %11694 = vmatprep.subr.bf16.mxu1 %v15550_v41 }
 0x4f7   : > { %11324 = vmatpush1.bf16.msra.mxu0 %v16051_v33  ;;  %v15590_v33 = vcombine.high %v840_v27, %v844_v36  ;;  %v1391_v27 = vld [vmem:[%s18216_s13 + $0x2210] sm:$0xff] }
 0x4f8   : > { %11325 = vmatprep.subr.bf16.mxu0 %v16060_v46  ;;  %v848_v46 = vld [vmem:[%s18216_s13 + $0x1118] sm:$0xff]  ;;  %v1395_v36 = vld [vmem:[%s18216_s13 + $0x2230] sm:$0xff] }
 0x4f9   : > { %11695 = vmatpush1.bf16.msra.mxu1 %v15549_v28  ;;  %v15598_v28 = vcombine.high %v848_v46, %v852_v35  ;;  %v15597_v56 = vcombine.low %v848_v46, %v852_v35  ;;  %v1399_v46 = vld [vmem:[%s18216_s13 + $0x2250] sm:$0xff] }
 0x4fa   : > { %11696 = vmatprep.subr.bf16.mxu1 %v15558_v12  ;;  %v856_v12 = vld [vmem:[%s18216_s13 + $0x1158] sm:$0xff]  ;;  %v1403_v35 = vld [vmem:[%s18216_s13 + $0x2270] sm:$0xff] }
 0x4fb   : > { %11326 = vmatpush1.bf16.msra.mxu0 %v16059_v45  ;;  %v16108_v45 = vcombine.high %v1359_v63, %v1363_v40  ;;  %v16139_v40 = vcombine.low %v1391_v27, %v1395_v36 }
 0x4fc   : > { %11327 = vmatprep.subr.bf16.mxu0 %v16068_v31  ;;  %v860_v31 = vld [vmem:[%s18216_s13 + $0x1178] sm:$0xff] }
 0x4fd   : > { %11697 = vmatpush1.bf16.msra.mxu1 %v15557_v59  ;;  %v15606_v59 = vcombine.high %v856_v12, %v860_v31  ;;  %v15605_v4 = vcombine.low %v856_v12, %v860_v31  ;;  %v1407_v12 = vld [vmem:[%s18216_s13 + $0x2290] sm:$0xff] }
 0x4fe   : > { %11707 = vmatprep.subr.bf16.mxu1 %v15566_v37  ;;  %v864_v37 = vld [vmem:[%s18216_s13 + $0x1198] sm:$0xff]  ;;  %v1411_v31 = vld [vmem:[%s18216_s13 + $0x22b0] sm:$0xff] }
 0x4ff   : > { %11328 = vmatpush1.bf16.msra.mxu0 %v16067_v62  ;;  %v16116_v62 = vcombine.high %v1367_v51, %v1371_v54  ;;  %v16147_v54 = vcombine.low %v1399_v46, %v1403_v35 }
 0x500   : > { %11338 = vmatprep.subr.bf16.mxu0 %v16076_v1  ;;  %11699 = vmatmul.mubr.bf16.vlgmr.msra.gmra.mrb[8].mxu1 %v18429_v55  ;;  %v1351_v55 = vld [vmem:[%s18216_s13 + $0x20d0] sm:$0xff]  ;;  %v868_v1 = vld [vmem:[%s18216_s13 + $0x11b8] sm:$0xff] }
 0x501   : > { %11708 = vmatpush1.bf16.msra.mxu1 %v15565_v8  ;;  %11739 = vmatprep.mubr.bf16.mxu1 %v18434_v61  ;;  %v16100_v41 = vcombine.high %v1351_v55, %v1355_v11  ;;  %v16099_v61 = vcombine.low %v1351_v55, %v1355_v11  ;;  %v15614_v8 = vcombine.high %v864_v37, %v868_v1 }
 0x502   : > { %11330 = vmatmul.mubr.bf16.vlgmr.msra.gmra.mrb[4].mxu0 %v18753_v38  ;;  %11709 = vmatprep.subr.bf16.mxu1 %v15574_v13  ;;  %v872_v13 = vld [vmem:[%s18216_s13 + $0x11d8] sm:$0xff]  ;;  %v15613_v18 = vcombine.low %v864_v37, %v868_v1  ;;  %v16131_v11 = vcombine.low %v1383_v32, %v1387_v15  ;;  %v1415_v37 = vld [vmem:[%s18216_s13 + $0x22d0] sm:$0xff] }
 0x503   : > { %11339 = vmatpush1.bf16.msra.mxu0 %v16075_v9  ;;  %11370 = vmatprep.mubr.bf16.mxu0 %v18758_v48  ;;  %v16124_v9 = vcombine.high %v1375_v50, %v1379_v53  ;;  %v1419_v1 = vld [vmem:[%s18216_s13 + $0x22f0] sm:$0xff]  ;;  %v16155_v53 = vcombine.low %v1407_v12, %v1411_v31 }
 0x504   : > { %11340 = vmatprep.subr.bf16.mxu0 %v16084_v14  ;;  %v876_v14 = vld [vmem:[%s18216_s13 + $0x11f8] sm:$0xff] }
 0x505   : > { %11710 = vmatpush1.bf16.msra.mxu1 %v15573_v16  ;;  %v15622_v16 = vcombine.high %v872_v13, %v876_v14  ;;  %v15621_v55 = vcombine.low %v872_v13, %v876_v14  ;;  %v1423_v13 = vld [vmem:[%s18216_s13 + $0x2310] sm:$0xff] }
 0x506   : > { %11711 = vmatprep.subr.bf16.mxu1 %v15582_v22  ;;  %v880_v22 = vld [vmem:[%s18216_s13 + $0x1218] sm:$0xff]  ;;  %v1427_v14 = vld [vmem:[%s18216_s13 + $0x2330] sm:$0xff] }
 0x507   : > { %11341 = vmatpush1.bf16.msra.mxu0 %v16083_v21  ;;  %v16132_v21 = vcombine.high %v1383_v32, %v1387_v15  ;;  %v16163_v15 = vcombine.low %v1415_v37, %v1419_v1 }
 0x508   : > { %11342 = vmatprep.subr.bf16.mxu0 %v16092_v26  ;;  %v884_v26 = vld [vmem:[%s18216_s13 + $0x1238] sm:$0xff] }
 0x509   : > { %11712 = vmatpush1.bf16.msra.mxu1 %v15581_v39  ;;  %v15630_v39 = vcombine.high %v880_v22, %v884_v26  ;;  %v15629_v63 = vcombine.low %v880_v22, %v884_v26  ;;  %v1431_v22 = vld [vmem:[%s18216_s13 + $0x2350] sm:$0xff] }
 0x50a   : > { %11713 = vmatprep.subr.bf16.mxu1 %v15590_v33  ;;  %v888_v33 = vld [vmem:[%s18216_s13 + $0x1258] sm:$0xff]  ;;  %v1435_v26 = vld [vmem:[%s18216_s13 + $0x2370] sm:$0xff] }
 0x50b   : > { %11343 = vmatpush1.bf16.msra.mxu0 %v16091_v5  ;;  %v16140_v5 = vcombine.high %v1391_v27, %v1395_v36  ;;  %v16171_v36 = vcombine.low %v1423_v13, %v1427_v14 }
 0x50c   : > { %11344 = vmatprep.subr.bf16.mxu0 %v16100_v41  ;;  %v892_v41 = vld [vmem:[%s18216_s13 + $0x1278] sm:$0xff] }
 0x50d   : > { %11714 = vmatpush1.bf16.msra.mxu1 %v15589_v44  ;;  %v15638_v44 = vcombine.high %v888_v33, %v892_v41  ;;  %v15637_v51 = vcombine.low %v888_v33, %v892_v41  ;;  %v1439_v33 = vld [vmem:[%s18216_s13 + $0x2390] sm:$0xff] }
 0x50e   : > { %11715 = vmatprep.subr.bf16.mxu1 %v15598_v28  ;;  %v896_v28 = vld [vmem:[%s18216_s13 + $0x1298] sm:$0xff]  ;;  %v1443_v41 = vld [vmem:[%s18216_s13 + $0x23b0] sm:$0xff] }
 0x50f   : > { %11345 = vmatpush1.bf16.msra.mxu0 %v16099_v61  ;;  %v16148_v61 = vcombine.high %v1399_v46, %v1403_v35  ;;  %v16179_v35 = vcombine.low %v1431_v22, %v1435_v26 }
 0x510   : > { %11346 = vmatprep.subr.bf16.mxu0 %v16108_v45  ;;  %v900_v45 = vld [vmem:[%s18216_s13 + $0x12b8] sm:$0xff] }
 0x511   : > { %11716 = vmatpush1.bf16.msra.mxu1 %v15597_v56  ;;  %v15646_v56 = vcombine.high %v896_v28, %v900_v45  ;;  %v15645_v50 = vcombine.low %v896_v28, %v900_v45  ;;  %v1447_v28 = vld [vmem:[%s18216_s13 + $0x23d0] sm:$0xff] }
 0x512   : > { %11717 = vmatprep.subr.bf16.mxu1 %v15606_v59  ;;  %v904_v59 = vld [vmem:[%s18216_s13 + $0x12d8] sm:$0xff]  ;;  %v1451_v45 = vld [vmem:[%s18216_s13 + $0x23f0] sm:$0xff] }
 0x513   : > { %11347 = vmatpush1.bf16.msra.mxu0 %v16107_v20  ;;  %v16156_v20 = vcombine.high %v1407_v12, %v1411_v31  ;;  %v16187_v31 = vcombine.low %v1439_v33, %v1443_v41 }
 0x514   : > { %11348 = vmatprep.subr.bf16.mxu0 %v16116_v62  ;;  %v908_v62 = vld [vmem:[%s18216_s13 + $0x12f8] sm:$0xff] }
 0x515   : > { %11718 = vmatpush1.bf16.msra.mxu1 %v15605_v4  ;;  %v15654_v4 = vcombine.high %v904_v59, %v908_v62  ;;  %v15653_v32 = vcombine.low %v904_v59, %v908_v62  ;;  %v1455_v59 = vld [vmem:[%s18216_s13 + $0x2410] sm:$0xff] }
 0x516   : > { %11719 = vmatprep.subr.bf16.mxu1 %v15614_v8  ;;  %v912_v8 = vld [vmem:[%s18216_s13 + $0x1318] sm:$0xff]  ;;  %v1459_v62 = vld [vmem:[%s18216_s13 + $0x2430] sm:$0xff] }
 0x517   : > { %11349 = vmatpush1.bf16.msra.mxu0 %v16115_v6  ;;  %v16164_v6 = vcombine.high %v1415_v37, %v1419_v1  ;;  %v16195_v1 = vcombine.low %v1447_v28, %v1451_v45 }
 0x518   : > { %11350 = vmatprep.subr.bf16.mxu0 %v16124_v9  ;;  %v916_v9 = vld [vmem:[%s18216_s13 + $0x1338] sm:$0xff] }
 0x519   : > { %11720 = vmatpush1.bf16.msra.mxu1 %v15613_v18  ;;  %v15662_v18 = vcombine.high %v912_v8, %v916_v9  ;;  %v15661_v27 = vcombine.low %v912_v8, %v916_v9  ;;  %v1463_v8 = vld [vmem:[%s18216_s13 + $0x2450] sm:$0xff] }
 0x51a   : > { %11721 = vmatprep.subr.bf16.mxu1 %v15622_v16  ;;  %v920_v16 = vld [vmem:[%s18216_s13 + $0x1358] sm:$0xff]  ;;  %v1467_v9 = vld [vmem:[%s18216_s13 + $0x2470] sm:$0xff] }
 0x51b   : > { %11351 = vmatpush1.bf16.msra.mxu0 %v16123_v19  ;;  %v16172_v19 = vcombine.high %v1423_v13, %v1427_v14  ;;  %v16203_v14 = vcombine.low %v1455_v59, %v1459_v62 }
 0x51c   : > { %11352 = vmatprep.subr.bf16.mxu0 %v16132_v21  ;;  %v924_v21 = vld [vmem:[%s18216_s13 + $0x1378] sm:$0xff] }
 0x51d   : > { %11722 = vmatpush1.bf16.msra.mxu1 %v15621_v55  ;;  %v15670_v55 = vcombine.high %v920_v16, %v924_v21  ;;  %v15669_v46 = vcombine.low %v920_v16, %v924_v21  ;;  %v1471_v16 = vld [vmem:[%s18216_s13 + $0x2490] sm:$0xff] }
 0x51e   : > { %11723 = vmatprep.subr.bf16.mxu1 %v15630_v39  ;;  %v928_v39 = vld [vmem:[%s18216_s13 + $0x1398] sm:$0xff]  ;;  %v1475_v21 = vld [vmem:[%s18216_s13 + $0x24b0] sm:$0xff] }
 0x51f   : > { %11353 = vmatpush1.bf16.msra.mxu0 %v16131_v11  ;;  %v16180_v11 = vcombine.high %v1431_v22, %v1435_v26  ;;  %v16211_v26 = vcombine.low %v1463_v8, %v1467_v9 }
 0x520   : > { %11354 = vmatprep.subr.bf16.mxu0 %v16140_v5  ;;  %v932_v5 = vld [vmem:[%s18216_s13 + $0x13b8] sm:$0xff] }
 0x521   : > { %11724 = vmatpush1.bf16.msra.mxu1 %v15629_v63  ;;  %v15678_v63 = vcombine.high %v928_v39, %v932_v5  ;;  %v15677_v12 = vcombine.low %v928_v39, %v932_v5  ;;  %v1483_v39 = vld [vmem:[%s18216_s13 + $0x24f0] sm:$0xff] }
 0x522   : > { %11725 = vmatprep.subr.bf16.mxu1 %v15638_v44  ;;  %v936_v44 = vld [vmem:[%s18216_s13 + $0x13d8] sm:$0xff] }
 0x523   : > { %11355 = vmatpush1.bf16.msra.mxu0 %v16139_v40  ;;  %v16188_v40 = vcombine.high %v1439_v33, %v1443_v41  ;;  %v16219_v33 = vcombine.low %v1471_v16, %v1475_v21 }
 0x524   : > { %11356 = vmatprep.subr.bf16.mxu0 %v16148_v61  ;;  %v940_v61 = vld [vmem:[%s18216_s13 + $0x13f8] sm:$0xff] }
 0x525   : > { %11726 = vmatpush1.bf16.msra.mxu1 %v15637_v51  ;;  %v15686_v51 = vcombine.high %v936_v44, %v940_v61  ;;  %v15685_v37 = vcombine.low %v936_v44, %v940_v61  ;;  %v1491_v44 = vld [vmem:[%s18216_s13 + $0x2530] sm:$0xff] }
 0x526   : > { %11727 = vmatprep.subr.bf16.mxu1 %v15646_v56  ;;  %v944_v56 = vld [vmem:[%s18216_s13 + $0x1418] sm:$0xff] }
 0x527   : > { %11357 = vmatpush1.bf16.msra.mxu0 %v16147_v54  ;;  %v16196_v54 = vcombine.high %v1447_v28, %v1451_v45 }
 0x528   : > { %11358 = vmatprep.subr.bf16.mxu0 %v16156_v20  ;;  %v948_v20 = vld [vmem:[%s18216_s13 + $0x1438] sm:$0xff] }
 0x529   : > { %11728 = vmatpush1.bf16.msra.mxu1 %v15645_v50  ;;  %v15694_v50 = vcombine.high %v944_v56, %v948_v20  ;;  %v15693_v13 = vcombine.low %v944_v56, %v948_v20 }
 0x52a   : > { %11729 = vmatprep.subr.bf16.mxu1 %v15654_v4  ;;  %v952_v4 = vld [vmem:[%s18216_s13 + $0x1458] sm:$0xff] }
 0x52b   : > { %11359 = vmatpush1.bf16.msra.mxu0 %v16155_v53  ;;  %v16204_v53 = vcombine.high %v1455_v59, %v1459_v62 }
 0x52c   : > { %11360 = vmatprep.subr.bf16.mxu0 %v16164_v6  ;;  %v956_v6 = vld [vmem:[%s18216_s13 + $0x1478] sm:$0xff] }
 0x52d   : > { %11730 = vmatpush1.bf16.msra.mxu1 %v15653_v32  ;;  %v15702_v32 = vcombine.high %v952_v4, %v956_v6  ;;  %v15701_v22 = vcombine.low %v952_v4, %v956_v6 }
 0x52e   : > { %11731 = vmatprep.subr.bf16.mxu1 %v15662_v18  ;;  %v960_v18 = vld [vmem:[%s18216_s13 + $0x1498] sm:$0xff] }
 0x52f   : > { %11361 = vmatpush1.bf16.msra.mxu0 %v16163_v15  ;;  %v16212_v15 = vcombine.high %v1463_v8, %v1467_v9 }
 0x530   : > { %11362 = vmatprep.subr.bf16.mxu0 %v16172_v19  ;;  %v964_v19 = vld [vmem:[%s18216_s13 + $0x14b8] sm:$0xff] }
 0x531   : > { %11732 = vmatpush1.bf16.msra.mxu1 %v15661_v27  ;;  %v15710_v27 = vcombine.high %v960_v18, %v964_v19  ;;  %v15709_v5 = vcombine.low %v960_v18, %v964_v19 }
 0x532   : > { %11733 = vmatprep.subr.bf16.mxu1 %v15670_v55  ;;  %v968_v55 = vld [vmem:[%s18216_s13 + $0x14d8] sm:$0xff] }
 0x533   : > { %11363 = vmatpush1.bf16.msra.mxu0 %v16171_v36  ;;  %v16220_v36 = vcombine.high %v1471_v16, %v1475_v21 }
 0x534   : > { %11364 = vmatprep.subr.bf16.mxu0 %v16180_v11  ;;  %v972_v11 = vld [vmem:[%s18216_s13 + $0x14f8] sm:$0xff] }
 0x535   : > { %11734 = vmatpush1.bf16.msra.mxu1 %v15669_v46  ;;  %v15718_v41 = vcombine.high %v968_v55, %v972_v11  ;;  %v15717_v61 = vcombine.low %v968_v55, %v972_v11 }
 0x536   : > { %11735 = vmatprep.subr.bf16.mxu1 %v15678_v63  ;;  %v980_v63 = vld [vmem:[%s18216_s13 + $0x1538] sm:$0xff] }
 0x537   : > { %11365 = vmatpush1.bf16.msra.mxu0 %v16179_v35  ;;  %v976_v35 = vld [vmem:[%s18216_s13 + $0x1518] sm:$0xff] }
 0x538   : > { %11366 = vmatprep.subr.bf16.mxu0 %v16188_v40  ;;  %v1487_v40 = vld [vmem:[%s18216_s13 + $0x2510] sm:$0xff]  ;;  %v15726_v28 = vcombine.high %v976_v35, %v980_v63  ;;  %v15725_v56 = vcombine.low %v976_v35, %v980_v63 }
 0x539   : > { %11736 = vmatpush1.bf16.msra.mxu1 %v15677_v12  ;;  %v16236_v45 = vcombine.high %v1487_v40, %v1491_v44  ;;  %v984_v12 = vld [vmem:[%s18216_s13 + $0x1558] sm:$0xff]  ;;  %v16235_v20 = vcombine.low %v1487_v40, %v1491_v44 }
 0x53a   : > { %11737 = vmatprep.subr.bf16.mxu1 %v15686_v51  ;;  %v1495_v51 = vld [vmem:[%s18216_s13 + $0x2550] sm:$0xff] }
 0x53b   : > { %11367 = vmatpush1.bf16.msra.mxu0 %v16187_v31  ;;  %v988_v31 = vld [vmem:[%s18216_s13 + $0x1578] sm:$0xff] }
 0x53c   : > { %11368 = vmatprep.subr.bf16.mxu0 %v16196_v54  ;;  %v1499_v54 = vld [vmem:[%s18216_s13 + $0x2570] sm:$0xff]  ;;  %v15734_v59 = vcombine.high %v984_v12, %v988_v31  ;;  %v15733_v4 = vcombine.low %v984_v12, %v988_v31 }
 0x53d   : > { %11738 = vmatpush1.bf16.msra.mxu1 %v15685_v37  ;;  %v16244_v62 = vcombine.high %v1495_v51, %v1499_v54  ;;  %v992_v37 = vld [vmem:[%s18216_s13 + $0x1598] sm:$0xff]  ;;  %v16243_v6 = vcombine.low %v1495_v51, %v1499_v54 }
 0x53e   : > { %11748 = vmatprep.subr.bf16.mxu1 %v15694_v50  ;;  %v1503_v50 = vld [vmem:[%s18216_s13 + $0x2590] sm:$0xff] }
 0x53f   : > { %11369 = vmatpush1.bf16.msra.mxu0 %v16195_v1  ;;  %v996_v1 = vld [vmem:[%s18216_s13 + $0x15b8] sm:$0xff] }
 0x540   : > { %11379 = vmatprep.subr.bf16.mxu0 %v16204_v53  ;;  %11740 = vmatmul.mubr.bf16.vlgmr.msra.gmra.mrb[8].mxu1 %v18504_v23  ;;  %v1479_v23 = vld [vmem:[%s18216_s13 + $0x24d0] sm:$0xff]  ;;  %v15742_v8 = vcombine.high %v992_v37, %v996_v1  ;;  %v15741_v18 = vcombine.low %v992_v37, %v996_v1 }
 0x541   : > { %11749 = vmatpush1.bf16.msra.mxu1 %v15693_v13  ;;  %11780 = vmatprep.mubr.bf16.mxu1 %v18510_v30  ;;  %v16228_v46 = vcombine.high %v1479_v23, %v1483_v39  ;;  %v16227_v30 = vcombine.low %v1479_v23, %v1483_v39  ;;  %v1507_v53 = vld [vmem:[%s18216_s13 + $0x25b0] sm:$0xff]  ;;  %v1000_v13 = vld [vmem:[%s18216_s13 + $0x15d8] sm:$0xff] }
 0x542   : > { %11371 = vmatmul.mubr.bf16.vlgmr.msra.gmra.mrb[4].mxu0 %v18828_v47  ;;  %11750 = vmatprep.subr.bf16.mxu1 %v15702_v32  ;;  %v16252_v9 = vcombine.high %v1503_v50, %v1507_v53  ;;  %v1511_v32 = vld [vmem:[%s18216_s13 + $0x25d0] sm:$0xff]  ;;  %v16251_v19 = vcombine.low %v1503_v50, %v1507_v53 }
 0x543   : > { %11380 = vmatpush1.bf16.msra.mxu0 %v16203_v14  ;;  %11411 = vmatprep.mubr.bf16.mxu0 %v18834_v58  ;;  %v1004_v14 = vld [vmem:[%s18216_s13 + $0x15f8] sm:$0xff] }
 0x544   : > { %11381 = vmatprep.subr.bf16.mxu0 %v16212_v15  ;;  %v1515_v15 = vld [vmem:[%s18216_s13 + $0x25f0] sm:$0xff]  ;;  %v15750_v16 = vcombine.high %v1000_v13, %v1004_v14  ;;  %v15749_v55 = vcombine.low %v1000_v13, %v1004_v14 }
 0x545   : > { %11751 = vmatpush1.bf16.msra.mxu1 %v15701_v22  ;;  %v16260_v21 = vcombine.high %v1511_v32, %v1515_v15  ;;  %v1008_v22 = vld [vmem:[%s18216_s13 + $0x1618] sm:$0xff]  ;;  %v16259_v11 = vcombine.low %v1511_v32, %v1515_v15 }
 0x546   : > { %11752 = vmatprep.subr.bf16.mxu1 %v15710_v27  ;;  %v1519_v27 = vld [vmem:[%s18216_s13 + $0x2610] sm:$0xff] }
 0x547   : > { %11382 = vmatpush1.bf16.msra.mxu0 %v16211_v26  ;;  %v1012_v26 = vld [vmem:[%s18216_s13 + $0x1638] sm:$0xff] }
 0x548   : > { %11383 = vmatprep.subr.bf16.mxu0 %v16220_v36  ;;  %v1523_v36 = vld [vmem:[%s18216_s13 + $0x2630] sm:$0xff]  ;;  %v15758_v23 = vcombine.high %v1008_v22, %v1012_v26  ;;  %v15757_v35 = vcombine.low %v1008_v22, %v1012_v26 }
 0x549   : > { %11753 = vmatpush1.bf16.msra.mxu1 %v15709_v5  ;;  %v16268_v39 = vcombine.high %v1519_v27, %v1523_v36  ;;  %v1016_v5 = vld [vmem:[%s18216_s13 + $0x1658] sm:$0xff]  ;;  %v16267_v63 = vcombine.low %v1519_v27, %v1523_v36 }
 0x54a   : > { %11754 = vmatprep.subr.bf16.mxu1 %v15718_v41  ;;  %v1527_v41 = vld [vmem:[%s18216_s13 + $0x2650] sm:$0xff] }
 0x54b   : > { %11384 = vmatpush1.bf16.msra.mxu0 %v16219_v33  ;;  %v1020_v33 = vld [vmem:[%s18216_s13 + $0x1678] sm:$0xff] }
 0x54c   : > { %11385 = vmatprep.subr.bf16.mxu0 %v16228_v46  ;;  %v1531_v46 = vld [vmem:[%s18216_s13 + $0x2670] sm:$0xff]  ;;  %v15766_v40 = vcombine.high %v1016_v5, %v1020_v33  ;;  %v15765_v12 = vcombine.low %v1016_v5, %v1020_v33 }
 0x54d   : > { %11755 = vmatpush1.bf16.msra.mxu1 %v15717_v61  ;;  %v16276_v44 = vcombine.high %v1527_v41, %v1531_v46  ;;  %v1024_v61 = vld [vmem:[%s18216_s13 + $0x1698] sm:$0xff]  ;;  %v16275_v31 = vcombine.low %v1527_v41, %v1531_v46 }
 0x54e   : > { %11756 = vmatprep.subr.bf16.mxu1 %v15726_v28  ;;  %v1535_v28 = vld [vmem:[%s18216_s13 + $0x2690] sm:$0xff] }
 0x54f   : > { %11386 = vmatpush1.bf16.msra.mxu0 %v16227_v30  ;;  %v1028_v30 = vld [vmem:[%s18216_s13 + $0x16b8] sm:$0xff] }
 0x550   : > { %11387 = vmatprep.subr.bf16.mxu0 %v16236_v45  ;;  %v1539_v45 = vld [vmem:[%s18216_s13 + $0x26b0] sm:$0xff]  ;;  %v15774_v51 = vcombine.high %v1024_v61, %v1028_v30  ;;  %v15773_v37 = vcombine.low %v1024_v61, %v1028_v30 }
 0x551   : > { %11757 = vmatpush1.bf16.msra.mxu1 %v15725_v56  ;;  %v16284_v54 = vcombine.high %v1535_v28, %v1539_v45  ;;  %v1032_v56 = vld [vmem:[%s18216_s13 + $0x16d8] sm:$0xff]  ;;  %v16283_v1 = vcombine.low %v1535_v28, %v1539_v45 }
 0x552   : > { %11758 = vmatprep.subr.bf16.mxu1 %v15734_v59  ;;  %v1543_v59 = vld [vmem:[%s18216_s13 + $0x26d0] sm:$0xff] }
 0x553   : > { %11388 = vmatpush1.bf16.msra.mxu0 %v16235_v20  ;;  %v1036_v20 = vld [vmem:[%s18216_s13 + $0x16f8] sm:$0xff] }
 0x554   : > { %11389 = vmatprep.subr.bf16.mxu0 %v16244_v62  ;;  %v1547_v62 = vld [vmem:[%s18216_s13 + $0x26f0] sm:$0xff]  ;;  %v15782_v50 = vcombine.high %v1032_v56, %v1036_v20  ;;  %v15781_v13 = vcombine.low %v1032_v56, %v1036_v20 }
 0x555   : > { %11759 = vmatpush1.bf16.msra.mxu1 %v15733_v4  ;;  %v16292_v53 = vcombine.high %v1543_v59, %v1547_v62  ;;  %v1040_v4 = vld [vmem:[%s18216_s13 + $0x1718] sm:$0xff]  ;;  %v16291_v14 = vcombine.low %v1543_v59, %v1547_v62 }
 0x556   : > { %11760 = vmatprep.subr.bf16.mxu1 %v15742_v8  ;;  %v1551_v8 = vld [vmem:[%s18216_s13 + $0x2710] sm:$0xff] }
 0x557   : > { %11390 = vmatpush1.bf16.msra.mxu0 %v16243_v6  ;;  %v1044_v6 = vld [vmem:[%s18216_s13 + $0x1738] sm:$0xff] }
 0x558   : > { %11391 = vmatprep.subr.bf16.mxu0 %v16252_v9  ;;  %v1555_v9 = vld [vmem:[%s18216_s13 + $0x2730] sm:$0xff]  ;;  %v15790_v32 = vcombine.high %v1040_v4, %v1044_v6  ;;  %v15789_v22 = vcombine.low %v1040_v4, %v1044_v6 }
 0x559   : > { %11761 = vmatpush1.bf16.msra.mxu1 %v15741_v18  ;;  %v16300_v15 = vcombine.high %v1551_v8, %v1555_v9  ;;  %v1048_v18 = vld [vmem:[%s18216_s13 + $0x1758] sm:$0xff]  ;;  %v16299_v26 = vcombine.low %v1551_v8, %v1555_v9 }
 0x55a   : > { %11762 = vmatprep.subr.bf16.mxu1 %v15750_v16  ;;  %v1559_v16 = vld [vmem:[%s18216_s13 + $0x2750] sm:$0xff] }
 0x55b   : > { %11392 = vmatpush1.bf16.msra.mxu0 %v16251_v19  ;;  %v1052_v19 = vld [vmem:[%s18216_s13 + $0x1778] sm:$0xff] }
 0x55c   : > { %11393 = vmatprep.subr.bf16.mxu0 %v16260_v21  ;;  %v1563_v21 = vld [vmem:[%s18216_s13 + $0x2770] sm:$0xff]  ;;  %v15798_v27 = vcombine.high %v1048_v18, %v1052_v19  ;;  %v15797_v5 = vcombine.low %v1048_v18, %v1052_v19 }
 0x55d   : > { %11763 = vmatpush1.bf16.msra.mxu1 %v15749_v55  ;;  %v16308_v36 = vcombine.high %v1559_v16, %v1563_v21  ;;  %v1056_v55 = vld [vmem:[%s18216_s13 + $0x1798] sm:$0xff]  ;;  %v16307_v33 = vcombine.low %v1559_v16, %v1563_v21 }
 0x55e   : > { %11764 = vmatprep.subr.bf16.mxu1 %v15758_v23  ;;  %v1567_v23 = vld [vmem:[%s18216_s13 + $0x2790] sm:$0xff] }
 0x55f   : > { %11394 = vmatpush1.bf16.msra.mxu0 %v16259_v11  ;;  %v1060_v11 = vld [vmem:[%s18216_s13 + $0x17b8] sm:$0xff] }
 0x560   : > { %11395 = vmatprep.subr.bf16.mxu0 %v16268_v39  ;;  %v1571_v39 = vld [vmem:[%s18216_s13 + $0x27b0] sm:$0xff]  ;;  %v15806_v41 = vcombine.high %v1056_v55, %v1060_v11  ;;  %v15805_v61 = vcombine.low %v1056_v55, %v1060_v11 }
 0x561   : > { %11765 = vmatpush1.bf16.msra.mxu1 %v15757_v35  ;;  %v16316_v46 = vcombine.high %v1567_v23, %v1571_v39  ;;  %v1064_v35 = vld [vmem:[%s18216_s13 + $0x17d8] sm:$0xff]  ;;  %v16315_v30 = vcombine.low %v1567_v23, %v1571_v39 }
 0x562   : > { %11766 = vmatprep.subr.bf16.mxu1 %v15766_v40  ;;  %v1575_v40 = vld [vmem:[%s18216_s13 + $0x27d0] sm:$0xff]  ;;  %v1104_v39 = vld [vmem:[%s18216_s13 + $0x1918] sm:$0xff] }
 0x563   : > { %11396 = vmatpush1.bf16.msra.mxu0 %v16267_v63  ;;  %v1068_v63 = vld [vmem:[%s18216_s13 + $0x17f8] sm:$0xff] }
 0x564   : > { %11397 = vmatprep.subr.bf16.mxu0 %v16276_v44  ;;  %v1579_v44 = vld [vmem:[%s18216_s13 + $0x27f0] sm:$0xff]  ;;  %v15814_v28 = vcombine.high %v1064_v35, %v1068_v63  ;;  %v15813_v56 = vcombine.low %v1064_v35, %v1068_v63 }
 0x565   : > { %11767 = vmatpush1.bf16.msra.mxu1 %v15765_v12  ;;  %v16324_v45 = vcombine.high %v1575_v40, %v1579_v44  ;;  %v1072_v12 = vld [vmem:[%s18216_s13 + $0x1818] sm:$0xff]  ;;  %v16323_v20 = vcombine.low %v1575_v40, %v1579_v44 }
 0x566   : > { %11768 = vmatprep.subr.bf16.mxu1 %v15774_v51  ;;  %v1583_v51 = vld [vmem:[%s18216_s13 + $0x2810] sm:$0xff]  ;;  %v1112_v40 = vld [vmem:[%s18216_s13 + $0x1958] sm:$0xff] }
 0x567   : > { %11398 = vmatpush1.bf16.msra.mxu0 %v16275_v31  ;;  %v1076_v31 = vld [vmem:[%s18216_s13 + $0x1838] sm:$0xff] }
 0x568   : > { %11399 = vmatprep.subr.bf16.mxu0 %v16284_v54  ;;  %v1587_v54 = vld [vmem:[%s18216_s13 + $0x2830] sm:$0xff]  ;;  %v15822_v59 = vcombine.high %v1072_v12, %v1076_v31  ;;  %v15821_v4 = vcombine.low %v1072_v12, %v1076_v31  ;;  %v1116_v44 = vld [vmem:[%s18216_s13 + $0x1978] sm:$0xff] }
 0x569   : > { %11769 = vmatpush1.bf16.msra.mxu1 %v15773_v37  ;;  %v16332_v62 = vcombine.high %v1583_v51, %v1587_v54  ;;  %v1080_v37 = vld [vmem:[%s18216_s13 + $0x1858] sm:$0xff]  ;;  %v16331_v6 = vcombine.low %v1583_v51, %v1587_v54  ;;  %v15862_v12 = vcombine.high %v1112_v40, %v1116_v44  ;;  %v1631_v31 = vld [vmem:[%s18216_s13 + $0x2990] sm:$0xff] }
 0x56a   : > { %11770 = vmatprep.subr.bf16.mxu1 %v15782_v50  ;;  %v1591_v50 = vld [vmem:[%s18216_s13 + $0x2850] sm:$0xff]  ;;  %v1120_v51 = vld [vmem:[%s18216_s13 + $0x1998] sm:$0xff] }
 0x56b   : > { %11400 = vmatpush1.bf16.msra.mxu0 %v16283_v1  ;;  %v1084_v1 = vld [vmem:[%s18216_s13 + $0x1878] sm:$0xff] }
 0x56c   : > { %11401 = vmatprep.subr.bf16.mxu0 %v16292_v53  ;;  %v1595_v53 = vld [vmem:[%s18216_s13 + $0x2870] sm:$0xff]  ;;  %v15830_v8 = vcombine.high %v1080_v37, %v1084_v1  ;;  %v15829_v18 = vcombine.low %v1080_v37, %v1084_v1 }
 0x56d   : > { %11771 = vmatpush1.bf16.msra.mxu1 %v15781_v13  ;;  %v16340_v9 = vcombine.high %v1591_v50, %v1595_v53  ;;  %v1088_v13 = vld [vmem:[%s18216_s13 + $0x1898] sm:$0xff]  ;;  %v16339_v19 = vcombine.low %v1591_v50, %v1595_v53  ;;  %v1639_v1 = vld [vmem:[%s18216_s13 + $0x29d0] sm:$0xff] }
 0x56e   : > { %11772 = vmatprep.subr.bf16.mxu1 %v15790_v32  ;;  %v1599_v32 = vld [vmem:[%s18216_s13 + $0x2890] sm:$0xff] }
 0x56f   : > { %11402 = vmatpush1.bf16.msra.mxu0 %v16291_v14  ;;  %v1092_v14 = vld [vmem:[%s18216_s13 + $0x18b8] sm:$0xff]  ;;  %v1643_v50 = vld [vmem:[%s18216_s13 + $0x29f0] sm:$0xff] }
 0x570   : > { %11403 = vmatprep.subr.bf16.mxu0 %v16300_v15  ;;  %v1603_v15 = vld [vmem:[%s18216_s13 + $0x28b0] sm:$0xff]  ;;  %v15838_v16 = vcombine.high %v1088_v13, %v1092_v14 }
 0x571   : > { %11773 = vmatpush1.bf16.msra.mxu1 %v15789_v22  ;;  %v16348_v21 = vcombine.high %v1599_v32, %v1603_v15  ;;  %v1096_v22 = vld [vmem:[%s18216_s13 + $0x18d8] sm:$0xff]  ;;  %v16347_v55 = vcombine.low %v1599_v32, %v1603_v15  ;;  %v1651_v32 = vld [vmem:[%s18216_s13 + $0x2a30] sm:$0xff] }
 0x572   : > { %11774 = vmatprep.subr.bf16.mxu1 %v15798_v27  ;;  %v1611_v27 = vld [vmem:[%s18216_s13 + $0x28f0] sm:$0xff]  ;;  %v1136_v15 = vld [vmem:[%s18216_s13 + $0x1a18] sm:$0xff] }
 0x573   : > { %11404 = vmatpush1.bf16.msra.mxu0 %v16299_v26  ;;  %v1100_v26 = vld [vmem:[%s18216_s13 + $0x18f8] sm:$0xff] }
 0x574   : > { %11405 = vmatprep.subr.bf16.mxu0 %v16308_v36  ;;  %v15837_v36 = vcombine.low %v1088_v13, %v1092_v14  ;;  %v15846_v11 = vcombine.high %v1096_v22, %v1100_v26  ;;  %v1647_v14 = vld [vmem:[%s18216_s13 + $0x2a10] sm:$0xff] }
 0x575   : > { %11775 = vmatpush1.bf16.msra.mxu1 %v15797_v5  ;;  %v1108_v5 = vld [vmem:[%s18216_s13 + $0x1938] sm:$0xff] }
 0x576   : > { %11776 = vmatprep.subr.bf16.mxu1 %v15806_v41  ;;  %v1619_v41 = vld [vmem:[%s18216_s13 + $0x2930] sm:$0xff]  ;;  %v15854_v35 = vcombine.high %v1104_v39, %v1108_v5 }
 0x577   : > { %11406 = vmatpush1.bf16.msra.mxu0 %v16307_v33  ;;  %v1615_v33 = vld [vmem:[%s18216_s13 + $0x2910] sm:$0xff] }
 0x578   : > { %11407 = vmatprep.subr.bf16.mxu0 %v16316_v46  ;;  %v15845_v46 = vcombine.low %v1096_v22, %v1100_v26  ;;  %v16364_v63 = vcombine.high %v1615_v33, %v1619_v41  ;;  %v1655_v26 = vld [vmem:[%s18216_s13 + $0x2a50] sm:$0xff] }
 0x579   : > { %11777 = vmatpush1.bf16.msra.mxu1 %v15805_v61  ;;  %v1623_v61 = vld [vmem:[%s18216_s13 + $0x2950] sm:$0xff] }
 0x57a   : > { %11778 = vmatprep.subr.bf16.mxu1 %v15814_v28  ;;  %v15853_v28 = vcombine.low %v1104_v39, %v1108_v5  ;;  %v1663_v5 = vld [vmem:[%s18216_s13 + $0x2a90] sm:$0xff] }
 0x57b   : > { %11408 = vmatpush1.bf16.msra.mxu0 %v16315_v30  ;;  %v1627_v30 = vld [vmem:[%s18216_s13 + $0x2970] sm:$0xff] }
 0x57c   : > { %11409 = vmatprep.subr.bf16.mxu0 %v16324_v45  ;;  %v16363_v45 = vcombine.low %v1615_v33, %v1619_v41  ;;  %v16372_v54 = vcombine.high %v1623_v61, %v1627_v30  ;;  %v1667_v33 = vld [vmem:[%s18216_s13 + $0x2ab0] sm:$0xff]  ;;  %v1152_v41 = vld [vmem:[%s18216_s13 + $0x1a98] sm:$0xff] }
 0x57d   : > { %11779 = vmatpush1.bf16.msra.mxu1 %v15813_v56  ;;  %v1124_v56 = vld [vmem:[%s18216_s13 + $0x19b8] sm:$0xff] }
 0x57e   : > { %11789 = vmatprep.subr.bf16.mxu1 %v15822_v59  ;;  %v15861_v59 = vcombine.low %v1112_v40, %v1116_v44  ;;  %v15870_v37 = vcombine.high %v1120_v51, %v1124_v56  ;;  %v1671_v44 = vld [vmem:[%s18216_s13 + $0x2ad0] sm:$0xff] }
 0x57f   : > { %11410 = vmatpush1.bf16.msra.mxu0 %v16323_v20  ;;  %v1635_v20 = vld [vmem:[%s18216_s13 + $0x29b0] sm:$0xff] }
 0x580   : > { %11420 = vmatprep.subr.bf16.mxu0 %v16332_v62  ;;  %11781 = vmatmul.mubr.bf16.vlgmr.msra.gmra.mrb[8].mxu1 %v18587_v0  ;;  %v1607_v0 = vld [vmem:[%s18216_s13 + $0x28d0] sm:$0xff]  ;;  %v16371_v62 = vcombine.low %v1623_v61, %v1627_v30  ;;  %v16380_v53 = vcombine.high %v1631_v31, %v1635_v20  ;;  %v1160_v30 = vld [vmem:[%s18216_s13 + $0x1ad8] sm:$0xff] }
 0x581   : > { %11790 = vmatpush1.bf16.msra.mxu1 %v15821_v4  ;;  %11821 = vmatprep.mubr.bf16.mxu1 %v18592_v7  ;;  %v16356_v23 = vcombine.high %v1607_v0, %v1611_v27  ;;  %v16355_v7 = vcombine.low %v1607_v0, %v1611_v27  ;;  %v1128_v4 = vld [vmem:[%s18216_s13 + $0x19d8] sm:$0xff]  ;;  %v1659_v0 = vld [vmem:[%s18216_s13 + $0x2a70] sm:$0xff] }
 0x582   : > { %11412 = vmatmul.mubr.bf16.vlgmr.msra.gmra.mrb[4].mxu0 %v18911_v2  ;;  %11791 = vmatprep.subr.bf16.mxu1 %v15830_v8  ;;  %v15869_v8 = vcombine.low %v1120_v51, %v1124_v56  ;;  %v1144_v27 = vld [vmem:[%s18216_s13 + $0x1a58] sm:$0xff]  ;;  %v1675_v61 = vld [vmem:[%s18216_s13 + $0x2af0] sm:$0xff] }
 0x583   : > { %11421 = vmatpush1.bf16.msra.mxu0 %v16331_v6  ;;  %11452 = vmatprep.mubr.bf16.mxu0 %v18916_v10  ;;  %v1132_v6 = vld [vmem:[%s18216_s13 + $0x19f8] sm:$0xff]  ;;  %v1683_v56 = vld [vmem:[%s18216_s13 + $0x2b30] sm:$0xff] }
 0x584   : > { %11422 = vmatprep.subr.bf16.mxu0 %v16340_v9  ;;  %v16379_v9 = vcombine.low %v1631_v31, %v1635_v20  ;;  %v15878_v13 = vcombine.high %v1128_v4, %v1132_v6  ;;  %v16411_v31 = vcombine.low %v1663_v5, %v1667_v33  ;;  %v1168_v20 = vld [vmem:[%s18216_s13 + $0x1b18] sm:$0xff] }
 0x585   : > { %11792 = vmatpush1.bf16.msra.mxu1 %v15829_v18  ;;  %v16388_v18 = vcombine.high %v1639_v1, %v1643_v50 }
 0x586   : > { %11793 = vmatprep.subr.bf16.mxu1 %v15838_v16  ;;  %v15877_v16 = vcombine.low %v1128_v4, %v1132_v6  ;;  %v1691_v4 = vld [vmem:[%s18216_s13 + $0x2b70] sm:$0xff]  ;;  %v1176_v6 = vld [vmem:[%s18216_s13 + $0x1b58] sm:$0xff] }
 0x587   : > { %11423 = vmatpush1.bf16.msra.mxu0 %v16339_v19  ;;  %v1140_v19 = vld [vmem:[%s18216_s13 + $0x1a38] sm:$0xff] }
 0x588   : > { %11424 = vmatprep.subr.bf16.mxu0 %v16348_v21  ;;  %v16387_v21 = vcombine.low %v1639_v1, %v1643_v50  ;;  %v15886_v22 = vcombine.high %v1136_v15, %v1140_v19  ;;  %v16419_v1 = vcombine.low %v1671_v44, %v1675_v61 }
 0x589   : > { %11794 = vmatpush1.bf16.msra.mxu1 %v15837_v36  ;;  %v16396_v36 = vcombine.high %v1647_v14, %v1651_v32 }
 0x58a   : > { %11795 = vmatprep.subr.bf16.mxu1 %v15846_v11  ;;  %v15885_v11 = vcombine.low %v1136_v15, %v1140_v19  ;;  %v1695_v15 = vld [vmem:[%s18216_s13 + $0x2b90] sm:$0xff]  ;;  %v1184_v19 = vld [vmem:[%s18216_s13 + $0x1b98] sm:$0xff] }
 0x58b   : > { %11425 = vmatpush1.bf16.msra.mxu0 %v16347_v55  ;;  %v1148_v55 = vld [vmem:[%s18216_s13 + $0x1a78] sm:$0xff] }
 0x58c   : > { %11426 = vmatprep.subr.bf16.mxu0 %v16356_v23  ;;  %v16395_v23 = vcombine.low %v1647_v14, %v1651_v32  ;;  %v15894_v39 = vcombine.high %v1144_v27, %v1148_v55 }
 0x58d   : > { %11796 = vmatpush1.bf16.msra.mxu1 %v15845_v46  ;;  %v16404_v46 = vcombine.high %v1655_v26, %v1659_v0 }
 0x58e   : > { %11797 = vmatprep.subr.bf16.mxu1 %v15854_v35  ;;  %v15893_v35 = vcombine.low %v1144_v27, %v1148_v55  ;;  %v1703_v27 = vld [vmem:[%s18216_s13 + $0x2bd0] sm:$0xff]  ;;  %v1192_v55 = vld [vmem:[%s18216_s13 + $0x1bd8] sm:$0xff] }
 0x58f   : > { %11427 = vmatpush1.bf16.msra.mxu0 %v16355_v7  ;;  %v1156_v7 = vld [vmem:[%s18216_s13 + $0x1ab8] sm:$0xff] }
 0x590   : > { %11428 = vmatprep.subr.bf16.mxu0 %v16364_v63  ;;  %v16403_v63 = vcombine.low %v1655_v26, %v1659_v0  ;;  %v15902_v40 = vcombine.high %v1152_v41, %v1156_v7 }
 0x591   : > { %11798 = vmatpush1.bf16.msra.mxu1 %v15853_v28  ;;  %v16412_v28 = vcombine.high %v1663_v5, %v1667_v33 }
 0x592   : > { %11799 = vmatprep.subr.bf16.mxu1 %v15862_v12  ;;  %v15901_v12 = vcombine.low %v1152_v41, %v1156_v7  ;;  %v1711_v41 = vld [vmem:[%s18216_s13 + $0x2c10] sm:$0xff]  ;;  %v1200_v7 = vld [vmem:[%s18216_s13 + $0x1c18] sm:$0xff] }
 0x593   : > { %11429 = vmatpush1.bf16.msra.mxu0 %v16363_v45  ;;  %v1164_v45 = vld [vmem:[%s18216_s13 + $0x1af8] sm:$0xff] }
 0x594   : > { %11430 = vmatprep.subr.bf16.mxu0 %v16372_v54  ;;  %v15910_v51 = vcombine.high %v1160_v30, %v1164_v45  ;;  %v1679_v54 = vld [vmem:[%s18216_s13 + $0x2b10] sm:$0xff] }
 0x595   : > { %11800 = vmatpush1.bf16.msra.mxu1 %v15861_v59  ;;  %v16420_v59 = vcombine.high %v1671_v44, %v1675_v61  ;;  %v16427_v14 = vcombine.low %v1679_v54, %v1683_v56 }
 0x596   : > { %11801 = vmatprep.subr.bf16.mxu1 %v15870_v37  ;;  %v15909_v37 = vcombine.low %v1160_v30, %v1164_v45  ;;  %v1719_v30 = vld [vmem:[%s18216_s13 + $0x2c50] sm:$0xff]  ;;  %v1208_v45 = vld [vmem:[%s18216_s13 + $0x1c58] sm:$0xff] }
 0x597   : > { %11431 = vmatpush1.bf16.msra.mxu0 %v16371_v62  ;;  %v1172_v62 = vld [vmem:[%s18216_s13 + $0x1b38] sm:$0xff] }
 0x598   : > { %11432 = vmatprep.subr.bf16.mxu0 %v16380_v53  ;;  %v15918_v50 = vcombine.high %v1168_v20, %v1172_v62  ;;  %v1687_v53 = vld [vmem:[%s18216_s13 + $0x2b50] sm:$0xff] }
 0x599   : > { %11802 = vmatpush1.bf16.msra.mxu1 %v15869_v8  ;;  %v16428_v8 = vcombine.high %v1679_v54, %v1683_v56  ;;  %v16435_v26 = vcombine.low %v1687_v53, %v1691_v4 }
 0x59a   : > { %11803 = vmatprep.subr.bf16.mxu1 %v15878_v13  ;;  %v15917_v13 = vcombine.low %v1168_v20, %v1172_v62  ;;  %v1727_v20 = vld [vmem:[%s18216_s13 + $0x2c90] sm:$0xff]  ;;  %v1216_v62 = vld [vmem:[%s18216_s13 + $0x1c98] sm:$0xff] }
 0x59b   : > { %11433 = vmatpush1.bf16.msra.mxu0 %v16379_v9  ;;  %v1180_v9 = vld [vmem:[%s18216_s13 + $0x1b78] sm:$0xff] }
 0x59c   : > { %11434 = vmatprep.subr.bf16.mxu0 %v16388_v18  ;;  %v15926_v32 = vcombine.high %v1176_v6, %v1180_v9  ;;  %v1699_v18 = vld [vmem:[%s18216_s13 + $0x2bb0] sm:$0xff] }
 0x59d   : > { %11804 = vmatpush1.bf16.msra.mxu1 %v15877_v16  ;;  %v16436_v16 = vcombine.high %v1687_v53, %v1691_v4  ;;  %v16443_v5 = vcombine.low %v1695_v15, %v1699_v18 }
 0x59e   : > { %11805 = vmatprep.subr.bf16.mxu1 %v15886_v22  ;;  %v15925_v22 = vcombine.low %v1176_v6, %v1180_v9  ;;  %v1735_v6 = vld [vmem:[%s18216_s13 + $0x2cd0] sm:$0xff]  ;;  %v1224_v9 = vld [vmem:[%s18216_s13 + $0x1cd8] sm:$0xff] }
 0x59f   : > { %11435 = vmatpush1.bf16.msra.mxu0 %v16387_v21  ;;  %v1188_v21 = vld [vmem:[%s18216_s13 + $0x1bb8] sm:$0xff] }
 0x5a0   : > { %11436 = vmatprep.subr.bf16.mxu0 %v16396_v36  ;;  %v15934_v0 = vcombine.high %v1184_v19, %v1188_v21  ;;  %v1707_v36 = vld [vmem:[%s18216_s13 + $0x2bf0] sm:$0xff] }
 0x5a1   : > { %11806 = vmatpush1.bf16.msra.mxu1 %v15885_v11  ;;  %v16444_v11 = vcombine.high %v1695_v15, %v1699_v18  ;;  %v16451_v44 = vcombine.low %v1703_v27, %v1707_v36  ;;  %v1743_v18 = vld [vmem:[%s18216_s13 + $0x2d10] sm:$0xff] }
 0x5a2   : > { %11807 = vmatprep.subr.bf16.mxu1 %v15894_v39  ;;  %v15933_v39 = vcombine.low %v1184_v19, %v1188_v21  ;;  %v1747_v19 = vld [vmem:[%s18216_s13 + $0x2d30] sm:$0xff] }
 0x5a3   : > { %11437 = vmatpush1.bf16.msra.mxu0 %v16395_v23  ;;  %v1196_v23 = vld [vmem:[%s18216_s13 + $0x1bf8] sm:$0xff] }
 0x5a4   : > { %11438 = vmatprep.subr.bf16.mxu0 %v16404_v46  ;;  %v15942_v33 = vcombine.high %v1192_v55, %v1196_v23  ;;  %v1715_v46 = vld [vmem:[%s18216_s13 + $0x2c30] sm:$0xff] }
 0x5a5   : > { %11808 = vmatpush1.bf16.msra.mxu1 %v15893_v35  ;;  %v16452_v35 = vcombine.high %v1703_v27, %v1707_v36  ;;  %v16459_v54 = vcombine.low %v1711_v41, %v1715_v46  ;;  %v1751_v27 = vld [vmem:[%s18216_s13 + $0x2d50] sm:$0xff] }
 0x5a6   : > { %11809 = vmatprep.subr.bf16.mxu1 %v15902_v40  ;;  %v15941_v40 = vcombine.low %v1192_v55, %v1196_v23  ;;  %v1755_v36 = vld [vmem:[%s18216_s13 + $0x2d70] sm:$0xff]  ;;  %v1240_v55 = vld [vmem:[%s18216_s13 + $0x1d58] sm:$0xff] }
 0x5a7   : > { %11439 = vmatpush1.bf16.msra.mxu0 %v16403_v63  ;;  %v1204_v63 = vld [vmem:[%s18216_s13 + $0x1c38] sm:$0xff] }
 0x5a8   : > { %11440 = vmatprep.subr.bf16.mxu0 %v16412_v28  ;;  %v15950_v61 = vcombine.high %v1200_v7, %v1204_v63  ;;  %v1723_v28 = vld [vmem:[%s18216_s13 + $0x2c70] sm:$0xff]  ;;  %v1244_v23 = vld [vmem:[%s18216_s13 + $0x1d78] sm:$0xff] }
 0x5a9   : > { %11810 = vmatpush1.bf16.msra.mxu1 %v15901_v12  ;;  %v16460_v12 = vcombine.high %v1711_v41, %v1715_v46  ;;  %v16467_v53 = vcombine.low %v1719_v30, %v1723_v28  ;;  %v1759_v41 = vld [vmem:[%s18216_s13 + $0x2d90] sm:$0xff]  ;;  %v1248_v46 = vld [vmem:[%s18216_s13 + $0x1d98] sm:$0xff] }
 0x5aa   : > { %11811 = vmatprep.subr.bf16.mxu1 %v15910_v51  ;;  %v15949_v51 = vcombine.low %v1200_v7, %v1204_v63  ;;  %v16500_v7 = vcombine.high %v1751_v27, %v1755_v36  ;;  %v1763_v63 = vld [vmem:[%s18216_s13 + $0x2db0] sm:$0xff] }
 0x5ab   : > { %11441 = vmatpush1.bf16.msra.mxu0 %v16411_v31  ;;  %v1212_v31 = vld [vmem:[%s18216_s13 + $0x1c78] sm:$0xff] }
 0x5ac   : > { %11442 = vmatprep.subr.bf16.mxu0 %v16420_v59  ;;  %v15958_v56 = vcombine.high %v1208_v45, %v1212_v31  ;;  %v1731_v59 = vld [vmem:[%s18216_s13 + $0x2cb0] sm:$0xff] }
 0x5ad   : > { %11812 = vmatpush1.bf16.msra.mxu1 %v15909_v37  ;;  %v16468_v37 = vcombine.high %v1719_v30, %v1723_v28  ;;  %v1767_v30 = vld [vmem:[%s18216_s13 + $0x2dd0] sm:$0xff] }
 0x5ae   : > { %11813 = vmatprep.subr.bf16.mxu1 %v15918_v50  ;;  %v15957_v50 = vcombine.low %v1208_v45, %v1212_v31  ;;  %v1771_v28 = vld [vmem:[%s18216_s13 + $0x2df0] sm:$0xff]  ;;  %v16508_v45 = vcombine.high %v1759_v41, %v1763_v63  ;;  %v1260_v31 = vld [vmem:[%s18216_s13 + $0x1df8] sm:$0xff] }
 0x5af   : > { %11443 = vmatpush1.bf16.msra.mxu0 %v16419_v1  ;;  %v1220_v1 = vld [vmem:[%s18216_s13 + $0x1cb8] sm:$0xff] }
 0x5b0   : > { %11444 = vmatprep.subr.bf16.mxu0 %v16428_v8  ;;  %v15966_v4 = vcombine.high %v1216_v62, %v1220_v1  ;;  %v1739_v8 = vld [vmem:[%s18216_s13 + $0x2cf0] sm:$0xff] }
 0x5b1   : > { %11814 = vmatpush1.bf16.msra.mxu1 %v15917_v13  ;;  %v16476_v13 = vcombine.high %v1727_v20, %v1731_v59  ;;  %v16484_v21 = vcombine.high %v1735_v6, %v1739_v8 }
 0x5b2   : > { %11815 = vmatprep.subr.bf16.mxu1 %v15926_v32  ;;  %v16475_v32 = vcombine.low %v1727_v20, %v1731_v59  ;;  %v1775_v20 = vld [vmem:[%s18216_s13 + $0x2e10] sm:$0xff] }
 0x5b3   : > { %11445 = vmatpush1.bf16.msra.mxu0 %v16427_v14  ;;  %v1228_v14 = vld [vmem:[%s18216_s13 + $0x1cf8] sm:$0xff]  ;;  %v1779_v59 = vld [vmem:[%s18216_s13 + $0x2e30] sm:$0xff] }
 0x5b4   : > { %11446 = vmatprep.subr.bf16.mxu0 %v16436_v16  ;;  %v15974_v15 = vcombine.high %v1224_v9, %v1228_v14  ;;  %v1232_v16 = vld [vmem:[%s18216_s13 + $0x1d18] sm:$0xff] }
 0x5b5   : > { %11816 = vmatpush1.bf16.msra.mxu1 %v15925_v22  ;;  %v1236_v22 = vld [vmem:[%s18216_s13 + $0x1d38] sm:$0xff] }
 0x5b6   : > { %11817 = vmatprep.subr.bf16.mxu1 %v15934_v0  ;;  %v15982_v0 = vcombine.high %v1232_v16, %v1236_v22 }
 0x5b7   : > { %11447 = vmatpush1.bf16.msra.mxu0 %v16435_v26  ;;  %v15973_v26 = vcombine.low %v1224_v9, %v1228_v14  ;;  %v1272_v9 = vld [vmem:[%s18216_s13 + $0x1e58] sm:$0xff] }
 0x5b8   : > { %11448 = vmatprep.subr.bf16.mxu0 %v16444_v11  ;;  %v16492_v11 = vcombine.high %v1743_v18, %v1747_v19  ;;  %v1276_v14 = vld [vmem:[%s18216_s13 + $0x1e78] sm:$0xff] }
 0x5b9   : > { %11818 = vmatpush1.bf16.msra.mxu1 %v15933_v39  ;;  %v15981_v39 = vcombine.low %v1232_v16, %v1236_v22  ;;  %v1280_v16 = vld [vmem:[%s18216_s13 + $0x1e98] sm:$0xff] }
 0x5ba   : > { %11819 = vmatprep.subr.bf16.mxu1 %v15942_v33  ;;  %v15990_v33 = vcombine.high %v1240_v55, %v1244_v23  ;;  %v1284_v22 = vld [vmem:[%s18216_s13 + $0x1eb8] sm:$0xff] }
 0x5bb   : > { %11449 = vmatpush1.bf16.msra.mxu0 %v16443_v5  ;;  %v16491_v5 = vcombine.low %v1743_v18, %v1747_v19  ;;  %v1791_v18 = vld [vmem:[%s18216_s13 + $0x2e90] sm:$0xff] }
 0x5bc   : > { %11450 = vmatprep.subr.bf16.mxu0 %v16452_v35  ;;  %v1252_v35 = vld [vmem:[%s18216_s13 + $0x1db8] sm:$0xff]  ;;  %v1795_v19 = vld [vmem:[%s18216_s13 + $0x2eb0] sm:$0xff] }
 0x5bd   : > { %11820 = vmatpush1.bf16.msra.mxu1 %v15941_v40  ;;  %v15989_v40 = vcombine.low %v1240_v55, %v1244_v23  ;;  %v1288_v55 = vld [vmem:[%s18216_s13 + $0x1ed8] sm:$0xff] }
 0x5be   : > { %11830 = vmatprep.subr.bf16.mxu1 %v15950_v61  ;;  %v15998_v61 = vcombine.high %v1248_v46, %v1252_v35  ;;  %v1292_v23 = vld [vmem:[%s18216_s13 + $0x1ef8] sm:$0xff] }
 0x5bf   : > { %11451 = vmatpush1.bf16.msra.mxu0 %v16451_v44  ;;  %v16499_v44 = vcombine.low %v1751_v27, %v1755_v36  ;;  %v1799_v27 = vld [vmem:[%s18216_s13 + $0x2ed0] sm:$0xff] }
 0x5c0   : > { %11461 = vmatprep.subr.bf16.mxu0 %v16460_v12  ;;  %11822 = vmatmul.mubr.bf16.vlgmr.msra.gmra.mrb[8].mxu1 %v18662_v42  ;;  %v15965_v42 = vcombine.low %v1216_v62, %v1220_v1  ;;  %v1256_v12 = vld [vmem:[%s18216_s13 + $0x1dd8] sm:$0xff]  ;;  %v1803_v36 = vld [vmem:[%s18216_s13 + $0x2ef0] sm:$0xff] }
 0x5c1   : > { %11831 = vmatpush1.bf16.msra.mxu1 %v15949_v51  ;;  %11862 = vmatprep.mubr.bf16.mxu1 %v18668_v49  ;;  %v16483_v49 = vcombine.low %v1735_v6, %v1739_v8  ;;  %v15997_v51 = vcombine.low %v1248_v46, %v1252_v35  ;;  %v1264_v62 = vld [vmem:[%s18216_s13 + $0x1e18] sm:$0xff]  ;;  %v1783_v6 = vld [vmem:[%s18216_s13 + $0x2e50] sm:$0xff]  ;;  %v16548_v35 = vcombine.high %v1799_v27, %v1803_v36 }
 0x5c2   : > { %11453 = vmatmul.mubr.bf16.vlgmr.msra.gmra.mrb[4].mxu0 %v18986_v25  ;;  %11832 = vmatprep.subr.bf16.mxu1 %v15958_v56  ;;  %v16006_v56 = vcombine.high %v1256_v12, %v1260_v31  ;;  %v1268_v1 = vld [vmem:[%s18216_s13 + $0x1e38] sm:$0xff]  ;;  %v1787_v8 = vld [vmem:[%s18216_s13 + $0x2e70] sm:$0xff] }
 0x5c3   : > { %11462 = vmatpush1.bf16.msra.mxu0 %v16459_v54  ;;  %11493 = vmatprep.mubr.bf16.mxu0 %v18992_v34  ;;  %v16507_v54 = vcombine.low %v1759_v41, %v1763_v63  ;;  %v1807_v41 = vld [vmem:[%s18216_s13 + $0x2f10] sm:$0xff]  ;;  %v1300_v63 = vld [vmem:[%s18216_s13 + $0x1f38] sm:$0xff] }
 0x5c4   : > { %11463 = vmatprep.subr.bf16.mxu0 %v16468_v37  ;;  %v16516_v37 = vcombine.high %v1767_v30, %v1771_v28  ;;  %v1811_v46 = vld [vmem:[%s18216_s13 + $0x2f30] sm:$0xff] }
 0x5c5   : > { %11833 = vmatpush1.bf16.msra.mxu1 %v15957_v50  ;;  %v16005_v50 = vcombine.low %v1256_v12, %v1260_v31  ;;  %v16556_v12 = vcombine.high %v1807_v41, %v1811_v46  ;;  %v1308_v31 = vld [vmem:[%s18216_s13 + $0x1f78] sm:$0xff] }
 0x5c6   : > { %11834 = vmatprep.subr.bf16.mxu1 %v15966_v4  ;;  %v16014_v4 = vcombine.high %v1264_v62, %v1268_v1 }
 0x5c7   : > { %11464 = vmatpush1.bf16.msra.mxu0 %v16467_v53  ;;  %v16515_v53 = vcombine.low %v1767_v30, %v1771_v28  ;;  %v1815_v30 = vld [vmem:[%s18216_s13 + $0x2f50] sm:$0xff] }
 0x5c8   : > { %11465 = vmatprep.subr.bf16.mxu0 %v16476_v13  ;;  %v16524_v13 = vcombine.high %v1775_v20, %v1779_v59  ;;  %v1819_v28 = vld [vmem:[%s18216_s13 + $0x2f70] sm:$0xff] }
 0x5c9   : > { %11835 = vmatpush1.bf16.msra.mxu1 %v15965_v42  ;;  %v16013_v42 = vcombine.low %v1264_v62, %v1268_v1  ;;  %v1312_v62 = vld [vmem:[%s18216_s13 + $0x1f98] sm:$0xff] }
 0x5ca   : > { %11836 = vmatprep.subr.bf16.mxu1 %v15974_v15  ;;  %v16022_v15 = vcombine.high %v1272_v9, %v1276_v14  ;;  %v1316_v1 = vld [vmem:[%s18216_s13 + $0x1fb8] sm:$0xff] }
 0x5cb   : > { %11466 = vmatpush1.bf16.msra.mxu0 %v16475_v32  ;;  %v16523_v32 = vcombine.low %v1775_v20, %v1779_v59  ;;  %v1823_v20 = vld [vmem:[%s18216_s13 + $0x2f90] sm:$0xff] }
 0x5cc   : > { %11467 = vmatprep.subr.bf16.mxu0 %v16484_v21  ;;  %v16532_v21 = vcombine.high %v1783_v6, %v1787_v8  ;;  %v1827_v59 = vld [vmem:[%s18216_s13 + $0x2fb0] sm:$0xff] }
 0x5cd   : > { %11837 = vmatpush1.bf16.msra.mxu1 %v15973_v26  ;;  %v16021_v26 = vcombine.low %v1272_v9, %v1276_v14  ;;  %v1320_v9 = vld [vmem:[%s18216_s13 + $0x1fd8] sm:$0xff] }
 0x5ce   : > { %11838 = vmatprep.subr.bf16.mxu1 %v15982_v0  ;;  %v16030_v0 = vcombine.high %v1280_v16, %v1284_v22  ;;  %v1324_v14 = vld [vmem:[%s18216_s13 + $0x1ff8] sm:$0xff] }
 0x5cf   : > { %11468 = vmatpush1.bf16.msra.mxu0 %v16483_v49  ;;  %v16531_v49 = vcombine.low %v1783_v6, %v1787_v8  ;;  %v1831_v6 = vld [vmem:[%s18216_s13 + $0x2fd0] sm:$0xff] }
 0x5d0   : > { %11469 = vmatprep.subr.bf16.mxu0 %v16492_v11  ;;  %v16540_v11 = vcombine.high %v1791_v18, %v1795_v19  ;;  %v1835_v8 = vld [vmem:[%s18216_s13 + $0x2ff0] sm:$0xff] }
 0x5d1   : > { %11839 = vmatpush1.bf16.msra.mxu1 %v15981_v39  ;;  %v16029_v39 = vcombine.low %v1280_v16, %v1284_v22  ;;  %v1328_v16 = vld [vmem:[%s18216_s13 + $0x2018] sm:$0xff] }
 0x5d2   : > { %11840 = vmatprep.subr.bf16.mxu1 %v15990_v33  ;;  %v16038_v33 = vcombine.high %v1288_v55, %v1292_v23  ;;  %v1332_v22 = vld [vmem:[%s18216_s13 + $0x2038] sm:$0xff] }
 0x5d3   : > { %11470 = vmatpush1.bf16.msra.mxu0 %v16491_v5  ;;  %v16539_v5 = vcombine.low %v1791_v18, %v1795_v19  ;;  %v1839_v18 = vld [vmem:[%s18216_s13 + $0x3010] sm:$0xff] }
 0x5d4   : > { %11471 = vmatprep.subr.bf16.mxu0 %v16500_v7  ;;  %v1296_v7 = vld [vmem:[%s18216_s13 + $0x1f18] sm:$0xff]  ;;  %v1843_v19 = vld [vmem:[%s18216_s13 + $0x3030] sm:$0xff] }
 0x5d5   : > { %11841 = vmatpush1.bf16.msra.mxu1 %v15989_v40  ;;  %v16037_v40 = vcombine.low %v1288_v55, %v1292_v23  ;;  %v1336_v55 = vld [vmem:[%s18216_s13 + $0x2058] sm:$0xff] }
 0x5d6   : > { %11842 = vmatprep.subr.bf16.mxu1 %v15998_v61  ;;  %v16046_v61 = vcombine.high %v1296_v7, %v1300_v63  ;;  %v1340_v23 = vld [vmem:[%s18216_s13 + $0x2078] sm:$0xff] }
 0x5d7   : > { %11472 = vmatpush1.bf16.msra.mxu0 %v16499_v44  ;;  %v16547_v44 = vcombine.low %v1799_v27, %v1803_v36  ;;  %v1847_v27 = vld [vmem:[%s18216_s13 + $0x3050] sm:$0xff] }
 0x5d8   : > { %11473 = vmatprep.subr.bf16.mxu0 %v16508_v45  ;;  %v1304_v45 = vld [vmem:[%s18216_s13 + $0x1f58] sm:$0xff]  ;;  %v1851_v36 = vld [vmem:[%s18216_s13 + $0x3070] sm:$0xff] }
 0x5d9   : > { %11843 = vmatpush1.bf16.msra.mxu1 %v15997_v51  ;;  %v16045_v51 = vcombine.low %v1296_v7, %v1300_v63  ;;  %v1344_v7 = vld [vmem:[%s18216_s13 + $0x2098] sm:$0xff] }
 0x5da   : > { %11844 = vmatprep.subr.bf16.mxu1 %v16006_v56  ;;  %v16054_v56 = vcombine.high %v1304_v45, %v1308_v31  ;;  %v1348_v63 = vld [vmem:[%s18216_s13 + $0x20b8] sm:$0xff] }
 0x5db   : > { %11474 = vmatpush1.bf16.msra.mxu0 %v16507_v54  ;;  %v16555_v54 = vcombine.low %v1807_v41, %v1811_v46  ;;  %v1855_v41 = vld [vmem:[%s18216_s13 + $0x3090] sm:$0xff] }
 0x5dc   : > { %11475 = vmatprep.subr.bf16.mxu0 %v16516_v37  ;;  %v16564_v37 = vcombine.high %v1815_v30, %v1819_v28  ;;  %v1859_v46 = vld [vmem:[%s18216_s13 + $0x30b0] sm:$0xff] }
 0x5dd   : > { %11845 = vmatpush1.bf16.msra.mxu1 %v16005_v50  ;;  %v16053_v50 = vcombine.low %v1304_v45, %v1308_v31  ;;  %v1352_v45 = vld [vmem:[%s18216_s13 + $0x20d8] sm:$0xff] }
 0x5de   : > { %11846 = vmatprep.subr.bf16.mxu1 %v16014_v4  ;;  %v16062_v4 = vcombine.high %v1312_v62, %v1316_v1  ;;  %v1356_v31 = vld [vmem:[%s18216_s13 + $0x20f8] sm:$0xff] }
 0x5df   : > { %11476 = vmatpush1.bf16.msra.mxu0 %v16515_v53  ;;  %v16563_v53 = vcombine.low %v1815_v30, %v1819_v28  ;;  %v1863_v30 = vld [vmem:[%s18216_s13 + $0x30d0] sm:$0xff] }
 0x5e0   : > { %11477 = vmatprep.subr.bf16.mxu0 %v16524_v13  ;;  %v16572_v13 = vcombine.high %v1823_v20, %v1827_v59  ;;  %v1867_v28 = vld [vmem:[%s18216_s13 + $0x30f0] sm:$0xff] }
 0x5e1   : > { %11847 = vmatpush1.bf16.msra.mxu1 %v16013_v42  ;;  %v16061_v42 = vcombine.low %v1312_v62, %v1316_v1  ;;  %v16101_v62 = vcombine.low %v1352_v45, %v1356_v31  ;;  %v17309_v1 = vld [vmem:[%s19809_s21 + $0x4] ss:$24 sps:$4 sm:$0xff]  }
 0x5e2   : > { %11848 = vmatprep.subr.bf16.mxu1 %v16022_v15  ;;  %v16070_v15 = vcombine.high %v1320_v9, %v1324_v14 }
 0x5e3   : > { %11478 = vmatpush1.bf16.msra.mxu0 %v16523_v32  ;;  %v16571_v32 = vcombine.low %v1823_v20, %v1827_v59  ;;  %v16612_v20 = vcombine.high %v1863_v30, %v1867_v28  ;;  %v1364_v59 = vld [vmem:[%s18216_s13 + $0x2138] sm:$0xff] }
 0x5e4   : > { %11479 = vmatprep.subr.bf16.mxu0 %v16532_v21  ;;  %v16580_v21 = vcombine.high %v1831_v6, %v1835_v8 }
 0x5e5   : > { %11849 = vmatpush1.bf16.msra.mxu1 %v16021_v26  ;;  %v16069_v26 = vcombine.low %v1320_v9, %v1324_v14  ;;  %v17312_v9 = vld [vmem:[%s19809_s21 + $0x34] ss:$24 sps:$4 sm:$0xff]  }
 0x5e6   : > { %11850 = vmatprep.subr.bf16.mxu1 %v16030_v0  ;;  %v16078_v0 = vcombine.high %v1328_v16, %v1332_v22  ;;  %v1380_v14 = vld [vmem:[%s18216_s13 + $0x21b8] sm:$0xff] }
 0x5e7   : > { %11480 = vmatpush1.bf16.msra.mxu0 %v16531_v49  ;;  %v16579_v49 = vcombine.low %v1831_v6, %v1835_v8  ;;  %v17307_v6 = vld [vmem:[%s19809_s21] ss:$24 sps:$4 sm:$0xff]  }
 0x5e8   : > { %11481 = vmatprep.subr.bf16.mxu0 %v16540_v11  ;;  %v16588_v11 = vcombine.high %v1839_v18, %v1843_v19 }
 0x5e9   : > { %11851 = vmatpush1.bf16.msra.mxu1 %v16029_v39  ;;  %v16077_v39 = vcombine.low %v1328_v16, %v1332_v22  ;;  %v1388_v16 = vld [vmem:[%s18216_s13 + $0x21f8] sm:$0xff]  ;;  %v17313_v22 = vld [vmem:[%s19809_s21 + $0x60] ss:$24 sps:$4 sm:$0xff]  }
 0x5ea   : > { %11852 = vmatprep.subr.bf16.mxu1 %v16038_v33  ;;  %v16086_v33 = vcombine.high %v1336_v55, %v1340_v23 }
 0x5eb   : > { %11482 = vmatpush1.bf16.msra.mxu0 %v16539_v5  ;;  %v16587_v5 = vcombine.low %v1839_v18, %v1843_v19  ;;  %v17315_v18 = vld [vmem:[%s19809_s21 + $0x64] ss:$24 sps:$4 sm:$0xff]   ;;  %v1384_v19 = vld [vmem:[%s18216_s13 + $0x21d8] sm:$0xff] }
 0x5ec   : > { %11483 = vmatprep.subr.bf16.mxu0 %v16548_v35  ;;  %v16596_v35 = vcombine.high %v1847_v27, %v1851_v36 }
 0x5ed   : > { %11853 = vmatpush1.bf16.msra.mxu1 %v16037_v40  ;;  %v16085_v40 = vcombine.low %v1336_v55, %v1340_v23  ;;  %v17316_v55 = vld [vmem:[%s19809_s21 + $0x90] ss:$24 sps:$4 sm:$0xff]   ;;  %v17321_v23 = vld [vmem:[%s19809_s21 + $0xc4] ss:$24 sps:$4 sm:$0xff]  }
 0x5ee   : > { %11854 = vmatprep.subr.bf16.mxu1 %v16046_v61  ;;  %v16094_v61 = vcombine.high %v1344_v7, %v1348_v63 }
 0x5ef   : > { %11484 = vmatpush1.bf16.msra.mxu0 %v16547_v44  ;;  %v16595_v44 = vcombine.low %v1847_v27, %v1851_v36  ;;  %v1396_v27 = vld [vmem:[%s18216_s13 + $0x2238] sm:$0xff]  ;;  %v16134_v36 = vcombine.high %v1384_v19, %v1388_v16 }
 0x5f0   : > { %11485 = vmatprep.subr.bf16.mxu0 %v16556_v12  ;;  %v16604_v12 = vcombine.high %v1855_v41, %v1859_v46 }
 0x5f1   : > { %11855 = vmatpush1.bf16.msra.mxu1 %v16045_v51  ;;  %v16603_v51 = vcombine.low %v1855_v41, %v1859_v46  ;;  %v17319_v41 = vld [vmem:[%s19809_s21 + $0xc0] ss:$24 sps:$4 sm:$0xff]  }
 0x5f2   : > { %11856 = vmatprep.subr.bf16.mxu1 %v16054_v56  ;;  %v1360_v56 = vld [vmem:[%s18216_s13 + $0x2118] sm:$0xff] }
 0x5f3   : > { %11486 = vmatpush1.bf16.msra.mxu0 %v16555_v54  ;;  %v16102_v54 = vcombine.high %v1352_v45, %v1356_v31  ;;  %v16109_v8 = vcombine.low %v1360_v56, %v1364_v59  ;;  %v1420_v45 = vld [vmem:[%s18216_s13 + $0x22f8] sm:$0xff]  ;;  %v17325_v31 = vld [vmem:[%s19809_s21 + $0x120] ss:$24 sps:$4 sm:$0xff]  }
 0x5f4   : > { %11487 = vmatprep.subr.bf16.mxu0 %v16564_v37  ;;  %v16110_v37 = vcombine.high %v1360_v56, %v1364_v59  ;;  %v1428_v56 = vld [vmem:[%s18216_s13 + $0x2338] sm:$0xff] }
 0x5f5   : > { %11857 = vmatpush1.bf16.msra.mxu1 %v16053_v50  ;;  %v1368_v50 = vld [vmem:[%s18216_s13 + $0x2158] sm:$0xff] }
 0x5f6   : > { %11858 = vmatprep.subr.bf16.mxu1 %v16062_v4  ;;  %v12077_v4 = vmax.f32 %v19328_v29, 0.0 }
 0x5f7   : > { %11488 = vmatpush1.bf16.msra.mxu0 %v16563_v53  ;;  %v1372_v53 = vld [vmem:[%s18216_s13 + $0x2178] sm:$0xff] }
 0x5f8   : > { %11489 = vmatprep.subr.bf16.mxu0 %v16572_v13  ;;  %v1376_v13 = vld [vmem:[%s18216_s13 + $0x2198] sm:$0xff]  ;;  %v16117_v29 = vcombine.low %v1368_v50, %v1372_v53 }
 0x5f9   : > { %11859 = vmatpush1.bf16.msra.mxu1 %v16061_v42  ;;  %v16118_v42 = vcombine.high %v1368_v50, %v1372_v53  ;;  %v1436_v50 = vld [vmem:[%s18216_s13 + $0x2378] sm:$0xff] }
 0x5fa   : > { %11860 = vmatprep.subr.bf16.mxu1 %v16070_v15  ;;  %v17310_v15 = vld [vmem:[%s19809_s21 + $0x30] ss:$24 sps:$4 sm:$0xff]  }
 0x5fb   : > { %11490 = vmatpush1.bf16.msra.mxu0 %v16571_v32  ;;  %v19946_v32 = vpack.c.bf16 %v12077_v4, %v12077_v4  ;;  %v17331_v4 = vld [vmem:[%s19809_s21 + $0x180] ss:$24 sps:$4 sm:$0xff]  }
 0x5fc   : > { %11491 = vmatprep.subr.bf16.mxu0 %v16580_v21  ;;  %v16126_v21 = vcombine.high %v1376_v13, %v1380_v14 }
 0x5fd   : > { %11861 = vmatpush1.bf16.msra.mxu1 %v16069_v26  ;;  %v16125_v26 = vcombine.low %v1376_v13, %v1380_v14  ;;  %v1444_v13 = vld [vmem:[%s18216_s13 + $0x23b8] sm:$0xff] }
 0x5fe   : > { %11871 = vmatprep.subr.bf16.mxu1 %v16078_v0  ;;  %v1392_v0 = vld [vmem:[%s18216_s13 + $0x2218] sm:$0xff] }
 0x5ff   : > { %11492 = vmatpush1.bf16.msra.mxu0 %v16579_v49  ;;  %v17318_v49 = vld [vmem:[%s19809_s21 + $0x94] ss:$24 sps:$4 sm:$0xff]   ;;  %v16141_v46 = vcombine.low %v1392_v0, %v1396_v27 }
 0x600   : > { %11502 = vmatprep.subr.bf16.mxu0 %v16588_v11  ;;  %11863 = vmatmul.mubr.bf16.vlgmr.msra.gmra.mrb[8].mxu1 %v18753_v38  ;;  %v16093_v38 = vcombine.low %v1344_v7, %v1348_v63  ;;  %v16133_v11 = vcombine.low %v1384_v19, %v1388_v16  ;;  %v17324_v7 = vld [vmem:[%s19809_s21 + $0xf4] ss:$24 sps:$4 sm:$0xff]  }
 0x601   : > { %11872 = vmatpush1.bf16.msra.mxu1 %v16077_v39  ;;  %11903 = vmatprep.mubr.bf16.mxu1 %v18758_v48  ;;  %v16611_v48 = vcombine.low %v1863_v30, %v1867_v28  ;;  %v1400_v39 = vld [vmem:[%s18216_s13 + $0x2258] sm:$0xff]  ;;  %v17327_v30 = vld [vmem:[%s19809_s21 + $0x124] ss:$24 sps:$4 sm:$0xff]  }
 0x602   : > { %11494 = vmatmul.mubr.bf16.vlgmr.msra.gmra.mrb[4].mxu0 %v19062_v57  ;;  %11873 = vmatprep.subr.bf16.mxu1 %v16086_v33  ;;  %v16142_v33 = vcombine.high %v1392_v0, %v1396_v27  ;;  %v1412_v63 = vld [vmem:[%s18216_s13 + $0x22b8] sm:$0xff] }
 0x603   : > { %11503 = vmatpush1.bf16.msra.mxu0 %v16587_v5  ;;  %11534 = vmatprep.mubr.bf16.mxu0 %v18023_v17  ;;  %v1404_v5 = vld [vmem:[%s18216_s13 + $0x2278] sm:$0xff] }
 0x604   : > { %11504 = vmatprep.subr.bf16.mxu0 %v16596_v35  ;;  %v1408_v35 = vld [vmem:[%s18216_s13 + $0x2298] sm:$0xff] }
 0x605   : > { %11874 = vmatpush1.bf16.msra.mxu1 %v16085_v40  ;;  %v16150_v40 = vcombine.high %v1400_v39, %v1404_v5  ;;  %v1416_v28 = vld [vmem:[%s18216_s13 + $0x22d8] sm:$0xff] }
 0x606   : > { %11875 = vmatprep.subr.bf16.mxu1 %v16094_v61  ;;  %v16149_v61 = vcombine.low %v1400_v39, %v1404_v5  ;;  %v16165_v59 = vcombine.low %v1416_v28, %v1420_v45  ;;  %v1452_v19 = vld [vmem:[%s18216_s13 + $0x23f8] sm:$0xff] }
 0x607   : > { %11505 = vmatpush1.bf16.msra.mxu0 %v16595_v44  ;;  %v17322_v44 = vld [vmem:[%s19809_s21 + $0xf0] ss:$24 sps:$4 sm:$0xff]  }
 0x608   : > { %11506 = vmatprep.subr.bf16.mxu0 %v16604_v12  ;;  %v16158_v12 = vcombine.high %v1408_v35, %v1412_v63  ;;  %v1460_v0 = vld [vmem:[%s18216_s13 + $0x2438] sm:$0xff] }
 0x609   : > { %11876 = vmatpush1.bf16.msra.mxu1 %v16093_v38  ;;  %v16157_v38 = vcombine.low %v1408_v35, %v1412_v63  ;;  %v1468_v39 = vld [vmem:[%s18216_s13 + $0x2478] sm:$0xff]  ;;  %v1885_v63 = vsub.s32 3, %v18252_v43 }
 0x60a   : > { %11877 = vmatprep.subr.bf16.mxu1 %v16102_v54  ;;  %v1424_v54 = vld [vmem:[%s18216_s13 + $0x2318] sm:$0xff] }
 0x60b   : > { %11507 = vmatpush1.bf16.msra.mxu0 %v16603_v51  ;;  %v17330_v51 = vld [vmem:[%s19809_s21 + $0x154] ss:$24 sps:$4 sm:$0xff]   ;;  %v16173_v53 = vcombine.low %v1424_v54, %v1428_v56 }
 0x60c   : > { %11508 = vmatprep.subr.bf16.mxu0 %v16612_v20  ;;  %v16166_v20 = vcombine.high %v1416_v28, %v1420_v45  ;;  %v1476_v35 = vld [vmem:[%s18216_s13 + $0x24b8] sm:$0xff] }
 0x60d   : > { %11878 = vmatpush1.bf16.msra.mxu1 %v16101_v62  ;;  %v17328_v62 = vld [vmem:[%s19809_s21 + $0x150] ss:$24 sps:$4 sm:$0xff]  }
 0x60e   : > { %11879 = vmatprep.subr.bf16.mxu1 %v16110_v37  ;;  %v16174_v37 = vcombine.high %v1424_v54, %v1428_v56  ;;  %v1480_v28 = vld [vmem:[%s18216_s13 + $0x24d8] sm:$0xff] }
 0x60f   : > { %11509 = vmatpush1.bf16.msra.mxu0 %v16611_v48  ;;  %v17333_v48 = vld [vmem:[%s19809_s21 + $0x184] ss:$24 sps:$4 sm:$0xff]   ;;  %v1484_v45 = vld [vmem:[%s18216_s13 + $0x24f8] sm:$0xff] }
 0x610   : > { %14396 = vmatprep.subr.bf16.mxu0 %v17309_v1  ;;  %v1432_v1 = vld [vmem:[%s18216_s13 + $0x2358] sm:$0xff] }
 0x611   : > { %11880 = vmatpush1.bf16.msra.mxu1 %v16109_v8  ;;  %v16182_v8 = vcombine.high %v1432_v1, %v1436_v50  ;;  %v16181_v14 = vcombine.low %v1432_v1, %v1436_v50  ;;  %v1488_v54 = vld [vmem:[%s18216_s13 + $0x2518] sm:$0xff]  ;;  %v17357_v1 = vld [vmem:[%s19809_s21 + $0x304] ss:$24 sps:$4 sm:$0xff]  }
 0x612   : > { %16617 = vmatmul.mubr.msk.bf16.vlgmr.msra.gmra.mrb[4].mxu0 %vm9940_vm0, %v19088_v52  ;;  %11881 = vmatprep.subr.bf16.mxu1 %v16118_v42  ;;  %v17334_v42 = vld [vmem:[%s19809_s21 + $0x1b0] ss:$24 sps:$4 sm:$0xff]  }
 0x613   : > { %14397 = vmatpush1.bf16.msra.mxu0 %v17307_v6  ;;  %14428 = vmatprep.mubr.bf16.mxu0 %v19946_v32  ;;  %v17336_v6 = vld [vmem:[%s19809_s21 + $0x1b4] ss:$24 sps:$4 sm:$0xff]  }
 0x614   : > { %14398 = vmatprep.subr.bf16.mxu0 %v17312_v9  ;;  %v1440_v9 = vld [vmem:[%s18216_s13 + $0x2398] sm:$0xff] }
 0x615   : > { %11882 = vmatpush1.bf16.msra.mxu1 %v16117_v29  ;;  %v16190_v29 = vcombine.high %v1440_v9, %v1444_v13  ;;  %v16189_v16 = vcombine.low %v1440_v9, %v1444_v13  ;;  %v1492_v56 = vld [vmem:[%s18216_s13 + $0x2538] sm:$0xff] }
 0x616   : > { %11883 = vmatprep.subr.bf16.mxu1 %v16126_v21  ;;  %v17337_v21 = vld [vmem:[%s19809_s21 + $0x1e0] ss:$24 sps:$4 sm:$0xff]   ;;  %v1504_v13 = vld [vmem:[%s18216_s13 + $0x2598] sm:$0xff] }
 0x617   : > { %14399 = vmatpush1.bf16.msra.mxu0 %v17310_v15  ;;  %v17339_v15 = vld [vmem:[%s19809_s21 + $0x1e4] ss:$24 sps:$4 sm:$0xff]  }
 0x618   : > { %14400 = vmatprep.subr.bf16.mxu0 %v17315_v18  ;;  %v1448_v18 = vld [vmem:[%s18216_s13 + $0x23d8] sm:$0xff] }
 0x619   : > { %11884 = vmatpush1.bf16.msra.mxu1 %v16125_v26  ;;  %v16198_v26 = vcombine.high %v1448_v18, %v1452_v19  ;;  %v16197_v27 = vcombine.low %v1448_v18, %v1452_v19  ;;  %v17363_v19 = vld [vmem:[%s19809_s21 + $0x364] ss:$24 sps:$4 sm:$0xff]  }
 0x61a   : > { %11885 = vmatprep.subr.bf16.mxu1 %v16134_v36  ;;  %v17340_v36 = vld [vmem:[%s19809_s21 + $0x210] ss:$24 sps:$4 sm:$0xff]  }
 0x61b   : > { %14401 = vmatpush1.bf16.msra.mxu0 %v17313_v22  ;;  %v17342_v22 = vld [vmem:[%s19809_s21 + $0x214] ss:$24 sps:$4 sm:$0xff]  }
 0x61c   : > { %14402 = vmatprep.subr.bf16.mxu0 %v17318_v49  ;;  %v1456_v49 = vld [vmem:[%s18216_s13 + $0x2418] sm:$0xff] }
 0x61d   : > { %11886 = vmatpush1.bf16.msra.mxu1 %v16133_v11  ;;  %v16206_v11 = vcombine.high %v1456_v49, %v1460_v0  ;;  %v16205_v5 = vcombine.low %v1456_v49, %v1460_v0  ;;  %v17366_v0 = vld [vmem:[%s19809_s21 + $0x394] ss:$24 sps:$4 sm:$0xff]  }
 0x61e   : > { %11887 = vmatprep.subr.bf16.mxu1 %v16142_v33  ;;  %v17343_v33 = vld [vmem:[%s19809_s21 + $0x240] ss:$24 sps:$4 sm:$0xff]  }
 0x61f   : > { %14403 = vmatpush1.bf16.msra.mxu0 %v17316_v55  ;;  %v17345_v55 = vld [vmem:[%s19809_s21 + $0x244] ss:$24 sps:$4 sm:$0xff]  }
 0x620   : > { %14404 = vmatprep.subr.bf16.mxu0 %v17321_v23  ;;  %v1464_v23 = vld [vmem:[%s18216_s13 + $0x2458] sm:$0xff] }
 0x621   : > { %11888 = vmatpush1.bf16.msra.mxu1 %v16141_v46  ;;  %v16214_v46 = vcombine.high %v1464_v23, %v1468_v39 }
 0x622   : > { %11889 = vmatprep.subr.bf16.mxu1 %v16150_v40  ;;  %v16213_v40 = vcombine.low %v1464_v23, %v1468_v39  ;;  %v17369_v39 = vld [vmem:[%s19809_s21 + $0x3c4] ss:$24 sps:$4 sm:$0xff]  }
 0x623   : > { %14405 = vmatpush1.bf16.msra.mxu0 %v17319_v41  ;;  %v17348_v41 = vld [vmem:[%s19809_s21 + $0x274] ss:$24 sps:$4 sm:$0xff]  }
 0x624   : > { %14406 = vmatprep.subr.bf16.mxu0 %v17324_v7  ;;  %v1472_v7 = vld [vmem:[%s18216_s13 + $0x2498] sm:$0xff] }
 0x625   : > { %11890 = vmatpush1.bf16.msra.mxu1 %v16149_v61  ;;  %v17351_v61 = vld [vmem:[%s19809_s21 + $0x2a4] ss:$24 sps:$4 sm:$0xff]  }
 0x626   : > { %11891 = vmatprep.subr.bf16.mxu1 %v16158_v12  ;;  %v20007_v12 = vld [vmem:[%s18224_s29] sm:$0xff] }
 0x627   : > { %14407 = vmatpush1.bf16.msra.mxu0 %v17322_v44  ;;  %v17346_v44 = vld [vmem:[%s19809_s21 + $0x270] ss:$24 sps:$4 sm:$0xff]  }
 0x628   : > { %14408 = vmatprep.subr.bf16.mxu0 %v17327_v30  ;;  %v16222_v30 = vcombine.high %v1472_v7, %v1476_v35 }
 0x629   : > { %11892 = vmatpush1.bf16.msra.mxu1 %v16157_v38  ;;  %v17349_v38 = vld [vmem:[%s19809_s21 + $0x2a0] ss:$24 sps:$4 sm:$0xff]  }
 0x62a   : > { %11893 = vmatprep.subr.bf16.mxu1 %v16166_v20 }
 0x62b   : > { %14409 = vmatpush1.bf16.msra.mxu0 %v17325_v31  ;;  %v16221_v31 = vcombine.low %v1472_v7, %v1476_v35  ;;  %v17372_v35 = vld [vmem:[%s19809_s21 + $0x3f4] ss:$24 sps:$4 sm:$0xff]  }
 0x62c   : > { %14410 = vmatprep.subr.bf16.mxu0 %v17330_v51  ;;  %v17354_v51 = vld [vmem:[%s19809_s21 + $0x2d4] ss:$24 sps:$4 sm:$0xff]  }
 0x62d   : > { %11894 = vmatpush1.bf16.msra.mxu1 %v16165_v59  ;;  %v16229_v59 = vcombine.low %v1480_v28, %v1484_v45 }
 0x62e   : > { %11895 = vmatprep.subr.bf16.mxu1 %v16174_v37  ;;  %v12076_v37 = vmax.f32 %v19326_v24, 0.0  ;;  %v17360_v24 = vld [vmem:[%s19809_s21 + $0x334] ss:$24 sps:$4 sm:$0xff]  }
 0x62f   : > { %14411 = vmatpush1.bf16.msra.mxu0 %v17328_v62  ;;  %v17352_v62 = vld [vmem:[%s19809_s21 + $0x2d0] ss:$24 sps:$4 sm:$0xff]  }
 0x630   : > { %14412 = vmatprep.subr.bf16.mxu0 %v17333_v48  ;;  %v16238_v48 = vcombine.high %v1488_v54, %v1492_v56 }
 0x631   : > { %11896 = vmatpush1.bf16.msra.mxu1 %v16173_v53  ;;  %v1496_v53 = vld [vmem:[%s18216_s13 + $0x2558] sm:$0xff] }
 0x632   : > { %11897 = vmatprep.subr.bf16.mxu1 %v16182_v8  ;;  %v20021_v8 = vpack.c.bf16 %v12076_v37, %v12076_v37  ;;  %v1560_v37 = vld [vmem:[%s18216_s13 + $0x2758] sm:$0xff] }
 0x633   : > { %14413 = vmatpush1.bf16.msra.mxu0 %v17331_v4  ;;  %v1500_v4 = vld [vmem:[%s18216_s13 + $0x2578] sm:$0xff] }
 0x634   : > { %14414 = vmatprep.subr.bf16.mxu0 %v17336_v6  ;;  %v16237_v6 = vcombine.low %v1488_v54, %v1492_v56  ;;  %v16246_v9 = vcombine.high %v1496_v53, %v1500_v4  ;;  %v1552_v54 = vld [vmem:[%s18216_s13 + $0x2718] sm:$0xff] }
 0x635   : > { %11898 = vmatpush1.bf16.msra.mxu1 %v16181_v14  ;;  %v1508_v14 = vld [vmem:[%s18216_s13 + $0x25b8] sm:$0xff] }
 0x636   : > { %11899 = vmatprep.subr.bf16.mxu1 %v16190_v29  ;;  %v17358_v29 = vld [vmem:[%s19809_s21 + $0x330] ss:$24 sps:$4 sm:$0xff]   ;;  %v16254_v18 = vcombine.high %v1504_v13, %v1508_v14 }
 0x637   : > { %14415 = vmatpush1.bf16.msra.mxu0 %v17334_v42  ;;  %v1556_v56 = vld [vmem:[%s18216_s13 + $0x2738] sm:$0xff] }
 0x638   : > { %14416 = vmatprep.subr.bf16.mxu0 %v17339_v15  ;;  %v16245_v15 = vcombine.low %v1496_v53, %v1500_v4  ;;  %v17379_v53 = vld [vmem:[%s19809_s21 + $0x480] ss:$24 sps:$4 sm:$0xff]  }
 0x639   : > { %11900 = vmatpush1.bf16.msra.mxu1 %v16189_v16  ;;  %v1512_v16 = vld [vmem:[%s18216_s13 + $0x25d8] sm:$0xff] }
 0x63a   : > { %11901 = vmatprep.subr.bf16.mxu1 %v16198_v26  ;;  %v17361_v26 = vld [vmem:[%s19809_s21 + $0x360] ss:$24 sps:$4 sm:$0xff]  }
 0x63b   : > { %14417 = vmatpush1.bf16.msra.mxu0 %v17337_v21  ;;  %v1516_v21 = vld [vmem:[%s18216_s13 + $0x25f8] sm:$0xff] }
 0x63c   : > { %14418 = vmatprep.subr.bf16.mxu0 %v17342_v22  ;;  %v16253_v22 = vcombine.low %v1504_v13, %v1508_v14  ;;  %v16262_v49 = vcombine.high %v1512_v16, %v1516_v21  ;;  %v17382_v13 = vld [vmem:[%s19809_s21 + $0x4b0] ss:$24 sps:$4 sm:$0xff]  }
 0x63d   : > { %11902 = vmatpush1.bf16.msra.mxu1 %v16197_v27  ;;  %v1520_v27 = vld [vmem:[%s18216_s13 + $0x2618] sm:$0xff] }
 0x63e   : > { %11912 = vmatprep.subr.bf16.mxu1 %v16206_v11  ;;  %v17364_v11 = vld [vmem:[%s19809_s21 + $0x390] ss:$24 sps:$4 sm:$0xff]  }
 0x63f   : > { %14419 = vmatpush1.bf16.msra.mxu0 %v17340_v36  ;;  %v1524_v36 = vld [vmem:[%s18216_s13 + $0x2638] sm:$0xff] }
 0x640   : > { %14420 = vmatprep.subr.bf16.mxu0 %v17345_v55  ;;  %11904 = vmatmul.mubr.bf16.vlgmr.msra.gmra.mrb[8].mxu1 %v18828_v47  ;;  %v1886_v47 = vrot.slane %v20007_v12, %v1885_v63  ;;  %v16261_v55 = vcombine.low %v1512_v16, %v1516_v21  ;;  %v16270_v23 = vcombine.high %v1520_v27, %v1524_v36  ;;  %v1536_v63 = vld [vmem:[%s18216_s13 + $0x2698] sm:$0xff]  ;;  %v17385_v16 = vld [vmem:[%s19809_s21 + $0x4e0] ss:$24 sps:$4 sm:$0xff]  }
 0x641   : > { %11913 = vmatpush1.bf16.msra.mxu1 %v16205_v5  ;;  %11944 = vmatprep.mubr.bf16.mxu1 %v18834_v58  ;;  %v16230_v58 = vcombine.high %v1480_v28, %v1484_v45  ;;  %v1528_v5 = vld [vmem:[%s18216_s13 + $0x2658] sm:$0xff]  ;;  %v17375_v28 = vld [vmem:[%s19809_s21 + $0x424] ss:$24 sps:$4 sm:$0xff]  }
 0x642   : > { %11914 = vmatprep.subr.bf16.mxu1 %v16214_v46  ;;  %v17012_v20 = vadd.f32 %v19605_v3, %v1886_v47  ;;  %v17355_v3 = vld [vmem:[%s19809_s21 + $0x300] ss:$24 sps:$4 sm:$0xff]   ;;  %v1544_v45 = vld [vmem:[%s18216_s13 + $0x26d8] sm:$0xff] }
 0x643   : > { %14421 = vmatpush1.bf16.msra.mxu0 %v17343_v33  ;;  %v1532_v33 = vld [vmem:[%s18216_s13 + $0x2678] sm:$0xff]  ;;  %v17367_v46 = vld [vmem:[%s19809_s21 + $0x3c0] ss:$24 sps:$4 sm:$0xff]  }
 0x644   : > { %14422 = vmatprep.subr.bf16.mxu0 %v17348_v41  ;;  %v12079_v50 = vmax.f32 %v17012_v20, 0.0  ;;  %v16269_v41 = vcombine.low %v1520_v27, %v1524_v36  ;;  %v16278_v7 = vcombine.high %v1528_v5, %v1532_v33  ;;  %v1548_v47 = vld [vmem:[%s18216_s13 + $0x26f8] sm:$0xff] }
 0x645   : > { %11915 = vmatpush1.bf16.msra.mxu1 %v16213_v40  ;;  %v1540_v40 = vld [vmem:[%s18216_s13 + $0x26b8] sm:$0xff]  ;;  %v16293_v20 = vcombine.low %v1544_v45, %v1548_v47 }
 0x646   : > { %11916 = vmatprep.subr.bf16.mxu1 %v16222_v30  ;;  %v20026_v42 = vpack.c.bf16 %v12079_v50, %v12079_v50  ;;  %v16286_v30 = vcombine.high %v1536_v63, %v1540_v40  ;;  %v16301_v50 = vcombine.low %v1552_v54, %v1556_v56  ;;  %v17388_v27 = vld [vmem:[%s19809_s21 + $0x510] ss:$24 sps:$4 sm:$0xff]  }
 0x647   : > { %14423 = vmatpush1.bf16.msra.mxu0 %v17346_v44  ;;  %v16277_v44 = vcombine.low %v1528_v5, %v1532_v33  ;;  %v17391_v5 = vld [vmem:[%s19809_s21 + $0x540] ss:$24 sps:$4 sm:$0xff]  }
 0x648   : > { %14424 = vmatprep.subr.bf16.mxu0 %v17351_v61  ;;  %v17370_v61 = vld [vmem:[%s19809_s21 + $0x3f0] ss:$24 sps:$4 sm:$0xff]  }
 0x649   : > { %11917 = vmatpush1.bf16.msra.mxu1 %v16221_v31  ;;  %v16285_v31 = vcombine.low %v1536_v63, %v1540_v40  ;;  %v17394_v40 = vld [vmem:[%s19809_s21 + $0x570] ss:$24 sps:$4 sm:$0xff]  }
 0x64a   : > { %11918 = vmatprep.subr.bf16.mxu1 %v16230_v58  ;;  %v17378_v58 = vld [vmem:[%s19809_s21 + $0x454] ss:$24 sps:$4 sm:$0xff]  }
 0x64b   : > { %14425 = vmatpush1.bf16.msra.mxu0 %v17349_v38  ;;  %v17373_v38 = vld [vmem:[%s19809_s21 + $0x420] ss:$24 sps:$4 sm:$0xff]  }
 0x64c   : > { %14426 = vmatprep.subr.bf16.mxu0 %v17354_v51  ;;  %v16294_v51 = vcombine.high %v1544_v45, %v1548_v47  ;;  %v1612_v45 = vld [vmem:[%s18216_s13 + $0x28f8] sm:$0xff] }
 0x64d   : > { %11919 = vmatpush1.bf16.msra.mxu1 %v16229_v59  ;;  %v17376_v59 = vld [vmem:[%s19809_s21 + $0x450] ss:$24 sps:$4 sm:$0xff]  }
 0x64e   : > { %11920 = vmatprep.subr.bf16.mxu1 %v16238_v48  ;;  %v17381_v48 = vld [vmem:[%s19809_s21 + $0x484] ss:$24 sps:$4 sm:$0xff]  }
 0x64f   : > { %14427 = vmatpush1.bf16.msra.mxu0 %v17352_v62  ;;  %v16302_v62 = vcombine.high %v1552_v54, %v1556_v56  ;;  %v17400_v56 = vld [vmem:[%s19809_s21 + $0x5d0] ss:$24 sps:$4 sm:$0xff]  }
 0x650   : > { %14437 = vmatprep.subr.bf16.mxu0 %v17357_v1  ;;  %v1564_v1 = vld [vmem:[%s18216_s13 + $0x2778] sm:$0xff] }
 0x651   : > { %11921 = vmatpush1.bf16.msra.mxu1 %v16237_v6  ;;  %v16310_v4 = vcombine.high %v1560_v37, %v1564_v1  ;;  %v17384_v6 = vld [vmem:[%s19809_s21 + $0x4b4] ss:$24 sps:$4 sm:$0xff]  }
 0x652   : > { %14429 = vmatmul.mubr.bf16.vlgmr.msra.gmra.mrb[8].mxu0 %v20021_v8  ;;  %11922 = vmatprep.subr.bf16.mxu1 %v16246_v9  ;;  %v1572_v9 = vld [vmem:[%s18216_s13 + $0x27b8] sm:$0xff] }
 0x653   : > { %14438 = vmatpush1.bf16.msra.mxu0 %v17355_v3  ;;  %14469 = vmatprep.mubr.bf16.mxu0 %v20026_v42  ;;  %v1568_v3 = vld [vmem:[%s18216_s13 + $0x2798] sm:$0xff] }
 0x654   : > { %14439 = vmatprep.subr.bf16.mxu0 %v17360_v24  ;;  %v16309_v24 = vcombine.low %v1560_v37, %v1564_v1  ;;  %v16318_v14 = vcombine.high %v1568_v3, %v1572_v9  ;;  %v17405_v37 = vld [vmem:[%s19809_s21 + $0x604] ss:$24 sps:$4 sm:$0xff]  }
 0x655   : > { %11923 = vmatpush1.bf16.msra.mxu1 %v16245_v15  ;;  %v17387_v15 = vld [vmem:[%s19809_s21 + $0x4e4] ss:$24 sps:$4 sm:$0xff]  }
 0x656   : > { %11924 = vmatprep.subr.bf16.mxu1 %v16254_v18  ;;  %v1580_v18 = vld [vmem:[%s18216_s13 + $0x27f8] sm:$0xff] }
 0x657   : > { %14440 = vmatpush1.bf16.msra.mxu0 %v17358_v29  ;;  %v1576_v29 = vld [vmem:[%s18216_s13 + $0x27d8] sm:$0xff] }
 0x658   : > { %14441 = vmatprep.subr.bf16.mxu0 %v17363_v19  ;;  %v16317_v19 = vcombine.low %v1568_v3, %v1572_v9  ;;  %v16326_v21 = vcombine.high %v1576_v29, %v1580_v18  ;;  %v17408_v3 = vld [vmem:[%s19809_s21 + $0x634] ss:$24 sps:$4 sm:$0xff]  }
 0x659   : > { %11925 = vmatpush1.bf16.msra.mxu1 %v16253_v22  ;;  %v17390_v22 = vld [vmem:[%s19809_s21 + $0x514] ss:$24 sps:$4 sm:$0xff]  }
 0x65a   : > { %11926 = vmatprep.subr.bf16.mxu1 %v16262_v49  ;;  %v1588_v49 = vld [vmem:[%s18216_s13 + $0x2838] sm:$0xff] }
 0x65b   : > { %14442 = vmatpush1.bf16.msra.mxu0 %v17361_v26  ;;  %v1584_v26 = vld [vmem:[%s18216_s13 + $0x2818] sm:$0xff] }
 0x65c   : > { %14443 = vmatprep.subr.bf16.mxu0 %v17366_v0  ;;  %v16325_v0 = vcombine.low %v1576_v29, %v1580_v18  ;;  %v16334_v36 = vcombine.high %v1584_v26, %v1588_v49  ;;  %v17411_v29 = vld [vmem:[%s19809_s21 + $0x664] ss:$24 sps:$4 sm:$0xff]  }
 0x65d   : > { %11927 = vmatpush1.bf16.msra.mxu1 %v16261_v55  ;;  %v17393_v55 = vld [vmem:[%s19809_s21 + $0x544] ss:$24 sps:$4 sm:$0xff]  }
 0x65e   : > { %11928 = vmatprep.subr.bf16.mxu1 %v16270_v23  ;;  %v1596_v23 = vld [vmem:[%s18216_s13 + $0x2878] sm:$0xff] }
 0x65f   : > { %14444 = vmatpush1.bf16.msra.mxu0 %v17364_v11  ;;  %v1592_v11 = vld [vmem:[%s18216_s13 + $0x2858] sm:$0xff] }
 0x660   : > { %14445 = vmatprep.subr.bf16.mxu0 %v17369_v39  ;;  %v16333_v39 = vcombine.low %v1584_v26, %v1588_v49  ;;  %v16342_v33 = vcombine.high %v1592_v11, %v1596_v23  ;;  %v16341_v63 = vcombine.low %v1592_v11, %v1596_v23  ;;  %v17414_v26 = vld [vmem:[%s19809_s21 + $0x694] ss:$24 sps:$4 sm:$0xff]   ;;  %v17417_v11 = vld [vmem:[%s19809_s21 + $0x6c4] ss:$24 sps:$4 sm:$0xff]  }
 0x661   : > { %11929 = vmatpush1.bf16.msra.mxu1 %v16269_v41  ;;  %v1881_v41 = vsub.s32 2, %v18252_v43 }
 0x662   : > { %11930 = vmatprep.subr.bf16.mxu1 %v16278_v7  ;;  %v1600_v7 = vld [vmem:[%s18216_s13 + $0x2898] sm:$0xff] }
 0x663   : > { %14446 = vmatpush1.bf16.msra.mxu0 %v17367_v46  ;;  %v17396_v46 = vld [vmem:[%s19809_s21 + $0x574] ss:$24 sps:$4 sm:$0xff]  }
 0x664   : > { %14447 = vmatprep.subr.bf16.mxu0 %v17372_v35  ;;  %v1604_v35 = vld [vmem:[%s18216_s13 + $0x28b8] sm:$0xff] }
 0x665   : > { %11931 = vmatpush1.bf16.msra.mxu1 %v16277_v44  ;;  %v16350_v44 = vcombine.high %v1600_v7, %v1604_v35 }
 0x666   : > { %11932 = vmatprep.subr.bf16.mxu1 %v16286_v30  ;;  %v17399_v30 = vld [vmem:[%s19809_s21 + $0x5a4] ss:$24 sps:$4 sm:$0xff]  }
 0x667   : > { %14448 = vmatpush1.bf16.msra.mxu0 %v17370_v61  ;;  %v1882_v61 = vrot.slane %v20007_v12, %v1881_v41  ;;  %v1668_v41 = vld [vmem:[%s18216_s13 + $0x2ab8] sm:$0xff] }
 0x668   : > { %14449 = vmatprep.subr.bf16.mxu0 %v17375_v28  ;;  %v1608_v28 = vld [vmem:[%s18216_s13 + $0x28d8] sm:$0xff] }
 0x669   : > { %11933 = vmatpush1.bf16.msra.mxu1 %v16285_v31  ;;  %v16358_v47 = vcombine.high %v1608_v28, %v1612_v45  ;;  %v17011_v31 = vadd.f32 %v19601_v60, %v1882_v61  ;;  %v16357_v54 = vcombine.low %v1608_v28, %v1612_v45  ;;  %v17423_v61 = vld [vmem:[%s19809_s21 + $0x724] ss:$24 sps:$4 sm:$0xff]   ;;  %v17421_v45 = vld [vmem:[%s19809_s21 + $0x720] ss:$24 sps:$4 sm:$0xff]  }
 0x66a   : > { %11934 = vmatprep.subr.bf16.mxu1 %v16294_v51  ;;  %v1616_v51 = vld [vmem:[%s18216_s13 + $0x2918] sm:$0xff] }
 0x66b   : > { %14450 = vmatpush1.bf16.msra.mxu0 %v17373_v38  ;;  %v17402_v38 = vld [vmem:[%s19809_s21 + $0x5d4] ss:$24 sps:$4 sm:$0xff]  }
 0x66c   : > { %14451 = vmatprep.subr.bf16.mxu0 %v17378_v58  ;;  %v1620_v58 = vld [vmem:[%s18216_s13 + $0x2938] sm:$0xff] }
 0x66d   : > { %11935 = vmatpush1.bf16.msra.mxu1 %v16293_v20  ;;  %v16366_v20 = vcombine.high %v1616_v51, %v1620_v58  ;;  %v16365_v60 = vcombine.low %v1616_v51, %v1620_v58  ;;  %v17424_v51 = vld [vmem:[%s19809_s21 + $0x750] ss:$24 sps:$4 sm:$0xff]  }
 0x66e   : > { %11936 = vmatprep.subr.bf16.mxu1 %v16302_v62  ;;  %v1624_v62 = vld [vmem:[%s18216_s13 + $0x2958] sm:$0xff] }
 0x66f   : > { %14452 = vmatpush1.bf16.msra.mxu0 %v17376_v59  ;;  %v12078_v59 = vmax.f32 %v17011_v31, 0.0  ;;  %v1688_v58 = vld [vmem:[%s18216_s13 + $0x2b58] sm:$0xff] }
 0x670   : > { %14453 = vmatprep.subr.bf16.mxu0 %v17381_v48  ;;  %v1628_v48 = vld [vmem:[%s18216_s13 + $0x2978] sm:$0xff] }
 0x671   : > { %11937 = vmatpush1.bf16.msra.mxu1 %v16301_v50  ;;  %v16374_v1 = vcombine.high %v1624_v62, %v1628_v48  ;;  %v17403_v50 = vld [vmem:[%s19809_s21 + $0x600] ss:$24 sps:$4 sm:$0xff]   ;;  %v16373_v9 = vcombine.low %v1624_v62, %v1628_v48  ;;  %v1696_v48 = vld [vmem:[%s18216_s13 + $0x2b98] sm:$0xff] }
 0x672   : > { %11938 = vmatprep.subr.bf16.mxu1 %v16310_v4  ;;  %v1632_v4 = vld [vmem:[%s18216_s13 + $0x2998] sm:$0xff]  ;;  %v17427_v62 = vld [vmem:[%s19809_s21 + $0x780] ss:$24 sps:$4 sm:$0xff]  }
 0x673   : > { %14454 = vmatpush1.bf16.msra.mxu0 %v17379_v53  ;;  %v20096_v53 = vpack.c.bf16 %v12078_v59, %v12078_v59 }
 0x674   : > { %14455 = vmatprep.subr.bf16.mxu0 %v17384_v6  ;;  %v1636_v6 = vld [vmem:[%s18216_s13 + $0x29b8] sm:$0xff] }
 0x675   : > { %11939 = vmatpush1.bf16.msra.mxu1 %v16309_v24  ;;  %v16382_v24 = vcombine.high %v1632_v4, %v1636_v6  ;;  %v16381_v18 = vcombine.low %v1632_v4, %v1636_v6  ;;  %v17430_v4 = vld [vmem:[%s19809_s21 + $0x7b0] ss:$24 sps:$4 sm:$0xff]  }
 0x676   : > { %11940 = vmatprep.subr.bf16.mxu1 %v16318_v14  ;;  %v1640_v14 = vld [vmem:[%s18216_s13 + $0x29d8] sm:$0xff] }
 0x677   : > { %14456 = vmatpush1.bf16.msra.mxu0 %v17382_v13  ;;  %v17406_v13 = vld [vmem:[%s19809_s21 + $0x630] ss:$24 sps:$4 sm:$0xff]  }
 0x678   : > { %14457 = vmatprep.subr.bf16.mxu0 %v17387_v15  ;;  %v1644_v15 = vld [vmem:[%s18216_s13 + $0x29f8] sm:$0xff] }
 0x679   : > { %11941 = vmatpush1.bf16.msra.mxu1 %v16317_v19  ;;  %v16390_v19 = vcombine.high %v1640_v14, %v1644_v15  ;;  %v16389_v49 = vcombine.low %v1640_v14, %v1644_v15  ;;  %v1704_v6 = vld [vmem:[%s18216_s13 + $0x2bd8] sm:$0xff]  ;;  %v17433_v14 = vld [vmem:[%s19809_s21 + $0x7e0] ss:$24 sps:$4 sm:$0xff]  }
 0x67a   : > { %11942 = vmatprep.subr.bf16.mxu1 %v16326_v21  ;;  %v1648_v21 = vld [vmem:[%s18216_s13 + $0x2a18] sm:$0xff] }
 0x67b   : > { %14458 = vmatpush1.bf16.msra.mxu0 %v17385_v16  ;;  %v17409_v16 = vld [vmem:[%s19809_s21 + $0x660] ss:$24 sps:$4 sm:$0xff]   ;;  %v1712_v15 = vld [vmem:[%s18216_s13 + $0x2c18] sm:$0xff] }
 0x67c   : > { %14459 = vmatprep.subr.bf16.mxu0 %v17390_v22  ;;  %v1652_v22 = vld [vmem:[%s18216_s13 + $0x2a38] sm:$0xff] }
 0x67d   : > { %11943 = vmatpush1.bf16.msra.mxu1 %v16325_v0  ;;  %v16398_v0 = vcombine.high %v1648_v21, %v1652_v22  ;;  %v16397_v23 = vcombine.low %v1648_v21, %v1652_v22  ;;  %v17436_v21 = vld [vmem:[%s19809_s21 + $0x810] ss:$24 sps:$4 sm:$0xff]  }
 0x67e   : > { %11953 = vmatprep.subr.bf16.mxu1 %v16334_v36  ;;  %v1656_v36 = vld [vmem:[%s18216_s13 + $0x2a58] sm:$0xff] }
 0x67f   : > { %14460 = vmatpush1.bf16.msra.mxu0 %v17388_v27  ;;  %v17412_v27 = vld [vmem:[%s19809_s21 + $0x690] ss:$24 sps:$4 sm:$0xff]  }
 0x680   : > { %14461 = vmatprep.subr.bf16.mxu0 %v17393_v55  ;;  %11945 = vmatmul.mubr.bf16.vlgmr.msra.gmra.mrb[8].mxu1 %v18911_v2  ;;  %v16349_v2 = vcombine.low %v1600_v7, %v1604_v35  ;;  %v1660_v55 = vld [vmem:[%s18216_s13 + $0x2a78] sm:$0xff] }
 0x681   : > { %11954 = vmatpush1.bf16.msra.mxu1 %v16333_v39  ;;  %11985 = vmatprep.mubr.bf16.mxu1 %v18916_v10  ;;  %v17397_v10 = vld [vmem:[%s19809_s21 + $0x5a0] ss:$24 sps:$4 sm:$0xff]   ;;  %v16406_v39 = vcombine.high %v1656_v36, %v1660_v55  ;;  %v16405_v7 = vcombine.low %v1656_v36, %v1660_v55  ;;  %v1720_v22 = vld [vmem:[%s18216_s13 + $0x2c58] sm:$0xff] }
 0x682   : > { %11955 = vmatprep.subr.bf16.mxu1 %v16342_v33  ;;  %v1664_v33 = vld [vmem:[%s18216_s13 + $0x2a98] sm:$0xff]  ;;  %v17439_v36 = vld [vmem:[%s19809_s21 + $0x840] ss:$24 sps:$4 sm:$0xff]  }
 0x683   : > { %14462 = vmatpush1.bf16.msra.mxu0 %v17391_v5  ;;  %v17415_v5 = vld [vmem:[%s19809_s21 + $0x6c0] ss:$24 sps:$4 sm:$0xff]   ;;  %v16414_v35 = vcombine.high %v1664_v33, %v1668_v41  ;;  %v1728_v55 = vld [vmem:[%s18216_s13 + $0x2c98] sm:$0xff] }
 0x684   : > { %14463 = vmatprep.subr.bf16.mxu0 %v17396_v46  ;;  %v17420_v46 = vld [vmem:[%s19809_s21 + $0x6f4] ss:$24 sps:$4 sm:$0xff]  }
 0x685   : > { %11956 = vmatpush1.bf16.msra.mxu1 %v16341_v63  ;;  %v17418_v63 = vld [vmem:[%s19809_s21 + $0x6f0] ss:$24 sps:$4 sm:$0xff]  }
 0x686   : > { %11957 = vmatprep.subr.bf16.mxu1 %v16350_v44  ;;  %v1676_v44 = vld [vmem:[%s18216_s13 + $0x2af8] sm:$0xff] }
 0x687   : > { %14464 = vmatpush1.bf16.msra.mxu0 %v17394_v40  ;;  %v1672_v40 = vld [vmem:[%s18216_s13 + $0x2ad8] sm:$0xff] }
 0x688   : > { %14465 = vmatprep.subr.bf16.mxu0 %v17399_v30  ;;  %v16413_v30 = vcombine.low %v1664_v33, %v1668_v41  ;;  %v16422_v28 = vcombine.high %v1672_v40, %v1676_v44  ;;  %v16421_v31 = vcombine.low %v1672_v40, %v1676_v44  ;;  %v17442_v33 = vld [vmem:[%s19809_s21 + $0x870] ss:$24 sps:$4 sm:$0xff]   ;;  %v17450_v44 = vld [vmem:[%s19809_s21 + $0x8d4] ss:$24 sps:$4 sm:$0xff]  }
 0x689   : > { %11958 = vmatpush1.bf16.msra.mxu1 %v16349_v2  ;;  %v1680_v2 = vld [vmem:[%s18216_s13 + $0x2b18] sm:$0xff] }
 0x68a   : > { %11959 = vmatprep.subr.bf16.mxu1 %v16358_v47  ;;  %v17426_v47 = vld [vmem:[%s19809_s21 + $0x754] ss:$24 sps:$4 sm:$0xff]  }
 0x68b   : > { %14466 = vmatpush1.bf16.msra.mxu0 %v17397_v10  ;;  %v1684_v10 = vld [vmem:[%s18216_s13 + $0x2b38] sm:$0xff] }
 0x68c   : > { %14467 = vmatprep.subr.bf16.mxu0 %v17402_v38  ;;  %v16430_v38 = vcombine.high %v1680_v2, %v1684_v10  ;;  %v1736_v41 = vld [vmem:[%s18216_s13 + $0x2cd8] sm:$0xff] }
 0x68d   : > { %11960 = vmatpush1.bf16.msra.mxu1 %v16357_v54  ;;  %v1692_v54 = vld [vmem:[%s18216_s13 + $0x2b78] sm:$0xff] }
 0x68e   : > { %11961 = vmatprep.subr.bf16.mxu1 %v16366_v20  ;;  %v16429_v20 = vcombine.low %v1680_v2, %v1684_v10  ;;  %v16438_v59 = vcombine.high %v1688_v58, %v1692_v54  ;;  %v1748_v40 = vld [vmem:[%s18216_s13 + $0x2d38] sm:$0xff] }
 0x68f   : > { %14468 = vmatpush1.bf16.msra.mxu0 %v17400_v56  ;;  %v17429_v56 = vld [vmem:[%s19809_s21 + $0x784] ss:$24 sps:$4 sm:$0xff]   ;;  %v1756_v2 = vld [vmem:[%s18216_s13 + $0x2d78] sm:$0xff] }
 0x690   : > { %14478 = vmatprep.subr.bf16.mxu0 %v17405_v37  ;;  %v1700_v37 = vld [vmem:[%s18216_s13 + $0x2bb8] sm:$0xff] }
 0x691   : > { %11962 = vmatpush1.bf16.msra.mxu1 %v16365_v60  ;;  %v17432_v60 = vld [vmem:[%s19809_s21 + $0x7b4] ss:$24 sps:$4 sm:$0xff]  }
 0x692   : > { %14470 = vmatmul.mubr.bf16.vlgmr.msra.gmra.mrb[8].mxu0 %v20096_v53  ;;  %11963 = vmatprep.subr.bf16.mxu1 %v16374_v1  ;;  %v16437_v1 = vcombine.low %v1688_v58, %v1692_v54  ;;  %v1768_v54 = vld [vmem:[%s18216_s13 + $0x2dd8] sm:$0xff] }
 0x693   : > { %14479 = vmatpush1.bf16.msra.mxu0 %v17403_v50  ;;  %v16446_v50 = vcombine.high %v1696_v48, %v1700_v37 }
 0x694   : > { %14480 = vmatprep.subr.bf16.mxu0 %v17408_v3  ;;  %v1708_v3 = vld [vmem:[%s18216_s13 + $0x2bf8] sm:$0xff] }
 0x695   : > { %11964 = vmatpush1.bf16.msra.mxu1 %v16373_v9  ;;  %v17435_v9 = vld [vmem:[%s19809_s21 + $0x7e4] ss:$24 sps:$4 sm:$0xff]  }
 0x696   : > { %11965 = vmatprep.subr.bf16.mxu1 %v16382_v24  ;;  %v16445_v24 = vcombine.low %v1696_v48, %v1700_v37  ;;  %v1780_v48 = vld [vmem:[%s18216_s13 + $0x2e38] sm:$0xff] }
 0x697   : > { %14481 = vmatpush1.bf16.msra.mxu0 %v17406_v13  ;;  %v16454_v13 = vcombine.high %v1704_v6, %v1708_v3 }
 0x698   : > { %14482 = vmatprep.subr.bf16.mxu0 %v17411_v29  ;;  %v1716_v29 = vld [vmem:[%s18216_s13 + $0x2c38] sm:$0xff] }
 0x699   : > { %11966 = vmatpush1.bf16.msra.mxu1 %v16381_v18  ;;  %v17438_v18 = vld [vmem:[%s19809_s21 + $0x814] ss:$24 sps:$4 sm:$0xff]  }
 0x69a   : > { %11967 = vmatprep.subr.bf16.mxu1 %v16390_v19  ;;  %v16453_v19 = vcombine.low %v1704_v6, %v1708_v3  ;;  %v1889_v6 = vsub.s32 4, %v18252_v43  ;;  %v1893_v3 = vsub.s32 5, %v18252_v43 }
 0x69b   : > { %14483 = vmatpush1.bf16.msra.mxu0 %v17409_v16  ;;  %v16462_v16 = vcombine.high %v1712_v15, %v1716_v29 }
 0x69c   : > { %14484 = vmatprep.subr.bf16.mxu0 %v17414_v26  ;;  %v1724_v26 = vld [vmem:[%s18216_s13 + $0x2c78] sm:$0xff] }
 0x69d   : > { %11968 = vmatpush1.bf16.msra.mxu1 %v16389_v49  ;;  %v17441_v49 = vld [vmem:[%s19809_s21 + $0x844] ss:$24 sps:$4 sm:$0xff]  }
 0x69e   : > { %11969 = vmatprep.subr.bf16.mxu1 %v16398_v0  ;;  %v16461_v0 = vcombine.low %v1712_v15, %v1716_v29  ;;  %v1894_v29 = vrot.slane %v20007_v12, %v1893_v3  ;;  %v17454_v3 = vld [vmem:[%s19809_s21 + $0x38] ss:$24 sps:$4 sm:$0xff]  }
 0x69f   : > { %14485 = vmatpush1.bf16.msra.mxu0 %v17412_v27  ;;  %v16470_v27 = vcombine.high %v1720_v22, %v1724_v26 }
 0x6a0   : > { %14486 = vmatprep.subr.bf16.mxu0 %v17417_v11  ;;  %v1732_v11 = vld [vmem:[%s18216_s13 + $0x2cb8] sm:$0xff] }
 0x6a1   : > { %11970 = vmatpush1.bf16.msra.mxu1 %v16397_v23  ;;  %v17444_v23 = vld [vmem:[%s19809_s21 + $0x874] ss:$24 sps:$4 sm:$0xff]  }
 0x6a2   : > { %11971 = vmatprep.subr.bf16.mxu1 %v16406_v39  ;;  %v16469_v39 = vcombine.low %v1720_v22, %v1724_v26 }
 0x6a3   : > { %14487 = vmatpush1.bf16.msra.mxu0 %v17415_v5  ;;  %v16478_v5 = vcombine.high %v1728_v55, %v1732_v11 }
 0x6a4   : > { %14488 = vmatprep.subr.bf16.mxu0 %v17420_v46  ;;  %v1740_v46 = vld [vmem:[%s18216_s13 + $0x2cf8] sm:$0xff] }
 0x6a5   : > { %11972 = vmatpush1.bf16.msra.mxu1 %v16405_v7  ;;  %v17447_v7 = vld [vmem:[%s19809_s21 + $0x8a4] ss:$24 sps:$4 sm:$0xff]  }
 0x6a6   : > { %11973 = vmatprep.subr.bf16.mxu1 %v16414_v35  ;;  %v16486_v35 = vcombine.high %v1736_v41, %v1740_v46 }
 0x6a7   : > { %14489 = vmatpush1.bf16.msra.mxu0 %v17418_v63  ;;  %v17445_v63 = vld [vmem:[%s19809_s21 + $0x8a0] ss:$24 sps:$4 sm:$0xff]  }
 0x6a8   : > { %14490 = vmatprep.subr.bf16.mxu0 %v17423_v61  ;;  %v16485_v61 = vcombine.low %v1736_v41, %v1740_v46 }
 0x6a9   : > { %11974 = vmatpush1.bf16.msra.mxu1 %v16413_v30 }
 0x6aa   : > { %11975 = vmatprep.subr.bf16.mxu1 %v16422_v28  ;;  %v17448_v28 = vld [vmem:[%s19809_s21 + $0x8d0] ss:$24 sps:$4 sm:$0xff]  }
 0x6ab   : > { %14491 = vmatpush1.bf16.msra.mxu0 %v17421_v45  ;;  %v1752_v45 = vld [vmem:[%s18216_s13 + $0x2d58] sm:$0xff] }
 0x6ac   : > { %14492 = vmatprep.subr.bf16.mxu0 %v17426_v47  ;;  %v16502_v47 = vcombine.high %v1752_v45, %v1756_v2 }
 0x6ad   : > { %11976 = vmatpush1.bf16.msra.mxu1 %v16421_v31  ;;  %v1760_v31 = vld [vmem:[%s18216_s13 + $0x2d98] sm:$0xff] }
 0x6ae   : > { %11977 = vmatprep.subr.bf16.mxu1 %v16430_v38  ;;  %v1764_v38 = vld [vmem:[%s18216_s13 + $0x2db8] sm:$0xff] }
 0x6af   : > { %14493 = vmatpush1.bf16.msra.mxu0 %v17424_v51  ;;  %v16501_v51 = vcombine.low %v1752_v45, %v1756_v2  ;;  %v16510_v58 = vcombine.high %v1760_v31, %v1764_v38 }
 0x6b0   : > { %14494 = vmatprep.subr.bf16.mxu0 %v17429_v56  ;;  %v1772_v56 = vld [vmem:[%s18216_s13 + $0x2df8] sm:$0xff] }
 0x6b1   : > { %11978 = vmatpush1.bf16.msra.mxu1 %v16429_v20  ;;  %v16509_v20 = vcombine.low %v1760_v31, %v1764_v38  ;;  %v16517_v37 = vcombine.low %v1768_v54, %v1772_v56 }
 0x6b2   : > { %11979 = vmatprep.subr.bf16.mxu1 %v16438_v59  ;;  %v16518_v59 = vcombine.high %v1768_v54, %v1772_v56 }
 0x6b3   : > { %14495 = vmatpush1.bf16.msra.mxu0 %v17427_v62  ;;  %v1776_v62 = vld [vmem:[%s18216_s13 + $0x2e18] sm:$0xff] }
 0x6b4   : > { %14496 = vmatprep.subr.bf16.mxu0 %v17432_v60  ;;  %v16526_v60 = vcombine.high %v1776_v62, %v1780_v48 }
 0x6b5   : > { %11980 = vmatpush1.bf16.msra.mxu1 %v16437_v1  ;;  %v1784_v1 = vld [vmem:[%s18216_s13 + $0x2e58] sm:$0xff] }
 0x6b6   : > { %11981 = vmatprep.subr.bf16.mxu1 %v16446_v50  ;;  %v1788_v50 = vld [vmem:[%s18216_s13 + $0x2e78] sm:$0xff] }
 0x6b7   : > { %14497 = vmatpush1.bf16.msra.mxu0 %v17430_v4  ;;  %v16525_v4 = vcombine.low %v1776_v62, %v1780_v48  ;;  %v16533_v15 = vcombine.low %v1784_v1, %v1788_v50 }
 0x6b8   : > { %14498 = vmatprep.subr.bf16.mxu0 %v17435_v9  ;;  %v16534_v9 = vcombine.high %v1784_v1, %v1788_v50 }
 0x6b9   : > { %11982 = vmatpush1.bf16.msra.mxu1 %v16445_v24  ;;  %v1792_v24 = vld [vmem:[%s18216_s13 + $0x2e98] sm:$0xff] }
 0x6ba   : > { %11983 = vmatprep.subr.bf16.mxu1 %v16454_v13  ;;  %v1796_v13 = vld [vmem:[%s18216_s13 + $0x2eb8] sm:$0xff] }
 0x6bb   : > { %14499 = vmatpush1.bf16.msra.mxu0 %v17433_v14  ;;  %v1890_v14 = vrot.slane %v20007_v12, %v1889_v6  ;;  %v1808_v12 = vld [vmem:[%s18216_s13 + $0x2f18] sm:$0xff]  ;;  %v17456_v6 = vld [vmem:[%s19809_s21 + $0x3c] ss:$24 sps:$4 sm:$0xff]  }
 0x6bc   : > { %14500 = vmatprep.subr.bf16.mxu0 %v17438_v18  ;;  %v16542_v18 = vcombine.high %v1792_v24, %v1796_v13 }
 0x6bd   : > { %11984 = vmatpush1.bf16.msra.mxu1 %v16453_v19  ;;  %v1800_v19 = vld [vmem:[%s18216_s13 + $0x2ed8] sm:$0xff] }
 0x6be   : > { %11994 = vmatprep.subr.bf16.mxu1 %v16462_v16  ;;  %v1804_v16 = vld [vmem:[%s18216_s13 + $0x2ef8] sm:$0xff] }
 0x6bf   : > { %14501 = vmatpush1.bf16.msra.mxu0 %v17436_v21 }
 0x6c0   : > { %14502 = vmatprep.subr.bf16.mxu0 %v17441_v49  ;;  %11986 = vmatmul.mubr.bf16.vlgmr.msra.gmra.mrb[8].mxu1 %v18986_v25  ;;  %v16477_v25 = vcombine.low %v1728_v55, %v1732_v11  ;;  %v16541_v49 = vcombine.low %v1792_v24, %v1796_v13  ;;  %v17457_v24 = vld [vmem:[%s19809_s21 + $0x68] ss:$24 sps:$4 sm:$0xff]   ;;  %v17462_v13 = vld [vmem:[%s19809_s21 + $0x9c] ss:$24 sps:$4 sm:$0xff]  }
 0x6c1   : > { %11995 = vmatpush1.bf16.msra.mxu1 %v16461_v0  ;;  %12026 = vmatprep.mubr.bf16.mxu1 %v18992_v34  ;;  %v1744_v34 = vld [vmem:[%s18216_s13 + $0x2d18] sm:$0xff] }
 0x6c2   : > { %11996 = vmatprep.subr.bf16.mxu1 %v16470_v27  ;;  %v16494_v30 = vcombine.high %v1744_v34, %v1748_v40  ;;  %v16493_v10 = vcombine.low %v1744_v34, %v1748_v40  ;;  %v1824_v34 = vld [vmem:[%s18216_s13 + $0x2f98] sm:$0xff] }
 0x6c3   : > { %14503 = vmatpush1.bf16.msra.mxu0 %v17439_v36  ;;  %v16550_v36 = vcombine.high %v1800_v19, %v1804_v16  ;;  %v1828_v40 = vld [vmem:[%s18216_s13 + $0x2fb8] sm:$0xff] }
 0x6c4   : > { %14504 = vmatprep.subr.bf16.mxu0 %v17444_v23  ;;  %v1812_v23 = vld [vmem:[%s18216_s13 + $0x2f38] sm:$0xff]  ;;  %v16573_v45 = vcombine.low %v1824_v34, %v1828_v40 }
 0x6c5   : > { %11997 = vmatpush1.bf16.msra.mxu1 %v16469_v39  ;;  %v16558_v41 = vcombine.high %v1808_v12, %v1812_v23 }
 0x6c6   : > { %11998 = vmatprep.subr.bf16.mxu1 %v16478_v5  ;;  %v16549_v5 = vcombine.low %v1800_v19, %v1804_v16  ;;  %v17471_v19 = vld [vmem:[%s19809_s21 + $0x12c] ss:$24 sps:$4 sm:$0xff]   ;;  %v17469_v16 = vld [vmem:[%s19809_s21 + $0x128] ss:$24 sps:$4 sm:$0xff]  }
 0x6c7   : > { %14505 = vmatpush1.bf16.msra.mxu0 %v17442_v33 }
 0x6c8   : > { %14506 = vmatprep.subr.bf16.mxu0 %v17447_v7  ;;  %v1816_v7 = vld [vmem:[%s18216_s13 + $0x2f58] sm:$0xff] }
 0x6c9   : > { %11999 = vmatpush1.bf16.msra.mxu1 %v16477_v25  ;;  %v1820_v25 = vld [vmem:[%s18216_s13 + $0x2f78] sm:$0xff] }
 0x6ca   : > { %12000 = vmatprep.subr.bf16.mxu1 %v16486_v35  ;;  %v16557_v35 = vcombine.low %v1808_v12, %v1812_v23  ;;  %v17478_v12 = vld [vmem:[%s19809_s21 + $0x1b8] ss:$24 sps:$4 sm:$0xff]  }
 0x6cb   : > { %14507 = vmatpush1.bf16.msra.mxu0 %v17445_v63  ;;  %v16566_v63 = vcombine.high %v1816_v7, %v1820_v25  ;;  %v17580_v23 = vld [vmem:[%s19809_s21 + $0x960] ss:$24 sps:$4 sm:$0xff]  }
 0x6cc   : > { %14508 = vmatprep.subr.bf16.mxu0 %v17450_v44  ;;  %v16565_v44 = vcombine.low %v1816_v7, %v1820_v25  ;;  %v17586_v7 = vld [vmem:[%s19809_s21 + $0x990] ss:$24 sps:$4 sm:$0xff]   ;;  %v17588_v25 = vld [vmem:[%s19809_s21 + $0x994] ss:$24 sps:$4 sm:$0xff]  }
 0x6cd   : > { %12001 = vmatpush1.bf16.msra.mxu1 %v16485_v61  ;;  %v16574_v61 = vcombine.high %v1824_v34, %v1828_v40  ;;  %v17592_v34 = vld [vmem:[%s19809_s21 + $0x9c0] ss:$24 sps:$4 sm:$0xff]   ;;  %v17594_v40 = vld [vmem:[%s19809_s21 + $0x9c4] ss:$24 sps:$4 sm:$0xff]  }
 0x6ce   : > { %12002 = vmatprep.subr.bf16.mxu1 %v16494_v30  ;;  %v1832_v30 = vld [vmem:[%s18216_s13 + $0x2fd8] sm:$0xff] }
 0x6cf   : > { %14509 = vmatpush1.bf16.msra.mxu0 %v17448_v28  ;;  %v1836_v28 = vld [vmem:[%s18216_s13 + $0x2ff8] sm:$0xff] }
 0x6d0   : > { %v16582_v2 = vcombine.high %v1832_v30, %v1836_v28  ;;  %v16581_v31 = vcombine.low %v1832_v30, %v1836_v28  ;;  %v17598_v30 = vld [vmem:[%s19809_s21 + $0x9f0] ss:$24 sps:$4 sm:$0xff]   ;;  %v17600_v28 = vld [vmem:[%s19809_s21 + $0x9f4] ss:$24 sps:$4 sm:$0xff]  }
 0x6d1   : > { %12003 = vmatpush1.bf16.msra.mxu1 %v16493_v10  ;;  %v1840_v10 = vld [vmem:[%s18216_s13 + $0x3018] sm:$0xff] }
 0x6d2   : > { %12004 = vmatprep.subr.bf16.mxu1 %v16502_v47  ;;  %v1844_v47 = vld [vmem:[%s18216_s13 + $0x3038] sm:$0xff] }
 0x6d3   : > { %v16590_v38 = vcombine.high %v1840_v10, %v1844_v47  ;;  %v16589_v54 = vcombine.low %v1840_v10, %v1844_v47  ;;  %v17604_v10 = vld [vmem:[%s19809_s21 + $0xa20] ss:$24 sps:$4 sm:$0xff]   ;;  %v17606_v47 = vld [vmem:[%s19809_s21 + $0xa24] ss:$24 sps:$4 sm:$0xff]  }
 0x6d5   : > { %12005 = vmatpush1.bf16.msra.mxu1 %v16501_v51  ;;  %v1848_v51 = vld [vmem:[%s18216_s13 + $0x3058] sm:$0xff] }
 0x6d6   : > { %12006 = vmatprep.subr.bf16.mxu1 %v16510_v58  ;;  %v1852_v58 = vld [vmem:[%s18216_s13 + $0x3078] sm:$0xff] }
 0x6d7   : > { %v16598_v56 = vcombine.high %v1848_v51, %v1852_v58  ;;  %v16597_v62 = vcombine.low %v1848_v51, %v1852_v58  ;;  %v17610_v51 = vld [vmem:[%s19809_s21 + $0xa50] ss:$24 sps:$4 sm:$0xff]   ;;  %v17612_v58 = vld [vmem:[%s19809_s21 + $0xa54] ss:$24 sps:$4 sm:$0xff]  }
 0x6d9   : > { %12007 = vmatpush1.bf16.msra.mxu1 %v16509_v20  ;;  %v1856_v20 = vld [vmem:[%s18216_s13 + $0x3098] sm:$0xff] }
 0x6da   : > { %12008 = vmatprep.subr.bf16.mxu1 %v16518_v59  ;;  %v1860_v59 = vld [vmem:[%s18216_s13 + $0x30b8] sm:$0xff] }
 0x6db   : > { %v16606_v48 = vcombine.high %v1856_v20, %v1860_v59  ;;  %v16605_v1 = vcombine.low %v1856_v20, %v1860_v59  ;;  %v17616_v20 = vld [vmem:[%s19809_s21 + $0xa80] ss:$24 sps:$4 sm:$0xff]   ;;  %v17618_v59 = vld [vmem:[%s19809_s21 + $0xa84] ss:$24 sps:$4 sm:$0xff]  }
 0x6dd   : > { %12009 = vmatpush1.bf16.msra.mxu1 %v16517_v37  ;;  %v1864_v37 = vld [vmem:[%s18216_s13 + $0x30d8] sm:$0xff] }
 0x6de   : > { %12010 = vmatprep.subr.bf16.mxu1 %v16526_v60  ;;  %v1868_v60 = vld [vmem:[%s18216_s13 + $0x30f8] sm:$0xff] }
 0x6df   : > { %v16614_v50 = vcombine.high %v1864_v37, %v1868_v60 }
 0x6e1   : > { %12011 = vmatpush1.bf16.msra.mxu1 %v16525_v4  ;;  %v16613_v4 = vcombine.low %v1864_v37, %v1868_v60  ;;  %v17622_v37 = vld [vmem:[%s19809_s21 + $0xab0] ss:$24 sps:$4 sm:$0xff]   ;;  %v17624_v60 = vld [vmem:[%s19809_s21 + $0xab4] ss:$24 sps:$4 sm:$0xff]  }
 0x6e2   : > { %12012 = vmatprep.subr.bf16.mxu1 %v16534_v9  ;;  %v17459_v9 = vld [vmem:[%s19809_s21 + $0x6c] ss:$24 sps:$4 sm:$0xff]  }
 0x6e5   : > { %v11536_v21 = vpop.f32.mrb[4].mxu0  ;;  %12013 = vmatpush1.bf16.msra.mxu1 %v16533_v15  ;;  %v17463_v15 = vld [vmem:[%s19809_s21 + $0xc8] ss:$24 sps:$4 sm:$0xff]  }
 0x6e6   : > { %v17013_v22 = vadd.f32 %v11536_v21, %v1890_v14  ;;  %v11538_v26 = vpop.f32.mrb[5].mxu0  ;;  %12014 = vmatprep.subr.bf16.mxu1 %v16542_v18  ;;  %v17460_v14 = vld [vmem:[%s19809_s21 + $0x98] ss:$24 sps:$4 sm:$0xff]   ;;  %v17474_v21 = vld [vmem:[%s19809_s21 + $0x15c] ss:$24 sps:$4 sm:$0xff]  }
 0x6e7   : > { %v17014_v0 = vadd.f32 %v11538_v26, %v1894_v29  ;;  %v11540_v27 = vpop.f32.mrb[6].mxu0  ;;  %v17468_v29 = vld [vmem:[%s19809_s21 + $0xfc] ss:$24 sps:$4 sm:$0xff]   ;;  %v17466_v18 = vld [vmem:[%s19809_s21 + $0xf8] ss:$24 sps:$4 sm:$0xff]  }
 0x6e8   : > { %v12080_v55 = vmax.f32 %v17013_v22, 0.0  ;;  %v11541_v11 = vpop.f32.mrb[7].mxu0  ;;  %v17472_v22 = vld [vmem:[%s19809_s21 + $0x158] ss:$24 sps:$4 sm:$0xff]   ;;  %v17475_v27 = vld [vmem:[%s19809_s21 + $0x188] ss:$24 sps:$4 sm:$0xff]  }
 0x6e9   : > { %v12081_v39 = vmax.f32 %v17014_v0, 0.0  ;;  %12015 = vmatpush1.bf16.msra.mxu1 %v16541_v49  ;;  %v17568_v26 = vld [vmem:[%s19809_s21 + $0x900] ss:$24 sps:$4 sm:$0xff]   ;;  %v17570_v49 = vld [vmem:[%s19809_s21 + $0x904] ss:$24 sps:$4 sm:$0xff]  }
 0x6ea   : > { %12016 = vmatprep.subr.bf16.mxu1 %v16550_v36  ;;  %v20183_v46 = vpack.c.bf16 %v12080_v55, %v12080_v55  ;;  %v17477_v0 = vld [vmem:[%s19809_s21 + $0x18c] ss:$24 sps:$4 sm:$0xff]   ;;  %14519 = vmatprep.subr.bf16.mxu0 %v17570_v49  ;;  %v17574_v36 = vld [vmem:[%s19809_s21 + $0x930] ss:$24 sps:$4 sm:$0xff]   ;;  %v17480_v11 = vld [vmem:[%s19809_s21 + $0x1bc] ss:$24 sps:$4 sm:$0xff]  }
 0x6eb   : > { %v20181_v33 = vpack.c.bf16 %v12081_v39, %v12081_v39  ;;  %v17576_v55 = vld [vmem:[%s19809_s21 + $0x934] ss:$24 sps:$4 sm:$0xff]   ;;  %v17582_v39 = vld [vmem:[%s19809_s21 + $0x964] ss:$24 sps:$4 sm:$0xff]   ;;  %v17652_v49 = vld [vmem:[%s19809_s21 + $0xba0] ss:$24 sps:$4 sm:$0xff]  }
 0x6ed   : > { %14510 = vmatprep.mubr.bf16.mxu0 %v20181_v33  ;;  %12017 = vmatpush1.bf16.msra.mxu1 %v16549_v5  ;;  %v17483_v5 = vld [vmem:[%s19809_s21 + $0x1ec] ss:$24 sps:$4 sm:$0xff]  }
 0x6ee   : > { %14511 = vmatmul.mubr.bf16.vlgmr.msra.gmra.mrb[8].mxu0 %v20183_v46  ;;  %12018 = vmatprep.subr.bf16.mxu1 %v16558_v41  ;;  %v17481_v41 = vld [vmem:[%s19809_s21 + $0x1e8] ss:$24 sps:$4 sm:$0xff]  }
 0x6ef   : > { %14520 = vmatpush1.bf16.msra.mxu0 %v17568_v26  ;;  %v17654_v26 = vld [vmem:[%s19809_s21 + $0xba4] ss:$24 sps:$4 sm:$0xff]  }
 0x6f0   : > { %14521 = vmatprep.subr.bf16.mxu0 %v17576_v55  ;;  %v17658_v55 = vld [vmem:[%s19809_s21 + $0xbd0] ss:$24 sps:$4 sm:$0xff]  }
 0x6f1   : > { %12019 = vmatpush1.bf16.msra.mxu1 %v16557_v35  ;;  %v17486_v35 = vld [vmem:[%s19809_s21 + $0x21c] ss:$24 sps:$4 sm:$0xff]  }
 0x6f2   : > { %12020 = vmatprep.subr.bf16.mxu1 %v16566_v63  ;;  %v17484_v63 = vld [vmem:[%s19809_s21 + $0x218] ss:$24 sps:$4 sm:$0xff]  }
 0x6f3   : > { %14522 = vmatpush1.bf16.msra.mxu0 %v17574_v36  ;;  %v17660_v36 = vld [vmem:[%s19809_s21 + $0xbd4] ss:$24 sps:$4 sm:$0xff]  }
 0x6f4   : > { %14523 = vmatprep.subr.bf16.mxu0 %v17582_v39  ;;  %v17523_v39 = vld [vmem:[%s19809_s21 + $0x488] ss:$24 sps:$4 sm:$0xff]  }
 0x6f5   : > { %12021 = vmatpush1.bf16.msra.mxu1 %v16565_v44  ;;  %v17489_v44 = vld [vmem:[%s19809_s21 + $0x24c] ss:$24 sps:$4 sm:$0xff]  }
 0x6f6   : > { %12022 = vmatprep.subr.bf16.mxu1 %v16574_v61  ;;  %v17487_v61 = vld [vmem:[%s19809_s21 + $0x248] ss:$24 sps:$4 sm:$0xff]  }
 0x6f7   : > { %14524 = vmatpush1.bf16.msra.mxu0 %v17580_v23  ;;  %v17666_v23 = vld [vmem:[%s19809_s21 + $0x14] ss:$24 sps:$4 sm:$0xff]  }
 0x6f8   : > { %14525 = vmatprep.subr.bf16.mxu0 %v17588_v25  ;;  %v17529_v25 = vld [vmem:[%s19809_s21 + $0x4e8] ss:$24 sps:$4 sm:$0xff]  }
 0x6f9   : > { %12023 = vmatpush1.bf16.msra.mxu1 %v16573_v45  ;;  %v17492_v45 = vld [vmem:[%s19809_s21 + $0x27c] ss:$24 sps:$4 sm:$0xff]  }
 0x6fa   : > { %12024 = vmatprep.subr.bf16.mxu1 %v16582_v2  ;;  %v17490_v2 = vld [vmem:[%s19809_s21 + $0x278] ss:$24 sps:$4 sm:$0xff]  }
 0x6fb   : > { %14526 = vmatpush1.bf16.msra.mxu0 %v17586_v7  ;;  %v17531_v7 = vld [vmem:[%s19809_s21 + $0x4ec] ss:$24 sps:$4 sm:$0xff]  }
 0x6fc   : > { %14527 = vmatprep.subr.bf16.mxu0 %v17594_v40  ;;  %v17535_v40 = vld [vmem:[%s19809_s21 + $0x548] ss:$24 sps:$4 sm:$0xff]  }
 0x6fd   : > { %12025 = vmatpush1.bf16.msra.mxu1 %v16581_v31  ;;  %v17495_v31 = vld [vmem:[%s19809_s21 + $0x2ac] ss:$24 sps:$4 sm:$0xff]  }
 0x6fe   : > { %12035 = vmatprep.subr.bf16.mxu1 %v16590_v38  ;;  %v17493_v38 = vld [vmem:[%s19809_s21 + $0x2a8] ss:$24 sps:$4 sm:$0xff]  }
 0x6ff   : > { %14528 = vmatpush1.bf16.msra.mxu0 %v17592_v34  ;;  %v17537_v34 = vld [vmem:[%s19809_s21 + $0x54c] ss:$24 sps:$4 sm:$0xff]  }
 0x700   : > { %12027 = vmatmul.mubr.bf16.vlgmr.msra.gmra.mrb[8].mxu1 %v19062_v57  ;;  %v17453_v57 = vld [vmem:[%s19809_s21 + $0xc] ss:$24 sps:$4 sm:$0xff]   ;;  %14529 = vmatprep.subr.bf16.mxu0 %v17600_v28  ;;  %v17541_v28 = vld [vmem:[%s19809_s21 + $0x5a8] ss:$24 sps:$4 sm:$0xff]  }
 0x701   : > { %12036 = vmatpush1.bf16.msra.mxu1 %v16589_v54  ;;  %12067 = vmatprep.mubr.bf16.mxu1 %v18023_v17  ;;  %v17451_v17 = vld [vmem:[%s19809_s21 + $0x8] ss:$24 sps:$4 sm:$0xff]   ;;  %v17498_v54 = vld [vmem:[%s19809_s21 + $0x2dc] ss:$24 sps:$4 sm:$0xff]  }
 0x702   : > { %12037 = vmatprep.subr.bf16.mxu1 %v16598_v56  ;;  %v17496_v56 = vld [vmem:[%s19809_s21 + $0x2d8] ss:$24 sps:$4 sm:$0xff]  }
 0x703   : > { %14530 = vmatpush1.bf16.msra.mxu0 %v17598_v30  ;;  %v17543_v30 = vld [vmem:[%s19809_s21 + $0x5ac] ss:$24 sps:$4 sm:$0xff]  }
 0x704   : > { %14531 = vmatprep.subr.bf16.mxu0 %v17606_v47  ;;  %v17547_v47 = vld [vmem:[%s19809_s21 + $0x608] ss:$24 sps:$4 sm:$0xff]  }
 0x705   : > { %12038 = vmatpush1.bf16.msra.mxu1 %v16597_v62  ;;  %v17501_v62 = vld [vmem:[%s19809_s21 + $0x30c] ss:$24 sps:$4 sm:$0xff]  }
 0x706   : > { %12039 = vmatprep.subr.bf16.mxu1 %v16606_v48  ;;  %v17499_v48 = vld [vmem:[%s19809_s21 + $0x308] ss:$24 sps:$4 sm:$0xff]  }
 0x707   : > { %14532 = vmatpush1.bf16.msra.mxu0 %v17604_v10  ;;  %v17549_v10 = vld [vmem:[%s19809_s21 + $0x60c] ss:$24 sps:$4 sm:$0xff]  }
 0x708   : > { %14533 = vmatprep.subr.bf16.mxu0 %v17612_v58  ;;  %v17553_v58 = vld [vmem:[%s19809_s21 + $0x668] ss:$24 sps:$4 sm:$0xff]  }
 0x709   : > { %12040 = vmatpush1.bf16.msra.mxu1 %v16605_v1  ;;  %v17504_v1 = vld [vmem:[%s19809_s21 + $0x33c] ss:$24 sps:$4 sm:$0xff]  }
 0x70a   : > { %12041 = vmatprep.subr.bf16.mxu1 %v16614_v50  ;;  %v17502_v50 = vld [vmem:[%s19809_s21 + $0x338] ss:$24 sps:$4 sm:$0xff]  }
 0x70b   : > { %14534 = vmatpush1.bf16.msra.mxu0 %v17610_v51  ;;  %v17555_v51 = vld [vmem:[%s19809_s21 + $0x66c] ss:$24 sps:$4 sm:$0xff]  }
 0x70c   : > { %14535 = vmatprep.subr.bf16.mxu0 %v17618_v59  ;;  %v17559_v59 = vld [vmem:[%s19809_s21 + $0x6c8] ss:$24 sps:$4 sm:$0xff]  }
 0x70d   : > { %12042 = vmatpush1.bf16.msra.mxu1 %v16613_v4  ;;  %v17628_v4 = vld [vmem:[%s19809_s21 + $0xae0] ss:$24 sps:$4 sm:$0xff]  }
 0x70e   : > { %14560 = vmatprep.subr.bf16.mxu1 %v17453_v57  ;;  %v17630_v57 = vld [vmem:[%s19809_s21 + $0xae4] ss:$24 sps:$4 sm:$0xff]  }
 0x70f   : > { %14536 = vmatpush1.bf16.msra.mxu0 %v17616_v20  ;;  %v17561_v20 = vld [vmem:[%s19809_s21 + $0x6cc] ss:$24 sps:$4 sm:$0xff]  }
 0x710   : > { %16618 = vmatmul.mubr.msk.bf16.vlgmr.msra.gmra.mrb[8].mxu1 %vm9940_vm0, %v19088_v52  ;;  %v17465_v52 = vld [vmem:[%s19809_s21 + $0xcc] ss:$24 sps:$4 sm:$0xff]   ;;  %14537 = vmatprep.subr.bf16.mxu0 %v17624_v60  ;;  %v17565_v60 = vld [vmem:[%s19809_s21 + $0x728] ss:$24 sps:$4 sm:$0xff]  }
 0x711   : > { %14561 = vmatpush1.bf16.msra.mxu1 %v17451_v17  ;;  %14592 = vmatprep.mubr.bf16.mxu1 %v19946_v32  ;;  %v17507_v17 = vld [vmem:[%s19809_s21 + $0x36c] ss:$24 sps:$4 sm:$0xff]  }
 0x712   : > { %14562 = vmatprep.subr.bf16.mxu1 %v17456_v6  ;;  %v17505_v6 = vld [vmem:[%s19809_s21 + $0x368] ss:$24 sps:$4 sm:$0xff]  }
 0x713   : > { %14538 = vmatpush1.bf16.msra.mxu0 %v17622_v37  ;;  %v17567_v37 = vld [vmem:[%s19809_s21 + $0x72c] ss:$24 sps:$4 sm:$0xff]  }
 0x714   : > { %14539 = vmatprep.subr.bf16.mxu0 %v17630_v57  ;;  %v17577_v57 = vld [vmem:[%s19809_s21 + $0x788] ss:$24 sps:$4 sm:$0xff]  }
 0x715   : > { %14563 = vmatpush1.bf16.msra.mxu1 %v17454_v3  ;;  %v17634_v3 = vld [vmem:[%s19809_s21 + $0xb10] ss:$24 sps:$4 sm:$0xff]  }
 0x716   : > { %14564 = vmatprep.subr.bf16.mxu1 %v17459_v9  ;;  %v17636_v9 = vld [vmem:[%s19809_s21 + $0xb14] ss:$24 sps:$4 sm:$0xff]  }
 0x717   : > { %14540 = vmatpush1.bf16.msra.mxu0 %v17628_v4  ;;  %v17579_v4 = vld [vmem:[%s19809_s21 + $0x78c] ss:$24 sps:$4 sm:$0xff]  }
 0x718   : > { %14541 = vmatprep.subr.bf16.mxu0 %v17636_v9  ;;  %v17589_v9 = vld [vmem:[%s19809_s21 + $0x7e8] ss:$24 sps:$4 sm:$0xff]  }
 0x719   : > { %14565 = vmatpush1.bf16.msra.mxu1 %v17457_v24  ;;  %v17510_v24 = vld [vmem:[%s19809_s21 + $0x39c] ss:$24 sps:$4 sm:$0xff]  }
 0x71a   : > { %14566 = vmatprep.subr.bf16.mxu1 %v17462_v13  ;;  %v17508_v13 = vld [vmem:[%s19809_s21 + $0x398] ss:$24 sps:$4 sm:$0xff]  }
 0x71b   : > { %14542 = vmatpush1.bf16.msra.mxu0 %v17634_v3  ;;  %v17591_v3 = vld [vmem:[%s19809_s21 + $0x7ec] ss:$24 sps:$4 sm:$0xff]  }
 0x71d   : > { %14567 = vmatpush1.bf16.msra.mxu1 %v17460_v14  ;;  %v17640_v14 = vld [vmem:[%s19809_s21 + $0xb40] ss:$24 sps:$4 sm:$0xff]  }
 0x71e   : > { %14568 = vmatprep.subr.bf16.mxu1 %v17465_v52  ;;  %v17642_v52 = vld [vmem:[%s19809_s21 + $0xb44] ss:$24 sps:$4 sm:$0xff]  }
 0x71f   : > { %14543 = vmatprep.subr.bf16.mxu0 %v17642_v52  ;;  %v17601_v52 = vld [vmem:[%s19809_s21 + $0x848] ss:$24 sps:$4 sm:$0xff]  }
 0x720   : > { %14544 = vmatpush1.bf16.msra.mxu0 %v17640_v14  ;;  %v17603_v14 = vld [vmem:[%s19809_s21 + $0x84c] ss:$24 sps:$4 sm:$0xff]  }
 0x721   : > { %14569 = vmatpush1.bf16.msra.mxu1 %v17463_v15  ;;  %v17513_v15 = vld [vmem:[%s19809_s21 + $0x3cc] ss:$24 sps:$4 sm:$0xff]  }
 0x722   : > { %14570 = vmatprep.subr.bf16.mxu1 %v17468_v29  ;;  %v17511_v29 = vld [vmem:[%s19809_s21 + $0x3c8] ss:$24 sps:$4 sm:$0xff]  }
 0x725   : > { %14571 = vmatpush1.bf16.msra.mxu1 %v17466_v18  ;;  %v17646_v18 = vld [vmem:[%s19809_s21 + $0xb70] ss:$24 sps:$4 sm:$0xff]  }
 0x726   : > { %14572 = vmatprep.subr.bf16.mxu1 %v17471_v19  ;;  %v17648_v19 = vld [vmem:[%s19809_s21 + $0xb74] ss:$24 sps:$4 sm:$0xff]  }
 0x727   : > { %14545 = vmatprep.subr.bf16.mxu0 %v17648_v19  ;;  %v17613_v19 = vld [vmem:[%s19809_s21 + $0x8a8] ss:$24 sps:$4 sm:$0xff]  }
 0x728   : > { %14546 = vmatpush1.bf16.msra.mxu0 %v17646_v18  ;;  %v17615_v18 = vld [vmem:[%s19809_s21 + $0x8ac] ss:$24 sps:$4 sm:$0xff]  }
 0x729   : > { %14573 = vmatpush1.bf16.msra.mxu1 %v17469_v16  ;;  %v17516_v16 = vld [vmem:[%s19809_s21 + $0x3fc] ss:$24 sps:$4 sm:$0xff]   ;;  %14547 = vmatprep.subr.bf16.mxu0 %v17654_v26  ;;  %v17625_v26 = vld [vmem:[%s19809_s21 + $0x908] ss:$24 sps:$4 sm:$0xff]  }
 0x72a   : > { %14574 = vmatprep.subr.bf16.mxu1 %v17474_v21  ;;  %v17514_v21 = vld [vmem:[%s19809_s21 + $0x3f8] ss:$24 sps:$4 sm:$0xff]  }
 0x72c   : > { %14548 = vmatpush1.bf16.msra.mxu0 %v17652_v49  ;;  %v17633_v49 = vld [vmem:[%s19809_s21 + $0x93c] ss:$24 sps:$4 sm:$0xff]  }
 0x72d   : > { %14575 = vmatpush1.bf16.msra.mxu1 %v17472_v22  ;;  %v17519_v22 = vld [vmem:[%s19809_s21 + $0x42c] ss:$24 sps:$4 sm:$0xff]   ;;  %14549 = vmatprep.subr.bf16.mxu0 %v17660_v36  ;;  %v17637_v36 = vld [vmem:[%s19809_s21 + $0x968] ss:$24 sps:$4 sm:$0xff]  }
 0x72e   : > { %14576 = vmatprep.subr.bf16.mxu1 %v17477_v0  ;;  %v17517_v0 = vld [vmem:[%s19809_s21 + $0x428] ss:$24 sps:$4 sm:$0xff]  }
 0x730   : > { %14550 = vmatpush1.bf16.msra.mxu0 %v17658_v55  ;;  %v17645_v55 = vld [vmem:[%s19809_s21 + $0x99c] ss:$24 sps:$4 sm:$0xff]  }
 0x731   : > { %14577 = vmatpush1.bf16.msra.mxu1 %v17475_v27  ;;  %v17522_v27 = vld [vmem:[%s19809_s21 + $0x45c] ss:$24 sps:$4 sm:$0xff]   ;;  %14724 = vmatprep.subr.bf16.mxu0 %v17666_v23  ;;  %v1897_v23 = vsub.s32 6, %v18252_v43 }
 0x732   : > { %14578 = vmatprep.subr.bf16.mxu1 %v17480_v11  ;;  %v17520_v11 = vld [vmem:[%s19809_s21 + $0x458] ss:$24 sps:$4 sm:$0xff]  }
 0x735   : > { %14579 = vmatpush1.bf16.msra.mxu1 %v17478_v12  ;;  %v17525_v12 = vld [vmem:[%s19809_s21 + $0x48c] ss:$24 sps:$4 sm:$0xff]  }
 0x736   : > { %14580 = vmatprep.subr.bf16.mxu1 %v17483_v5  ;;  %v17528_v5 = vld [vmem:[%s19809_s21 + $0x4bc] ss:$24 sps:$4 sm:$0xff]  }
 0x739   : > { %14581 = vmatpush1.bf16.msra.mxu1 %v17481_v41  ;;  %v17526_v41 = vld [vmem:[%s19809_s21 + $0x4b8] ss:$24 sps:$4 sm:$0xff]  }
 0x73a   : > { %14582 = vmatprep.subr.bf16.mxu1 %v17486_v35  ;;  %v17534_v35 = vld [vmem:[%s19809_s21 + $0x51c] ss:$24 sps:$4 sm:$0xff]  }
 0x73d   : > { %14583 = vmatpush1.bf16.msra.mxu1 %v17484_v63  ;;  %v17532_v63 = vld [vmem:[%s19809_s21 + $0x518] ss:$24 sps:$4 sm:$0xff]  }
 0x73e   : > { %14584 = vmatprep.subr.bf16.mxu1 %v17489_v44  ;;  %v17540_v44 = vld [vmem:[%s19809_s21 + $0x57c] ss:$24 sps:$4 sm:$0xff]  }
 0x741   : > { %14585 = vmatpush1.bf16.msra.mxu1 %v17487_v61  ;;  %v17538_v61 = vld [vmem:[%s19809_s21 + $0x578] ss:$24 sps:$4 sm:$0xff]  }
 0x742   : > { %14586 = vmatprep.subr.bf16.mxu1 %v17492_v45  ;;  %v17546_v45 = vld [vmem:[%s19809_s21 + $0x5dc] ss:$24 sps:$4 sm:$0xff]  }
 0x745   : > { %14587 = vmatpush1.bf16.msra.mxu1 %v17490_v2  ;;  %v17544_v2 = vld [vmem:[%s19809_s21 + $0x5d8] ss:$24 sps:$4 sm:$0xff]  }
 0x746   : > { %14588 = vmatprep.subr.bf16.mxu1 %v17495_v31  ;;  %v17552_v31 = vld [vmem:[%s19809_s21 + $0x63c] ss:$24 sps:$4 sm:$0xff]  }
 0x749   : > { %14589 = vmatpush1.bf16.msra.mxu1 %v17493_v38  ;;  %v17550_v38 = vld [vmem:[%s19809_s21 + $0x638] ss:$24 sps:$4 sm:$0xff]  }
 0x74a   : > { %14590 = vmatprep.subr.bf16.mxu1 %v17498_v54  ;;  %v17558_v54 = vld [vmem:[%s19809_s21 + $0x69c] ss:$24 sps:$4 sm:$0xff]  }
 0x74d   : > { %14591 = vmatpush1.bf16.msra.mxu1 %v17496_v56  ;;  %v17556_v56 = vld [vmem:[%s19809_s21 + $0x698] ss:$24 sps:$4 sm:$0xff]  }
 0x74e   : > { %14601 = vmatprep.subr.bf16.mxu1 %v17501_v62  ;;  %v17564_v62 = vld [vmem:[%s19809_s21 + $0x6fc] ss:$24 sps:$4 sm:$0xff]  }
 0x750   : > { %14593 = vmatmul.mubr.bf16.vlgmr.msra.gmra.mrb[12].mxu1 %v20021_v8 }
 0x751   : > { %14602 = vmatpush1.bf16.msra.mxu1 %v17499_v48  ;;  %14633 = vmatprep.mubr.bf16.mxu1 %v20026_v42  ;;  %v17562_v48 = vld [vmem:[%s19809_s21 + $0x6f8] ss:$24 sps:$4 sm:$0xff]  }
 0x752   : > { %14603 = vmatprep.subr.bf16.mxu1 %v17504_v1  ;;  %v17573_v1 = vld [vmem:[%s19809_s21 + $0x75c] ss:$24 sps:$4 sm:$0xff]  }
 0x755   : > { %14604 = vmatpush1.bf16.msra.mxu1 %v17502_v50  ;;  %v17571_v50 = vld [vmem:[%s19809_s21 + $0x758] ss:$24 sps:$4 sm:$0xff]  }
 0x756   : > { %14605 = vmatprep.subr.bf16.mxu1 %v17507_v17  ;;  %v17585_v17 = vld [vmem:[%s19809_s21 + $0x7bc] ss:$24 sps:$4 sm:$0xff]  }
 0x759   : > { %14606 = vmatpush1.bf16.msra.mxu1 %v17505_v6  ;;  %v17583_v6 = vld [vmem:[%s19809_s21 + $0x7b8] ss:$24 sps:$4 sm:$0xff]  }
 0x75a   : > { %14607 = vmatprep.subr.bf16.mxu1 %v17510_v24  ;;  %v17597_v24 = vld [vmem:[%s19809_s21 + $0x81c] ss:$24 sps:$4 sm:$0xff]  }
 0x75d   : > { %14608 = vmatpush1.bf16.msra.mxu1 %v17508_v13  ;;  %v17595_v13 = vld [vmem:[%s19809_s21 + $0x818] ss:$24 sps:$4 sm:$0xff]  }
 0x75e   : > { %14609 = vmatprep.subr.bf16.mxu1 %v17513_v15  ;;  %v17609_v15 = vld [vmem:[%s19809_s21 + $0x87c] ss:$24 sps:$4 sm:$0xff]  }
 0x761   : > { %14610 = vmatpush1.bf16.msra.mxu1 %v17511_v29  ;;  %v17607_v29 = vld [vmem:[%s19809_s21 + $0x878] ss:$24 sps:$4 sm:$0xff]  }
 0x762   : > { %14611 = vmatprep.subr.bf16.mxu1 %v17516_v16  ;;  %v17621_v16 = vld [vmem:[%s19809_s21 + $0x8dc] ss:$24 sps:$4 sm:$0xff]  }
 0x765   : > { %14612 = vmatpush1.bf16.msra.mxu1 %v17514_v21  ;;  %v17619_v21 = vld [vmem:[%s19809_s21 + $0x8d8] ss:$24 sps:$4 sm:$0xff]  }
 0x766   : > { %14613 = vmatprep.subr.bf16.mxu1 %v17519_v22  ;;  %v17627_v22 = vld [vmem:[%s19809_s21 + $0x90c] ss:$24 sps:$4 sm:$0xff]  }
 0x769   : > { %14614 = vmatpush1.bf16.msra.mxu1 %v17517_v0  ;;  %v17631_v0 = vld [vmem:[%s19809_s21 + $0x938] ss:$24 sps:$4 sm:$0xff]  }
 0x76a   : > { %14615 = vmatprep.subr.bf16.mxu1 %v17522_v27  ;;  %v17639_v27 = vld [vmem:[%s19809_s21 + $0x96c] ss:$24 sps:$4 sm:$0xff]  }
 0x76d   : > { %14616 = vmatpush1.bf16.msra.mxu1 %v17520_v11  ;;  %v17643_v11 = vld [vmem:[%s19809_s21 + $0x998] ss:$24 sps:$4 sm:$0xff]  }
 0x76e   : > { %14617 = vmatprep.subr.bf16.mxu1 %v17525_v12  ;;  %v17651_v12 = vld [vmem:[%s19809_s21 + $0x9cc] ss:$24 sps:$4 sm:$0xff]  }
 0x771   : > { %14618 = vmatpush1.bf16.msra.mxu1 %v17523_v39  ;;  %v17649_v39 = vld [vmem:[%s19809_s21 + $0x9c8] ss:$24 sps:$4 sm:$0xff]  }
 0x772   : > { %14619 = vmatprep.subr.bf16.mxu1 %v17528_v5  ;;  %v1901_v5 = vsub.s32 7, %v18252_v43 }
 0x775   : > { %14620 = vmatpush1.bf16.msra.mxu1 %v17526_v41  ;;  %v17657_v41 = vld [vmem:[%s19809_s21 + $0x9fc] ss:$24 sps:$4 sm:$0xff]  }
 0x776   : > { %14621 = vmatprep.subr.bf16.mxu1 %v17531_v7  ;;  %v17884_v7 = vld [vmem:[%s18224_s29] sm:$0xff] }
 0x779   : > { %14622 = vmatpush1.bf16.msra.mxu1 %v17529_v25  ;;  %v1898_v25 = vrot.slane %v17884_v7, %v1897_v23  ;;  %v17721_v23 = vld [vmem:[%s19809_s21 + $0x1f0] ss:$24 sps:$4 sm:$0xff]  }
 0x77a   : > { %14623 = vmatprep.subr.bf16.mxu1 %v17534_v35  ;;  %v1902_v35 = vrot.slane %v17884_v7, %v1901_v5  ;;  %v17724_v5 = vld [vmem:[%s19809_s21 + $0x220] ss:$24 sps:$4 sm:$0xff]   ;;  %v17727_v7 = vld [vmem:[%s19809_s21 + $0x250] ss:$24 sps:$4 sm:$0xff]  }
 0x77d   : > { %14624 = vmatpush1.bf16.msra.mxu1 %v17532_v63  ;;  %v17655_v63 = vld [vmem:[%s19809_s21 + $0x9f8] ss:$24 sps:$4 sm:$0xff]  }
 0x77e   : > { %14625 = vmatprep.subr.bf16.mxu1 %v17537_v34  ;;  %v17663_v34 = vld [vmem:[%s19809_s21 + $0xa2c] ss:$24 sps:$4 sm:$0xff]  }
 0x781   : > { %14626 = vmatpush1.bf16.msra.mxu1 %v17535_v40 }
 0x782   : > { %14627 = vmatprep.subr.bf16.mxu1 %v17540_v44 }
 0x785   : > { %14628 = vmatpush1.bf16.msra.mxu1 %v17538_v61 }
 0x786   : > { %14629 = vmatprep.subr.bf16.mxu1 %v17543_v30 }
 0x789   : > { %14630 = vmatpush1.bf16.msra.mxu1 %v17541_v28 }
 0x78a   : > { %14631 = vmatprep.subr.bf16.mxu1 %v17546_v45  ;;  %v17661_v45 = vld [vmem:[%s19809_s21 + $0xa28] ss:$24 sps:$4 sm:$0xff]  }
 0x78d   : > { %14632 = vmatpush1.bf16.msra.mxu1 %v17544_v2 }
 0x78e   : > { %14642 = vmatprep.subr.bf16.mxu1 %v17549_v10 }
 0x790   : > { %14634 = vmatmul.mubr.bf16.vlgmr.msra.gmra.mrb[12].mxu1 %v20096_v53 }
 0x791   : > { %14643 = vmatpush1.bf16.msra.mxu1 %v17547_v47  ;;  %14674 = vmatprep.mubr.bf16.mxu1 %v20181_v33  ;;  %v17669_v47 = vld [vmem:[%s19809_s21 + $0xa5c] ss:$24 sps:$4 sm:$0xff]  }
 0x792   : > { %14644 = vmatprep.subr.bf16.mxu1 %v17552_v31 }
 0x795   : > { %14645 = vmatpush1.bf16.msra.mxu1 %v17550_v38 }
 0x796   : > { %14646 = vmatprep.subr.bf16.mxu1 %v17555_v51  ;;  %v17664_v51 = vld [vmem:[%s19809_s21 + $0x10] ss:$24 sps:$4 sm:$0xff]  }
 0x799   : > { %14647 = vmatpush1.bf16.msra.mxu1 %v17553_v58  ;;  %v17667_v58 = vld [vmem:[%s19809_s21 + $0xa58] ss:$24 sps:$4 sm:$0xff]  }
 0x79a   : > { %14648 = vmatprep.subr.bf16.mxu1 %v17558_v54 }
 0x79d   : > { %14649 = vmatpush1.bf16.msra.mxu1 %v17556_v56  ;;  %v17672_v56 = vld [vmem:[%s19809_s21 + $0x44] ss:$24 sps:$4 sm:$0xff]  }
 0x79e   : > { %14650 = vmatprep.subr.bf16.mxu1 %v17561_v20  ;;  %v17675_v20 = vld [vmem:[%s19809_s21 + $0xa8c] ss:$24 sps:$4 sm:$0xff]  }
 0x7a1   : > { %14651 = vmatpush1.bf16.msra.mxu1 %v17559_v59  ;;  %v17670_v59 = vld [vmem:[%s19809_s21 + $0x40] ss:$24 sps:$4 sm:$0xff]  }
 0x7a2   : > { %14652 = vmatprep.subr.bf16.mxu1 %v17564_v62  ;;  %v17673_v62 = vld [vmem:[%s19809_s21 + $0xa88] ss:$24 sps:$4 sm:$0xff]  }
 0x7a5   : > { %14653 = vmatpush1.bf16.msra.mxu1 %v17562_v48  ;;  %v17678_v48 = vld [vmem:[%s19809_s21 + $0x74] ss:$24 sps:$4 sm:$0xff]  }
 0x7a6   : > { %14654 = vmatprep.subr.bf16.mxu1 %v17567_v37  ;;  %v17681_v37 = vld [vmem:[%s19809_s21 + $0xabc] ss:$24 sps:$4 sm:$0xff]  }
 0x7a9   : > { %14655 = vmatpush1.bf16.msra.mxu1 %v17565_v60  ;;  %v17676_v60 = vld [vmem:[%s19809_s21 + $0x70] ss:$24 sps:$4 sm:$0xff]  }
 0x7aa   : > { %14656 = vmatprep.subr.bf16.mxu1 %v17573_v1  ;;  %v17679_v1 = vld [vmem:[%s19809_s21 + $0xab8] ss:$24 sps:$4 sm:$0xff]  }
 0x7ad   : > { %14657 = vmatpush1.bf16.msra.mxu1 %v17571_v50  ;;  %v17684_v50 = vld [vmem:[%s19809_s21 + $0xa4] ss:$24 sps:$4 sm:$0xff]  }
 0x7ae   : > { %14658 = vmatprep.subr.bf16.mxu1 %v17579_v4  ;;  %v17687_v4 = vld [vmem:[%s19809_s21 + $0xaec] ss:$24 sps:$4 sm:$0xff]  }
 0x7b1   : > { %14659 = vmatpush1.bf16.msra.mxu1 %v17577_v57  ;;  %v17685_v57 = vld [vmem:[%s19809_s21 + $0xae8] ss:$24 sps:$4 sm:$0xff]  }
 0x7b2   : > { %14660 = vmatprep.subr.bf16.mxu1 %v17585_v17  ;;  %v17690_v17 = vld [vmem:[%s19809_s21 + $0xd4] ss:$24 sps:$4 sm:$0xff]  }
 0x7b5   : > { %14661 = vmatpush1.bf16.msra.mxu1 %v17583_v6  ;;  %v17693_v6 = vld [vmem:[%s19809_s21 + $0xb1c] ss:$24 sps:$4 sm:$0xff]  }
 0x7b6   : > { %14662 = vmatprep.subr.bf16.mxu1 %v17591_v3  ;;  %v17688_v3 = vld [vmem:[%s19809_s21 + $0xd0] ss:$24 sps:$4 sm:$0xff]  }
 0x7b9   : > { %14663 = vmatpush1.bf16.msra.mxu1 %v17589_v9  ;;  %v17691_v9 = vld [vmem:[%s19809_s21 + $0xb18] ss:$24 sps:$4 sm:$0xff]  }
 0x7ba   : > { %14664 = vmatprep.subr.bf16.mxu1 %v17597_v24  ;;  %v17696_v24 = vld [vmem:[%s19809_s21 + $0x104] ss:$24 sps:$4 sm:$0xff]  }
 0x7bd   : > { %14665 = vmatpush1.bf16.msra.mxu1 %v17595_v13  ;;  %v17699_v13 = vld [vmem:[%s19809_s21 + $0xb4c] ss:$24 sps:$4 sm:$0xff]  }
 0x7be   : > { %14666 = vmatprep.subr.bf16.mxu1 %v17603_v14  ;;  %v17694_v14 = vld [vmem:[%s19809_s21 + $0x100] ss:$24 sps:$4 sm:$0xff]  }
 0x7c1   : > { %14667 = vmatpush1.bf16.msra.mxu1 %v17601_v52  ;;  %v17697_v52 = vld [vmem:[%s19809_s21 + $0xb48] ss:$24 sps:$4 sm:$0xff]  }
 0x7c2   : > { %14668 = vmatprep.subr.bf16.mxu1 %v17609_v15  ;;  %v17702_v15 = vld [vmem:[%s19809_s21 + $0x134] ss:$24 sps:$4 sm:$0xff]  }
 0x7c5   : > { %14669 = vmatpush1.bf16.msra.mxu1 %v17607_v29  ;;  %v17705_v29 = vld [vmem:[%s19809_s21 + $0xb7c] ss:$24 sps:$4 sm:$0xff]  }
 0x7c6   : > { %14670 = vmatprep.subr.bf16.mxu1 %v17615_v18  ;;  %v17700_v18 = vld [vmem:[%s19809_s21 + $0x130] ss:$24 sps:$4 sm:$0xff]  }
 0x7c9   : > { %14671 = vmatpush1.bf16.msra.mxu1 %v17613_v19  ;;  %v17703_v19 = vld [vmem:[%s19809_s21 + $0xb78] ss:$24 sps:$4 sm:$0xff]  }
 0x7ca   : > { %14672 = vmatprep.subr.bf16.mxu1 %v17621_v16  ;;  %v17708_v16 = vld [vmem:[%s19809_s21 + $0x164] ss:$24 sps:$4 sm:$0xff]  }
 0x7cd   : > { %14673 = vmatpush1.bf16.msra.mxu1 %v17619_v21  ;;  %v17711_v21 = vld [vmem:[%s19809_s21 + $0xbac] ss:$24 sps:$4 sm:$0xff]  }
 0x7ce   : > { %14683 = vmatprep.subr.bf16.mxu1 %v17627_v22  ;;  %v17706_v22 = vld [vmem:[%s19809_s21 + $0x160] ss:$24 sps:$4 sm:$0xff]  }
 0x7d0   : > { %14675 = vmatmul.mubr.bf16.vlgmr.msra.gmra.mrb[12].mxu1 %v20183_v46 }
 0x7d1   : > { %14684 = vmatpush1.bf16.msra.mxu1 %v17625_v26  ;;  %v17709_v26 = vld [vmem:[%s19809_s21 + $0xba8] ss:$24 sps:$4 sm:$0xff]  }
 0x7d2   : > { %14685 = vmatprep.subr.bf16.mxu1 %v17633_v49  ;;  %v17714_v49 = vld [vmem:[%s19809_s21 + $0x194] ss:$24 sps:$4 sm:$0xff]  }
 0x7d5   : > { %14686 = vmatpush1.bf16.msra.mxu1 %v17631_v0  ;;  %v17717_v0 = vld [vmem:[%s19809_s21 + $0xbdc] ss:$24 sps:$4 sm:$0xff]  }
 0x7d6   : > { %14687 = vmatprep.subr.bf16.mxu1 %v17639_v27  ;;  %v17712_v27 = vld [vmem:[%s19809_s21 + $0x190] ss:$24 sps:$4 sm:$0xff]  }
 0x7d9   : > { %14688 = vmatpush1.bf16.msra.mxu1 %v17637_v36  ;;  %v17715_v36 = vld [vmem:[%s19809_s21 + $0xbd8] ss:$24 sps:$4 sm:$0xff]  }
 0x7da   : > { %14689 = vmatprep.subr.bf16.mxu1 %v17645_v55  ;;  %v17720_v55 = vld [vmem:[%s19809_s21 + $0x1c4] ss:$24 sps:$4 sm:$0xff]  }
 0x7dd   : > { %14690 = vmatpush1.bf16.msra.mxu1 %v17643_v11  ;;  %v17718_v11 = vld [vmem:[%s19809_s21 + $0x1c0] ss:$24 sps:$4 sm:$0xff]  }
 0x7de   : > { %14691 = vmatprep.subr.bf16.mxu1 %v17651_v12  ;;  %v17723_v12 = vld [vmem:[%s19809_s21 + $0x1f4] ss:$24 sps:$4 sm:$0xff]  }
 0x7e1   : > { %14692 = vmatpush1.bf16.msra.mxu1 %v17649_v39  ;;  %v17726_v39 = vld [vmem:[%s19809_s21 + $0x224] ss:$24 sps:$4 sm:$0xff]  }
 0x7e2   : > { %14693 = vmatprep.subr.bf16.mxu1 %v17657_v41  ;;  %v17729_v41 = vld [vmem:[%s19809_s21 + $0x254] ss:$24 sps:$4 sm:$0xff]  }
 0x7e3   : > { %v12069_v40 = vpop.f32.mrb[8].mxu1 }
 0x7e4   : > { %v17015_v44 = vadd.f32 %v12069_v40, %v1898_v25  ;;  %v12071_v61 = vpop.f32.mrb[9].mxu1  ;;  %v17732_v25 = vld [vmem:[%s19809_s21 + $0x284] ss:$24 sps:$4 sm:$0xff]  }
 0x7e5   : > { %v17016_v30 = vadd.f32 %v12071_v61, %v1902_v35  ;;  %v12073_v28 = vpop.f32.mrb[10].mxu1  ;;  %14694 = vmatpush1.bf16.msra.mxu1 %v17655_v63  ;;  %v17730_v35 = vld [vmem:[%s19809_s21 + $0x280] ss:$24 sps:$4 sm:$0xff]   ;;  %v17735_v63 = vld [vmem:[%s19809_s21 + $0x2b4] ss:$24 sps:$4 sm:$0xff]  }
 0x7e6   : > { %v12082_v2 = vmax.f32 %v17015_v44, 0.0  ;;  %v12074_v10 = vpop.f32.mrb[11].mxu1  ;;  %14695 = vmatprep.subr.bf16.mxu1 %v17663_v34  ;;  %v17733_v34 = vld [vmem:[%s19809_s21 + $0x2b0] ss:$24 sps:$4 sm:$0xff]   ;;  %v17738_v40 = vld [vmem:[%s19809_s21 + $0x2e4] ss:$24 sps:$4 sm:$0xff]  }
 0x7e7   : > { %v12083_v31 = vmax.f32 %v17016_v30, 0.0  ;;  %v17736_v44 = vld [vmem:[%s19809_s21 + $0x2e0] ss:$24 sps:$4 sm:$0xff]   ;;  %v17741_v61 = vld [vmem:[%s19809_s21 + $0x314] ss:$24 sps:$4 sm:$0xff]  }
 0x7e8   : > { %v20362_v54 = vpack.c.bf16 %v12082_v2, %v12082_v2  ;;  %v17739_v30 = vld [vmem:[%s19809_s21 + $0x310] ss:$24 sps:$4 sm:$0xff]   ;;  %v17744_v28 = vld [vmem:[%s19809_s21 + $0x344] ss:$24 sps:$4 sm:$0xff]   ;;  %v17747_v2 = vld [vmem:[%s19809_s21 + $0x374] ss:$24 sps:$4 sm:$0xff]  }
 0x7e9   : > { %v20358_v38 = vpack.c.bf16 %v12083_v31, %v12083_v31  ;;  %14696 = vmatpush1.bf16.msra.mxu1 %v17661_v45  ;;  %v17742_v45 = vld [vmem:[%s19809_s21 + $0x340] ss:$24 sps:$4 sm:$0xff]   ;;  %v17745_v10 = vld [vmem:[%s19809_s21 + $0x370] ss:$24 sps:$4 sm:$0xff]  }
 0x7ea   : > { %14697 = vmatprep.subr.bf16.mxu1 %v17669_v47  ;;  %v17750_v47 = vld [vmem:[%s19809_s21 + $0x3a4] ss:$24 sps:$4 sm:$0xff]   ;;  %v17748_v31 = vld [vmem:[%s19809_s21 + $0x3a0] ss:$24 sps:$4 sm:$0xff]  }
 0x7eb   : > { %14551 = vmatprep.mubr.bf16.mxu0 %v20358_v38  ;;  %14715 = vmatprep.mubr.bf16.mxu1 %v20358_v38 }
 0x7ec   : > { %14552 = vmatmul.mubr.bf16.vlgmr.msra.gmra.mrb[8].mxu0 %v20362_v54 }
 0x7ed   : > { %14725 = vmatpush1.bf16.msra.mxu0 %v17664_v51  ;;  %14698 = vmatpush1.bf16.msra.mxu1 %v17667_v58  ;;  %v17751_v51 = vld [vmem:[%s19809_s21 + $0x3d0] ss:$24 sps:$4 sm:$0xff]   ;;  %v17754_v58 = vld [vmem:[%s19809_s21 + $0x400] ss:$24 sps:$4 sm:$0xff]  }
 0x7ee   : > { %14756 = vmatprep.mubr.bf16.mxu0 %v19946_v32  ;;  %14726 = vmatprep.subr.bf16.mxu0 %v17672_v56  ;;  %v17682_v32 = vld [vmem:[%s19809_s21 + $0xa0] ss:$24 sps:$4 sm:$0xff]   ;;  %v17759_v56 = vld [vmem:[%s19809_s21 + $0x434] ss:$24 sps:$4 sm:$0xff]  }
 0x7ef   : > { %14699 = vmatprep.subr.bf16.mxu1 %v17675_v20  ;;  %v17757_v20 = vld [vmem:[%s19809_s21 + $0x430] ss:$24 sps:$4 sm:$0xff]  }
 0x7f1   : > { %14727 = vmatpush1.bf16.msra.mxu0 %v17670_v59  ;;  %14700 = vmatpush1.bf16.msra.mxu1 %v17673_v62  ;;  %v17762_v59 = vld [vmem:[%s19809_s21 + $0x464] ss:$24 sps:$4 sm:$0xff]   ;;  %v17760_v62 = vld [vmem:[%s19809_s21 + $0x460] ss:$24 sps:$4 sm:$0xff]  }
 0x7f2   : > { %14728 = vmatprep.subr.bf16.mxu0 %v17678_v48  ;;  %14701 = vmatprep.subr.bf16.mxu1 %v17681_v37  ;;  %v17765_v48 = vld [vmem:[%s19809_s21 + $0x494] ss:$24 sps:$4 sm:$0xff]   ;;  %v17763_v37 = vld [vmem:[%s19809_s21 + $0x490] ss:$24 sps:$4 sm:$0xff]  }
 0x7f5   : > { %14729 = vmatpush1.bf16.msra.mxu0 %v17676_v60  ;;  %14702 = vmatpush1.bf16.msra.mxu1 %v17679_v1  ;;  %v17768_v60 = vld [vmem:[%s19809_s21 + $0x4c4] ss:$24 sps:$4 sm:$0xff]   ;;  %v17766_v1 = vld [vmem:[%s19809_s21 + $0x4c0] ss:$24 sps:$4 sm:$0xff]  }
 0x7f6   : > { %14730 = vmatprep.subr.bf16.mxu0 %v17684_v50  ;;  %14703 = vmatprep.subr.bf16.mxu1 %v17687_v4  ;;  %v17771_v50 = vld [vmem:[%s19809_s21 + $0x4f4] ss:$24 sps:$4 sm:$0xff]   ;;  %v17769_v4 = vld [vmem:[%s19809_s21 + $0x4f0] ss:$24 sps:$4 sm:$0xff]  }
 0x7f9   : > { %14731 = vmatpush1.bf16.msra.mxu0 %v17682_v32  ;;  %14704 = vmatpush1.bf16.msra.mxu1 %v17685_v57  ;;  %v17774_v32 = vld [vmem:[%s19809_s21 + $0x524] ss:$24 sps:$4 sm:$0xff]   ;;  %v17772_v57 = vld [vmem:[%s19809_s21 + $0x520] ss:$24 sps:$4 sm:$0xff]  }
 0x7fa   : > { %14732 = vmatprep.subr.bf16.mxu0 %v17690_v17  ;;  %14705 = vmatprep.subr.bf16.mxu1 %v17693_v6  ;;  %v17777_v17 = vld [vmem:[%s19809_s21 + $0x554] ss:$24 sps:$4 sm:$0xff]   ;;  %v17775_v6 = vld [vmem:[%s19809_s21 + $0x550] ss:$24 sps:$4 sm:$0xff]  }
 0x7fd   : > { %14733 = vmatpush1.bf16.msra.mxu0 %v17688_v3  ;;  %14706 = vmatpush1.bf16.msra.mxu1 %v17691_v9  ;;  %v17780_v3 = vld [vmem:[%s19809_s21 + $0x584] ss:$24 sps:$4 sm:$0xff]   ;;  %v17778_v9 = vld [vmem:[%s19809_s21 + $0x580] ss:$24 sps:$4 sm:$0xff]  }
 0x7fe   : > { %14734 = vmatprep.subr.bf16.mxu0 %v17696_v24  ;;  %14707 = vmatprep.subr.bf16.mxu1 %v17699_v13  ;;  %v17783_v24 = vld [vmem:[%s19809_s21 + $0x5b4] ss:$24 sps:$4 sm:$0xff]   ;;  %v17781_v13 = vld [vmem:[%s19809_s21 + $0x5b0] ss:$24 sps:$4 sm:$0xff]  }
 0x801   : > { %14735 = vmatpush1.bf16.msra.mxu0 %v17694_v14  ;;  %14708 = vmatpush1.bf16.msra.mxu1 %v17697_v52  ;;  %v17786_v14 = vld [vmem:[%s19809_s21 + $0x5e4] ss:$24 sps:$4 sm:$0xff]   ;;  %v17784_v52 = vld [vmem:[%s19809_s21 + $0x5e0] ss:$24 sps:$4 sm:$0xff]  }
 0x802   : > { %14736 = vmatprep.subr.bf16.mxu0 %v17702_v15  ;;  %14709 = vmatprep.subr.bf16.mxu1 %v17705_v29  ;;  %v17789_v15 = vld [vmem:[%s19809_s21 + $0x614] ss:$24 sps:$4 sm:$0xff]   ;;  %v17787_v29 = vld [vmem:[%s19809_s21 + $0x610] ss:$24 sps:$4 sm:$0xff]  }
 0x805   : > { %14737 = vmatpush1.bf16.msra.mxu0 %v17700_v18  ;;  %14710 = vmatpush1.bf16.msra.mxu1 %v17703_v19  ;;  %v17792_v18 = vld [vmem:[%s19809_s21 + $0x644] ss:$24 sps:$4 sm:$0xff]   ;;  %v17790_v19 = vld [vmem:[%s19809_s21 + $0x640] ss:$24 sps:$4 sm:$0xff]  }
 0x806   : > { %14738 = vmatprep.subr.bf16.mxu0 %v17708_v16  ;;  %14711 = vmatprep.subr.bf16.mxu1 %v17711_v21  ;;  %v17795_v16 = vld [vmem:[%s19809_s21 + $0x674] ss:$24 sps:$4 sm:$0xff]   ;;  %v17793_v21 = vld [vmem:[%s19809_s21 + $0x670] ss:$24 sps:$4 sm:$0xff]  }
 0x809   : > { %14739 = vmatpush1.bf16.msra.mxu0 %v17706_v22  ;;  %14712 = vmatpush1.bf16.msra.mxu1 %v17709_v26  ;;  %v17798_v22 = vld [vmem:[%s19809_s21 + $0x6a4] ss:$24 sps:$4 sm:$0xff]   ;;  %v17796_v26 = vld [vmem:[%s19809_s21 + $0x6a0] ss:$24 sps:$4 sm:$0xff]  }
 0x80a   : > { %14740 = vmatprep.subr.bf16.mxu0 %v17714_v49  ;;  %14713 = vmatprep.subr.bf16.mxu1 %v17717_v0  ;;  %v17799_v49 = vld [vmem:[%s19809_s21 + $0x6d0] ss:$24 sps:$4 sm:$0xff]   ;;  %v17802_v0 = vld [vmem:[%s19809_s21 + $0x700] ss:$24 sps:$4 sm:$0xff]  }
 0x80d   : > { %14741 = vmatpush1.bf16.msra.mxu0 %v17712_v27  ;;  %14714 = vmatpush1.bf16.msra.mxu1 %v17715_v36  ;;  %v17807_v27 = vld [vmem:[%s19809_s21 + $0x734] ss:$24 sps:$4 sm:$0xff]   ;;  %v17805_v36 = vld [vmem:[%s19809_s21 + $0x730] ss:$24 sps:$4 sm:$0xff]  }
 0x80e   : > { %14742 = vmatprep.subr.bf16.mxu0 %v17720_v55  ;;  %v17810_v55 = vld [vmem:[%s19809_s21 + $0x764] ss:$24 sps:$4 sm:$0xff]  }
 0x810   : > { %14716 = vmatmul.mubr.bf16.vlgmr.msra.gmra.mrb[12].mxu1 %v20362_v54 }
 0x811   : > { %14743 = vmatpush1.bf16.msra.mxu0 %v17718_v11  ;;  %v17808_v11 = vld [vmem:[%s19809_s21 + $0x760] ss:$24 sps:$4 sm:$0xff]  }
 0x812   : > { %14744 = vmatprep.subr.bf16.mxu0 %v17723_v12  ;;  %v17813_v12 = vld [vmem:[%s19809_s21 + $0x794] ss:$24 sps:$4 sm:$0xff]  }
 0x815   : > { %14745 = vmatpush1.bf16.msra.mxu0 %v17721_v23  ;;  %v17811_v23 = vld [vmem:[%s19809_s21 + $0x790] ss:$24 sps:$4 sm:$0xff]  }
 0x816   : > { %14746 = vmatprep.subr.bf16.mxu0 %v17726_v39  ;;  %v17816_v39 = vld [vmem:[%s19809_s21 + $0x7c4] ss:$24 sps:$4 sm:$0xff]  }
 0x819   : > { %14747 = vmatpush1.bf16.msra.mxu0 %v17724_v5  ;;  %v17814_v5 = vld [vmem:[%s19809_s21 + $0x7c0] ss:$24 sps:$4 sm:$0xff]  }
 0x81a   : > { %14748 = vmatprep.subr.bf16.mxu0 %v17729_v41  ;;  %v17819_v41 = vld [vmem:[%s19809_s21 + $0x7f4] ss:$24 sps:$4 sm:$0xff]  }
 0x81d   : > { %14749 = vmatpush1.bf16.msra.mxu0 %v17727_v7  ;;  %v17817_v7 = vld [vmem:[%s19809_s21 + $0x7f0] ss:$24 sps:$4 sm:$0xff]  }
 0x81e   : > { %14750 = vmatprep.subr.bf16.mxu0 %v17732_v25  ;;  %v17822_v25 = vld [vmem:[%s19809_s21 + $0x824] ss:$24 sps:$4 sm:$0xff]  }
 0x821   : > { %14751 = vmatpush1.bf16.msra.mxu0 %v17730_v35  ;;  %v17820_v35 = vld [vmem:[%s19809_s21 + $0x820] ss:$24 sps:$4 sm:$0xff]  }
 0x822   : > { %14752 = vmatprep.subr.bf16.mxu0 %v17735_v63  ;;  %v17825_v63 = vld [vmem:[%s19809_s21 + $0x854] ss:$24 sps:$4 sm:$0xff]  }
 0x825   : > { %14753 = vmatpush1.bf16.msra.mxu0 %v17733_v34  ;;  %v17823_v34 = vld [vmem:[%s19809_s21 + $0x850] ss:$24 sps:$4 sm:$0xff]  }
 0x826   : > { %14754 = vmatprep.subr.bf16.mxu0 %v17738_v40  ;;  %v17828_v40 = vld [vmem:[%s19809_s21 + $0x884] ss:$24 sps:$4 sm:$0xff]  }
 0x829   : > { %14755 = vmatpush1.bf16.msra.mxu0 %v17736_v44  ;;  %v17826_v44 = vld [vmem:[%s19809_s21 + $0x880] ss:$24 sps:$4 sm:$0xff]  }
 0x82a   : > { %14765 = vmatprep.subr.bf16.mxu0 %v17741_v61  ;;  %v17831_v61 = vld [vmem:[%s19809_s21 + $0x8b4] ss:$24 sps:$4 sm:$0xff]  }
 0x82c   : > { %14757 = vmatmul.mubr.bf16.vlgmr.msra.gmra.mrb[12].mxu0 %v20021_v8  ;;  %v17753_v8 = vld [vmem:[%s19809_s21 + $0x3d4] ss:$24 sps:$4 sm:$0xff]  }
 0x82d   : > { %14766 = vmatpush1.bf16.msra.mxu0 %v17739_v30  ;;  %14797 = vmatprep.mubr.bf16.mxu0 %v20026_v42  ;;  %v17756_v42 = vld [vmem:[%s19809_s21 + $0x404] ss:$24 sps:$4 sm:$0xff]   ;;  %v17829_v30 = vld [vmem:[%s19809_s21 + $0x8b0] ss:$24 sps:$4 sm:$0xff]  }
 0x82e   : > { %14767 = vmatprep.subr.bf16.mxu0 %v17744_v28  ;;  %v17834_v28 = vld [vmem:[%s19809_s21 + $0x8e4] ss:$24 sps:$4 sm:$0xff]  }
 0x831   : > { %14768 = vmatpush1.bf16.msra.mxu0 %v17742_v45  ;;  %v17832_v45 = vld [vmem:[%s19809_s21 + $0x8e0] ss:$24 sps:$4 sm:$0xff]  }
 0x832   : > { %14769 = vmatprep.subr.bf16.mxu0 %v17747_v2  ;;  %v17837_v2 = vld [vmem:[%s19809_s21 + $0x914] ss:$24 sps:$4 sm:$0xff]  }
 0x835   : > { %14770 = vmatpush1.bf16.msra.mxu0 %v17745_v10  ;;  %v17835_v10 = vld [vmem:[%s19809_s21 + $0x910] ss:$24 sps:$4 sm:$0xff]  }
 0x836   : > { %14771 = vmatprep.subr.bf16.mxu0 %v17750_v47  ;;  %v17840_v47 = vld [vmem:[%s19809_s21 + $0x944] ss:$24 sps:$4 sm:$0xff]  }
 0x839   : > { %14772 = vmatpush1.bf16.msra.mxu0 %v17748_v31  ;;  %v17838_v31 = vld [vmem:[%s19809_s21 + $0x940] ss:$24 sps:$4 sm:$0xff]  }
 0x83a   : > { %14773 = vmatprep.subr.bf16.mxu0 %v17753_v8  ;;  %v17843_v8 = vld [vmem:[%s19809_s21 + $0x974] ss:$24 sps:$4 sm:$0xff]  }
 0x83d   : > { %14774 = vmatpush1.bf16.msra.mxu0 %v17751_v51  ;;  %v17841_v51 = vld [vmem:[%s19809_s21 + $0x970] ss:$24 sps:$4 sm:$0xff]  }
 0x83e   : > { %14775 = vmatprep.subr.bf16.mxu0 %v17756_v42  ;;  %v17846_v42 = vld [vmem:[%s19809_s21 + $0x9a4] ss:$24 sps:$4 sm:$0xff]  }
 0x841   : > { %14776 = vmatpush1.bf16.msra.mxu0 %v17754_v58  ;;  %v17844_v58 = vld [vmem:[%s19809_s21 + $0x9a0] ss:$24 sps:$4 sm:$0xff]  }
 0x842   : > { %14777 = vmatprep.subr.bf16.mxu0 %v17759_v56  ;;  %v17849_v56 = vld [vmem:[%s19809_s21 + $0x9d4] ss:$24 sps:$4 sm:$0xff]  }
 0x845   : > { %14778 = vmatpush1.bf16.msra.mxu0 %v17757_v20  ;;  %v17850_v20 = vld [vmem:[%s19809_s21 + $0xa00] ss:$24 sps:$4 sm:$0xff]  }
 0x846   : > { %14779 = vmatprep.subr.bf16.mxu0 %v17762_v59  ;;  %v17855_v59 = vld [vmem:[%s19809_s21 + $0xa34] ss:$24 sps:$4 sm:$0xff]  }
 0x849   : > { %14780 = vmatpush1.bf16.msra.mxu0 %v17760_v62 }
 0x84a   : > { %14781 = vmatprep.subr.bf16.mxu0 %v17765_v48 }
 0x84d   : > { %14782 = vmatpush1.bf16.msra.mxu0 %v17763_v37 }
 0x84e   : > { %14783 = vmatprep.subr.bf16.mxu0 %v17768_v60 }
 0x851   : > { %14784 = vmatpush1.bf16.msra.mxu0 %v17766_v1  ;;  %v17853_v1 = vld [vmem:[%s19809_s21 + $0xa30] ss:$24 sps:$4 sm:$0xff]  }
 0x852   : > { %14785 = vmatprep.subr.bf16.mxu0 %v17771_v50 }
 0x855   : > { %14786 = vmatpush1.bf16.msra.mxu0 %v17769_v4  ;;  %v17858_v4 = vld [vmem:[%s19809_s21 + $0xa64] ss:$24 sps:$4 sm:$0xff]  }
 0x856   : > { %14787 = vmatprep.subr.bf16.mxu0 %v17774_v32  ;;  %v17856_v32 = vld [vmem:[%s19809_s21 + $0xa60] ss:$24 sps:$4 sm:$0xff]  }
 0x859   : > { %14788 = vmatpush1.bf16.msra.mxu0 %v17772_v57  ;;  %v17861_v57 = vld [vmem:[%s19809_s21 + $0xa94] ss:$24 sps:$4 sm:$0xff]  }
 0x85a   : > { %14789 = vmatprep.subr.bf16.mxu0 %v17777_v17  ;;  %v17859_v17 = vld [vmem:[%s19809_s21 + $0xa90] ss:$24 sps:$4 sm:$0xff]  }
 0x85d   : > { %14790 = vmatpush1.bf16.msra.mxu0 %v17775_v6  ;;  %v17864_v6 = vld [vmem:[%s19809_s21 + $0xac4] ss:$24 sps:$4 sm:$0xff]  }
 0x85e   : > { %14791 = vmatprep.subr.bf16.mxu0 %v17780_v3  ;;  %v17862_v3 = vld [vmem:[%s19809_s21 + $0xac0] ss:$24 sps:$4 sm:$0xff]  }
 0x861   : > { %14792 = vmatpush1.bf16.msra.mxu0 %v17778_v9  ;;  %v17867_v9 = vld [vmem:[%s19809_s21 + $0xaf4] ss:$24 sps:$4 sm:$0xff]  }
 0x862   : > { %14793 = vmatprep.subr.bf16.mxu0 %v17783_v24  ;;  %v17865_v24 = vld [vmem:[%s19809_s21 + $0xaf0] ss:$24 sps:$4 sm:$0xff]  }
 0x865   : > { %14794 = vmatpush1.bf16.msra.mxu0 %v17781_v13  ;;  %v17870_v13 = vld [vmem:[%s19809_s21 + $0xb24] ss:$24 sps:$4 sm:$0xff]  }
 0x866   : > { %14795 = vmatprep.subr.bf16.mxu0 %v17786_v14  ;;  %v17868_v14 = vld [vmem:[%s19809_s21 + $0xb20] ss:$24 sps:$4 sm:$0xff]  }
 0x869   : > { %14796 = vmatpush1.bf16.msra.mxu0 %v17784_v52  ;;  %v17873_v52 = vld [vmem:[%s19809_s21 + $0xb54] ss:$24 sps:$4 sm:$0xff]  }
 0x86a   : > { %14806 = vmatprep.subr.bf16.mxu0 %v17789_v15  ;;  %v17871_v15 = vld [vmem:[%s19809_s21 + $0xb50] ss:$24 sps:$4 sm:$0xff]  }
 0x86c   : > { %14798 = vmatmul.mubr.bf16.vlgmr.msra.gmra.mrb[12].mxu0 %v20096_v53  ;;  %v17801_v53 = vld [vmem:[%s19809_s21 + $0x6d4] ss:$24 sps:$4 sm:$0xff]  }
 0x86d   : > { %14807 = vmatpush1.bf16.msra.mxu0 %v17787_v29  ;;  %14838 = vmatprep.mubr.bf16.mxu0 %v20181_v33  ;;  %v17804_v33 = vld [vmem:[%s19809_s21 + $0x704] ss:$24 sps:$4 sm:$0xff]  }
 0x86e   : > { %14808 = vmatprep.subr.bf16.mxu0 %v17792_v18  ;;  %v17876_v29 = vld [vmem:[%s19809_s21 + $0xb84] ss:$24 sps:$4 sm:$0xff]   ;;  %v18024_v18 = vmov 1983009808  }
 0x871   : > { %14809 = vmatpush1.bf16.msra.mxu0 %v17790_v19  ;;  %v14897_v19 = vunpack.c.l.s4 %v18024_v18 }
 0x872   : > { %14810 = vmatprep.subr.bf16.mxu0 %v17795_v16  ;;  %v17874_v16 = vld [vmem:[%s19809_s21 + $0xb80] ss:$24 sps:$4 sm:$0xff]  }
 0x875   : > { %14811 = vmatpush1.bf16.msra.mxu0 %v17793_v21  ;;  %v17879_v21 = vld [vmem:[%s19809_s21 + $0xbb4] ss:$24 sps:$4 sm:$0xff]  }
 0x876   : > { %14812 = vmatprep.subr.bf16.mxu0 %v17798_v22  ;;  %v14898_v22 = vunpack.c.0.s8 %v14897_v19 }
 0x879   : > { %14813 = vmatpush1.bf16.msra.mxu0 %v17796_v26  ;;  %v17877_v26 = vld [vmem:[%s19809_s21 + $0xbb0] ss:$24 sps:$4 sm:$0xff]  }
 0x87a   : > { %14814 = vmatprep.subr.bf16.mxu0 %v17801_v53  ;;  %v17882_v53 = vld [vmem:[%s19809_s21 + $0xbe4] ss:$24 sps:$4 sm:$0xff]  }
 0x87d   : > { %14815 = vmatpush1.bf16.msra.mxu0 %v17799_v49  ;;  %v14901_v49 = vsub.s32 %v14898_v22, %v18252_v43 }
 0x87e   : > { %14816 = vmatprep.subr.bf16.mxu0 %v17804_v33 }
 0x881   : > { %14817 = vmatpush1.bf16.msra.mxu0 %v17802_v0 }
 0x882   : > { %14818 = vmatprep.subr.bf16.mxu0 %v17807_v27 }
 0x885   : > { %14819 = vmatpush1.bf16.msra.mxu0 %v17805_v36 }
 0x886   : > { %14820 = vmatprep.subr.bf16.mxu0 %v17810_v55  ;;  %v17880_v55 = vld [vmem:[%s19809_s21 + $0xbe0] ss:$24 sps:$4 sm:$0xff]  }
 0x889   : > { %14821 = vmatpush1.bf16.msra.mxu0 %v17808_v11 }
 0x88a   : > { %14822 = vmatprep.subr.bf16.mxu0 %v17813_v12 }
 0x88d   : > { %14823 = vmatpush1.bf16.msra.mxu0 %v17811_v23 }
 0x88e   : > { %14824 = vmatprep.subr.bf16.mxu0 %v17816_v39 }
 0x891   : > { %14825 = vmatpush1.bf16.msra.mxu0 %v17814_v5 }
 0x892   : > { %14826 = vmatprep.subr.bf16.mxu0 %v17819_v41 }
 0x895   : > { %14827 = vmatpush1.bf16.msra.mxu0 %v17817_v7 }
 0x896   : > { %14828 = vmatprep.subr.bf16.mxu0 %v17822_v25 }
 0x899   : > { %14829 = vmatpush1.bf16.msra.mxu0 %v17820_v35 }
 0x89a   : > { %14830 = vmatprep.subr.bf16.mxu0 %v17825_v63 }
 0x89d   : > { %14831 = vmatpush1.bf16.msra.mxu0 %v17823_v34 }
 0x89e   : > { %14832 = vmatprep.subr.bf16.mxu0 %v17828_v40 }
 0x8a1   : > { %14833 = vmatpush1.bf16.msra.mxu0 %v17826_v44 }
 0x8a2   : > { %14834 = vmatprep.subr.bf16.mxu0 %v17831_v61 }
 0x8a5   : > { %14835 = vmatpush1.bf16.msra.mxu0 %v17829_v30 }
 0x8a6   : > { %14836 = vmatprep.subr.bf16.mxu0 %v17834_v28 }
 0x8a9   : > { %14837 = vmatpush1.bf16.msra.mxu0 %v17832_v45 }
 0x8aa   : > { %14847 = vmatprep.subr.bf16.mxu0 %v17837_v2 }
 0x8ac   : > { %14839 = vmatmul.mubr.bf16.vlgmr.msra.gmra.mrb[12].mxu0 %v20183_v46  ;;  %v17847_v46 = vld [vmem:[%s19809_s21 + $0x9d0] ss:$24 sps:$4 sm:$0xff]  }
 0x8ad   : > { %14848 = vmatpush1.bf16.msra.mxu0 %v17835_v10  ;;  %14879 = vmatprep.mubr.bf16.mxu0 %v20358_v38  ;;  %v17852_v38 = vld [vmem:[%s19809_s21 + $0xa04] ss:$24 sps:$4 sm:$0xff]  }
 0x8ae   : > { %14849 = vmatprep.subr.bf16.mxu0 %v17840_v47 }
 0x8b1   : > { %14850 = vmatpush1.bf16.msra.mxu0 %v17838_v31 }
 0x8b2   : > { %14851 = vmatprep.subr.bf16.mxu0 %v17843_v8 }
 0x8b5   : > { %14852 = vmatpush1.bf16.msra.mxu0 %v17841_v51 }
 0x8b6   : > { %14853 = vmatprep.subr.bf16.mxu0 %v17846_v42 }
 0x8b9   : > { %14854 = vmatpush1.bf16.msra.mxu0 %v17844_v58 }
 0x8ba   : > { %14855 = vmatprep.subr.bf16.mxu0 %v17849_v56 }
 0x8bd   : > { %14856 = vmatpush1.bf16.msra.mxu0 %v17847_v46 }
 0x8be   : > { %14857 = vmatprep.subr.bf16.mxu0 %v17852_v38 }
 0x8bf   : > { %v14553_v62 = vpop.f32.mrb[8].mxu0 }
 0x8c0   : > { %v14555_v48 = vpop.f32.mrb[9].mxu0 }
 0x8c1   : > { %v14894_v37 = vcombine.low %v14553_v62, %v14555_v48  ;;  %14858 = vmatpush1.bf16.msra.mxu0 %v17850_v20  ;;  %v14557_v60 = vpop.f32.mrb[10].mxu0 }
 0x8c2   : > { %v14558_v50 = vpop.f32.mrb[11].mxu0  ;;  %14859 = vmatprep.subr.bf16.mxu0 %v17855_v59 }
 0x8c3   : > { %v14902_v12 = vrot.slane %v14894_v37, %v14901_v49 }
 0x8c5   : > { %14860 = vmatpush1.bf16.msra.mxu0 %v17853_v1 }
 0x8c6   : > { %14861 = vmatprep.subr.bf16.mxu0 %v17858_v4 }
 0x8c9   : > { %14862 = vmatpush1.bf16.msra.mxu0 %v17856_v32 }
 0x8ca   : > { %14863 = vmatprep.subr.bf16.mxu0 %v17861_v57 }
 0x8cd   : > { %14864 = vmatpush1.bf16.msra.mxu0 %v17859_v17 }
 0x8ce   : > { %14865 = vmatprep.subr.bf16.mxu0 %v17864_v6 }
 0x8d1   : > { %14866 = vmatpush1.bf16.msra.mxu0 %v17862_v3 }
 0x8d2   : > { %14867 = vmatprep.subr.bf16.mxu0 %v17867_v9 }
 0x8d5   : > { %14868 = vmatpush1.bf16.msra.mxu0 %v17865_v24 }
 0x8d6   : > { %14869 = vmatprep.subr.bf16.mxu0 %v17870_v13 }
 0x8d9   : > { %14870 = vmatpush1.bf16.msra.mxu0 %v17868_v14 }
 0x8da   : > { %14871 = vmatprep.subr.bf16.mxu0 %v17873_v52 }
 0x8dd   : > { %14872 = vmatpush1.bf16.msra.mxu0 %v17871_v15 }
 0x8de   : > { %14873 = vmatprep.subr.bf16.mxu0 %v17876_v29 }
 0x8e1   : > { %14874 = vmatpush1.bf16.msra.mxu0 %v17874_v16 }
 0x8e2   : > { %14875 = vmatprep.subr.bf16.mxu0 %v17879_v21 }
 0x8e3   : > { %v14717_v33 = vpop.f32.mrb[12].mxu1 }
 0x8e4   : > { %v14719_v0 = vpop.f32.mrb[13].mxu1 }
 0x8e5   : > { %v14895_v27 = vcombine.low %v14717_v33, %v14719_v0  ;;  %14876 = vmatpush1.bf16.msra.mxu0 %v17877_v26  ;;  %v14721_v36 = vpop.f32.mrb[14].mxu1 }
 0x8e6   : > { %v14722_v11 = vpop.f32.mrb[15].mxu1  ;;  %14877 = vmatprep.subr.bf16.mxu0 %v17882_v53 }
 0x8e7   : > { %v14909_v23 = vrot.slane %v14895_v27, %v14901_v49 }
 0x8e9   : > { %v14910_v39 = vcombine.low %v14902_v12, %v14909_v23  ;;  %14878 = vmatpush1.bf16.msra.mxu0 %v17880_v55 }
 0x8eb   : > { %14921 = vst [vmem:[%s295_s11] sm:$0xff] %v14910_v39 }
 0x8ec   : > { %14880 = vmatmul.mubr.bf16.vlgmr.msra.gmra.mrb[12].mxu0 %v20362_v54 }
 0x9bf   : > { %v14881_v43 = vpop.f32.mrb[12].mxu0 }
 0x9c0   : > { %v14883_v5 = vpop.f32.mrb[13].mxu0 }
 0x9c1   : > { %v14911_v41 = vcombine.low %v14881_v43, %v14883_v5  ;;  %v14885_v7 = vpop.f32.mrb[14].mxu0 }
 0x9c2   : > { %v14886_v25 = vpop.f32.mrb[15].mxu0 }
 0x9c3   : > { %17003 = vst.sshfl [vmem:[%s295_s11 + $0x8] sm:$0x33 pattern:$0x76325410] %v14911_v41 }
 0x9c4 PF: > { %p17_p0 = scmp.ge.s32.totalorder %s18072_s20, 4   ;;  %s20549_s15 = smov %s18005_s16 }
 0x9c5   : > { %s20550_s16 = smov %s18009_s17  ;;  %s20551_s17 = smov %s18082_s23 }
 0x9c6   : > { %s20552_s18 = smov %s18072_s20  ;;  %19 = sbr.rel (!%p17_p0) target bundleno = 5 (0x5), region = 100 }
 0x9cd   :  { %14944 = vsyncpa [#allocation3], 1 }
 0x9ce   :  { %14946 = vsyncpa [#allocation3 + $0x1], 1 }
 0x9cf   :  { %14947 = vsyncpa [#allocation5], 1 }
 0x9d0   :  { %14949 = vsyncpa [#allocation5 + $0x1], 1 }

</bundles_post_ra>
